<compile_context>
chip_gen: v7x
topology: tpu7x:2x2x1
jax: 0.10.0
libtpu: 0.0.40
codegen_flags: <defaults>
</compile_context>

<pallas_src>
import functools

import jax
import jax.numpy as jnp
from jax.experimental import pallas as pl
from jax.experimental.pallas import tpu as pltpu

LANE = 128  # TPU lane width

# Fixed model dimensions (from the PyTorch module).
D_EIF = 2048   # eif input
D_H1 = 2048    # eif layer-1 out
D_H2 = 512     # eif layer-2 out
D_H3 = 256     # eif layer-3 out
D_EOUT = 100   # eif layer-4 out
D_FF = 35      # ff input
D_F1 = 60      # ff layer-1 out
D_FOUT = 10    # ff layer-2 out


def _round_up(v, m):
    return ((v + m - 1) // m) * m


# ---------------------------------------------------------------------------
# Fused Pallas kernel: entire forward pass, everything resident in VMEM.
#
# Packed-weight buffer `wsm` (bf16, 1024 x >=256), row layout:
#   [   0: 512)  w3                  (512, 256)
#   [ 512: 768)  w4' = w4 @ Wc[:100] (256, ncp)   zero-padded cols
#   [ 768: 896)  wf1                 (35->128, 60->128) zero-padded
#   [ 896:1024)  wf2' = wf2 @ Wc[100:110] (60->128, ncp) zero-padded
# Packed scalar buffer `sc` (f32, 8 x 2048), rows:
#   0: b1   1: b2   2: b3   3: bf1(pad)   4: fused classifier bias   5: w1 scale
# ---------------------------------------------------------------------------
def _fused_model_kernel(xe_ref, xf_ref, w1_ref, w2_ref, wsm_ref, sc_ref,
                        o_ref, xfp_ref):
    ncp = o_ref.shape[1]

    # ---- in-kernel input prep (no wrapper-side pad/convert ops) ----
    xe = xe_ref[...].astype(jnp.bfloat16)                       # (B, 2048)

    xfp_ref[...] = jnp.zeros_like(xfp_ref)                      # (B, 128) f32
    xfp_ref[:, 0:D_FF] = xf_ref[...]                            # masked lane store
    xf = xfp_ref[...].astype(jnp.bfloat16)                      # cols 35: == 0

    # ---- eif branch ----
    # layer 1: int8 weights; per-output-channel scale applied to the f32 acc.
    # i8 -> f32 -> bf16 is lossless (|q| <= 127), MXU stays bf16 on all gens.
    w1 = w1_ref[...].astype(jnp.float32).astype(jnp.bfloat16)
    h = jnp.dot(xe, w1, preferred_element_type=jnp.float32)
    h = h * sc_ref[5:6, :] + sc_ref[0:1, :]
    h = jnp.maximum(h, 0.0).astype(jnp.bfloat16)                # (B, 2048)

    h = jnp.dot(h, w2_ref[...], preferred_element_type=jnp.float32)
    h = h + sc_ref[1:2, 0:D_H2]
    h = jnp.maximum(h, 0.0).astype(jnp.bfloat16)                # (B, 512)

    h = jnp.dot(h, wsm_ref[0:512, 0:256], preferred_element_type=jnp.float32)
    h = h + sc_ref[2:3, 0:D_H3]
    h = jnp.maximum(h, 0.0).astype(jnp.bfloat16)                # (B, 256)

    # layer 4 folded with the classifier (no nonlinearity in between).
    logits = jnp.dot(h, wsm_ref[512:768, 0:ncp],
                     preferred_element_type=jnp.float32)        # (B, ncp)

    # ---- ff branch ----
    g = jnp.dot(xf, wsm_ref[768:896, 0:LANE],
                preferred_element_type=jnp.float32)
    g = g + sc_ref[3:4, 0:LANE]
    g = jnp.maximum(g, 0.0).astype(jnp.bfloat16)                # cols 60: == 0

    logits = logits + jnp.dot(g, wsm_ref[896:1024, 0:ncp],
                              preferred_element_type=jnp.float32)
    logits = logits + sc_ref[4:5, 0:ncp]

    # numerically-stable sigmoid (exp only ever sees non-positive args)
    z = jnp.exp(-jnp.abs(logits))
    o_ref[...] = jnp.where(logits >= 0, 1.0, z) / (1.0 + z)


# ---------------------------------------------------------------------------
# Parameters: PyTorch-style init, then one-time fold/quantize/pack for TPU.
# ---------------------------------------------------------------------------
def init_linear_params(key, fan_in, fan_out):
    """PyTorch default Linear init: U(-1/sqrt(fan_in), 1/sqrt(fan_in))."""
    kw, kb = jax.random.split(key)
    bound = 1.0 / jnp.sqrt(jnp.float32(fan_in))
    w = jax.random.uniform(kw, (fan_in, fan_out), jnp.float32, -bound, bound)
    b = jax.random.uniform(kb, (fan_out,), jnp.float32, -bound, bound)
    return w, b


def init_params(key, num_classes=1):
    keys = jax.random.split(key, 7)
    return {
        "eif": [
            init_linear_params(keys[0], D_EIF, D_H1),
            init_linear_params(keys[1], D_H1, D_H2),
            init_linear_params(keys[2], D_H2, D_H3),
            init_linear_params(keys[3], D_H3, D_EOUT),
        ],
        "ff": [
            init_linear_params(keys[4], D_FF, D_F1),
            init_linear_params(keys[5], D_F1, D_FOUT),
        ],
        "cls": init_linear_params(keys[6], D_EOUT + D_FOUT, num_classes),
        "num_classes": num_classes,
    }


def prepare_params(params):
    """One-time (outside the hot path) fold + quantize + pack of all weights."""
    (w1, b1), (w2, b2), (w3, b3), (w4, b4) = params["eif"]
    (wf1, bf1), (wf2, bf2) = params["ff"]
    wc, bc = params["cls"]                       # (110, nc), (nc,)
    nc = wc.shape[1]
    ncp = _round_up(max(nc, 1), LANE)

    # Offline classifier folding (exact: no nonlinearity after these layers).
    wce, wcf = wc[:D_EOUT], wc[D_EOUT:D_EOUT + D_FOUT]
    w4p = w4 @ wce                               # (256, nc)
    wf2p = wf2 @ wcf                             # (60, nc)
    bp = b4 @ wce + bf2 @ wcf + bc               # (nc,)

    # Symmetric per-output-channel int8 quantization of w1 (76% of the bytes).
    absmax = jnp.max(jnp.abs(w1), axis=0)
    s1 = jnp.where(absmax > 0, absmax / 127.0, 1.0)
    w1_i8 = jnp.clip(jnp.round(w1 / s1), -127.0, 127.0).astype(jnp.int8)

    w2_bf16 = w2.astype(jnp.bfloat16)

    # Pack the small weights into one bf16 buffer (row layout documented above).
    smc = max(256, ncp)
    wsm = jnp.zeros((1024, smc), jnp.float32)
    wsm = wsm.at[0:512, 0:256].set(w3)
    wsm = wsm.at[512:512 + D_H3, 0:nc].set(w4p)
    wsm = wsm.at[768:768 + D_FF, 0:D_F1].set(wf1)
    wsm = wsm.at[896:896 + D_F1, 0:nc].set(wf2p)
    wsm = wsm.astype(jnp.bfloat16)

    # Pack all biases + the w1 dequant scale into one small f32 buffer.
    scc = max(D_H1, ncp)
    sc = jnp.zeros((8, scc), jnp.float32)
    sc = sc.at[0, 0:D_H1].set(b1)
    sc = sc.at[1, 0:D_H2].set(b2)
    sc = sc.at[2, 0:D_H3].set(b3)
    sc = sc.at[3, 0:D_F1].set(bf1)
    sc = sc.at[4, 0:nc].set(bp)
    sc = sc.at[5, 0:D_H1].set(s1)

    return {"w1_i8": w1_i8, "w2": w2_bf16, "wsm": wsm, "sc": sc,
            "num_classes": nc, "ncp": ncp}


# ---------------------------------------------------------------------------
# Forward pass (single fused pallas_call, jitted)
# ---------------------------------------------------------------------------
@functools.partial(jax.jit, static_argnames=("ncp",))
def _fused_forward(w1_i8, w2, wsm, sc, eif, ff, *, ncp):
    B = eif.shape[0]
    vmem = pl.BlockSpec(memory_space=pltpu.MemorySpace.VMEM)

    flops = 2 * B * (D_EIF * D_H1 + D_H1 * D_H2 + D_H2 * D_H3
                     + D_H3 * ncp + LANE * LANE + LANE * ncp)
    bytes_accessed = (w1_i8.size + 2 * w2.size + 2 * wsm.size + 4 * sc.size
                      + 4 * eif.size + 4 * ff.size + 4 * B * ncp)

    return pl.pallas_call(
        _fused_model_kernel,
        out_shape=jax.ShapeDtypeStruct((B, ncp), jnp.float32),
        in_specs=[vmem] * 6,
        out_specs=vmem,
        scratch_shapes=[pltpu.VMEM((B, LANE), jnp.float32)],  # padded ff input
        compiler_params=pltpu.CompilerParams(
            # ~5.9 MiB weights + ~8 MiB dequantized-w1 temp + activations;
            # comfortable under v7x's 64 MiB physical VMEM, above the default
            # scoped limits.
            vmem_limit_bytes=48 * 1024 * 1024,
        ),
        cost_estimate=pl.CostEstimate(
            flops=flops, transcendentals=B * ncp, bytes_accessed=bytes_accessed),
    )(eif, ff, w1_i8, w2, wsm, sc)


def custom_model_forward(prep, eif, ff):
    out = _fused_forward(prep["w1_i8"], prep["w2"], prep["wsm"], prep["sc"],
                         eif.astype(jnp.float32), ff.astype(jnp.float32),
                         ncp=prep["ncp"])
    return out[:eif.shape[0], :prep["num_classes"]]


# ---------------------------------------------------------------------------
# Plain-JAX reference (f32) for correctness checking
# ---------------------------------------------------------------------------
def reference_forward(params, eif, ff):
    h = eif
    for i, (w, b) in enumerate(params["eif"]):
        h = h @ w + b
        if i < len(params["eif"]) - 1:
            h = jnp.maximum(h, 0.0)
    g = ff
    for i, (w, b) in enumerate(params["ff"]):
        g = g @ w + b
        if i < len(params["ff"]) - 1:
            g = jnp.maximum(g, 0.0)
    feats = jnp.concatenate([h, g], axis=1)
    wc, bc = params["cls"]
    return jax.nn.sigmoid(feats @ wc + bc)


if __name__ == "__main__":
    key = jax.random.PRNGKey(0)
    k_params, k_eif, k_ff = jax.random.split(key, 3)

    batch = 8
    num_classes = 1
    params = init_params(k_params, num_classes=num_classes)
    prep = prepare_params(params)   # one-time fold/quantize/pack (off hot path)

    eif = jax.random.normal(k_eif, (batch, D_EIF), jnp.float32)
    ff = jax.random.normal(k_ff, (batch, D_FF), jnp.float32)

    out = jax.block_until_ready(custom_model_forward(prep, eif, ff))

    assert out.shape == (batch, num_classes)
    assert bool(jnp.all((out >= 0.0) & (out <= 1.0)))

    # bf16 activations + int8 w1 vs f32 reference: tolerance on sigmoid output
    ref = reference_forward(params, eif, ff)
    max_err = float(jnp.max(jnp.abs(out - ref)))
    assert max_err < 0.05, f"max abs error vs f32 reference: {max_err}"

    print("KERNEL_OK")
</pallas_src>

<mosaic_0001>
module attributes {stable_mosaic.version = 11 : i64} {
  func.func @_fused_model_kernel(%arg0: memref<8x2048xf32, #tpu.memory_space<vmem>>, %arg1: memref<8x35xf32, #tpu.memory_space<vmem>>, %arg2: memref<2048x2048xi8, #tpu.memory_space<vmem>>, %arg3: memref<2048x512xbf16, #tpu.memory_space<vmem>>, %arg4: memref<1024x256xbf16, #tpu.memory_space<vmem>>, %arg5: memref<8x2048xf32, #tpu.memory_space<vmem>>, %arg6: memref<8x128xf32, #tpu.memory_space<vmem>>, %arg7: memref<8x128xf32, #tpu.memory_space<vmem>>) attributes {dimension_semantics = [], scalar_prefetch = 0 : i64, scratch_operands = 1 : i64, tpu.core_type = #tpu.core_type<tc>} {
    %c0 = arith.constant 0 : index
    %c0_0 = arith.constant 0 : index
    %0 = vector.load %arg0[%c0, %c0_0] : memref<8x2048xf32, #tpu.memory_space<vmem>>, vector<8x2048xf32>
    %1 = arith.truncf %0 : vector<8x2048xf32> to vector<8x2048xbf16>
    %cst = arith.constant 0.000000e+00 : f32
    %2 = vector.broadcast %cst : f32 to vector<8x128xf32>
    %c0_1 = arith.constant 0 : index
    %c0_2 = arith.constant 0 : index
    %3 = vector.load %arg7[%c0_1, %c0_2] : memref<8x128xf32, #tpu.memory_space<vmem>>, vector<8x128xf32>
    tpu.vector_store %arg7[%c0_1, %c0_2], %2 {strides = array<i32>} : memref<8x128xf32, #tpu.memory_space<vmem>>, vector<8x128xf32>,
    %c0_3 = arith.constant 0 : index
    %c0_4 = arith.constant 0 : index
    %4 = vector.load %arg1[%c0_3, %c0_4] : memref<8x35xf32, #tpu.memory_space<vmem>>, vector<8x35xf32>
    %c0_5 = arith.constant 0 : index
    %c0_6 = arith.constant 0 : index
    %5 = vector.load %arg7[%c0_5, %c0_6] : memref<8x128xf32, #tpu.memory_space<vmem>>, vector<8x35xf32>
    tpu.vector_store %arg7[%c0_5, %c0_6], %4 {strides = array<i32>} : memref<8x128xf32, #tpu.memory_space<vmem>>, vector<8x35xf32>,
    %c0_7 = arith.constant 0 : index
    %c0_8 = arith.constant 0 : index
    %6 = vector.load %arg7[%c0_7, %c0_8] : memref<8x128xf32, #tpu.memory_space<vmem>>, vector<8x128xf32>
    %7 = arith.truncf %6 : vector<8x128xf32> to vector<8x128xbf16>
    %c0_9 = arith.constant 0 : index
    %c0_10 = arith.constant 0 : index
    %8 = vector.load %arg2[%c0_9, %c0_10] : memref<2048x2048xi8, #tpu.memory_space<vmem>>, vector<2048x2048xi8>
    %9 = arith.sitofp %8 : vector<2048x2048xi8> to vector<2048x2048xf32>
    %10 = arith.truncf %9 : vector<2048x2048xf32> to vector<2048x2048xbf16>
    %cst_11 = arith.constant dense<0.000000e+00> : vector<8x2048xf32>
    %11 = tpu.matmul %1, %10, %cst_11 {dimension_numbers = #tpu.dot_dimension_numbers<[1], [0], [0], [1], [0, 0, 1, 1], [], []>} : vector<8x2048xbf16>, vector<2048x2048xbf16>, vector<8x2048xf32> -> vector<8x2048xf32>
    %c5 = arith.constant 5 : index
    %c0_12 = arith.constant 0 : index
    %12 = vector.load %arg5[%c5, %c0_12] : memref<8x2048xf32, #tpu.memory_space<vmem>>, vector<1x2048xf32>
    %13 = vector.broadcast %12 : vector<1x2048xf32> to vector<8x2048xf32>
    %14 = arith.mulf %11, %13 : vector<8x2048xf32>
    %c0_13 = arith.constant 0 : index
    %c0_14 = arith.constant 0 : index
    %15 = vector.load %arg5[%c0_13, %c0_14] : memref<8x2048xf32, #tpu.memory_space<vmem>>, vector<1x2048xf32>
    %16 = vector.broadcast %15 : vector<1x2048xf32> to vector<8x2048xf32>
    %17 = arith.addf %14, %16 : vector<8x2048xf32>
    %cst_15 = arith.constant 0.000000e+00 : f32
    %18 = vector.broadcast %cst_15 : f32 to vector<8x2048xf32>
    %19 = arith.maximumf %17, %18 : vector<8x2048xf32>
    %20 = arith.truncf %19 : vector<8x2048xf32> to vector<8x2048xbf16>
    %c0_16 = arith.constant 0 : index
    %c0_17 = arith.constant 0 : index
    %21 = vector.load %arg3[%c0_16, %c0_17] : memref<2048x512xbf16, #tpu.memory_space<vmem>>, vector<2048x512xbf16>
    %cst_18 = arith.constant dense<0.000000e+00> : vector<8x512xf32>
    %22 = tpu.matmul %20, %21, %cst_18 {dimension_numbers = #tpu.dot_dimension_numbers<[1], [0], [0], [1], [0, 0, 1, 1], [], []>} : vector<8x2048xbf16>, vector<2048x512xbf16>, vector<8x512xf32> -> vector<8x512xf32>
    %c1 = arith.constant 1 : index
    %c0_19 = arith.constant 0 : index
    %23 = vector.load %arg5[%c1, %c0_19] : memref<8x2048xf32, #tpu.memory_space<vmem>>, vector<1x512xf32>
    %24 = vector.broadcast %23 : vector<1x512xf32> to vector<8x512xf32>
    %25 = arith.addf %22, %24 : vector<8x512xf32>
    %cst_20 = arith.constant 0.000000e+00 : f32
    %26 = vector.broadcast %cst_20 : f32 to vector<8x512xf32>
    %27 = arith.maximumf %25, %26 : vector<8x512xf32>
    %28 = arith.truncf %27 : vector<8x512xf32> to vector<8x512xbf16>
    %c0_21 = arith.constant 0 : index
    %c0_22 = arith.constant 0 : index
    %29 = vector.load %arg4[%c0_21, %c0_22] : memref<1024x256xbf16, #tpu.memory_space<vmem>>, vector<512x256xbf16>
    %cst_23 = arith.constant dense<0.000000e+00> : vector<8x256xf32>
    %30 = tpu.matmul %28, %29, %cst_23 {dimension_numbers = #tpu.dot_dimension_numbers<[1], [0], [0], [1], [0, 0, 1, 1], [], []>} : vector<8x512xbf16>, vector<512x256xbf16>, vector<8x256xf32> -> vector<8x256xf32>
    %c2 = arith.constant 2 : index
    %c0_24 = arith.constant 0 : index
    %31 = vector.load %arg5[%c2, %c0_24] : memref<8x2048xf32, #tpu.memory_space<vmem>>, vector<1x256xf32>
    %32 = vector.broadcast %31 : vector<1x256xf32> to vector<8x256xf32>
    %33 = arith.addf %30, %32 : vector<8x256xf32>
    %cst_25 = arith.constant 0.000000e+00 : f32
    %34 = vector.broadcast %cst_25 : f32 to vector<8x256xf32>
    %35 = arith.maximumf %33, %34 : vector<8x256xf32>
    %36 = arith.truncf %35 : vector<8x256xf32> to vector<8x256xbf16>
    %c512 = arith.constant 512 : index
    %c0_26 = arith.constant 0 : index
    %37 = vector.load %arg4[%c512, %c0_26] : memref<1024x256xbf16, #tpu.memory_space<vmem>>, vector<256x128xbf16>
    %cst_27 = arith.constant dense<0.000000e+00> : vector<8x128xf32>
    %38 = tpu.matmul %36, %37, %cst_27 {dimension_numbers = #tpu.dot_dimension_numbers<[1], [0], [0], [1], [0, 0, 1, 1], [], []>} : vector<8x256xbf16>, vector<256x128xbf16>, vector<8x128xf32> -> vector<8x128xf32>
    %c768 = arith.constant 768 : index
    %c0_28 = arith.constant 0 : index
    %39 = vector.load %arg4[%c768, %c0_28] : memref<1024x256xbf16, #tpu.memory_space<vmem>>, vector<128x128xbf16>
    %cst_29 = arith.constant dense<0.000000e+00> : vector<8x128xf32>
    %40 = tpu.matmul %7, %39, %cst_29 {dimension_numbers = #tpu.dot_dimension_numbers<[1], [0], [0], [1], [0, 0, 1, 1], [], []>} : vector<8x128xbf16>, vector<128x128xbf16>, vector<8x128xf32> -> vector<8x128xf32>
    %c3 = arith.constant 3 : index
    %c0_30 = arith.constant 0 : index
    %41 = vector.load %arg5[%c3, %c0_30] : memref<8x2048xf32, #tpu.memory_space<vmem>>, vector<1x128xf32>
    %42 = vector.broadcast %41 : vector<1x128xf32> to vector<8x128xf32>
    %43 = arith.addf %40, %42 : vector<8x128xf32>
    %cst_31 = arith.constant 0.000000e+00 : f32
    %44 = vector.broadcast %cst_31 : f32 to vector<8x128xf32>
    %45 = arith.maximumf %43, %44 : vector<8x128xf32>
    %46 = arith.truncf %45 : vector<8x128xf32> to vector<8x128xbf16>
    %c896 = arith.constant 896 : index
    %c0_32 = arith.constant 0 : index
    %47 = vector.load %arg4[%c896, %c0_32] : memref<1024x256xbf16, #tpu.memory_space<vmem>>, vector<128x128xbf16>
    %cst_33 = arith.constant dense<0.000000e+00> : vector<8x128xf32>
    %48 = tpu.matmul %46, %47, %cst_33 {dimension_numbers = #tpu.dot_dimension_numbers<[1], [0], [0], [1], [0, 0, 1, 1], [], []>} : vector<8x128xbf16>, vector<128x128xbf16>, vector<8x128xf32> -> vector<8x128xf32>
    %49 = arith.addf %38, %48 : vector<8x128xf32>
    %c4 = arith.constant 4 : index
    %c0_34 = arith.constant 0 : index
    %50 = vector.load %arg5[%c4, %c0_34] : memref<8x2048xf32, #tpu.memory_space<vmem>>, vector<1x128xf32>
    %51 = vector.broadcast %50 : vector<1x128xf32> to vector<8x128xf32>
    %52 = arith.addf %49, %51 : vector<8x128xf32>
    %53 = math.absf %52 : vector<8x128xf32>
    %cst_35 = arith.constant 0.000000e+00 : f32
    %54 = vector.broadcast %cst_35 : f32 to vector<8x128xf32>
    %55 = arith.subf %54, %53 : vector<8x128xf32>
    %56 = math.exp %55 : vector<8x128xf32>
    %cst_36 = arith.constant 0.000000e+00 : f32
    %57 = vector.broadcast %cst_36 : f32 to vector<8x128xf32>
    %58 = arith.cmpf oge, %52, %57 : vector<8x128xf32>
    %cst_37 = arith.constant 1.000000e+00 : f32
    %59 = vector.broadcast %cst_37 : f32 to vector<8x128xf32>
    %60 = arith.select %58, %59, %56 : vector<8x128xi1>, vector<8x128xf32>
    %cst_38 = arith.constant 1.000000e+00 : f32
    %61 = vector.broadcast %cst_38 : f32 to vector<8x128xf32>
    %62 = arith.addf %61, %56 : vector<8x128xf32>
    %63 = arith.divf %60, %62 : vector<8x128xf32>
    %c0_39 = arith.constant 0 : index
    %c0_40 = arith.constant 0 : index
    %64 = vector.load %arg6[%c0_39, %c0_40] : memref<8x128xf32, #tpu.memory_space<vmem>>, vector<8x128xf32>
    tpu.vector_store %arg6[%c0_39, %c0_40], %63 {strides = array<i32>} : memref<8x128xf32, #tpu.memory_space<vmem>>, vector<8x128xf32>,
    return
  }
}

</mosaic_0001>

<bundles_post_ra>
// kernel: _fused_forward.1
= control target key start
LH: loop header
LB: loop body
LE: loop exit
PB: predicated region body
PF: predicated region fallthrough
CT: control target
= control target key end

     0   :  { %11 = vsyncpa [#allocation4], 0  ;;  %s13272_s0 = inlined_call_operand.hbm [shape: f32[8,2048], index: 0, kind: input, shape index: {}]   ;;  %s13273_s1 = inlined_call_operand.hbm [shape: f32[8,35], index: 1, kind: input, shape index: {}]   ;;  %s13274_s2 = inlined_call_operand.hbm [shape: s8[2048,2048], index: 2, kind: input, shape index: {}]   ;;  %s13275_s3 = inlined_call_operand.hbm [shape: bf16[2048,512], index: 3, kind: input, shape index: {}]   ;;  %s13276_s4 = inlined_call_operand.hbm [shape: bf16[1024,256], index: 4, kind: input, shape index: {}]   ;;  %s13277_s5 = inlined_call_operand.hbm [shape: f32[8,2048], index: 5, kind: input, shape index: {}]   ;;  %s13278_s6 = inlined_call_operand.hbm [shape: f32[8,128], index: 6, kind: output, shape index: {}]  }
   0x1   :  { %12 = vsyncpa [#allocation7], 0 }
   0x2   :  { %13 = vsyncpa [#allocation10], 0 }
   0x3   :  { %14 = vsyncpa [#allocation13], 0 }
   0x4   :  { %15 = vsyncpa [#allocation5], 0  ;;  %s12785_s21 = smov [#allocation6]   ;;  %s12786_s23 = smov [#allocation9]  }
   0x5   :  { %s32_s22 = sshll.u32 %s12785_s21, 4  ;;  %s53_s24 = sshll.u32 %s12786_s23, 4  ;;  %s33_s22 = int_to_ptr.vmem [resolvable:$true] %s32_s22  ;;  %s12834_s24 = int_to_ptr.vmem [resolvable:$true] %s53_s24 }
   0x6   :  { %s12621_s27 = scalar_lea.hbm %s13273_s1, 128 }
   0x7   :  { %p12622_p0 = scmp.ne.s32.totalorder %s13273_s1, %s12621_s27  ;;  %p12625_p1 = scmp.lt.u32.totalorder %s12621_s27, %s13273_s1 }
   0x9   :  { %p12627_p2 = pnand %p12625_p1, %p12622_p0 }
   0xb   :  { %12630 = shalt.err (!%p12627_p2)
}
   0xc   :  { %s12631_s8 = scalar_lea.vmem %s33_s22, 128  ;;  %p12636_p4 = scmp.lt.s32.totalorder %s33_s22, %s33_s22 }
   0xd   :  { %p12632_p3 = scmp.ne.s32.totalorder %s33_s22, %s12631_s8  ;;  %p12637_p5 = scmp.lt.s32.totalorder %s12631_s8, %s12631_s8 }
   0xf   :  { %p12638_p6 = por %p12637_p5, %p12636_p4 }
  0x11   :  { %p12639_p7 = pnand %p12638_p6, %p12632_p3 }
  0x13   :  { %12642 = shalt.err (!%p12639_p7)
}
  0x14   :  { %35 = dma.hbm_to_vmem [thread:$0]  %s13273_s1, 128, %s33_s22, [#allocation7]  }
  0x15   :  { %s12643_s13 = scalar_lea.hbm %s13275_s3, 65536 }
  0x16   :  { %p12644_p8 = scmp.ne.s32.totalorder %s13275_s3, %s12643_s13  ;;  %p12647_p9 = scmp.lt.u32.totalorder %s12643_s13, %s13275_s3 }
  0x18   :  { %p12649_p10 = pnand %p12647_p9, %p12644_p8 }
  0x1a   :  { %12652 = shalt.err (!%p12649_p10)
}
  0x1b   :  { %s12653_s18 = scalar_lea.vmem %s12834_s24, 65536  ;;  %p12658_p12 = scmp.lt.s32.totalorder %s12834_s24, %s12834_s24 }
  0x1c   :  { %p12654_p11 = scmp.ne.s32.totalorder %s12834_s24, %s12653_s18  ;;  %p12659_p13 = scmp.lt.s32.totalorder %s12653_s18, %s12653_s18 }
  0x1e   :  { %p12660_p0 = por %p12659_p13, %p12658_p12 }
  0x20   :  { %p12661_p1 = pnand %p12660_p0, %p12654_p11 }
  0x22   :  { %12664 = shalt.err (!%p12661_p1)
}
  0x23   :  { %s12787_s1 = smov 256   ;;  %s12788_s19 = smov 16  }
  0x24   :  { %59 = dma.hbm_to_vmem [thread:$0]  %s13275_s3, 65536, %s12834_s24, [#allocation10], %s12787_s1, %s12787_s1, %s12788_s19  }
  0x25   :  { %s12789_s22 = smov [#allocation3]   ;;  %s12790_s25 = smov [#allocation8]  }
  0x26   :  { %s22_s23 = sshll.u32 %s12789_s22, 4  ;;  %s41_s26 = sshll.u32 %s12790_s25, 4  ;;  %s23_s23 = int_to_ptr.vmem [resolvable:$true] %s22_s23  ;;  %s12865_s26 = int_to_ptr.vmem [resolvable:$true] %s41_s26 }
  0x27   :  { %s12665_s29 = scalar_lea.hbm %s13272_s0, 2048 }
  0x28   :  { %p12666_p2 = scmp.ne.s32.totalorder %s13272_s0, %s12665_s29  ;;  %p12669_p3 = scmp.lt.u32.totalorder %s12665_s29, %s13272_s0 }
  0x2a   :  { %p12671_p4 = pnand %p12669_p3, %p12666_p2 }
  0x2c   :  { %12674 = shalt.err (!%p12671_p4)
}
  0x2d   :  { %s12675_s3 = scalar_lea.vmem %s23_s23, 2048  ;;  %p12680_p6 = scmp.lt.s32.totalorder %s23_s23, %s23_s23 }
  0x2e   :  { %p12676_p5 = scmp.ne.s32.totalorder %s23_s23, %s12675_s3  ;;  %p12681_p7 = scmp.lt.s32.totalorder %s12675_s3, %s12675_s3 }
  0x30   :  { %p12682_p8 = por %p12681_p7, %p12680_p6 }
  0x32   :  { %p12683_p9 = pnand %p12682_p8, %p12676_p5 }
  0x34   :  { %12686 = shalt.err (!%p12683_p9)
}
  0x35   :  { %25 = dma.hbm_to_vmem [thread:$0]  %s13272_s0, 2048, %s23_s23, [#allocation4]  }
  0x36   :  { %s12687_s13 = scalar_lea.hbm %s13274_s2, 131072 }
  0x37   :  { %p12688_p10 = scmp.ne.s32.totalorder %s13274_s2, %s12687_s13  ;;  %p12691_p11 = scmp.lt.u32.totalorder %s12687_s13, %s13274_s2 }
  0x39   :  { %p12693_p12 = pnand %p12691_p11, %p12688_p10 }
  0x3b   :  { %12696 = shalt.err (!%p12693_p12)
}
  0x3c   :  { %s12697_s18 = scalar_lea.vmem %s12865_s26, 131072  ;;  %p12702_p0 = scmp.lt.s32.totalorder %s12865_s26, %s12865_s26 }
  0x3d   :  { %p12698_p13 = scmp.ne.s32.totalorder %s12865_s26, %s12697_s18  ;;  %p12703_p1 = scmp.lt.s32.totalorder %s12697_s18, %s12697_s18 }
  0x3f   :  { %p12704_p2 = por %p12703_p1, %p12702_p0 }
  0x41   :  { %p12705_p3 = pnand %p12704_p2, %p12698_p13 }
  0x43   :  { %12708 = shalt.err (!%p12705_p3)
}
  0x44   :  { %s12791_s0 = smov 2048   ;;  %s12792_s1 = smov 128  }
  0x45   :  { %47 = dma.hbm_to_vmem [thread:$0]  %s13274_s2, 131072, %s12865_s26, [#allocation7], %s12791_s0, %s12791_s0, %s12792_s1  }
  0x46   :  { %s12793_s21 = smov [#allocation11]   ;;  %s12794_s23 = smov [#allocation12]  }
  0x47   :  { %s65_s22 = sshll.u32 %s12793_s21, 4  ;;  %s78_s25 = sshll.u32 %s12794_s23, 4  ;;  %s66_s22 = int_to_ptr.vmem [resolvable:$true] %s65_s22  ;;  %s79_s25 = int_to_ptr.vmem [resolvable:$true] %s78_s25 }
  0x48   :  { %s12709_s29 = scalar_lea.hbm %s13276_s4, 16384 }
  0x49   :  { %p12710_p4 = scmp.ne.s32.totalorder %s13276_s4, %s12709_s29  ;;  %p12713_p5 = scmp.lt.u32.totalorder %s12709_s29, %s13276_s4 }
  0x4b   :  { %p12715_p6 = pnand %p12713_p5, %p12710_p4 }
  0x4d   :  { %12718 = shalt.err (!%p12715_p6)
}
  0x4e   :  { %s12719_s2 = scalar_lea.vmem %s66_s22, 16384  ;;  %p12724_p8 = scmp.lt.s32.totalorder %s66_s22, %s66_s22 }
  0x4f   :  { %p12720_p7 = scmp.ne.s32.totalorder %s66_s22, %s12719_s2  ;;  %p12725_p9 = scmp.lt.s32.totalorder %s12719_s2, %s12719_s2 }
  0x51   :  { %p12726_p10 = por %p12725_p9, %p12724_p8 }
  0x53   :  { %p12727_p11 = pnand %p12726_p10, %p12720_p7 }
  0x55   :  { %12730 = shalt.err (!%p12727_p11)
}
  0x56   :  { %s12795_s26 = smov 8   ;;  %s12731_s12 = scalar_lea.hbm %s13277_s5, 2048 }
  0x57   :  { %71 = dma.hbm_to_vmem [thread:$0]  %s13276_s4, 16384, %s66_s22, [#allocation10], %s12792_s1, %s12792_s1, %s12795_s26  }
  0x58   :  { %p12732_p12 = scmp.ne.s32.totalorder %s13277_s5, %s12731_s12  ;;  %p12735_p13 = scmp.lt.u32.totalorder %s12731_s12, %s13277_s5 }
  0x5a   :  { %p12737_p0 = pnand %p12735_p13, %p12732_p12 }
  0x5c   :  { %12740 = shalt.err (!%p12737_p0)
}
  0x5d   :  { %s12741_s17 = scalar_lea.vmem %s79_s25, 2048  ;;  %p12746_p2 = scmp.lt.s32.totalorder %s79_s25, %s79_s25 }
  0x5e   :  { %p12742_p1 = scmp.ne.s32.totalorder %s79_s25, %s12741_s17  ;;  %p12747_p3 = scmp.lt.s32.totalorder %s12741_s17, %s12741_s17 }
  0x60   :  { %p12748_p4 = por %p12747_p3, %p12746_p2 }
  0x62   :  { %p12749_p5 = pnand %p12748_p4, %p12742_p1 }
  0x64   :  { %12752 = shalt.err (!%p12749_p5)
}
  0x65   :  { %81 = dma.hbm_to_vmem [thread:$0]  %s13277_s5, 2048, %s79_s25, [#allocation13]  }
  0x66   :  { %12775 = dma.done.wait [#allocation4], 2048  }
  0x67   :  { %12776 = vsyncadd [#allocation4], 4294965248 }
  0x68   :  { %12777 = dma.done.wait [#allocation7], 131200  }
  0x69   :  { %12778 = vsyncadd [#allocation7], 4294836096 }
  0x6a   :  { %12779 = dma.done.wait [#allocation10], 81920  }
  0x6b   :  { %12780 = vsyncadd [#allocation10], 4294885376 }
  0x6c   :  { %12781 = dma.done.wait [#allocation13], 2048  }
  0x6d   :  { %12782 = vsyncadd [#allocation13], 4294965248  ;;  %v140_v0 = vld [vmem:[#allocation8 + $0x8] sm:$0xff]  ;;  %v142_v1 = vld [vmem:[#allocation8 + $0x18] sm:$0xff]  ;;  %vm135_vm0 = vcmask 285696   ;;  %vm12797_vm1 = vmmov 0  }
  0x6e   :  { %v139_v2 = vld [vmem:[#allocation8] sm:$0xff]  ;;  %v1164_v3 = vunpack.c.l.s8.bf16 %v140_v0  ;;  %v1180_v4 = vunpack.c.h.s8.bf16 %v140_v0  ;;  %v1166_v5 = vunpack.c.l.s8.bf16 %v142_v1  ;;  %v1182_v6 = vunpack.c.h.s8.bf16 %v142_v1  ;;  %v141_v7 = vld [vmem:[#allocation8 + $0x10] sm:$0xff]  ;;  %v156_v10 = vld [vmem:[#allocation8 + $0x88] sm:$0xff]  ;;  %s12798_s5 = smov [#allocation14]  }
  0x6f   :  { %v1163_v8 = vunpack.c.l.s8.bf16 %v139_v2  ;;  %v1165_v9 = vunpack.c.l.s8.bf16 %v141_v7  ;;  %v158_v11 = vld [vmem:[#allocation8 + $0x98] sm:$0xff]  ;;  %v1179_v12 = vunpack.c.h.s8.bf16 %v139_v2  ;;  %v1181_v13 = vunpack.c.h.s8.bf16 %v141_v7  ;;  %v155_v16 = vld [vmem:[#allocation8 + $0x80] sm:$0xff]  ;;  %v157_v17 = vld [vmem:[#allocation8 + $0x90] sm:$0xff]  ;;  %s10717_s0 = sshll.u32 %s12798_s5, 4  ;;  %s10718_s0 = int_to_ptr.vmem [resolvable:$true] %s10717_s0 }
  0x70   :  { %3211 = vmatprep.subr.bf16.mxu0 %v1164_v3  ;;  %3539 = vmatprep.subr.bf16.mxu1 %v1166_v5  ;;  %v1196_v14 = vunpack.c.l.s8.bf16 %v156_v10  ;;  %v1198_v15 = vunpack.c.l.s8.bf16 %v158_v11  ;;  %v1195_v18 = vunpack.c.l.s8.bf16 %v155_v16  ;;  %v1197_v19 = vunpack.c.l.s8.bf16 %v157_v17  ;;  %v172_v22 = vld [vmem:[#allocation8 + $0x108] sm:$0xff]  ;;  %v174_v23 = vld [vmem:[#allocation8 + $0x118] sm:$0xff]  ;;  %v171_v28 = vld [vmem:[#allocation8 + $0x100] sm:$0xff]  ;;  %s12753_s1 = scalar_lea.vmem %s10718_s0, 128  ;;  %p12758_p7 = scmp.lt.s32.totalorder %s10718_s0, %s10718_s0 }
  0x71   :  { %3212 = vmatpush1.bf16.msra.mxu0 %v1163_v8  ;;  %3540 = vmatpush1.bf16.msra.mxu1 %v1165_v9  ;;  %v1212_v20 = vunpack.c.h.s8.bf16 %v156_v10  ;;  %v1214_v21 = vunpack.c.h.s8.bf16 %v158_v11  ;;  %v1211_v24 = vunpack.c.h.s8.bf16 %v155_v16  ;;  %v1213_v25 = vunpack.c.h.s8.bf16 %v157_v17  ;;  %v173_v29 = vld [vmem:[#allocation8 + $0x110] sm:$0xff]  ;;  %v102_v30 = vld [vmem:[#allocation3 + $0x8] sm:$0xff]  ;;  %v188_v36 = vld [vmem:[#allocation8 + $0x188] sm:$0xff]  ;;  %p12754_p6 = scmp.ne.s32.totalorder %s10718_s0, %s12753_s1  ;;  %p12759_p8 = scmp.lt.s32.totalorder %s12753_s1, %s12753_s1 }
  0x72   :  { %3213 = vmatprep.subr.bf16.mxu0 %v1180_v4  ;;  %3541 = vmatprep.subr.bf16.mxu1 %v1182_v6  ;;  %v1228_v26 = vunpack.c.l.s8.bf16 %v172_v22  ;;  %v1230_v27 = vunpack.c.l.s8.bf16 %v174_v23  ;;  %v1227_v31 = vunpack.c.l.s8.bf16 %v171_v28  ;;  %v1229_v32 = vunpack.c.l.s8.bf16 %v173_v29  ;;  %v190_v37 = vld [vmem:[#allocation8 + $0x198] sm:$0xff]  ;;  %v187_v42 = vld [vmem:[#allocation8 + $0x180] sm:$0xff]  ;;  %v189_v43 = vld [vmem:[#allocation8 + $0x190] sm:$0xff] }
  0x73   :  { %v1244_v33 = vunpack.c.h.s8.bf16 %v172_v22  ;;  %v1246_v34 = vunpack.c.h.s8.bf16 %v174_v23  ;;  %v12920_v35 = vpack.c.bf16 %v102_v30, %v102_v30  ;;  %v1243_v38 = vunpack.c.h.s8.bf16 %v171_v28  ;;  %v204_v48 = vld [vmem:[#allocation8 + $0x208] sm:$0xff]  ;;  %v206_v49 = vld [vmem:[#allocation8 + $0x218] sm:$0xff]  ;;  %v203_v50 = vld [vmem:[#allocation8 + $0x200] sm:$0xff]  ;;  %p12760_p9 = por %p12759_p8, %p12758_p7 }
  0x74   :  { %v1245_v39 = vunpack.c.h.s8.bf16 %v173_v29  ;;  %v1260_v40 = vunpack.c.l.s8.bf16 %v188_v36  ;;  %v1262_v41 = vunpack.c.l.s8.bf16 %v190_v37  ;;  %v1259_v44 = vunpack.c.l.s8.bf16 %v187_v42  ;;  %v205_v51 = vld [vmem:[#allocation8 + $0x210] sm:$0xff]  ;;  %v220_v60 = vld [vmem:[#allocation8 + $0x288] sm:$0xff]  ;;  %v222_v61 = vld [vmem:[#allocation8 + $0x298] sm:$0xff] }
  0x75   :  { %3214 = vmatpush1.bf16.msra.mxu0 %v1179_v12  ;;  %3542 = vmatpush1.bf16.msra.mxu1 %v1181_v13  ;;  %v1261_v45 = vunpack.c.l.s8.bf16 %v189_v43  ;;  %v1276_v46 = vunpack.c.h.s8.bf16 %v188_v36  ;;  %v1278_v47 = vunpack.c.h.s8.bf16 %v190_v37  ;;  %v1275_v52 = vunpack.c.h.s8.bf16 %v187_v42  ;;  %v219_v62 = vld [vmem:[#allocation8 + $0x280] sm:$0xff]  ;;  %v221_v63 = vld [vmem:[#allocation8 + $0x290] sm:$0xff]  ;;  %v236_v8 = vld [vmem:[#allocation8 + $0x308] sm:$0xff]  ;;  %p12761_p10 = pnand %p12760_p9, %p12754_p6 }
  0x76   :  { %3215 = vmatprep.subr.bf16.mxu0 %v1196_v14  ;;  %3543 = vmatprep.subr.bf16.mxu1 %v1198_v15  ;;  %v1277_v53 = vunpack.c.h.s8.bf16 %v189_v43  ;;  %v1292_v54 = vunpack.c.l.s8.bf16 %v204_v48  ;;  %v1294_v55 = vunpack.c.l.s8.bf16 %v206_v49  ;;  %v1291_v56 = vunpack.c.l.s8.bf16 %v203_v50  ;;  %v238_v9 = vld [vmem:[#allocation8 + $0x318] sm:$0xff]  ;;  %v235_v10 = vld [vmem:[#allocation8 + $0x300] sm:$0xff]  ;;  %v237_v11 = vld [vmem:[#allocation8 + $0x310] sm:$0xff] }
  0x77   :  { %3243 = vmatprep.mubr.bf16.mxu0 %v12920_v35  ;;  %3571 = vmatprep.mubr.bf16.mxu1 %v12920_v35  ;;  %v1293_v57 = vunpack.c.l.s8.bf16 %v205_v51  ;;  %v1308_v58 = vunpack.c.h.s8.bf16 %v204_v48  ;;  %v1310_v59 = vunpack.c.h.s8.bf16 %v206_v49  ;;  %v1307_v0 = vunpack.c.h.s8.bf16 %v203_v50  ;;  %v251_v22 = vld [vmem:[#allocation8 + $0x380] sm:$0xff]  ;;  %v253_v23 = vld [vmem:[#allocation8 + $0x390] sm:$0xff]  ;;  %v284_v48 = vld [vmem:[#allocation8 + $0x488] sm:$0xff] }
  0x78   :  { %v1309_v1 = vunpack.c.h.s8.bf16 %v205_v51  ;;  %v1324_v2 = vunpack.c.l.s8.bf16 %v220_v60  ;;  %v1326_v3 = vunpack.c.l.s8.bf16 %v222_v61  ;;  %v1323_v4 = vunpack.c.l.s8.bf16 %v219_v62  ;;  %v267_v36 = vld [vmem:[#allocation8 + $0x400] sm:$0xff]  ;;  %v269_v37 = vld [vmem:[#allocation8 + $0x410] sm:$0xff]  ;;  %v286_v49 = vld [vmem:[#allocation8 + $0x498] sm:$0xff] }
  0x79   :  { %3216 = vmatpush1.bf16.msra.mxu0 %v1195_v18  ;;  %3544 = vmatpush1.bf16.msra.mxu1 %v1197_v19  ;;  %v1325_v5 = vunpack.c.l.s8.bf16 %v221_v63  ;;  %v1340_v6 = vunpack.c.h.s8.bf16 %v220_v60  ;;  %v1342_v7 = vunpack.c.h.s8.bf16 %v222_v61  ;;  %v1339_v12 = vunpack.c.h.s8.bf16 %v219_v62  ;;  %v104_v42 = vld [vmem:[#allocation3 + $0x18] sm:$0xff]  ;;  %v283_v51 = vld [vmem:[#allocation8 + $0x480] sm:$0xff]  ;;  %v300_v61 = vld [vmem:[#allocation8 + $0x508] sm:$0xff] }
  0x7a   :  { %3217 = vmatprep.subr.bf16.mxu0 %v1212_v20  ;;  %3545 = vmatprep.subr.bf16.mxu1 %v1214_v21  ;;  %v1341_v13 = vunpack.c.h.s8.bf16 %v221_v63  ;;  %v1356_v14 = vunpack.c.l.s8.bf16 %v236_v8  ;;  %v1358_v15 = vunpack.c.l.s8.bf16 %v238_v9  ;;  %v1355_v16 = vunpack.c.l.s8.bf16 %v235_v10  ;;  %v252_v20 = vld [vmem:[#allocation8 + $0x388] sm:$0xff]  ;;  %v254_v21 = vld [vmem:[#allocation8 + $0x398] sm:$0xff]  ;;  %v299_v63 = vld [vmem:[#allocation8 + $0x500] sm:$0xff] }
  0x7b   :  { %v1357_v17 = vunpack.c.l.s8.bf16 %v237_v11  ;;  %v1372_v18 = vunpack.c.h.s8.bf16 %v236_v8  ;;  %v1374_v19 = vunpack.c.h.s8.bf16 %v238_v9  ;;  %v1387_v28 = vunpack.c.l.s8.bf16 %v251_v22  ;;  %v302_v62 = vld [vmem:[#allocation8 + $0x518] sm:$0xff]  ;;  %v316_v9 = vld [vmem:[#allocation8 + $0x588] sm:$0xff] }
  0x7c   :  { %v1389_v29 = vunpack.c.l.s8.bf16 %v253_v23  ;;  %v1404_v30 = vunpack.c.h.s8.bf16 %v252_v20  ;;  %v12926_v50 = vpack.c.bf16 %v104_v42, %v104_v42  ;;  %v1470_v60 = vunpack.c.h.s8.bf16 %v286_v49 }
  0x7d   :  { %3218 = vmatpush1.bf16.msra.mxu0 %v1211_v24  ;;  %3546 = vmatpush1.bf16.msra.mxu1 %v1213_v25  ;;  %v1371_v24 = vunpack.c.h.s8.bf16 %v235_v10  ;;  %v1373_v25 = vunpack.c.h.s8.bf16 %v237_v11  ;;  %v1502_v8 = vunpack.c.h.s8.bf16 %v302_v62  ;;  %v318_v10 = vld [vmem:[#allocation8 + $0x598] sm:$0xff]  ;;  %v315_v11 = vld [vmem:[#allocation8 + $0x580] sm:$0xff] }
  0x7e   :  { %3219 = vmatprep.subr.bf16.mxu0 %v1228_v26  ;;  %3547 = vmatprep.subr.bf16.mxu1 %v1230_v27  ;;  %v1388_v26 = vunpack.c.l.s8.bf16 %v252_v20  ;;  %v1390_v27 = vunpack.c.l.s8.bf16 %v254_v21  ;;  %v1534_v20 = vunpack.c.h.s8.bf16 %v318_v10 }
  0x81   :  { %3220 = vmatpush1.bf16.msra.mxu0 %v1227_v31  ;;  %3548 = vmatpush1.bf16.msra.mxu1 %v1229_v32  ;;  %v1406_v31 = vunpack.c.h.s8.bf16 %v254_v21  ;;  %v268_v32 = vld [vmem:[#allocation8 + $0x408] sm:$0xff] }
  0x82   :  { %3221 = vmatprep.subr.bf16.mxu0 %v1244_v33  ;;  %3549 = vmatprep.subr.bf16.mxu1 %v1246_v34  ;;  %v270_v33 = vld [vmem:[#allocation8 + $0x418] sm:$0xff]  ;;  %v332_v21 = vld [vmem:[#allocation8 + $0x608] sm:$0xff] }
  0x83   :  { %v101_v34 = vld [vmem:[#allocation3] sm:$0xff] }
  0x84   :  { %v12924_v43 = vpack.c.bf16 %v101_v34, %v101_v34  ;;  %v350_v34 = vld [vmem:[#allocation8 + $0x698] sm:$0xff] }
  0x85   :  { %3222 = vmatpush1.bf16.msra.mxu0 %v1243_v38  ;;  %3550 = vmatpush1.bf16.msra.mxu1 %v1245_v39  ;;  %v1403_v38 = vunpack.c.h.s8.bf16 %v251_v22  ;;  %v1405_v39 = vunpack.c.h.s8.bf16 %v253_v23  ;;  %v334_v22 = vld [vmem:[#allocation8 + $0x618] sm:$0xff]  ;;  %v331_v23 = vld [vmem:[#allocation8 + $0x600] sm:$0xff] }
  0x86   :  { %3223 = vmatprep.subr.bf16.mxu0 %v1260_v40  ;;  %3551 = vmatprep.subr.bf16.mxu1 %v1262_v41  ;;  %v1420_v40 = vunpack.c.l.s8.bf16 %v268_v32  ;;  %v1422_v41 = vunpack.c.l.s8.bf16 %v270_v33 }
  0x89   :  { %3224 = vmatpush1.bf16.msra.mxu0 %v1259_v44  ;;  %3552 = vmatpush1.bf16.msra.mxu1 %v1261_v45  ;;  %v1419_v44 = vunpack.c.l.s8.bf16 %v267_v36  ;;  %v1421_v45 = vunpack.c.l.s8.bf16 %v269_v37 }
  0x8a   :  { %3225 = vmatprep.subr.bf16.mxu0 %v1276_v46  ;;  %3553 = vmatprep.subr.bf16.mxu1 %v1278_v47  ;;  %v1436_v46 = vunpack.c.h.s8.bf16 %v268_v32  ;;  %v1438_v47 = vunpack.c.h.s8.bf16 %v270_v33  ;;  %v1566_v32 = vunpack.c.h.s8.bf16 %v334_v22  ;;  %v348_v33 = vld [vmem:[#allocation8 + $0x688] sm:$0xff] }
  0x8d   :  { %3226 = vmatpush1.bf16.msra.mxu0 %v1275_v52  ;;  %3554 = vmatpush1.bf16.msra.mxu1 %v1277_v53  ;;  %v285_v52 = vld [vmem:[#allocation8 + $0x490] sm:$0xff]  ;;  %v1435_v53 = vunpack.c.h.s8.bf16 %v267_v36  ;;  %v347_v36 = vld [vmem:[#allocation8 + $0x680] sm:$0xff] }
  0x8e   :  { %3227 = vmatprep.subr.bf16.mxu0 %v1292_v54  ;;  %3555 = vmatprep.subr.bf16.mxu1 %v1294_v55  ;;  %v1437_v54 = vunpack.c.h.s8.bf16 %v269_v37  ;;  %v1452_v55 = vunpack.c.l.s8.bf16 %v284_v48  ;;  %v349_v37 = vld [vmem:[#allocation8 + $0x690] sm:$0xff]  ;;  %v1579_v42 = vunpack.c.l.s8.bf16 %v347_v36 }
  0x91   :  { %3228 = vmatpush1.bf16.msra.mxu0 %v1291_v56  ;;  %3556 = vmatpush1.bf16.msra.mxu1 %v1293_v57  ;;  %v1454_v56 = vunpack.c.l.s8.bf16 %v286_v49  ;;  %v1451_v57 = vunpack.c.l.s8.bf16 %v283_v51  ;;  %v363_v49 = vld [vmem:[#allocation8 + $0x700] sm:$0xff] }
  0x92   :  { %3229 = vmatprep.subr.bf16.mxu0 %v1308_v58  ;;  %3557 = vmatprep.subr.bf16.mxu1 %v1310_v59  ;;  %v1453_v58 = vunpack.c.l.s8.bf16 %v285_v52  ;;  %v1468_v59 = vunpack.c.h.s8.bf16 %v284_v48  ;;  %v366_v48 = vld [vmem:[#allocation8 + $0x718] sm:$0xff] }
  0x95   :  { %3230 = vmatpush1.bf16.msra.mxu0 %v1307_v0  ;;  %3558 = vmatpush1.bf16.msra.mxu1 %v1309_v1  ;;  %v301_v0 = vld [vmem:[#allocation8 + $0x510] sm:$0xff]  ;;  %v1467_v1 = vunpack.c.h.s8.bf16 %v283_v51 }
  0x96   :  { %3231 = vmatprep.subr.bf16.mxu0 %v1324_v2  ;;  %3559 = vmatprep.subr.bf16.mxu1 %v1326_v3  ;;  %v1469_v2 = vunpack.c.h.s8.bf16 %v285_v52  ;;  %v1484_v3 = vunpack.c.l.s8.bf16 %v300_v61  ;;  %v365_v51 = vld [vmem:[#allocation8 + $0x710] sm:$0xff]  ;;  %v1595_v52 = vunpack.c.h.s8.bf16 %v347_v36 }
  0x99   :  { %3232 = vmatpush1.bf16.msra.mxu0 %v1323_v4  ;;  %3560 = vmatpush1.bf16.msra.mxu1 %v1325_v5  ;;  %v1486_v4 = vunpack.c.l.s8.bf16 %v302_v62  ;;  %v1483_v5 = vunpack.c.l.s8.bf16 %v299_v63  ;;  %v379_v62 = vld [vmem:[#allocation8 + $0x780] sm:$0xff] }
  0x9a   :  { %3233 = vmatprep.subr.bf16.mxu0 %v1340_v6  ;;  %3561 = vmatprep.subr.bf16.mxu1 %v1342_v7  ;;  %v1485_v6 = vunpack.c.l.s8.bf16 %v301_v0  ;;  %v1500_v7 = vunpack.c.h.s8.bf16 %v300_v61  ;;  %v382_v61 = vld [vmem:[#allocation8 + $0x798] sm:$0xff] }
  0x9d   :  { %3234 = vmatpush1.bf16.msra.mxu0 %v1339_v12  ;;  %3562 = vmatpush1.bf16.msra.mxu1 %v1341_v13  ;;  %v317_v12 = vld [vmem:[#allocation8 + $0x590] sm:$0xff]  ;;  %v1499_v13 = vunpack.c.h.s8.bf16 %v299_v63 }
  0x9e   :  { %3235 = vmatprep.subr.bf16.mxu0 %v1356_v14  ;;  %3563 = vmatprep.subr.bf16.mxu1 %v1358_v15  ;;  %v1501_v14 = vunpack.c.h.s8.bf16 %v301_v0  ;;  %v1516_v15 = vunpack.c.l.s8.bf16 %v316_v9  ;;  %v381_v63 = vld [vmem:[#allocation8 + $0x790] sm:$0xff]  ;;  %v1627_v0 = vunpack.c.h.s8.bf16 %v363_v49 }
  0xa1   :  { %3236 = vmatpush1.bf16.msra.mxu0 %v1355_v16  ;;  %3564 = vmatpush1.bf16.msra.mxu1 %v1357_v17  ;;  %v1518_v16 = vunpack.c.l.s8.bf16 %v318_v10  ;;  %v1515_v17 = vunpack.c.l.s8.bf16 %v315_v11  ;;  %v103_v10 = vld [vmem:[#allocation3 + $0x10] sm:$0xff] }
  0xa2   :  { %3237 = vmatprep.subr.bf16.mxu0 %v1372_v18  ;;  %3565 = vmatprep.subr.bf16.mxu1 %v1374_v19  ;;  %v1517_v18 = vunpack.c.l.s8.bf16 %v317_v12  ;;  %v1532_v19 = vunpack.c.h.s8.bf16 %v316_v9  ;;  %v398_v9 = vld [vmem:[#allocation8 + $0x818] sm:$0xff] }
  0xa5   :  { %3238 = vmatpush1.bf16.msra.mxu0 %v1371_v24  ;;  %3566 = vmatpush1.bf16.msra.mxu1 %v1373_v25  ;;  %v333_v24 = vld [vmem:[#allocation8 + $0x610] sm:$0xff]  ;;  %v1531_v25 = vunpack.c.h.s8.bf16 %v315_v11  ;;  %v395_v11 = vld [vmem:[#allocation8 + $0x800] sm:$0xff] }
  0xa6   :  { %3239 = vmatprep.subr.bf16.mxu0 %v1388_v26  ;;  %3567 = vmatprep.subr.bf16.mxu1 %v1390_v27  ;;  %v1533_v26 = vunpack.c.h.s8.bf16 %v317_v12  ;;  %v1548_v27 = vunpack.c.l.s8.bf16 %v332_v21  ;;  %v397_v12 = vld [vmem:[#allocation8 + $0x810] sm:$0xff] }
  0xa9   :  { %3240 = vmatpush1.bf16.msra.mxu0 %v1387_v28  ;;  %3568 = vmatpush1.bf16.msra.mxu1 %v1389_v29  ;;  %v1550_v28 = vunpack.c.l.s8.bf16 %v334_v22  ;;  %v1547_v29 = vunpack.c.l.s8.bf16 %v331_v23  ;;  %v1694_v22 = vunpack.c.h.s8.bf16 %v398_v9 }
  0xaa   :  { %3241 = vmatprep.subr.bf16.mxu0 %v1404_v30  ;;  %3569 = vmatprep.subr.bf16.mxu1 %v1406_v31  ;;  %v1549_v30 = vunpack.c.l.s8.bf16 %v333_v24  ;;  %v1564_v31 = vunpack.c.h.s8.bf16 %v332_v21 }
  0xad   :  { %3242 = vmatpush1.bf16.msra.mxu0 %v1403_v38  ;;  %3570 = vmatpush1.bf16.msra.mxu1 %v1405_v39  ;;  %v1563_v38 = vunpack.c.h.s8.bf16 %v331_v23  ;;  %v1565_v39 = vunpack.c.h.s8.bf16 %v333_v24  ;;  %v412_v23 = vld [vmem:[#allocation8 + $0x888] sm:$0xff]  ;;  %v414_v24 = vld [vmem:[#allocation8 + $0x898] sm:$0xff] }
  0xae   :  { %3252 = vmatprep.subr.bf16.mxu0 %v1420_v40  ;;  %3580 = vmatprep.subr.bf16.mxu1 %v1422_v41  ;;  %v1580_v40 = vunpack.c.l.s8.bf16 %v348_v33  ;;  %v1582_v41 = vunpack.c.l.s8.bf16 %v350_v34  ;;  %v1726_v36 = vunpack.c.h.s8.bf16 %v414_v24 }
  0xb0   :  { %3244 = vmatmul.mubr.bf16.vlgmr.msra.gmra.mrb[0].mxu0 %v12924_v43  ;;  %3572 = vmatmul.mubr.bf16.vlgmr.msra.gmra.mrb[0].mxu1 %v12924_v43 }
  0xb1   :  { %3253 = vmatpush1.bf16.msra.mxu0 %v1419_v44  ;;  %3581 = vmatpush1.bf16.msra.mxu1 %v1421_v45  ;;  %v1581_v44 = vunpack.c.l.s8.bf16 %v349_v37  ;;  %v1596_v45 = vunpack.c.h.s8.bf16 %v348_v33 }
  0xb2   :  { %3254 = vmatprep.subr.bf16.mxu0 %v1436_v46  ;;  %3582 = vmatprep.subr.bf16.mxu1 %v1438_v47  ;;  %v1598_v46 = vunpack.c.h.s8.bf16 %v350_v34  ;;  %v364_v47 = vld [vmem:[#allocation8 + $0x708] sm:$0xff]  ;;  %v1724_v34 = vunpack.c.h.s8.bf16 %v412_v23 }
  0xb3   :  { %3284 = vmatprep.mubr.bf16.mxu0 %v12926_v50  ;;  %3612 = vmatprep.mubr.bf16.mxu1 %v12926_v50 }
  0xb5   :  { %3255 = vmatpush1.bf16.msra.mxu0 %v1435_v53  ;;  %3583 = vmatpush1.bf16.msra.mxu1 %v1437_v54  ;;  %v1597_v53 = vunpack.c.h.s8.bf16 %v349_v37  ;;  %v1612_v54 = vunpack.c.l.s8.bf16 %v364_v47  ;;  %v428_v37 = vld [vmem:[#allocation8 + $0x908] sm:$0xff] }
  0xb6   :  { %3256 = vmatprep.subr.bf16.mxu0 %v1452_v55  ;;  %3584 = vmatprep.subr.bf16.mxu1 %v1454_v56  ;;  %v1614_v55 = vunpack.c.l.s8.bf16 %v366_v48  ;;  %v1611_v56 = vunpack.c.l.s8.bf16 %v363_v49 }
  0xb9   :  { %3257 = vmatpush1.bf16.msra.mxu0 %v1451_v57  ;;  %3585 = vmatpush1.bf16.msra.mxu1 %v1453_v58  ;;  %v1613_v57 = vunpack.c.l.s8.bf16 %v365_v51  ;;  %v1628_v58 = vunpack.c.h.s8.bf16 %v364_v47 }
  0xba   :  { %3258 = vmatprep.subr.bf16.mxu0 %v1468_v59  ;;  %3586 = vmatprep.subr.bf16.mxu1 %v1470_v60  ;;  %v1630_v59 = vunpack.c.h.s8.bf16 %v366_v48  ;;  %v380_v60 = vld [vmem:[#allocation8 + $0x788] sm:$0xff]  ;;  %v1756_v48 = vunpack.c.h.s8.bf16 %v428_v37 }
  0xbd   :  { %3259 = vmatpush1.bf16.msra.mxu0 %v1467_v1  ;;  %3587 = vmatpush1.bf16.msra.mxu1 %v1469_v2  ;;  %v1629_v1 = vunpack.c.h.s8.bf16 %v365_v51  ;;  %v1644_v2 = vunpack.c.l.s8.bf16 %v380_v60  ;;  %v444_v51 = vld [vmem:[#allocation8 + $0x988] sm:$0xff] }
  0xbe   :  { %3260 = vmatprep.subr.bf16.mxu0 %v1484_v3  ;;  %3588 = vmatprep.subr.bf16.mxu1 %v1486_v4  ;;  %v1646_v3 = vunpack.c.l.s8.bf16 %v382_v61  ;;  %v1643_v4 = vunpack.c.l.s8.bf16 %v379_v62 }
  0xc1   :  { %3261 = vmatpush1.bf16.msra.mxu0 %v1483_v5  ;;  %3589 = vmatpush1.bf16.msra.mxu1 %v1485_v6  ;;  %v1645_v5 = vunpack.c.l.s8.bf16 %v381_v63  ;;  %v1660_v6 = vunpack.c.h.s8.bf16 %v380_v60 }
  0xc2   :  { %3262 = vmatprep.subr.bf16.mxu0 %v1500_v7  ;;  %3590 = vmatprep.subr.bf16.mxu1 %v1502_v8  ;;  %v1662_v7 = vunpack.c.h.s8.bf16 %v382_v61  ;;  %v396_v8 = vld [vmem:[#allocation8 + $0x808] sm:$0xff]  ;;  %v1788_v61 = vunpack.c.h.s8.bf16 %v444_v51 }
  0xc3   :  { %v1692_v21 = vunpack.c.h.s8.bf16 %v396_v8 }
  0xc5   :  { %3263 = vmatpush1.bf16.msra.mxu0 %v1499_v13  ;;  %3591 = vmatpush1.bf16.msra.mxu1 %v1501_v14  ;;  %v1659_v13 = vunpack.c.h.s8.bf16 %v379_v62  ;;  %v1661_v14 = vunpack.c.h.s8.bf16 %v381_v63  ;;  %v460_v63 = vld [vmem:[#allocation8 + $0xa08] sm:$0xff] }
  0xc6   :  { %3264 = vmatprep.subr.bf16.mxu0 %v1516_v15  ;;  %3592 = vmatprep.subr.bf16.mxu1 %v1518_v16  ;;  %v1676_v15 = vunpack.c.l.s8.bf16 %v396_v8  ;;  %v1678_v16 = vunpack.c.l.s8.bf16 %v398_v9  ;;  %v1820_v9 = vunpack.c.h.s8.bf16 %v460_v63 }
  0xc9   :  { %3265 = vmatpush1.bf16.msra.mxu0 %v1515_v17  ;;  %3593 = vmatpush1.bf16.msra.mxu1 %v1517_v18  ;;  %v106_v17 = vld [vmem:[#allocation3 + $0x28] sm:$0xff]  ;;  %v12932_v18 = vpack.c.bf16 %v103_v10, %v103_v10 }
  0xca   :  { %3266 = vmatprep.subr.bf16.mxu0 %v1532_v19  ;;  %3594 = vmatprep.subr.bf16.mxu1 %v1534_v20  ;;  %v1675_v19 = vunpack.c.l.s8.bf16 %v395_v11  ;;  %v1677_v20 = vunpack.c.l.s8.bf16 %v397_v12 }
  0xcd   :  { %3267 = vmatpush1.bf16.msra.mxu0 %v1531_v25  ;;  %3595 = vmatpush1.bf16.msra.mxu1 %v1533_v26  ;;  %v12934_v25 = vpack.c.bf16 %v106_v17, %v106_v17  ;;  %v411_v26 = vld [vmem:[#allocation8 + $0x880] sm:$0xff] }
  0xce   :  { %3268 = vmatprep.subr.bf16.mxu0 %v1548_v27  ;;  %3596 = vmatprep.subr.bf16.mxu1 %v1550_v28  ;;  %v413_v27 = vld [vmem:[#allocation8 + $0x890] sm:$0xff]  ;;  %v1691_v28 = vunpack.c.h.s8.bf16 %v395_v11  ;;  %v476_v11 = vld [vmem:[#allocation8 + $0xa88] sm:$0xff] }
  0xcf   :  { %v1709_v33 = vunpack.c.l.s8.bf16 %v413_v27  ;;  %v1836_v17 = vunpack.c.l.s8.bf16 %v476_v11 }
  0xd1   :  { %3269 = vmatpush1.bf16.msra.mxu0 %v1547_v29  ;;  %3597 = vmatpush1.bf16.msra.mxu1 %v1549_v30  ;;  %v1693_v29 = vunpack.c.h.s8.bf16 %v397_v12  ;;  %v1708_v30 = vunpack.c.l.s8.bf16 %v412_v23  ;;  %v478_v12 = vld [vmem:[#allocation8 + $0xa98] sm:$0xff] }
  0xd2   :  { %3270 = vmatprep.subr.bf16.mxu0 %v1564_v31  ;;  %3598 = vmatprep.subr.bf16.mxu1 %v1566_v32  ;;  %v1710_v31 = vunpack.c.l.s8.bf16 %v414_v24  ;;  %v1707_v32 = vunpack.c.l.s8.bf16 %v411_v26  ;;  %v1854_v23 = vunpack.c.h.s8.bf16 %v478_v12  ;;  %v492_v24 = vld [vmem:[#allocation8 + $0xb08] sm:$0xff] }
  0xd5   :  { %3271 = vmatpush1.bf16.msra.mxu0 %v1563_v38  ;;  %3599 = vmatpush1.bf16.msra.mxu1 %v1565_v39  ;;  %v430_v38 = vld [vmem:[#allocation8 + $0x918] sm:$0xff]  ;;  %v427_v39 = vld [vmem:[#allocation8 + $0x900] sm:$0xff] }
  0xd6   :  { %3272 = vmatprep.subr.bf16.mxu0 %v1580_v40  ;;  %3600 = vmatprep.subr.bf16.mxu1 %v1582_v41  ;;  %v429_v40 = vld [vmem:[#allocation8 + $0x910] sm:$0xff]  ;;  %v1723_v41 = vunpack.c.h.s8.bf16 %v411_v26  ;;  %v1758_v49 = vunpack.c.h.s8.bf16 %v430_v38  ;;  %v494_v26 = vld [vmem:[#allocation8 + $0xb18] sm:$0xff] }
  0xd7   :  { %v1741_v47 = vunpack.c.l.s8.bf16 %v429_v40 }
  0xd9   :  { %3273 = vmatpush1.bf16.msra.mxu0 %v1579_v42  ;;  %3601 = vmatpush1.bf16.msra.mxu1 %v1581_v44  ;;  %v1725_v42 = vunpack.c.h.s8.bf16 %v413_v27  ;;  %v1740_v44 = vunpack.c.l.s8.bf16 %v428_v37  ;;  %v491_v27 = vld [vmem:[#allocation8 + $0xb00] sm:$0xff]  ;;  %v1886_v37 = vunpack.c.h.s8.bf16 %v494_v26 }
  0xda   :  { %3274 = vmatprep.subr.bf16.mxu0 %v1596_v45  ;;  %3602 = vmatprep.subr.bf16.mxu1 %v1598_v46  ;;  %v1742_v45 = vunpack.c.l.s8.bf16 %v430_v38  ;;  %v1739_v46 = vunpack.c.l.s8.bf16 %v427_v39  ;;  %v508_v38 = vld [vmem:[#allocation8 + $0xb88] sm:$0xff] }
  0xdd   :  { %3275 = vmatpush1.bf16.msra.mxu0 %v1595_v52  ;;  %3603 = vmatpush1.bf16.msra.mxu1 %v1597_v53  ;;  %v446_v52 = vld [vmem:[#allocation8 + $0x998] sm:$0xff]  ;;  %v443_v53 = vld [vmem:[#allocation8 + $0x980] sm:$0xff] }
  0xde   :  { %3276 = vmatprep.subr.bf16.mxu0 %v1612_v54  ;;  %3604 = vmatprep.subr.bf16.mxu1 %v1614_v55  ;;  %v445_v54 = vld [vmem:[#allocation8 + $0x990] sm:$0xff]  ;;  %v1755_v55 = vunpack.c.h.s8.bf16 %v427_v39  ;;  %v1790_v62 = vunpack.c.h.s8.bf16 %v446_v52  ;;  %v510_v39 = vld [vmem:[#allocation8 + $0xb98] sm:$0xff] }
  0xdf   :  { %v1773_v60 = vunpack.c.l.s8.bf16 %v445_v54 }
  0xe1   :  { %3277 = vmatpush1.bf16.msra.mxu0 %v1611_v56  ;;  %3605 = vmatpush1.bf16.msra.mxu1 %v1613_v57  ;;  %v1757_v56 = vunpack.c.h.s8.bf16 %v429_v40  ;;  %v1772_v57 = vunpack.c.l.s8.bf16 %v444_v51  ;;  %v507_v40 = vld [vmem:[#allocation8 + $0xb80] sm:$0xff]  ;;  %v1918_v51 = vunpack.c.h.s8.bf16 %v510_v39 }
  0xe2   :  { %3278 = vmatprep.subr.bf16.mxu0 %v1628_v58  ;;  %3606 = vmatprep.subr.bf16.mxu1 %v1630_v59  ;;  %v1774_v58 = vunpack.c.l.s8.bf16 %v446_v52  ;;  %v1771_v59 = vunpack.c.l.s8.bf16 %v443_v53  ;;  %v524_v52 = vld [vmem:[#allocation8 + $0xc08] sm:$0xff] }
  0xe5   :  { %3279 = vmatpush1.bf16.msra.mxu0 %v1627_v0  ;;  %3607 = vmatpush1.bf16.msra.mxu1 %v1629_v1  ;;  %v462_v0 = vld [vmem:[#allocation8 + $0xa18] sm:$0xff]  ;;  %v459_v1 = vld [vmem:[#allocation8 + $0xa00] sm:$0xff] }
  0xe6   :  { %3280 = vmatprep.subr.bf16.mxu0 %v1644_v2  ;;  %3608 = vmatprep.subr.bf16.mxu1 %v1646_v3  ;;  %v461_v2 = vld [vmem:[#allocation8 + $0xa10] sm:$0xff]  ;;  %v1787_v3 = vunpack.c.h.s8.bf16 %v443_v53  ;;  %v1822_v10 = vunpack.c.h.s8.bf16 %v462_v0  ;;  %v526_v53 = vld [vmem:[#allocation8 + $0xc18] sm:$0xff] }
  0xe7   :  { %v1805_v8 = vunpack.c.l.s8.bf16 %v461_v2 }
  0xe9   :  { %3281 = vmatpush1.bf16.msra.mxu0 %v1643_v4  ;;  %3609 = vmatpush1.bf16.msra.mxu1 %v1645_v5  ;;  %v1789_v4 = vunpack.c.h.s8.bf16 %v445_v54  ;;  %v1804_v5 = vunpack.c.l.s8.bf16 %v460_v63  ;;  %v105_v54 = vld [vmem:[#allocation3 + $0x20] sm:$0xff] }
  0xea   :  { %3282 = vmatprep.subr.bf16.mxu0 %v1660_v6  ;;  %3610 = vmatprep.subr.bf16.mxu1 %v1662_v7  ;;  %v1806_v6 = vunpack.c.l.s8.bf16 %v462_v0  ;;  %v1803_v7 = vunpack.c.l.s8.bf16 %v459_v1 }
  0xed   :  { %3283 = vmatpush1.bf16.msra.mxu0 %v1659_v13  ;;  %3611 = vmatpush1.bf16.msra.mxu1 %v1661_v14  ;;  %v475_v13 = vld [vmem:[#allocation8 + $0xa80] sm:$0xff]  ;;  %v477_v14 = vld [vmem:[#allocation8 + $0xa90] sm:$0xff] }
  0xee   :  { %3293 = vmatprep.subr.bf16.mxu0 %v1676_v15  ;;  %3621 = vmatprep.subr.bf16.mxu1 %v1678_v16  ;;  %v1819_v15 = vunpack.c.h.s8.bf16 %v459_v1  ;;  %v1821_v16 = vunpack.c.h.s8.bf16 %v461_v2  ;;  %v1948_v1 = vunpack.c.h.s8.bf16 %v524_v52  ;;  %v1950_v2 = vunpack.c.h.s8.bf16 %v526_v53 }
  0xf0   :  { %3285 = vmatmul.mubr.bf16.vlgmr.msra.gmra.mrb[0].mxu0 %v12932_v18  ;;  %3613 = vmatmul.mubr.bf16.vlgmr.msra.gmra.mrb[0].mxu1 %v12932_v18 }
  0xf1   :  { %3294 = vmatpush1.bf16.msra.mxu0 %v1675_v19  ;;  %3622 = vmatpush1.bf16.msra.mxu1 %v1677_v20  ;;  %v1838_v19 = vunpack.c.l.s8.bf16 %v478_v12  ;;  %v1835_v20 = vunpack.c.l.s8.bf16 %v475_v13 }
  0xf2   :  { %3295 = vmatprep.subr.bf16.mxu0 %v1692_v21  ;;  %3623 = vmatprep.subr.bf16.mxu1 %v1694_v22  ;;  %v1837_v21 = vunpack.c.l.s8.bf16 %v477_v14  ;;  %v1852_v22 = vunpack.c.h.s8.bf16 %v476_v11 }
  0xf3   :  { %3325 = vmatprep.mubr.bf16.mxu0 %v12934_v25  ;;  %3653 = vmatprep.mubr.bf16.mxu1 %v12934_v25 }
  0xf5   :  { %3296 = vmatpush1.bf16.msra.mxu0 %v1691_v28  ;;  %3624 = vmatpush1.bf16.msra.mxu1 %v1693_v29  ;;  %v493_v28 = vld [vmem:[#allocation8 + $0xb10] sm:$0xff]  ;;  %v1851_v29 = vunpack.c.h.s8.bf16 %v475_v13 }
  0xf6   :  { %3297 = vmatprep.subr.bf16.mxu0 %v1708_v30  ;;  %3625 = vmatprep.subr.bf16.mxu1 %v1710_v31  ;;  %v1853_v30 = vunpack.c.h.s8.bf16 %v477_v14  ;;  %v1868_v31 = vunpack.c.l.s8.bf16 %v492_v24 }
  0xf9   :  { %3298 = vmatpush1.bf16.msra.mxu0 %v1707_v32  ;;  %3626 = vmatpush1.bf16.msra.mxu1 %v1709_v33  ;;  %v1870_v32 = vunpack.c.l.s8.bf16 %v494_v26  ;;  %v1867_v33 = vunpack.c.l.s8.bf16 %v491_v27 }
  0xfa   :  { %3299 = vmatprep.subr.bf16.mxu0 %v1724_v34  ;;  %3627 = vmatprep.subr.bf16.mxu1 %v1726_v36  ;;  %v1869_v34 = vunpack.c.l.s8.bf16 %v493_v28  ;;  %v1884_v36 = vunpack.c.h.s8.bf16 %v492_v24 }
  0xfd   :  { %3300 = vmatpush1.bf16.msra.mxu0 %v1723_v41  ;;  %3628 = vmatpush1.bf16.msra.mxu1 %v1725_v42  ;;  %v509_v41 = vld [vmem:[#allocation8 + $0xb90] sm:$0xff]  ;;  %v1883_v42 = vunpack.c.h.s8.bf16 %v491_v27 }
  0xfe   :  { %3301 = vmatprep.subr.bf16.mxu0 %v1740_v44  ;;  %3629 = vmatprep.subr.bf16.mxu1 %v1742_v45  ;;  %v1885_v44 = vunpack.c.h.s8.bf16 %v493_v28  ;;  %v1900_v45 = vunpack.c.l.s8.bf16 %v508_v38 }
 0x101   :  { %3302 = vmatpush1.bf16.msra.mxu0 %v1739_v46  ;;  %3630 = vmatpush1.bf16.msra.mxu1 %v1741_v47  ;;  %v1902_v46 = vunpack.c.l.s8.bf16 %v510_v39  ;;  %v1899_v47 = vunpack.c.l.s8.bf16 %v507_v40 }
 0x102   :  { %3303 = vmatprep.subr.bf16.mxu0 %v1756_v48  ;;  %3631 = vmatprep.subr.bf16.mxu1 %v1758_v49  ;;  %v1901_v48 = vunpack.c.l.s8.bf16 %v509_v41  ;;  %v1916_v49 = vunpack.c.h.s8.bf16 %v508_v38 }
 0x105   :  { %3304 = vmatpush1.bf16.msra.mxu0 %v1755_v55  ;;  %3632 = vmatpush1.bf16.msra.mxu1 %v1757_v56  ;;  %v523_v55 = vld [vmem:[#allocation8 + $0xc00] sm:$0xff]  ;;  %v525_v56 = vld [vmem:[#allocation8 + $0xc10] sm:$0xff] }
 0x106   :  { %3305 = vmatprep.subr.bf16.mxu0 %v1772_v57  ;;  %3633 = vmatprep.subr.bf16.mxu1 %v1774_v58  ;;  %v1915_v57 = vunpack.c.h.s8.bf16 %v507_v40  ;;  %v1917_v58 = vunpack.c.h.s8.bf16 %v509_v41  ;;  %v1931_v63 = vunpack.c.l.s8.bf16 %v523_v55  ;;  %v1933_v0 = vunpack.c.l.s8.bf16 %v525_v56 }
 0x109   :  { %3306 = vmatpush1.bf16.msra.mxu0 %v1771_v59  ;;  %3634 = vmatpush1.bf16.msra.mxu1 %v1773_v60  ;;  %v1932_v59 = vunpack.c.l.s8.bf16 %v524_v52  ;;  %v1934_v60 = vunpack.c.l.s8.bf16 %v526_v53 }
 0x10a   :  { %3307 = vmatprep.subr.bf16.mxu0 %v1788_v61  ;;  %3635 = vmatprep.subr.bf16.mxu1 %v1790_v62  ;;  %v108_v61 = vld [vmem:[#allocation3 + $0x38] sm:$0xff]  ;;  %v12940_v62 = vpack.c.bf16 %v105_v54, %v105_v54 }
 0x10d   :  { %3308 = vmatpush1.bf16.msra.mxu0 %v1787_v3  ;;  %3636 = vmatpush1.bf16.msra.mxu1 %v1789_v4  ;;  %v540_v3 = vld [vmem:[#allocation8 + $0xc88] sm:$0xff]  ;;  %v542_v4 = vld [vmem:[#allocation8 + $0xc98] sm:$0xff] }
 0x10e   :  { %3309 = vmatprep.subr.bf16.mxu0 %v1804_v5  ;;  %3637 = vmatprep.subr.bf16.mxu1 %v1806_v6  ;;  %v12942_v5 = vpack.c.bf16 %v108_v61, %v108_v61  ;;  %v539_v6 = vld [vmem:[#allocation8 + $0xc80] sm:$0xff]  ;;  %v1966_v11 = vunpack.c.l.s8.bf16 %v542_v4  ;;  %v1980_v14 = vunpack.c.h.s8.bf16 %v540_v3 }
 0x10f   :  { %v1963_v12 = vunpack.c.l.s8.bf16 %v539_v6 }
 0x111   :  { %3310 = vmatpush1.bf16.msra.mxu0 %v1803_v7  ;;  %3638 = vmatpush1.bf16.msra.mxu1 %v1805_v8  ;;  %v541_v7 = vld [vmem:[#allocation8 + $0xc90] sm:$0xff]  ;;  %v1947_v8 = vunpack.c.h.s8.bf16 %v523_v55 }
 0x112   :  { %3311 = vmatprep.subr.bf16.mxu0 %v1820_v9  ;;  %3639 = vmatprep.subr.bf16.mxu1 %v1822_v10  ;;  %v1949_v9 = vunpack.c.h.s8.bf16 %v525_v56  ;;  %v1964_v10 = vunpack.c.l.s8.bf16 %v540_v3  ;;  %v1965_v13 = vunpack.c.l.s8.bf16 %v541_v7 }
 0x115   :  { %3312 = vmatpush1.bf16.msra.mxu0 %v1819_v15  ;;  %3640 = vmatpush1.bf16.msra.mxu1 %v1821_v16  ;;  %v1982_v15 = vunpack.c.h.s8.bf16 %v542_v4  ;;  %v556_v16 = vld [vmem:[#allocation8 + $0xd08] sm:$0xff] }
 0x116   :  { %3313 = vmatprep.subr.bf16.mxu0 %v1836_v17  ;;  %3641 = vmatprep.subr.bf16.mxu1 %v1838_v19  ;;  %v558_v17 = vld [vmem:[#allocation8 + $0xd18] sm:$0xff]  ;;  %v555_v19 = vld [vmem:[#allocation8 + $0xd00] sm:$0xff]  ;;  %v2012_v28 = vunpack.c.h.s8.bf16 %v556_v16 }
 0x117   :  { %v1998_v24 = vunpack.c.l.s8.bf16 %v558_v17  ;;  %v1995_v26 = vunpack.c.l.s8.bf16 %v555_v19 }
 0x119   :  { %3314 = vmatpush1.bf16.msra.mxu0 %v1835_v20  ;;  %3642 = vmatpush1.bf16.msra.mxu1 %v1837_v21  ;;  %v557_v20 = vld [vmem:[#allocation8 + $0xd10] sm:$0xff]  ;;  %v1979_v21 = vunpack.c.h.s8.bf16 %v539_v6 }
 0x11a   :  { %3315 = vmatprep.subr.bf16.mxu0 %v1852_v22  ;;  %3643 = vmatprep.subr.bf16.mxu1 %v1854_v23  ;;  %v1981_v22 = vunpack.c.h.s8.bf16 %v541_v7  ;;  %v1996_v23 = vunpack.c.l.s8.bf16 %v556_v16  ;;  %v1997_v27 = vunpack.c.l.s8.bf16 %v557_v20  ;;  %v620_v7 = vld [vmem:[#allocation8 + $0xf08] sm:$0xff] }
 0x11d   :  { %3316 = vmatpush1.bf16.msra.mxu0 %v1851_v29  ;;  %3644 = vmatpush1.bf16.msra.mxu1 %v1853_v30  ;;  %v2014_v29 = vunpack.c.h.s8.bf16 %v558_v17  ;;  %v572_v30 = vld [vmem:[#allocation8 + $0xd88] sm:$0xff]  ;;  %v2140_v17 = vunpack.c.h.s8.bf16 %v620_v7 }
 0x11e   :  { %3317 = vmatprep.subr.bf16.mxu0 %v1868_v31  ;;  %3645 = vmatprep.subr.bf16.mxu1 %v1870_v32  ;;  %v574_v31 = vld [vmem:[#allocation8 + $0xd98] sm:$0xff]  ;;  %v571_v32 = vld [vmem:[#allocation8 + $0xd80] sm:$0xff]  ;;  %v2044_v41 = vunpack.c.h.s8.bf16 %v572_v30 }
 0x11f   :  { %v2030_v38 = vunpack.c.l.s8.bf16 %v574_v31  ;;  %v2027_v39 = vunpack.c.l.s8.bf16 %v571_v32 }
 0x121   :  { %3318 = vmatpush1.bf16.msra.mxu0 %v1867_v33  ;;  %3646 = vmatpush1.bf16.msra.mxu1 %v1869_v34  ;;  %v573_v33 = vld [vmem:[#allocation8 + $0xd90] sm:$0xff]  ;;  %v2011_v34 = vunpack.c.h.s8.bf16 %v555_v19 }
 0x122   :  { %3319 = vmatprep.subr.bf16.mxu0 %v1884_v36  ;;  %3647 = vmatprep.subr.bf16.mxu1 %v1886_v37  ;;  %v2013_v36 = vunpack.c.h.s8.bf16 %v557_v20  ;;  %v2028_v37 = vunpack.c.l.s8.bf16 %v572_v30  ;;  %v2029_v40 = vunpack.c.l.s8.bf16 %v573_v33  ;;  %v636_v20 = vld [vmem:[#allocation8 + $0xf88] sm:$0xff] }
 0x125   :  { %3320 = vmatpush1.bf16.msra.mxu0 %v1883_v42  ;;  %3648 = vmatpush1.bf16.msra.mxu1 %v1885_v44  ;;  %v2046_v42 = vunpack.c.h.s8.bf16 %v574_v31  ;;  %v588_v44 = vld [vmem:[#allocation8 + $0xe08] sm:$0xff]  ;;  %v2172_v31 = vunpack.c.h.s8.bf16 %v636_v20 }
 0x126   :  { %3321 = vmatprep.subr.bf16.mxu0 %v1900_v45  ;;  %3649 = vmatprep.subr.bf16.mxu1 %v1902_v46  ;;  %v590_v45 = vld [vmem:[#allocation8 + $0xe18] sm:$0xff]  ;;  %v587_v46 = vld [vmem:[#allocation8 + $0xe00] sm:$0xff]  ;;  %v2076_v55 = vunpack.c.h.s8.bf16 %v588_v44 }
 0x127   :  { %v2062_v52 = vunpack.c.l.s8.bf16 %v590_v45  ;;  %v2059_v53 = vunpack.c.l.s8.bf16 %v587_v46  ;;  %v2078_v56 = vunpack.c.h.s8.bf16 %v590_v45  ;;  %v2075_v61 = vunpack.c.h.s8.bf16 %v587_v46 }
 0x129   :  { %3322 = vmatpush1.bf16.msra.mxu0 %v1899_v47  ;;  %3650 = vmatpush1.bf16.msra.mxu1 %v1901_v48  ;;  %v589_v47 = vld [vmem:[#allocation8 + $0xe10] sm:$0xff]  ;;  %v2043_v48 = vunpack.c.h.s8.bf16 %v571_v32 }
 0x12a   :  { %3323 = vmatprep.subr.bf16.mxu0 %v1916_v49  ;;  %3651 = vmatprep.subr.bf16.mxu1 %v1918_v51  ;;  %v2045_v49 = vunpack.c.h.s8.bf16 %v573_v33  ;;  %v2060_v51 = vunpack.c.l.s8.bf16 %v588_v44  ;;  %v2061_v54 = vunpack.c.l.s8.bf16 %v589_v47  ;;  %v652_v33 = vld [vmem:[#allocation8 + $0x1008] sm:$0xff]  ;;  %v110_v44 = vld [vmem:[#allocation3 + $0x48] sm:$0xff] }
 0x12d   :  { %3324 = vmatpush1.bf16.msra.mxu0 %v1915_v57  ;;  %3652 = vmatpush1.bf16.msra.mxu1 %v1917_v58  ;;  %v604_v57 = vld [vmem:[#allocation8 + $0xe88] sm:$0xff]  ;;  %v606_v58 = vld [vmem:[#allocation8 + $0xe98] sm:$0xff] }
 0x12e   :  { %3334 = vmatprep.subr.bf16.mxu0 %v1932_v59  ;;  %3662 = vmatprep.subr.bf16.mxu1 %v1934_v60  ;;  %v603_v59 = vld [vmem:[#allocation8 + $0xe80] sm:$0xff]  ;;  %v605_v60 = vld [vmem:[#allocation8 + $0xe90] sm:$0xff]  ;;  %v2108_v4 = vunpack.c.h.s8.bf16 %v604_v57  ;;  %v2110_v6 = vunpack.c.h.s8.bf16 %v606_v58 }
 0x12f   :  { %v2093_v3 = vunpack.c.l.s8.bf16 %v605_v60 }
 0x130   :  { %3326 = vmatmul.mubr.bf16.vlgmr.msra.gmra.mrb[0].mxu0 %v12940_v62  ;;  %3654 = vmatmul.mubr.bf16.vlgmr.msra.gmra.mrb[0].mxu1 %v12940_v62 }
 0x131   :  { %3335 = vmatpush1.bf16.msra.mxu0 %v1931_v63  ;;  %3663 = vmatpush1.bf16.msra.mxu1 %v1933_v0  ;;  %v2077_v63 = vunpack.c.h.s8.bf16 %v589_v47  ;;  %v2092_v0 = vunpack.c.l.s8.bf16 %v604_v57 }
 0x132   :  { %3336 = vmatprep.subr.bf16.mxu0 %v1948_v1  ;;  %3664 = vmatprep.subr.bf16.mxu1 %v1950_v2  ;;  %v2094_v1 = vunpack.c.l.s8.bf16 %v606_v58  ;;  %v2091_v2 = vunpack.c.l.s8.bf16 %v603_v59 }
 0x133   :  { %3366 = vmatprep.mubr.bf16.mxu0 %v12942_v5  ;;  %3694 = vmatprep.mubr.bf16.mxu1 %v12942_v5 }
 0x135   :  { %3337 = vmatpush1.bf16.msra.mxu0 %v1947_v8  ;;  %3665 = vmatpush1.bf16.msra.mxu1 %v1949_v9  ;;  %v622_v8 = vld [vmem:[#allocation8 + $0xf18] sm:$0xff]  ;;  %v619_v9 = vld [vmem:[#allocation8 + $0xf00] sm:$0xff] }
 0x136   :  { %3338 = vmatprep.subr.bf16.mxu0 %v1964_v10  ;;  %3666 = vmatprep.subr.bf16.mxu1 %v1966_v11  ;;  %v621_v10 = vld [vmem:[#allocation8 + $0xf10] sm:$0xff]  ;;  %v2107_v11 = vunpack.c.h.s8.bf16 %v603_v59  ;;  %v2142_v19 = vunpack.c.h.s8.bf16 %v622_v8 }
 0x137   :  { %v2125_v16 = vunpack.c.l.s8.bf16 %v621_v10 }
 0x139   :  { %3339 = vmatpush1.bf16.msra.mxu0 %v1963_v12  ;;  %3667 = vmatpush1.bf16.msra.mxu1 %v1965_v13  ;;  %v2109_v12 = vunpack.c.h.s8.bf16 %v605_v60  ;;  %v2124_v13 = vunpack.c.l.s8.bf16 %v620_v7 }
 0x13a   :  { %3340 = vmatprep.subr.bf16.mxu0 %v1980_v14  ;;  %3668 = vmatprep.subr.bf16.mxu1 %v1982_v15  ;;  %v2126_v14 = vunpack.c.l.s8.bf16 %v622_v8  ;;  %v2123_v15 = vunpack.c.l.s8.bf16 %v619_v9 }
 0x13d   :  { %3341 = vmatpush1.bf16.msra.mxu0 %v1979_v21  ;;  %3669 = vmatpush1.bf16.msra.mxu1 %v1981_v22  ;;  %v638_v21 = vld [vmem:[#allocation8 + $0xf98] sm:$0xff]  ;;  %v635_v22 = vld [vmem:[#allocation8 + $0xf80] sm:$0xff] }
 0x13e   :  { %3342 = vmatprep.subr.bf16.mxu0 %v1996_v23  ;;  %3670 = vmatprep.subr.bf16.mxu1 %v1998_v24  ;;  %v637_v23 = vld [vmem:[#allocation8 + $0xf90] sm:$0xff]  ;;  %v2139_v24 = vunpack.c.h.s8.bf16 %v619_v9  ;;  %v2174_v32 = vunpack.c.h.s8.bf16 %v638_v21 }
 0x13f   :  { %v2157_v30 = vunpack.c.l.s8.bf16 %v637_v23 }
 0x141   :  { %3343 = vmatpush1.bf16.msra.mxu0 %v1995_v26  ;;  %3671 = vmatpush1.bf16.msra.mxu1 %v1997_v27  ;;  %v2141_v26 = vunpack.c.h.s8.bf16 %v621_v10  ;;  %v2156_v27 = vunpack.c.l.s8.bf16 %v636_v20 }
 0x142   :  { %3344 = vmatprep.subr.bf16.mxu0 %v2012_v28  ;;  %3672 = vmatprep.subr.bf16.mxu1 %v2014_v29  ;;  %v2158_v28 = vunpack.c.l.s8.bf16 %v638_v21  ;;  %v2155_v29 = vunpack.c.l.s8.bf16 %v635_v22 }
 0x145   :  { %3345 = vmatpush1.bf16.msra.mxu0 %v2011_v34  ;;  %3673 = vmatpush1.bf16.msra.mxu1 %v2013_v36  ;;  %v654_v34 = vld [vmem:[#allocation8 + $0x1018] sm:$0xff]  ;;  %v107_v36 = vld [vmem:[#allocation3 + $0x30] sm:$0xff] }
 0x146   :  { %3346 = vmatprep.subr.bf16.mxu0 %v2028_v37  ;;  %3674 = vmatprep.subr.bf16.mxu1 %v2030_v38  ;;  %v651_v37 = vld [vmem:[#allocation8 + $0x1000] sm:$0xff]  ;;  %v653_v38 = vld [vmem:[#allocation8 + $0x1010] sm:$0xff]  ;;  %v12948_v45 = vpack.c.bf16 %v107_v36, %v107_v36 }
 0x147   :  { %v2187_v46 = vunpack.c.l.s8.bf16 %v651_v37  ;;  %v2189_v47 = vunpack.c.l.s8.bf16 %v653_v38  ;;  %v2205_v57 = vunpack.c.h.s8.bf16 %v653_v38 }
 0x149   :  { %3347 = vmatpush1.bf16.msra.mxu0 %v2027_v39  ;;  %3675 = vmatpush1.bf16.msra.mxu1 %v2029_v40  ;;  %v2171_v39 = vunpack.c.h.s8.bf16 %v635_v22  ;;  %v2173_v40 = vunpack.c.h.s8.bf16 %v637_v23 }
 0x14a   :  { %3348 = vmatprep.subr.bf16.mxu0 %v2044_v41  ;;  %3676 = vmatprep.subr.bf16.mxu1 %v2046_v42  ;;  %v2188_v41 = vunpack.c.l.s8.bf16 %v652_v33  ;;  %v2190_v42 = vunpack.c.l.s8.bf16 %v654_v34 }
 0x14d   :  { %3349 = vmatpush1.bf16.msra.mxu0 %v2043_v48  ;;  %3677 = vmatpush1.bf16.msra.mxu1 %v2045_v49  ;;  %v2204_v48 = vunpack.c.h.s8.bf16 %v652_v33  ;;  %v2206_v49 = vunpack.c.h.s8.bf16 %v654_v34 }
 0x14e   :  { %3350 = vmatprep.subr.bf16.mxu0 %v2060_v51  ;;  %3678 = vmatprep.subr.bf16.mxu1 %v2062_v52  ;;  %v668_v51 = vld [vmem:[#allocation8 + $0x1088] sm:$0xff]  ;;  %v670_v52 = vld [vmem:[#allocation8 + $0x1098] sm:$0xff] }
 0x14f   :  { %v2220_v58 = vunpack.c.l.s8.bf16 %v668_v51  ;;  %v2222_v59 = vunpack.c.l.s8.bf16 %v670_v52 }
 0x151   :  { %3351 = vmatpush1.bf16.msra.mxu0 %v2059_v53  ;;  %3679 = vmatpush1.bf16.msra.mxu1 %v2061_v54  ;;  %v12950_v53 = vpack.c.bf16 %v110_v44, %v110_v44  ;;  %v667_v54 = vld [vmem:[#allocation8 + $0x1080] sm:$0xff] }
 0x152   :  { %3352 = vmatprep.subr.bf16.mxu0 %v2076_v55  ;;  %3680 = vmatprep.subr.bf16.mxu1 %v2078_v56  ;;  %v669_v55 = vld [vmem:[#allocation8 + $0x1090] sm:$0xff]  ;;  %v2203_v56 = vunpack.c.h.s8.bf16 %v651_v37  ;;  %v2219_v60 = vunpack.c.l.s8.bf16 %v667_v54 }
 0x153   :  { %v2237_v7 = vunpack.c.h.s8.bf16 %v669_v55 }
 0x155   :  { %3353 = vmatpush1.bf16.msra.mxu0 %v2075_v61  ;;  %3681 = vmatpush1.bf16.msra.mxu1 %v2077_v63  ;;  %v2221_v61 = vunpack.c.l.s8.bf16 %v669_v55  ;;  %v2236_v63 = vunpack.c.h.s8.bf16 %v668_v51  ;;  %v733_v51 = vld [vmem:[#allocation8 + $0x1290] sm:$0xff] }
 0x156   :  { %3354 = vmatprep.subr.bf16.mxu0 %v2092_v0  ;;  %3682 = vmatprep.subr.bf16.mxu1 %v2094_v1  ;;  %v2238_v0 = vunpack.c.h.s8.bf16 %v670_v52  ;;  %v684_v1 = vld [vmem:[#allocation8 + $0x1108] sm:$0xff] }
 0x157   :  { %v2252_v8 = vunpack.c.l.s8.bf16 %v684_v1 }
 0x159   :  { %3355 = vmatpush1.bf16.msra.mxu0 %v2091_v2  ;;  %3683 = vmatpush1.bf16.msra.mxu1 %v2093_v3  ;;  %v686_v2 = vld [vmem:[#allocation8 + $0x1118] sm:$0xff]  ;;  %v683_v3 = vld [vmem:[#allocation8 + $0x1100] sm:$0xff] }
 0x15a   :  { %3356 = vmatprep.subr.bf16.mxu0 %v2108_v4  ;;  %3684 = vmatprep.subr.bf16.mxu1 %v2110_v6  ;;  %v685_v4 = vld [vmem:[#allocation8 + $0x1110] sm:$0xff]  ;;  %v2235_v6 = vunpack.c.h.s8.bf16 %v667_v54  ;;  %v2254_v9 = vunpack.c.l.s8.bf16 %v686_v2  ;;  %v2251_v10 = vunpack.c.l.s8.bf16 %v683_v3  ;;  %v2349_v54 = vunpack.c.l.s8.bf16 %v733_v51 }
 0x15b   :  { %v2269_v20 = vunpack.c.h.s8.bf16 %v685_v4 }
 0x15d   :  { %3357 = vmatpush1.bf16.msra.mxu0 %v2107_v11  ;;  %3685 = vmatpush1.bf16.msra.mxu1 %v2109_v12  ;;  %v2253_v11 = vunpack.c.l.s8.bf16 %v685_v4  ;;  %v2268_v12 = vunpack.c.h.s8.bf16 %v684_v1  ;;  %v749_v1 = vld [vmem:[#allocation8 + $0x1310] sm:$0xff] }
 0x15e   :  { %3358 = vmatprep.subr.bf16.mxu0 %v2124_v13  ;;  %3686 = vmatprep.subr.bf16.mxu1 %v2126_v14  ;;  %v2270_v13 = vunpack.c.h.s8.bf16 %v686_v2  ;;  %v700_v14 = vld [vmem:[#allocation8 + $0x1188] sm:$0xff] }
 0x15f   :  { %v2284_v21 = vunpack.c.l.s8.bf16 %v700_v14 }
 0x161   :  { %3359 = vmatpush1.bf16.msra.mxu0 %v2123_v15  ;;  %3687 = vmatpush1.bf16.msra.mxu1 %v2125_v16  ;;  %v702_v15 = vld [vmem:[#allocation8 + $0x1198] sm:$0xff]  ;;  %v699_v16 = vld [vmem:[#allocation8 + $0x1180] sm:$0xff] }
 0x162   :  { %3360 = vmatprep.subr.bf16.mxu0 %v2140_v17  ;;  %3688 = vmatprep.subr.bf16.mxu1 %v2142_v19  ;;  %v701_v17 = vld [vmem:[#allocation8 + $0x1190] sm:$0xff]  ;;  %v2267_v19 = vunpack.c.h.s8.bf16 %v683_v3  ;;  %v2286_v22 = vunpack.c.l.s8.bf16 %v702_v15  ;;  %v2283_v23 = vunpack.c.l.s8.bf16 %v699_v16  ;;  %v2381_v3 = vunpack.c.l.s8.bf16 %v749_v1 }
 0x163   :  { %v2301_v33 = vunpack.c.h.s8.bf16 %v701_v17 }
 0x165   :  { %3361 = vmatpush1.bf16.msra.mxu0 %v2139_v24  ;;  %3689 = vmatpush1.bf16.msra.mxu1 %v2141_v26  ;;  %v2285_v24 = vunpack.c.l.s8.bf16 %v701_v17  ;;  %v2300_v26 = vunpack.c.h.s8.bf16 %v700_v14  ;;  %v765_v14 = vld [vmem:[#allocation8 + $0x1390] sm:$0xff] }
 0x166   :  { %3362 = vmatprep.subr.bf16.mxu0 %v2156_v27  ;;  %3690 = vmatprep.subr.bf16.mxu1 %v2158_v28  ;;  %v2302_v27 = vunpack.c.h.s8.bf16 %v702_v15  ;;  %v716_v28 = vld [vmem:[#allocation8 + $0x1208] sm:$0xff] }
 0x167   :  { %v2316_v34 = vunpack.c.l.s8.bf16 %v716_v28 }
 0x169   :  { %3363 = vmatpush1.bf16.msra.mxu0 %v2155_v29  ;;  %3691 = vmatpush1.bf16.msra.mxu1 %v2157_v30  ;;  %v718_v29 = vld [vmem:[#allocation8 + $0x1218] sm:$0xff]  ;;  %v715_v30 = vld [vmem:[#allocation8 + $0x1200] sm:$0xff] }
 0x16a   :  { %3364 = vmatprep.subr.bf16.mxu0 %v2172_v31  ;;  %3692 = vmatprep.subr.bf16.mxu1 %v2174_v32  ;;  %v717_v31 = vld [vmem:[#allocation8 + $0x1210] sm:$0xff]  ;;  %v2299_v32 = vunpack.c.h.s8.bf16 %v699_v16  ;;  %v2318_v36 = vunpack.c.l.s8.bf16 %v718_v29  ;;  %v2315_v37 = vunpack.c.l.s8.bf16 %v715_v30  ;;  %v2331_v44 = vunpack.c.h.s8.bf16 %v715_v30 }
 0x16b   :  { %v2317_v38 = vunpack.c.l.s8.bf16 %v717_v31  ;;  %v2413_v16 = vunpack.c.l.s8.bf16 %v765_v14 }
 0x16d   :  { %3365 = vmatpush1.bf16.msra.mxu0 %v2171_v39  ;;  %3693 = vmatpush1.bf16.msra.mxu1 %v2173_v40  ;;  %v2332_v39 = vunpack.c.h.s8.bf16 %v716_v28  ;;  %v2334_v40 = vunpack.c.h.s8.bf16 %v718_v29  ;;  %v779_v28 = vld [vmem:[#allocation8 + $0x1400] sm:$0xff]  ;;  %v781_v29 = vld [vmem:[#allocation8 + $0x1410] sm:$0xff] }
 0x16e   :  { %3375 = vmatprep.subr.bf16.mxu0 %v2188_v41  ;;  %3703 = vmatprep.subr.bf16.mxu1 %v2190_v42  ;;  %v732_v41 = vld [vmem:[#allocation8 + $0x1288] sm:$0xff]  ;;  %v734_v42 = vld [vmem:[#allocation8 + $0x1298] sm:$0xff] }
 0x16f   :  { %v2364_v55 = vunpack.c.h.s8.bf16 %v732_v41 }
 0x170   :  { %3367 = vmatmul.mubr.bf16.vlgmr.msra.gmra.mrb[0].mxu0 %v12948_v45  ;;  %3695 = vmatmul.mubr.bf16.vlgmr.msra.gmra.mrb[0].mxu1 %v12948_v45 }
 0x171   :  { %3376 = vmatpush1.bf16.msra.mxu0 %v2187_v46  ;;  %3704 = vmatpush1.bf16.msra.mxu1 %v2189_v47  ;;  %v2333_v46 = vunpack.c.h.s8.bf16 %v717_v31  ;;  %v2348_v47 = vunpack.c.l.s8.bf16 %v732_v41  ;;  %v112_v31 = vld [vmem:[#allocation3 + $0x58] sm:$0xff]  ;;  %v2461_v41 = vunpack.c.h.s8.bf16 %v781_v29 }
 0x172   :  { %3377 = vmatprep.subr.bf16.mxu0 %v2204_v48  ;;  %3705 = vmatprep.subr.bf16.mxu1 %v2206_v49  ;;  %v2350_v48 = vunpack.c.l.s8.bf16 %v734_v42  ;;  %v731_v49 = vld [vmem:[#allocation8 + $0x1280] sm:$0xff] }
 0x173   :  { %3407 = vmatprep.mubr.bf16.mxu0 %v12950_v53  ;;  %3735 = vmatprep.mubr.bf16.mxu1 %v12950_v53  ;;  %v2347_v52 = vunpack.c.l.s8.bf16 %v731_v49 }
 0x175   :  { %3378 = vmatpush1.bf16.msra.mxu0 %v2203_v56  ;;  %3706 = vmatpush1.bf16.msra.mxu1 %v2205_v57  ;;  %v2366_v56 = vunpack.c.h.s8.bf16 %v734_v42  ;;  %v748_v57 = vld [vmem:[#allocation8 + $0x1308] sm:$0xff] }
 0x176   :  { %3379 = vmatprep.subr.bf16.mxu0 %v2220_v58  ;;  %3707 = vmatprep.subr.bf16.mxu1 %v2222_v59  ;;  %v750_v58 = vld [vmem:[#allocation8 + $0x1318] sm:$0xff]  ;;  %v2363_v59 = vunpack.c.h.s8.bf16 %v731_v49  ;;  %v2396_v4 = vunpack.c.h.s8.bf16 %v748_v57 }
 0x179   :  { %3380 = vmatpush1.bf16.msra.mxu0 %v2219_v60  ;;  %3708 = vmatpush1.bf16.msra.mxu1 %v2221_v61  ;;  %v2365_v60 = vunpack.c.h.s8.bf16 %v733_v51  ;;  %v2380_v61 = vunpack.c.l.s8.bf16 %v748_v57 }
 0x17a   :  { %3381 = vmatprep.subr.bf16.mxu0 %v2236_v63  ;;  %3709 = vmatprep.subr.bf16.mxu1 %v2238_v0  ;;  %v2382_v63 = vunpack.c.l.s8.bf16 %v750_v58  ;;  %v747_v0 = vld [vmem:[#allocation8 + $0x1300] sm:$0xff] }
 0x17b   :  { %v2379_v2 = vunpack.c.l.s8.bf16 %v747_v0 }
 0x17d   :  { %3382 = vmatpush1.bf16.msra.mxu0 %v2235_v6  ;;  %3710 = vmatpush1.bf16.msra.mxu1 %v2237_v7  ;;  %v2398_v6 = vunpack.c.h.s8.bf16 %v750_v58  ;;  %v764_v7 = vld [vmem:[#allocation8 + $0x1388] sm:$0xff] }
 0x17e   :  { %3383 = vmatprep.subr.bf16.mxu0 %v2252_v8  ;;  %3711 = vmatprep.subr.bf16.mxu1 %v2254_v9  ;;  %v766_v8 = vld [vmem:[#allocation8 + $0x1398] sm:$0xff]  ;;  %v2395_v9 = vunpack.c.h.s8.bf16 %v747_v0  ;;  %v2428_v17 = vunpack.c.h.s8.bf16 %v764_v7 }
 0x181   :  { %3384 = vmatpush1.bf16.msra.mxu0 %v2251_v10  ;;  %3712 = vmatpush1.bf16.msra.mxu1 %v2253_v11  ;;  %v2397_v10 = vunpack.c.h.s8.bf16 %v749_v1  ;;  %v2412_v11 = vunpack.c.l.s8.bf16 %v764_v7 }
 0x182   :  { %3385 = vmatprep.subr.bf16.mxu0 %v2268_v12  ;;  %3713 = vmatprep.subr.bf16.mxu1 %v2270_v13  ;;  %v2414_v12 = vunpack.c.l.s8.bf16 %v766_v8  ;;  %v763_v13 = vld [vmem:[#allocation8 + $0x1380] sm:$0xff] }
 0x183   :  { %v2411_v15 = vunpack.c.l.s8.bf16 %v763_v13 }
 0x185   :  { %3386 = vmatpush1.bf16.msra.mxu0 %v2267_v19  ;;  %3714 = vmatpush1.bf16.msra.mxu1 %v2269_v20  ;;  %v2430_v19 = vunpack.c.h.s8.bf16 %v766_v8  ;;  %v780_v20 = vld [vmem:[#allocation8 + $0x1408] sm:$0xff] }
 0x186   :  { %3387 = vmatprep.subr.bf16.mxu0 %v2284_v21  ;;  %3715 = vmatprep.subr.bf16.mxu1 %v2286_v22  ;;  %v782_v21 = vld [vmem:[#allocation8 + $0x1418] sm:$0xff]  ;;  %v2427_v22 = vunpack.c.h.s8.bf16 %v763_v13 }
 0x189   :  { %3388 = vmatpush1.bf16.msra.mxu0 %v2283_v23  ;;  %3716 = vmatpush1.bf16.msra.mxu1 %v2285_v24  ;;  %v2429_v23 = vunpack.c.h.s8.bf16 %v765_v14  ;;  %v109_v24 = vld [vmem:[#allocation3 + $0x40] sm:$0xff] }
 0x18a   :  { %3389 = vmatprep.subr.bf16.mxu0 %v2300_v26  ;;  %3717 = vmatprep.subr.bf16.mxu1 %v2302_v27  ;;  %v2444_v26 = vunpack.c.l.s8.bf16 %v780_v20  ;;  %v2446_v27 = vunpack.c.l.s8.bf16 %v782_v21  ;;  %v12956_v30 = vpack.c.bf16 %v109_v24, %v109_v24  ;;  %v845_v24 = vld [vmem:[#allocation8 + $0x1610] sm:$0xff] }
 0x18d   :  { %3390 = vmatpush1.bf16.msra.mxu0 %v2299_v32  ;;  %3718 = vmatpush1.bf16.msra.mxu1 %v2301_v33  ;;  %v2443_v32 = vunpack.c.l.s8.bf16 %v779_v28  ;;  %v2445_v33 = vunpack.c.l.s8.bf16 %v781_v29 }
 0x18e   :  { %3391 = vmatprep.subr.bf16.mxu0 %v2316_v34  ;;  %3719 = vmatprep.subr.bf16.mxu1 %v2318_v36  ;;  %v2460_v34 = vunpack.c.h.s8.bf16 %v780_v20  ;;  %v2462_v36 = vunpack.c.h.s8.bf16 %v782_v21 }
 0x191   :  { %3392 = vmatpush1.bf16.msra.mxu0 %v2315_v37  ;;  %3720 = vmatpush1.bf16.msra.mxu1 %v2317_v38  ;;  %v796_v37 = vld [vmem:[#allocation8 + $0x1488] sm:$0xff]  ;;  %v798_v38 = vld [vmem:[#allocation8 + $0x1498] sm:$0xff] }
 0x192   :  { %3393 = vmatprep.subr.bf16.mxu0 %v2332_v39  ;;  %3721 = vmatprep.subr.bf16.mxu1 %v2334_v40  ;;  %v12958_v39 = vpack.c.bf16 %v112_v31, %v112_v31  ;;  %v2459_v40 = vunpack.c.h.s8.bf16 %v779_v28  ;;  %v2476_v42 = vunpack.c.l.s8.bf16 %v796_v37  ;;  %v2492_v51 = vunpack.c.h.s8.bf16 %v796_v37  ;;  %v860_v31 = vld [vmem:[#allocation8 + $0x1688] sm:$0xff] }
 0x195   :  { %3394 = vmatpush1.bf16.msra.mxu0 %v2331_v44  ;;  %3722 = vmatpush1.bf16.msra.mxu1 %v2333_v46  ;;  %v2478_v44 = vunpack.c.l.s8.bf16 %v798_v38  ;;  %v795_v46 = vld [vmem:[#allocation8 + $0x1480] sm:$0xff] }
 0x196   :  { %3395 = vmatprep.subr.bf16.mxu0 %v2348_v47  ;;  %3723 = vmatprep.subr.bf16.mxu1 %v2350_v48  ;;  %v797_v47 = vld [vmem:[#allocation8 + $0x1490] sm:$0xff]  ;;  %v2475_v48 = vunpack.c.l.s8.bf16 %v795_v46 }
 0x197   :  { %v2477_v49 = vunpack.c.l.s8.bf16 %v797_v47  ;;  %v2493_v57 = vunpack.c.h.s8.bf16 %v797_v47  ;;  %v876_v47 = vld [vmem:[#allocation8 + $0x1708] sm:$0xff] }
 0x199   :  { %3396 = vmatpush1.bf16.msra.mxu0 %v2347_v52  ;;  %3724 = vmatpush1.bf16.msra.mxu1 %v2349_v54  ;;  %v2494_v52 = vunpack.c.h.s8.bf16 %v798_v38  ;;  %v812_v54 = vld [vmem:[#allocation8 + $0x1508] sm:$0xff]  ;;  %v859_v38 = vld [vmem:[#allocation8 + $0x1680] sm:$0xff] }
 0x19a   :  { %3397 = vmatprep.subr.bf16.mxu0 %v2364_v55  ;;  %3725 = vmatprep.subr.bf16.mxu1 %v2366_v56  ;;  %v814_v55 = vld [vmem:[#allocation8 + $0x1518] sm:$0xff]  ;;  %v2491_v56 = vunpack.c.h.s8.bf16 %v795_v46  ;;  %v2508_v58 = vunpack.c.l.s8.bf16 %v812_v54  ;;  %v2524_v1 = vunpack.c.h.s8.bf16 %v812_v54 }
 0x19d   :  { %3398 = vmatpush1.bf16.msra.mxu0 %v2363_v59  ;;  %3726 = vmatpush1.bf16.msra.mxu1 %v2365_v60  ;;  %v2510_v59 = vunpack.c.l.s8.bf16 %v814_v55  ;;  %v811_v60 = vld [vmem:[#allocation8 + $0x1500] sm:$0xff] }
 0x19e   :  { %3399 = vmatprep.subr.bf16.mxu0 %v2380_v61  ;;  %3727 = vmatprep.subr.bf16.mxu1 %v2382_v63  ;;  %v813_v61 = vld [vmem:[#allocation8 + $0x1510] sm:$0xff]  ;;  %v2507_v63 = vunpack.c.l.s8.bf16 %v811_v60 }
 0x19f   :  { %v2509_v0 = vunpack.c.l.s8.bf16 %v813_v61  ;;  %v2525_v7 = vunpack.c.h.s8.bf16 %v813_v61  ;;  %v892_v61 = vld [vmem:[#allocation8 + $0x1788] sm:$0xff] }
 0x1a1   :  { %3400 = vmatpush1.bf16.msra.mxu0 %v2379_v2  ;;  %3728 = vmatpush1.bf16.msra.mxu1 %v2381_v3  ;;  %v2526_v2 = vunpack.c.h.s8.bf16 %v814_v55  ;;  %v828_v3 = vld [vmem:[#allocation8 + $0x1588] sm:$0xff]  ;;  %v875_v55 = vld [vmem:[#allocation8 + $0x1700] sm:$0xff] }
 0x1a2   :  { %3401 = vmatprep.subr.bf16.mxu0 %v2396_v4  ;;  %3729 = vmatprep.subr.bf16.mxu1 %v2398_v6  ;;  %v830_v4 = vld [vmem:[#allocation8 + $0x1598] sm:$0xff]  ;;  %v2523_v6 = vunpack.c.h.s8.bf16 %v811_v60  ;;  %v2540_v8 = vunpack.c.l.s8.bf16 %v828_v3  ;;  %v2556_v14 = vunpack.c.h.s8.bf16 %v828_v3 }
 0x1a5   :  { %3402 = vmatpush1.bf16.msra.mxu0 %v2395_v9  ;;  %3730 = vmatpush1.bf16.msra.mxu1 %v2397_v10  ;;  %v2542_v9 = vunpack.c.l.s8.bf16 %v830_v4  ;;  %v827_v10 = vld [vmem:[#allocation8 + $0x1580] sm:$0xff] }
 0x1a6   :  { %3403 = vmatprep.subr.bf16.mxu0 %v2412_v11  ;;  %3731 = vmatprep.subr.bf16.mxu1 %v2414_v12  ;;  %v829_v11 = vld [vmem:[#allocation8 + $0x1590] sm:$0xff]  ;;  %v2539_v12 = vunpack.c.l.s8.bf16 %v827_v10 }
 0x1a7   :  { %v2541_v13 = vunpack.c.l.s8.bf16 %v829_v11  ;;  %v2557_v20 = vunpack.c.h.s8.bf16 %v829_v11  ;;  %v908_v11 = vld [vmem:[#allocation8 + $0x1808] sm:$0xff] }
 0x1a9   :  { %3404 = vmatpush1.bf16.msra.mxu0 %v2411_v15  ;;  %3732 = vmatpush1.bf16.msra.mxu1 %v2413_v16  ;;  %v2558_v15 = vunpack.c.h.s8.bf16 %v830_v4  ;;  %v844_v16 = vld [vmem:[#allocation8 + $0x1608] sm:$0xff]  ;;  %v891_v4 = vld [vmem:[#allocation8 + $0x1780] sm:$0xff] }
 0x1aa   :  { %3405 = vmatprep.subr.bf16.mxu0 %v2428_v17  ;;  %3733 = vmatprep.subr.bf16.mxu1 %v2430_v19  ;;  %v846_v17 = vld [vmem:[#allocation8 + $0x1618] sm:$0xff]  ;;  %v2555_v19 = vunpack.c.h.s8.bf16 %v827_v10  ;;  %v2572_v21 = vunpack.c.l.s8.bf16 %v844_v16  ;;  %v2588_v28 = vunpack.c.h.s8.bf16 %v844_v16  ;;  %v2700_v16 = vunpack.c.l.s8.bf16 %v908_v11 }
 0x1ab   :  { %v2590_v29 = vunpack.c.h.s8.bf16 %v846_v17 }
 0x1ad   :  { %3406 = vmatpush1.bf16.msra.mxu0 %v2427_v22  ;;  %3734 = vmatpush1.bf16.msra.mxu1 %v2429_v23  ;;  %v2574_v22 = vunpack.c.l.s8.bf16 %v846_v17  ;;  %v843_v23 = vld [vmem:[#allocation8 + $0x1600] sm:$0xff] }
 0x1ae   :  { %3416 = vmatprep.subr.bf16.mxu0 %v2444_v26  ;;  %3744 = vmatprep.subr.bf16.mxu1 %v2446_v27  ;;  %v2571_v26 = vunpack.c.l.s8.bf16 %v843_v23  ;;  %v2573_v27 = vunpack.c.l.s8.bf16 %v845_v24 }
 0x1b0   :  { %3408 = vmatmul.mubr.bf16.vlgmr.msra.gmra.mrb[0].mxu0 %v12956_v30  ;;  %3736 = vmatmul.mubr.bf16.vlgmr.msra.gmra.mrb[0].mxu1 %v12956_v30 }
 0x1b1   :  { %3417 = vmatpush1.bf16.msra.mxu0 %v2443_v32  ;;  %3745 = vmatpush1.bf16.msra.mxu1 %v2445_v33  ;;  %v862_v32 = vld [vmem:[#allocation8 + $0x1698] sm:$0xff]  ;;  %v2587_v33 = vunpack.c.h.s8.bf16 %v843_v23 }
 0x1b2   :  { %3418 = vmatprep.subr.bf16.mxu0 %v2460_v34  ;;  %3746 = vmatprep.subr.bf16.mxu1 %v2462_v36  ;;  %v2589_v34 = vunpack.c.h.s8.bf16 %v845_v24  ;;  %v2604_v36 = vunpack.c.l.s8.bf16 %v860_v31  ;;  %v2606_v37 = vunpack.c.l.s8.bf16 %v862_v32  ;;  %v2622_v46 = vunpack.c.h.s8.bf16 %v862_v32 }
 0x1b3   :  { %3448 = vmatprep.mubr.bf16.mxu0 %v12958_v39  ;;  %3776 = vmatprep.mubr.bf16.mxu1 %v12958_v39 }
 0x1b5   :  { %3419 = vmatpush1.bf16.msra.mxu0 %v2459_v40  ;;  %3747 = vmatpush1.bf16.msra.mxu1 %v2461_v41  ;;  %v861_v40 = vld [vmem:[#allocation8 + $0x1690] sm:$0xff]  ;;  %v2603_v41 = vunpack.c.l.s8.bf16 %v859_v38 }
 0x1b6   :  { %3420 = vmatprep.subr.bf16.mxu0 %v2476_v42  ;;  %3748 = vmatprep.subr.bf16.mxu1 %v2478_v44  ;;  %v2605_v42 = vunpack.c.l.s8.bf16 %v861_v40  ;;  %v2620_v44 = vunpack.c.h.s8.bf16 %v860_v31 }
 0x1b9   :  { %3421 = vmatpush1.bf16.msra.mxu0 %v2475_v48  ;;  %3749 = vmatpush1.bf16.msra.mxu1 %v2477_v49  ;;  %v878_v48 = vld [vmem:[#allocation8 + $0x1718] sm:$0xff]  ;;  %v2619_v49 = vunpack.c.h.s8.bf16 %v859_v38  ;;  %v925_v38 = vld [vmem:[#allocation8 + $0x1890] sm:$0xff] }
 0x1ba   :  { %3422 = vmatprep.subr.bf16.mxu0 %v2492_v51  ;;  %3750 = vmatprep.subr.bf16.mxu1 %v2494_v52  ;;  %v2621_v51 = vunpack.c.h.s8.bf16 %v861_v40  ;;  %v2636_v52 = vunpack.c.l.s8.bf16 %v876_v47  ;;  %v2638_v54 = vunpack.c.l.s8.bf16 %v878_v48  ;;  %v2654_v60 = vunpack.c.h.s8.bf16 %v878_v48 }
 0x1bd   :  { %3423 = vmatpush1.bf16.msra.mxu0 %v2491_v56  ;;  %3751 = vmatpush1.bf16.msra.mxu1 %v2493_v57  ;;  %v877_v56 = vld [vmem:[#allocation8 + $0x1710] sm:$0xff]  ;;  %v2635_v57 = vunpack.c.l.s8.bf16 %v875_v55 }
 0x1be   :  { %3424 = vmatprep.subr.bf16.mxu0 %v2508_v58  ;;  %3752 = vmatprep.subr.bf16.mxu1 %v2510_v59  ;;  %v2637_v58 = vunpack.c.l.s8.bf16 %v877_v56  ;;  %v2652_v59 = vunpack.c.h.s8.bf16 %v876_v47  ;;  %v942_v47 = vld [vmem:[#allocation8 + $0x1918] sm:$0xff] }
 0x1c1   :  { %3425 = vmatpush1.bf16.msra.mxu0 %v2507_v63  ;;  %3753 = vmatpush1.bf16.msra.mxu1 %v2509_v0  ;;  %v894_v63 = vld [vmem:[#allocation8 + $0x1798] sm:$0xff]  ;;  %v2651_v0 = vunpack.c.h.s8.bf16 %v875_v55  ;;  %v941_v55 = vld [vmem:[#allocation8 + $0x1910] sm:$0xff] }
 0x1c2   :  { %3426 = vmatprep.subr.bf16.mxu0 %v2524_v1  ;;  %3754 = vmatprep.subr.bf16.mxu1 %v2526_v2  ;;  %v2653_v1 = vunpack.c.h.s8.bf16 %v877_v56  ;;  %v2668_v2 = vunpack.c.l.s8.bf16 %v892_v61  ;;  %v2670_v3 = vunpack.c.l.s8.bf16 %v894_v63  ;;  %v2686_v10 = vunpack.c.h.s8.bf16 %v894_v63 }
 0x1c5   :  { %3427 = vmatpush1.bf16.msra.mxu0 %v2523_v6  ;;  %3755 = vmatpush1.bf16.msra.mxu1 %v2525_v7  ;;  %v893_v6 = vld [vmem:[#allocation8 + $0x1790] sm:$0xff]  ;;  %v2667_v7 = vunpack.c.l.s8.bf16 %v891_v4 }
 0x1c6   :  { %3428 = vmatprep.subr.bf16.mxu0 %v2540_v8  ;;  %3756 = vmatprep.subr.bf16.mxu1 %v2542_v9  ;;  %v2669_v8 = vunpack.c.l.s8.bf16 %v893_v6  ;;  %v2684_v9 = vunpack.c.h.s8.bf16 %v892_v61  ;;  %v958_v61 = vld [vmem:[#allocation8 + $0x1998] sm:$0xff] }
 0x1c9   :  { %3429 = vmatpush1.bf16.msra.mxu0 %v2539_v12  ;;  %3757 = vmatpush1.bf16.msra.mxu1 %v2541_v13  ;;  %v910_v12 = vld [vmem:[#allocation8 + $0x1818] sm:$0xff]  ;;  %v2683_v13 = vunpack.c.h.s8.bf16 %v891_v4  ;;  %v957_v4 = vld [vmem:[#allocation8 + $0x1990] sm:$0xff] }
 0x1ca   :  { %3430 = vmatprep.subr.bf16.mxu0 %v2556_v14  ;;  %3758 = vmatprep.subr.bf16.mxu1 %v2558_v15  ;;  %v2685_v14 = vunpack.c.h.s8.bf16 %v893_v6  ;;  %v111_v15 = vld [vmem:[#allocation3 + $0x50] sm:$0xff]  ;;  %v2702_v17 = vunpack.c.l.s8.bf16 %v910_v12 }
 0x1cd   :  { %3431 = vmatpush1.bf16.msra.mxu0 %v2555_v19  ;;  %3759 = vmatpush1.bf16.msra.mxu1 %v2557_v20  ;;  %v907_v19 = vld [vmem:[#allocation8 + $0x1800] sm:$0xff]  ;;  %v909_v20 = vld [vmem:[#allocation8 + $0x1810] sm:$0xff] }
 0x1ce   :  { %3432 = vmatprep.subr.bf16.mxu0 %v2572_v21  ;;  %3760 = vmatprep.subr.bf16.mxu1 %v2574_v22  ;;  %v12964_v21 = vpack.c.bf16 %v111_v15, %v111_v15  ;;  %v114_v22 = vld [vmem:[#allocation3 + $0x68] sm:$0xff]  ;;  %v2699_v23 = vunpack.c.l.s8.bf16 %v907_v19  ;;  %v2701_v24 = vunpack.c.l.s8.bf16 %v909_v20  ;;  %v2715_v32 = vunpack.c.h.s8.bf16 %v907_v19 }
 0x1cf   :  { %v12966_v31 = vpack.c.bf16 %v114_v22, %v114_v22 }
 0x1d1   :  { %3433 = vmatpush1.bf16.msra.mxu0 %v2571_v26  ;;  %3761 = vmatpush1.bf16.msra.mxu1 %v2573_v27  ;;  %v2716_v26 = vunpack.c.h.s8.bf16 %v908_v11  ;;  %v2718_v27 = vunpack.c.h.s8.bf16 %v910_v12  ;;  %v974_v11 = vld [vmem:[#allocation8 + $0x1a18] sm:$0xff] }
 0x1d2   :  { %3434 = vmatprep.subr.bf16.mxu0 %v2588_v28  ;;  %3762 = vmatprep.subr.bf16.mxu1 %v2590_v29  ;;  %v924_v28 = vld [vmem:[#allocation8 + $0x1888] sm:$0xff]  ;;  %v926_v29 = vld [vmem:[#allocation8 + $0x1898] sm:$0xff]  ;;  %v2830_v15 = vunpack.c.l.s8.bf16 %v974_v11 }
 0x1d5   :  { %3435 = vmatpush1.bf16.msra.mxu0 %v2587_v33  ;;  %3763 = vmatpush1.bf16.msra.mxu1 %v2589_v34  ;;  %v2717_v33 = vunpack.c.h.s8.bf16 %v909_v20  ;;  %v2732_v34 = vunpack.c.l.s8.bf16 %v924_v28 }
 0x1d6   :  { %3436 = vmatprep.subr.bf16.mxu0 %v2604_v36  ;;  %3764 = vmatprep.subr.bf16.mxu1 %v2606_v37  ;;  %v2734_v36 = vunpack.c.l.s8.bf16 %v926_v29  ;;  %v923_v37 = vld [vmem:[#allocation8 + $0x1880] sm:$0xff] }
 0x1d7   :  { %v2731_v40 = vunpack.c.l.s8.bf16 %v923_v37  ;;  %v2747_v48 = vunpack.c.h.s8.bf16 %v923_v37 }
 0x1d9   :  { %3437 = vmatpush1.bf16.msra.mxu0 %v2603_v41  ;;  %3765 = vmatpush1.bf16.msra.mxu1 %v2605_v42  ;;  %v2733_v41 = vunpack.c.l.s8.bf16 %v925_v38  ;;  %v2748_v42 = vunpack.c.h.s8.bf16 %v924_v28 }
 0x1da   :  { %3438 = vmatprep.subr.bf16.mxu0 %v2620_v44  ;;  %3766 = vmatprep.subr.bf16.mxu1 %v2622_v46  ;;  %v2750_v44 = vunpack.c.h.s8.bf16 %v926_v29  ;;  %v940_v46 = vld [vmem:[#allocation8 + $0x1908] sm:$0xff] }
 0x1dd   :  { %3439 = vmatpush1.bf16.msra.mxu0 %v2619_v49  ;;  %3767 = vmatpush1.bf16.msra.mxu1 %v2621_v51  ;;  %v2749_v49 = vunpack.c.h.s8.bf16 %v925_v38  ;;  %v2764_v51 = vunpack.c.l.s8.bf16 %v940_v46 }
 0x1de   :  { %3440 = vmatprep.subr.bf16.mxu0 %v2636_v52  ;;  %3768 = vmatprep.subr.bf16.mxu1 %v2638_v54  ;;  %v2766_v52 = vunpack.c.l.s8.bf16 %v942_v47  ;;  %v939_v54 = vld [vmem:[#allocation8 + $0x1900] sm:$0xff] }
 0x1df   :  { %v2763_v56 = vunpack.c.l.s8.bf16 %v939_v54  ;;  %v2779_v63 = vunpack.c.h.s8.bf16 %v939_v54 }
 0x1e1   :  { %3441 = vmatpush1.bf16.msra.mxu0 %v2635_v57  ;;  %3769 = vmatpush1.bf16.msra.mxu1 %v2637_v58  ;;  %v2765_v57 = vunpack.c.l.s8.bf16 %v941_v55  ;;  %v2780_v58 = vunpack.c.h.s8.bf16 %v940_v46 }
 0x1e2   :  { %3442 = vmatprep.subr.bf16.mxu0 %v2652_v59  ;;  %3770 = vmatprep.subr.bf16.mxu1 %v2654_v60  ;;  %v2782_v59 = vunpack.c.h.s8.bf16 %v942_v47  ;;  %v956_v60 = vld [vmem:[#allocation8 + $0x1988] sm:$0xff] }
 0x1e5   :  { %3443 = vmatpush1.bf16.msra.mxu0 %v2651_v0  ;;  %3771 = vmatpush1.bf16.msra.mxu1 %v2653_v1  ;;  %v2781_v0 = vunpack.c.h.s8.bf16 %v941_v55  ;;  %v2796_v1 = vunpack.c.l.s8.bf16 %v956_v60 }
 0x1e6   :  { %3444 = vmatprep.subr.bf16.mxu0 %v2668_v2  ;;  %3772 = vmatprep.subr.bf16.mxu1 %v2670_v3  ;;  %v2798_v2 = vunpack.c.l.s8.bf16 %v958_v61  ;;  %v955_v3 = vld [vmem:[#allocation8 + $0x1980] sm:$0xff] }
 0x1e7   :  { %v2795_v6 = vunpack.c.l.s8.bf16 %v955_v3  ;;  %v2811_v12 = vunpack.c.h.s8.bf16 %v955_v3 }
 0x1e9   :  { %3445 = vmatpush1.bf16.msra.mxu0 %v2667_v7  ;;  %3773 = vmatpush1.bf16.msra.mxu1 %v2669_v8  ;;  %v2797_v7 = vunpack.c.l.s8.bf16 %v957_v4  ;;  %v2812_v8 = vunpack.c.h.s8.bf16 %v956_v60 }
 0x1ea   :  { %3446 = vmatprep.subr.bf16.mxu0 %v2684_v9  ;;  %3774 = vmatprep.subr.bf16.mxu1 %v2686_v10  ;;  %v2814_v9 = vunpack.c.h.s8.bf16 %v958_v61  ;;  %v972_v10 = vld [vmem:[#allocation8 + $0x1a08] sm:$0xff] }
 0x1eb   :  { %v2844_v22 = vunpack.c.h.s8.bf16 %v972_v10 }
 0x1ed   :  { %3447 = vmatpush1.bf16.msra.mxu0 %v2683_v13  ;;  %3775 = vmatpush1.bf16.msra.mxu1 %v2685_v14  ;;  %v2813_v13 = vunpack.c.h.s8.bf16 %v957_v4  ;;  %v2828_v14 = vunpack.c.l.s8.bf16 %v972_v10 }
 0x1ee   :  { %3457 = vmatprep.subr.bf16.mxu0 %v2700_v16  ;;  %3785 = vmatprep.subr.bf16.mxu1 %v2702_v17  ;;  %v971_v16 = vld [vmem:[#allocation8 + $0x1a00] sm:$0xff]  ;;  %v973_v17 = vld [vmem:[#allocation8 + $0x1a10] sm:$0xff] }
 0x1ef   :  { %v2827_v19 = vunpack.c.l.s8.bf16 %v971_v16  ;;  %v2829_v20 = vunpack.c.l.s8.bf16 %v973_v17  ;;  %v2845_v28 = vunpack.c.h.s8.bf16 %v973_v17  ;;  %v116_v17 = vld [vmem:[#allocation3 + $0x78] sm:$0xff] }
 0x1f0   :  { %3449 = vmatmul.mubr.bf16.vlgmr.msra.gmra.mrb[0].mxu0 %v12964_v21  ;;  %3777 = vmatmul.mubr.bf16.vlgmr.msra.gmra.mrb[0].mxu1 %v12964_v21 }
 0x1f1   :  { %3458 = vmatpush1.bf16.msra.mxu0 %v2699_v23  ;;  %3786 = vmatpush1.bf16.msra.mxu1 %v2701_v24  ;;  %v2846_v23 = vunpack.c.h.s8.bf16 %v974_v11  ;;  %v988_v24 = vld [vmem:[#allocation8 + $0x1a88] sm:$0xff]  ;;  %v113_v11 = vld [vmem:[#allocation3 + $0x60] sm:$0xff] }
 0x1f2   :  { %3459 = vmatprep.subr.bf16.mxu0 %v2716_v26  ;;  %3787 = vmatprep.subr.bf16.mxu1 %v2718_v27  ;;  %v990_v26 = vld [vmem:[#allocation8 + $0x1a98] sm:$0xff]  ;;  %v2843_v27 = vunpack.c.h.s8.bf16 %v971_v16  ;;  %v2860_v29 = vunpack.c.l.s8.bf16 %v988_v24  ;;  %v2876_v38 = vunpack.c.h.s8.bf16 %v988_v24  ;;  %v12972_v16 = vpack.c.bf16 %v113_v11, %v113_v11  ;;  %v1052_v24 = vld [vmem:[#allocation8 + $0x1c88] sm:$0xff] }
 0x1f3   :  { %3489 = vmatprep.mubr.bf16.mxu0 %v12966_v31  ;;  %3817 = vmatprep.mubr.bf16.mxu1 %v12966_v31 }
 0x1f5   :  { %3460 = vmatpush1.bf16.msra.mxu0 %v2715_v32  ;;  %3788 = vmatpush1.bf16.msra.mxu1 %v2717_v33  ;;  %v2862_v32 = vunpack.c.l.s8.bf16 %v990_v26  ;;  %v987_v33 = vld [vmem:[#allocation8 + $0x1a80] sm:$0xff] }
 0x1f6   :  { %3461 = vmatprep.subr.bf16.mxu0 %v2732_v34  ;;  %3789 = vmatprep.subr.bf16.mxu1 %v2734_v36  ;;  %v989_v34 = vld [vmem:[#allocation8 + $0x1a90] sm:$0xff]  ;;  %v2859_v36 = vunpack.c.l.s8.bf16 %v987_v33 }
 0x1f7   :  { %v2861_v37 = vunpack.c.l.s8.bf16 %v989_v34  ;;  %v2877_v46 = vunpack.c.h.s8.bf16 %v989_v34  ;;  %v1051_v34 = vld [vmem:[#allocation8 + $0x1c80] sm:$0xff] }
 0x1f9   :  { %3462 = vmatpush1.bf16.msra.mxu0 %v2731_v40  ;;  %3790 = vmatpush1.bf16.msra.mxu1 %v2733_v41  ;;  %v2878_v40 = vunpack.c.h.s8.bf16 %v990_v26  ;;  %v1004_v41 = vld [vmem:[#allocation8 + $0x1b08] sm:$0xff]  ;;  %v1054_v26 = vld [vmem:[#allocation8 + $0x1c98] sm:$0xff] }
 0x1fa   :  { %3463 = vmatprep.subr.bf16.mxu0 %v2748_v42  ;;  %3791 = vmatprep.subr.bf16.mxu1 %v2750_v44  ;;  %v1006_v42 = vld [vmem:[#allocation8 + $0x1b18] sm:$0xff]  ;;  %v2875_v44 = vunpack.c.h.s8.bf16 %v987_v33  ;;  %v2892_v47 = vunpack.c.l.s8.bf16 %v1004_v41  ;;  %v2908_v55 = vunpack.c.h.s8.bf16 %v1004_v41  ;;  %v2990_v33 = vunpack.c.l.s8.bf16 %v1054_v26 }
 0x1fb   :  { %v3006_v41 = vunpack.c.h.s8.bf16 %v1054_v26 }
 0x1fd   :  { %3464 = vmatpush1.bf16.msra.mxu0 %v2747_v48  ;;  %3792 = vmatpush1.bf16.msra.mxu1 %v2749_v49  ;;  %v2894_v48 = vunpack.c.l.s8.bf16 %v1006_v42  ;;  %v1003_v49 = vld [vmem:[#allocation8 + $0x1b00] sm:$0xff] }
 0x1fe   :  { %3465 = vmatprep.subr.bf16.mxu0 %v2764_v51  ;;  %3793 = vmatprep.subr.bf16.mxu1 %v2766_v52  ;;  %v1005_v51 = vld [vmem:[#allocation8 + $0x1b10] sm:$0xff]  ;;  %v2891_v52 = vunpack.c.l.s8.bf16 %v1003_v49 }
 0x1ff   :  { %v2893_v54 = vunpack.c.l.s8.bf16 %v1005_v51  ;;  %v2909_v60 = vunpack.c.h.s8.bf16 %v1005_v51  ;;  %v1067_v51 = vld [vmem:[#allocation8 + $0x1d00] sm:$0xff] }
 0x201   :  { %3466 = vmatpush1.bf16.msra.mxu0 %v2763_v56  ;;  %3794 = vmatpush1.bf16.msra.mxu1 %v2765_v57  ;;  %v2910_v56 = vunpack.c.h.s8.bf16 %v1006_v42  ;;  %v1020_v57 = vld [vmem:[#allocation8 + $0x1b88] sm:$0xff] }
 0x202   :  { %3467 = vmatprep.subr.bf16.mxu0 %v2780_v58  ;;  %3795 = vmatprep.subr.bf16.mxu1 %v2782_v59  ;;  %v1022_v58 = vld [vmem:[#allocation8 + $0x1b98] sm:$0xff]  ;;  %v2907_v59 = vunpack.c.h.s8.bf16 %v1003_v49  ;;  %v2924_v61 = vunpack.c.l.s8.bf16 %v1020_v57  ;;  %v2940_v4 = vunpack.c.h.s8.bf16 %v1020_v57  ;;  %v1068_v42 = vld [vmem:[#allocation8 + $0x1d08] sm:$0xff] }
 0x205   :  { %3468 = vmatpush1.bf16.msra.mxu0 %v2779_v63  ;;  %3796 = vmatpush1.bf16.msra.mxu1 %v2781_v0  ;;  %v2926_v63 = vunpack.c.l.s8.bf16 %v1022_v58  ;;  %v1019_v0 = vld [vmem:[#allocation8 + $0x1b80] sm:$0xff] }
 0x206   :  { %3469 = vmatprep.subr.bf16.mxu0 %v2796_v1  ;;  %3797 = vmatprep.subr.bf16.mxu1 %v2798_v2  ;;  %v1021_v1 = vld [vmem:[#allocation8 + $0x1b90] sm:$0xff]  ;;  %v2923_v2 = vunpack.c.l.s8.bf16 %v1019_v0 }
 0x207   :  { %v2925_v3 = vunpack.c.l.s8.bf16 %v1021_v1  ;;  %v2941_v10 = vunpack.c.h.s8.bf16 %v1021_v1  ;;  %v1083_v1 = vld [vmem:[#allocation8 + $0x1d80] sm:$0xff] }
 0x209   :  { %3470 = vmatpush1.bf16.msra.mxu0 %v2795_v6  ;;  %3798 = vmatpush1.bf16.msra.mxu1 %v2797_v7  ;;  %v2942_v6 = vunpack.c.h.s8.bf16 %v1022_v58  ;;  %v1036_v7 = vld [vmem:[#allocation8 + $0x1c08] sm:$0xff] }
 0x20a   :  { %3471 = vmatprep.subr.bf16.mxu0 %v2812_v8  ;;  %3799 = vmatprep.subr.bf16.mxu1 %v2814_v9  ;;  %v1038_v8 = vld [vmem:[#allocation8 + $0x1c18] sm:$0xff]  ;;  %v2939_v9 = vunpack.c.h.s8.bf16 %v1019_v0  ;;  %v1084_v58 = vld [vmem:[#allocation8 + $0x1d88] sm:$0xff] }
 0x20d   :  { %3472 = vmatpush1.bf16.msra.mxu0 %v2811_v12  ;;  %3800 = vmatpush1.bf16.msra.mxu1 %v2813_v13  ;;  %v2956_v12 = vunpack.c.l.s8.bf16 %v1036_v7  ;;  %v2958_v13 = vunpack.c.l.s8.bf16 %v1038_v8 }
 0x20e   :  { %3473 = vmatprep.subr.bf16.mxu0 %v2828_v14  ;;  %3801 = vmatprep.subr.bf16.mxu1 %v2830_v15  ;;  %v1035_v14 = vld [vmem:[#allocation8 + $0x1c00] sm:$0xff]  ;;  %v1037_v15 = vld [vmem:[#allocation8 + $0x1c10] sm:$0xff] }
 0x211   :  { %3474 = vmatpush1.bf16.msra.mxu0 %v2827_v19  ;;  %3802 = vmatpush1.bf16.msra.mxu1 %v2829_v20  ;;  %v2955_v19 = vunpack.c.l.s8.bf16 %v1035_v14  ;;  %v2957_v20 = vunpack.c.l.s8.bf16 %v1037_v15 }
 0x212   :  { %3475 = vmatprep.subr.bf16.mxu0 %v2844_v22  ;;  %3803 = vmatprep.subr.bf16.mxu1 %v2846_v23  ;;  %v2972_v22 = vunpack.c.h.s8.bf16 %v1036_v7  ;;  %v2974_v23 = vunpack.c.h.s8.bf16 %v1038_v8  ;;  %v1100_v8 = vld [vmem:[#allocation8 + $0x1e08] sm:$0xff] }
 0x215   :  { %3476 = vmatpush1.bf16.msra.mxu0 %v2843_v27  ;;  %3804 = vmatpush1.bf16.msra.mxu1 %v2845_v28  ;;  %v12974_v27 = vpack.c.bf16 %v116_v17, %v116_v17  ;;  %v2971_v28 = vunpack.c.h.s8.bf16 %v1035_v14  ;;  %v1099_v14 = vld [vmem:[#allocation8 + $0x1e00] sm:$0xff] }
 0x216   :  { %3477 = vmatprep.subr.bf16.mxu0 %v2860_v29  ;;  %3805 = vmatprep.subr.bf16.mxu1 %v2862_v32  ;;  %v2973_v29 = vunpack.c.h.s8.bf16 %v1037_v15  ;;  %v2988_v32 = vunpack.c.l.s8.bf16 %v1052_v24  ;;  %v1101_v15 = vld [vmem:[#allocation8 + $0x1e10] sm:$0xff]  ;;  %v3083_v17 = vunpack.c.l.s8.bf16 %v1099_v14  ;;  %v3099_v26 = vunpack.c.h.s8.bf16 %v1099_v14  ;;  %v143_v14 = vld [vmem:[#allocation8 + $0x20] sm:$0xff] }
 0x219   :  { %3478 = vmatpush1.bf16.msra.mxu0 %v2859_v36  ;;  %3806 = vmatpush1.bf16.msra.mxu1 %v2861_v37  ;;  %v1053_v36 = vld [vmem:[#allocation8 + $0x1c90] sm:$0xff]  ;;  %v2987_v37 = vunpack.c.l.s8.bf16 %v1051_v34 }
 0x21a   :  { %3479 = vmatprep.subr.bf16.mxu0 %v2876_v38  ;;  %3807 = vmatprep.subr.bf16.mxu1 %v2878_v40  ;;  %v2989_v38 = vunpack.c.l.s8.bf16 %v1053_v36  ;;  %v3004_v40 = vunpack.c.h.s8.bf16 %v1052_v24  ;;  %v1118_v24 = vld [vmem:[#allocation8 + $0x1e98] sm:$0xff] }
 0x21d   :  { %3480 = vmatpush1.bf16.msra.mxu0 %v2875_v44  ;;  %3808 = vmatpush1.bf16.msra.mxu1 %v2877_v46  ;;  %v1070_v44 = vld [vmem:[#allocation8 + $0x1d18] sm:$0xff]  ;;  %v3003_v46 = vunpack.c.h.s8.bf16 %v1051_v34  ;;  %v1117_v34 = vld [vmem:[#allocation8 + $0x1e90] sm:$0xff] }
 0x21e   :  { %3481 = vmatprep.subr.bf16.mxu0 %v2892_v47  ;;  %3809 = vmatprep.subr.bf16.mxu1 %v2894_v48  ;;  %v3005_v47 = vunpack.c.h.s8.bf16 %v1053_v36  ;;  %v3020_v48 = vunpack.c.l.s8.bf16 %v1068_v42  ;;  %v3022_v49 = vunpack.c.l.s8.bf16 %v1070_v44  ;;  %v3038_v57 = vunpack.c.h.s8.bf16 %v1070_v44 }
 0x221   :  { %3482 = vmatpush1.bf16.msra.mxu0 %v2891_v52  ;;  %3810 = vmatpush1.bf16.msra.mxu1 %v2893_v54  ;;  %v1069_v52 = vld [vmem:[#allocation8 + $0x1d10] sm:$0xff]  ;;  %v3019_v54 = vunpack.c.l.s8.bf16 %v1067_v51 }
 0x222   :  { %3483 = vmatprep.subr.bf16.mxu0 %v2908_v55  ;;  %3811 = vmatprep.subr.bf16.mxu1 %v2910_v56  ;;  %v3021_v55 = vunpack.c.l.s8.bf16 %v1069_v52  ;;  %v3036_v56 = vunpack.c.h.s8.bf16 %v1068_v42  ;;  %v1134_v42 = vld [vmem:[#allocation8 + $0x1f18] sm:$0xff] }
 0x225   :  { %3484 = vmatpush1.bf16.msra.mxu0 %v2907_v59  ;;  %3812 = vmatpush1.bf16.msra.mxu1 %v2909_v60  ;;  %v1086_v59 = vld [vmem:[#allocation8 + $0x1d98] sm:$0xff]  ;;  %v3035_v60 = vunpack.c.h.s8.bf16 %v1067_v51  ;;  %v1133_v51 = vld [vmem:[#allocation8 + $0x1f10] sm:$0xff] }
 0x226   :  { %3485 = vmatprep.subr.bf16.mxu0 %v2924_v61  ;;  %3813 = vmatprep.subr.bf16.mxu1 %v2926_v63  ;;  %v3037_v61 = vunpack.c.h.s8.bf16 %v1069_v52  ;;  %v3052_v63 = vunpack.c.l.s8.bf16 %v1084_v58  ;;  %v3054_v0 = vunpack.c.l.s8.bf16 %v1086_v59  ;;  %v3070_v7 = vunpack.c.h.s8.bf16 %v1086_v59 }
 0x229   :  { %3486 = vmatpush1.bf16.msra.mxu0 %v2923_v2  ;;  %3814 = vmatpush1.bf16.msra.mxu1 %v2925_v3  ;;  %v1085_v2 = vld [vmem:[#allocation8 + $0x1d90] sm:$0xff]  ;;  %v3051_v3 = vunpack.c.l.s8.bf16 %v1083_v1 }
 0x22a   :  { %3487 = vmatprep.subr.bf16.mxu0 %v2940_v4  ;;  %3815 = vmatprep.subr.bf16.mxu1 %v2942_v6  ;;  %v3053_v4 = vunpack.c.l.s8.bf16 %v1085_v2  ;;  %v3068_v6 = vunpack.c.h.s8.bf16 %v1084_v58  ;;  %v3069_v11 = vunpack.c.h.s8.bf16 %v1085_v2  ;;  %v1150_v58 = vld [vmem:[#allocation8 + $0x1f98] sm:$0xff] }
 0x22d   :  { %3488 = vmatpush1.bf16.msra.mxu0 %v2939_v9  ;;  %3816 = vmatpush1.bf16.msra.mxu1 %v2941_v10  ;;  %v1102_v9 = vld [vmem:[#allocation8 + $0x1e18] sm:$0xff]  ;;  %v3067_v10 = vunpack.c.h.s8.bf16 %v1083_v1  ;;  %v1149_v1 = vld [vmem:[#allocation8 + $0x1f90] sm:$0xff] }
 0x22e   :  { %3498 = vmatprep.subr.bf16.mxu0 %v2956_v12  ;;  %3826 = vmatprep.subr.bf16.mxu1 %v2958_v13  ;;  %v3084_v12 = vunpack.c.l.s8.bf16 %v1100_v8  ;;  %v3086_v13 = vunpack.c.l.s8.bf16 %v1102_v9 }
 0x230   :  { %3490 = vmatmul.mubr.bf16.vlgmr.msra.gmra.mrb[0].mxu0 %v12972_v16  ;;  %3818 = vmatmul.mubr.bf16.vlgmr.msra.gmra.mrb[0].mxu1 %v12972_v16 }
 0x231   :  { %3499 = vmatpush1.bf16.msra.mxu0 %v2955_v19  ;;  %3827 = vmatpush1.bf16.msra.mxu1 %v2957_v20  ;;  %v3085_v19 = vunpack.c.l.s8.bf16 %v1101_v15  ;;  %v3100_v20 = vunpack.c.h.s8.bf16 %v1100_v8  ;;  %v146_v8 = vld [vmem:[#allocation8 + $0x38] sm:$0xff] }
 0x232   :  { %3500 = vmatprep.subr.bf16.mxu0 %v2972_v22  ;;  %3828 = vmatprep.subr.bf16.mxu1 %v2974_v23  ;;  %v3102_v22 = vunpack.c.h.s8.bf16 %v1102_v9  ;;  %v1116_v23 = vld [vmem:[#allocation8 + $0x1e88] sm:$0xff] }
 0x233   :  { %3530 = vmatprep.mubr.bf16.mxu0 %v12974_v27  ;;  %3858 = vmatprep.mubr.bf16.mxu1 %v12974_v27 }
 0x235   :  { %3501 = vmatpush1.bf16.msra.mxu0 %v2971_v28  ;;  %3829 = vmatpush1.bf16.msra.mxu1 %v2973_v29  ;;  %v3101_v28 = vunpack.c.h.s8.bf16 %v1101_v15  ;;  %v3116_v29 = vunpack.c.l.s8.bf16 %v1116_v23  ;;  %v145_v15 = vld [vmem:[#allocation8 + $0x30] sm:$0xff] }
 0x236   :  { %3502 = vmatprep.subr.bf16.mxu0 %v2988_v32  ;;  %3830 = vmatprep.subr.bf16.mxu1 %v2990_v33  ;;  %v3118_v32 = vunpack.c.l.s8.bf16 %v1118_v24  ;;  %v1115_v33 = vld [vmem:[#allocation8 + $0x1e80] sm:$0xff] }
 0x237   :  { %v3115_v36 = vunpack.c.l.s8.bf16 %v1115_v33  ;;  %v3131_v44 = vunpack.c.h.s8.bf16 %v1115_v33 }
 0x239   :  { %3503 = vmatpush1.bf16.msra.mxu0 %v2987_v37  ;;  %3831 = vmatpush1.bf16.msra.mxu1 %v2989_v38  ;;  %v3117_v37 = vunpack.c.l.s8.bf16 %v1117_v34  ;;  %v3132_v38 = vunpack.c.h.s8.bf16 %v1116_v23  ;;  %v1186_v23 = vunpack.c.h.s8.bf16 %v146_v8 }
 0x23a   :  { %3504 = vmatprep.subr.bf16.mxu0 %v3004_v40  ;;  %3832 = vmatprep.subr.bf16.mxu1 %v3006_v41  ;;  %v3134_v40 = vunpack.c.h.s8.bf16 %v1118_v24  ;;  %v1132_v41 = vld [vmem:[#allocation8 + $0x1f08] sm:$0xff] }
 0x23b   :  { %v160_v24 = vld [vmem:[#allocation8 + $0xa8] sm:$0xff] }
 0x23d   :  { %3505 = vmatpush1.bf16.msra.mxu0 %v3003_v46  ;;  %3833 = vmatpush1.bf16.msra.mxu1 %v3005_v47  ;;  %v3133_v46 = vunpack.c.h.s8.bf16 %v1117_v34  ;;  %v3148_v47 = vunpack.c.l.s8.bf16 %v1132_v41  ;;  %v159_v34 = vld [vmem:[#allocation8 + $0xa0] sm:$0xff] }
 0x23e   :  { %3506 = vmatprep.subr.bf16.mxu0 %v3020_v48  ;;  %3834 = vmatprep.subr.bf16.mxu1 %v3022_v49  ;;  %v3150_v48 = vunpack.c.l.s8.bf16 %v1134_v42  ;;  %v1131_v49 = vld [vmem:[#allocation8 + $0x1f00] sm:$0xff] }
 0x23f   :  { %v3147_v52 = vunpack.c.l.s8.bf16 %v1131_v49  ;;  %v3163_v59 = vunpack.c.h.s8.bf16 %v1131_v49 }
 0x241   :  { %3507 = vmatpush1.bf16.msra.mxu0 %v3019_v54  ;;  %3835 = vmatpush1.bf16.msra.mxu1 %v3021_v55  ;;  %v3149_v54 = vunpack.c.l.s8.bf16 %v1133_v51  ;;  %v3164_v55 = vunpack.c.h.s8.bf16 %v1132_v41 }
 0x242   :  { %3508 = vmatprep.subr.bf16.mxu0 %v3036_v56  ;;  %3836 = vmatprep.subr.bf16.mxu1 %v3038_v57  ;;  %v3166_v56 = vunpack.c.h.s8.bf16 %v1134_v42  ;;  %v1148_v57 = vld [vmem:[#allocation8 + $0x1f88] sm:$0xff] }
 0x243   :  { %v176_v42 = vld [vmem:[#allocation8 + $0x128] sm:$0xff] }
 0x245   :  { %3509 = vmatpush1.bf16.msra.mxu0 %v3035_v60  ;;  %3837 = vmatpush1.bf16.msra.mxu1 %v3037_v61  ;;  %v3165_v60 = vunpack.c.h.s8.bf16 %v1133_v51  ;;  %v3180_v61 = vunpack.c.l.s8.bf16 %v1148_v57  ;;  %v175_v51 = vld [vmem:[#allocation8 + $0x120] sm:$0xff] }
 0x246   :  { %3510 = vmatprep.subr.bf16.mxu0 %v3052_v63  ;;  %3838 = vmatprep.subr.bf16.mxu1 %v3054_v0  ;;  %v3182_v63 = vunpack.c.l.s8.bf16 %v1150_v58  ;;  %v1147_v0 = vld [vmem:[#allocation8 + $0x1f80] sm:$0xff] }
 0x247   :  { %v3179_v2 = vunpack.c.l.s8.bf16 %v1147_v0  ;;  %v3195_v9 = vunpack.c.h.s8.bf16 %v1147_v0 }
 0x249   :  { %3511 = vmatpush1.bf16.msra.mxu0 %v3051_v3  ;;  %3839 = vmatpush1.bf16.msra.mxu1 %v3053_v4  ;;  %v3181_v3 = vunpack.c.l.s8.bf16 %v1149_v1  ;;  %v3196_v4 = vunpack.c.h.s8.bf16 %v1148_v57 }
 0x24a   :  { %3512 = vmatprep.subr.bf16.mxu0 %v3068_v6  ;;  %3840 = vmatprep.subr.bf16.mxu1 %v3070_v7  ;;  %v3198_v6 = vunpack.c.h.s8.bf16 %v1150_v58  ;;  %v144_v7 = vld [vmem:[#allocation8 + $0x28] sm:$0xff] }
 0x24b   :  { %v192_v58 = vld [vmem:[#allocation8 + $0x1a8] sm:$0xff] }
 0x24d   :  { %3513 = vmatpush1.bf16.msra.mxu0 %v3067_v10  ;;  %3841 = vmatpush1.bf16.msra.mxu1 %v3069_v11  ;;  %v3197_v10 = vunpack.c.h.s8.bf16 %v1149_v1  ;;  %v115_v11 = vld [vmem:[#allocation3 + $0x70] sm:$0xff]  ;;  %v191_v1 = vld [vmem:[#allocation8 + $0x1a0] sm:$0xff] }
 0x24e   :  { %3514 = vmatprep.subr.bf16.mxu0 %v3084_v12  ;;  %3842 = vmatprep.subr.bf16.mxu1 %v3086_v13  ;;  %v1168_v12 = vunpack.c.l.s8.bf16 %v144_v7  ;;  %v1170_v13 = vunpack.c.l.s8.bf16 %v146_v8  ;;  %v208_v8 = vld [vmem:[#allocation8 + $0x228] sm:$0xff] }
 0x251   :  { %3515 = vmatpush1.bf16.msra.mxu0 %v3083_v17  ;;  %3843 = vmatpush1.bf16.msra.mxu1 %v3085_v19  ;;  %v12980_v17 = vpack.c.bf16 %v115_v11, %v115_v11  ;;  %v1167_v19 = vunpack.c.l.s8.bf16 %v143_v14 }
 0x252   :  { %3516 = vmatprep.subr.bf16.mxu0 %v3100_v20  ;;  %3844 = vmatprep.subr.bf16.mxu1 %v3102_v22  ;;  %v1169_v20 = vunpack.c.l.s8.bf16 %v145_v15  ;;  %v1184_v22 = vunpack.c.h.s8.bf16 %v144_v7 }
 0x255   :  { %3517 = vmatpush1.bf16.msra.mxu0 %v3099_v26  ;;  %3845 = vmatpush1.bf16.msra.mxu1 %v3101_v28  ;;  %v162_v26 = vld [vmem:[#allocation8 + $0xb8] sm:$0xff]  ;;  %v1183_v28 = vunpack.c.h.s8.bf16 %v143_v14  ;;  %v207_v14 = vld [vmem:[#allocation8 + $0x220] sm:$0xff] }
 0x256   :  { %3518 = vmatprep.subr.bf16.mxu0 %v3116_v29  ;;  %3846 = vmatprep.subr.bf16.mxu1 %v3118_v32  ;;  %v1185_v29 = vunpack.c.h.s8.bf16 %v145_v15  ;;  %v1200_v32 = vunpack.c.l.s8.bf16 %v160_v24  ;;  %v1202_v33 = vunpack.c.l.s8.bf16 %v162_v26  ;;  %v1218_v41 = vunpack.c.h.s8.bf16 %v162_v26  ;;  %v209_v15 = vld [vmem:[#allocation8 + $0x230] sm:$0xff]  ;;  %v226_v26 = vld [vmem:[#allocation8 + $0x2b8] sm:$0xff] }
 0x259   :  { %3519 = vmatpush1.bf16.msra.mxu0 %v3115_v36  ;;  %3847 = vmatpush1.bf16.msra.mxu1 %v3117_v37  ;;  %v161_v36 = vld [vmem:[#allocation8 + $0xb0] sm:$0xff]  ;;  %v1199_v37 = vunpack.c.l.s8.bf16 %v159_v34 }
 0x25a   :  { %3520 = vmatprep.subr.bf16.mxu0 %v3132_v38  ;;  %3848 = vmatprep.subr.bf16.mxu1 %v3134_v40  ;;  %v1201_v38 = vunpack.c.l.s8.bf16 %v161_v36  ;;  %v1216_v40 = vunpack.c.h.s8.bf16 %v160_v24  ;;  %v224_v24 = vld [vmem:[#allocation8 + $0x2a8] sm:$0xff] }
 0x25d   :  { %3521 = vmatpush1.bf16.msra.mxu0 %v3131_v44  ;;  %3849 = vmatpush1.bf16.msra.mxu1 %v3133_v46  ;;  %v178_v44 = vld [vmem:[#allocation8 + $0x138] sm:$0xff]  ;;  %v1215_v46 = vunpack.c.h.s8.bf16 %v159_v34  ;;  %v223_v34 = vld [vmem:[#allocation8 + $0x2a0] sm:$0xff] }
 0x25e   :  { %3522 = vmatprep.subr.bf16.mxu0 %v3148_v47  ;;  %3850 = vmatprep.subr.bf16.mxu1 %v3150_v48  ;;  %v1217_v47 = vunpack.c.h.s8.bf16 %v161_v36  ;;  %v1232_v48 = vunpack.c.l.s8.bf16 %v176_v42  ;;  %v1234_v49 = vunpack.c.l.s8.bf16 %v178_v44  ;;  %v1250_v57 = vunpack.c.h.s8.bf16 %v178_v44  ;;  %v225_v36 = vld [vmem:[#allocation8 + $0x2b0] sm:$0xff]  ;;  %v242_v44 = vld [vmem:[#allocation8 + $0x338] sm:$0xff] }
 0x261   :  { %3523 = vmatpush1.bf16.msra.mxu0 %v3147_v52  ;;  %3851 = vmatpush1.bf16.msra.mxu1 %v3149_v54  ;;  %v177_v52 = vld [vmem:[#allocation8 + $0x130] sm:$0xff]  ;;  %v1231_v54 = vunpack.c.l.s8.bf16 %v175_v51 }
 0x262   :  { %3524 = vmatprep.subr.bf16.mxu0 %v3164_v55  ;;  %3852 = vmatprep.subr.bf16.mxu1 %v3166_v56  ;;  %v1233_v55 = vunpack.c.l.s8.bf16 %v177_v52  ;;  %v1248_v56 = vunpack.c.h.s8.bf16 %v176_v42  ;;  %v240_v42 = vld [vmem:[#allocation8 + $0x328] sm:$0xff] }
 0x265   :  { %3525 = vmatpush1.bf16.msra.mxu0 %v3163_v59  ;;  %3853 = vmatpush1.bf16.msra.mxu1 %v3165_v60  ;;  %v194_v59 = vld [vmem:[#allocation8 + $0x1b8] sm:$0xff]  ;;  %v1247_v60 = vunpack.c.h.s8.bf16 %v175_v51  ;;  %v239_v51 = vld [vmem:[#allocation8 + $0x320] sm:$0xff] }
 0x266   :  { %3526 = vmatprep.subr.bf16.mxu0 %v3180_v61  ;;  %3854 = vmatprep.subr.bf16.mxu1 %v3182_v63  ;;  %v1249_v61 = vunpack.c.h.s8.bf16 %v177_v52  ;;  %v1264_v63 = vunpack.c.l.s8.bf16 %v192_v58  ;;  %v1266_v0 = vunpack.c.l.s8.bf16 %v194_v59  ;;  %v1282_v7 = vunpack.c.h.s8.bf16 %v194_v59  ;;  %v241_v52 = vld [vmem:[#allocation8 + $0x330] sm:$0xff]  ;;  %v258_v59 = vld [vmem:[#allocation8 + $0x3b8] sm:$0xff] }
 0x269   :  { %3527 = vmatpush1.bf16.msra.mxu0 %v3179_v2  ;;  %3855 = vmatpush1.bf16.msra.mxu1 %v3181_v3  ;;  %v193_v2 = vld [vmem:[#allocation8 + $0x1b0] sm:$0xff]  ;;  %v1263_v3 = vunpack.c.l.s8.bf16 %v191_v1 }
 0x26a   :  { %3528 = vmatprep.subr.bf16.mxu0 %v3196_v4  ;;  %3856 = vmatprep.subr.bf16.mxu1 %v3198_v6  ;;  %v1265_v4 = vunpack.c.l.s8.bf16 %v193_v2  ;;  %v1280_v6 = vunpack.c.h.s8.bf16 %v192_v58  ;;  %v1281_v11 = vunpack.c.h.s8.bf16 %v193_v2  ;;  %v256_v58 = vld [vmem:[#allocation8 + $0x3a8] sm:$0xff]  ;;  %v257_v2 = vld [vmem:[#allocation8 + $0x3b0] sm:$0xff] }
 0x26d   :  { %3529 = vmatpush1.bf16.msra.mxu0 %v3195_v9  ;;  %3857 = vmatpush1.bf16.msra.mxu1 %v3197_v10  ;;  %v210_v9 = vld [vmem:[#allocation8 + $0x238] sm:$0xff]  ;;  %v1279_v10 = vunpack.c.h.s8.bf16 %v191_v1  ;;  %v255_v1 = vld [vmem:[#allocation8 + $0x3a0] sm:$0xff] }
 0x26e   :  { %3867 = vmatprep.subr.bf16.mxu0 %v1168_v12  ;;  %4195 = vmatprep.subr.bf16.mxu1 %v1170_v13  ;;  %v1296_v12 = vunpack.c.l.s8.bf16 %v208_v8  ;;  %v1298_v13 = vunpack.c.l.s8.bf16 %v210_v9 }
 0x270   :  { %3531 = vmatmul.mubr.bf16.vlgmr.msra.gmra.mrb[0].mxu0 %v12980_v17  ;;  %3859 = vmatmul.mubr.bf16.vlgmr.msra.gmra.mrb[0].mxu1 %v12980_v17 }
 0x271   :  { %3868 = vmatpush1.bf16.msra.mxu0 %v1167_v19  ;;  %4196 = vmatpush1.bf16.msra.mxu1 %v1169_v20  ;;  %v1295_v19 = vunpack.c.l.s8.bf16 %v207_v14  ;;  %v1297_v20 = vunpack.c.l.s8.bf16 %v209_v15 }
 0x272   :  { %3869 = vmatprep.subr.bf16.mxu0 %v1184_v22  ;;  %4197 = vmatprep.subr.bf16.mxu1 %v1186_v23  ;;  %v1312_v22 = vunpack.c.h.s8.bf16 %v208_v8  ;;  %v1314_v23 = vunpack.c.h.s8.bf16 %v210_v9  ;;  %v272_v8 = vld [vmem:[#allocation8 + $0x428] sm:$0xff]  ;;  %v274_v9 = vld [vmem:[#allocation8 + $0x438] sm:$0xff] }
 0x273   :  { %3899 = vmatprep.mubr.bf16.mxu0 %v12920_v35  ;;  %4227 = vmatprep.mubr.bf16.mxu1 %v12920_v35 }
 0x275   :  { %3870 = vmatpush1.bf16.msra.mxu0 %v1183_v28  ;;  %4198 = vmatpush1.bf16.msra.mxu1 %v1185_v29  ;;  %v1311_v28 = vunpack.c.h.s8.bf16 %v207_v14  ;;  %v1313_v29 = vunpack.c.h.s8.bf16 %v209_v15  ;;  %v271_v14 = vld [vmem:[#allocation8 + $0x420] sm:$0xff]  ;;  %v273_v15 = vld [vmem:[#allocation8 + $0x430] sm:$0xff] }
 0x276   :  { %3871 = vmatprep.subr.bf16.mxu0 %v1200_v32  ;;  %4199 = vmatprep.subr.bf16.mxu1 %v1202_v33  ;;  %v1328_v32 = vunpack.c.l.s8.bf16 %v224_v24  ;;  %v1330_v33 = vunpack.c.l.s8.bf16 %v226_v26 }
 0x279   :  { %3872 = vmatpush1.bf16.msra.mxu0 %v1199_v37  ;;  %4200 = vmatpush1.bf16.msra.mxu1 %v1201_v38  ;;  %v1327_v37 = vunpack.c.l.s8.bf16 %v223_v34  ;;  %v1329_v38 = vunpack.c.l.s8.bf16 %v225_v36 }
 0x27a   :  { %3873 = vmatprep.subr.bf16.mxu0 %v1216_v40  ;;  %4201 = vmatprep.subr.bf16.mxu1 %v1218_v41  ;;  %v1344_v40 = vunpack.c.h.s8.bf16 %v224_v24  ;;  %v1346_v41 = vunpack.c.h.s8.bf16 %v226_v26  ;;  %v288_v24 = vld [vmem:[#allocation8 + $0x4a8] sm:$0xff]  ;;  %v290_v26 = vld [vmem:[#allocation8 + $0x4b8] sm:$0xff] }
 0x27d   :  { %3874 = vmatpush1.bf16.msra.mxu0 %v1215_v46  ;;  %4202 = vmatpush1.bf16.msra.mxu1 %v1217_v47  ;;  %v1343_v46 = vunpack.c.h.s8.bf16 %v223_v34  ;;  %v1345_v47 = vunpack.c.h.s8.bf16 %v225_v36  ;;  %v287_v34 = vld [vmem:[#allocation8 + $0x4a0] sm:$0xff]  ;;  %v289_v36 = vld [vmem:[#allocation8 + $0x4b0] sm:$0xff] }
 0x27e   :  { %3875 = vmatprep.subr.bf16.mxu0 %v1232_v48  ;;  %4203 = vmatprep.subr.bf16.mxu1 %v1234_v49  ;;  %v1360_v48 = vunpack.c.l.s8.bf16 %v240_v42  ;;  %v1362_v49 = vunpack.c.l.s8.bf16 %v242_v44 }
 0x281   :  { %3876 = vmatpush1.bf16.msra.mxu0 %v1231_v54  ;;  %4204 = vmatpush1.bf16.msra.mxu1 %v1233_v55  ;;  %v1359_v54 = vunpack.c.l.s8.bf16 %v239_v51  ;;  %v1361_v55 = vunpack.c.l.s8.bf16 %v241_v52 }
 0x282   :  { %3877 = vmatprep.subr.bf16.mxu0 %v1248_v56  ;;  %4205 = vmatprep.subr.bf16.mxu1 %v1250_v57  ;;  %v1376_v56 = vunpack.c.h.s8.bf16 %v240_v42  ;;  %v1378_v57 = vunpack.c.h.s8.bf16 %v242_v44  ;;  %v304_v42 = vld [vmem:[#allocation8 + $0x528] sm:$0xff]  ;;  %v306_v44 = vld [vmem:[#allocation8 + $0x538] sm:$0xff] }
 0x285   :  { %3878 = vmatpush1.bf16.msra.mxu0 %v1247_v60  ;;  %4206 = vmatpush1.bf16.msra.mxu1 %v1249_v61  ;;  %v1375_v60 = vunpack.c.h.s8.bf16 %v239_v51  ;;  %v1377_v61 = vunpack.c.h.s8.bf16 %v241_v52  ;;  %v303_v51 = vld [vmem:[#allocation8 + $0x520] sm:$0xff]  ;;  %v305_v52 = vld [vmem:[#allocation8 + $0x530] sm:$0xff] }
 0x286   :  { %3879 = vmatprep.subr.bf16.mxu0 %v1264_v63  ;;  %4207 = vmatprep.subr.bf16.mxu1 %v1266_v0  ;;  %v1392_v63 = vunpack.c.l.s8.bf16 %v256_v58  ;;  %v1394_v0 = vunpack.c.l.s8.bf16 %v258_v59 }
 0x289   :  { %3880 = vmatpush1.bf16.msra.mxu0 %v1263_v3  ;;  %4208 = vmatpush1.bf16.msra.mxu1 %v1265_v4  ;;  %v1391_v3 = vunpack.c.l.s8.bf16 %v255_v1  ;;  %v1393_v4 = vunpack.c.l.s8.bf16 %v257_v2 }
 0x28a   :  { %3881 = vmatprep.subr.bf16.mxu0 %v1280_v6  ;;  %4209 = vmatprep.subr.bf16.mxu1 %v1282_v7  ;;  %v1408_v6 = vunpack.c.h.s8.bf16 %v256_v58  ;;  %v1410_v7 = vunpack.c.h.s8.bf16 %v258_v59  ;;  %v320_v58 = vld [vmem:[#allocation8 + $0x5a8] sm:$0xff]  ;;  %v322_v59 = vld [vmem:[#allocation8 + $0x5b8] sm:$0xff] }
 0x28d   :  { %3882 = vmatpush1.bf16.msra.mxu0 %v1279_v10  ;;  %4210 = vmatpush1.bf16.msra.mxu1 %v1281_v11  ;;  %v1407_v10 = vunpack.c.h.s8.bf16 %v255_v1  ;;  %v1409_v11 = vunpack.c.h.s8.bf16 %v257_v2  ;;  %v319_v1 = vld [vmem:[#allocation8 + $0x5a0] sm:$0xff]  ;;  %v321_v2 = vld [vmem:[#allocation8 + $0x5b0] sm:$0xff] }
 0x28e   :  { %3883 = vmatprep.subr.bf16.mxu0 %v1296_v12  ;;  %4211 = vmatprep.subr.bf16.mxu1 %v1298_v13  ;;  %v1424_v12 = vunpack.c.l.s8.bf16 %v272_v8  ;;  %v1426_v13 = vunpack.c.l.s8.bf16 %v274_v9 }
 0x291   :  { %3884 = vmatpush1.bf16.msra.mxu0 %v1295_v19  ;;  %4212 = vmatpush1.bf16.msra.mxu1 %v1297_v20  ;;  %v1423_v19 = vunpack.c.l.s8.bf16 %v271_v14  ;;  %v1425_v20 = vunpack.c.l.s8.bf16 %v273_v15 }
 0x292   :  { %3885 = vmatprep.subr.bf16.mxu0 %v1312_v22  ;;  %4213 = vmatprep.subr.bf16.mxu1 %v1314_v23  ;;  %v1440_v22 = vunpack.c.h.s8.bf16 %v272_v8  ;;  %v1442_v23 = vunpack.c.h.s8.bf16 %v274_v9  ;;  %v336_v8 = vld [vmem:[#allocation8 + $0x628] sm:$0xff]  ;;  %v338_v9 = vld [vmem:[#allocation8 + $0x638] sm:$0xff] }
 0x295   :  { %3886 = vmatpush1.bf16.msra.mxu0 %v1311_v28  ;;  %4214 = vmatpush1.bf16.msra.mxu1 %v1313_v29  ;;  %v1439_v28 = vunpack.c.h.s8.bf16 %v271_v14  ;;  %v1441_v29 = vunpack.c.h.s8.bf16 %v273_v15  ;;  %v335_v14 = vld [vmem:[#allocation8 + $0x620] sm:$0xff]  ;;  %v337_v15 = vld [vmem:[#allocation8 + $0x630] sm:$0xff] }
 0x296   :  { %3887 = vmatprep.subr.bf16.mxu0 %v1328_v32  ;;  %4215 = vmatprep.subr.bf16.mxu1 %v1330_v33  ;;  %v1456_v32 = vunpack.c.l.s8.bf16 %v288_v24  ;;  %v1458_v33 = vunpack.c.l.s8.bf16 %v290_v26 }
 0x299   :  { %3888 = vmatpush1.bf16.msra.mxu0 %v1327_v37  ;;  %4216 = vmatpush1.bf16.msra.mxu1 %v1329_v38  ;;  %v1455_v37 = vunpack.c.l.s8.bf16 %v287_v34  ;;  %v1457_v38 = vunpack.c.l.s8.bf16 %v289_v36 }
 0x29a   :  { %3889 = vmatprep.subr.bf16.mxu0 %v1344_v40  ;;  %4217 = vmatprep.subr.bf16.mxu1 %v1346_v41  ;;  %v1472_v40 = vunpack.c.h.s8.bf16 %v288_v24  ;;  %v1474_v41 = vunpack.c.h.s8.bf16 %v290_v26  ;;  %v352_v24 = vld [vmem:[#allocation8 + $0x6a8] sm:$0xff]  ;;  %v354_v26 = vld [vmem:[#allocation8 + $0x6b8] sm:$0xff] }
 0x29d   :  { %3890 = vmatpush1.bf16.msra.mxu0 %v1343_v46  ;;  %4218 = vmatpush1.bf16.msra.mxu1 %v1345_v47  ;;  %v1471_v46 = vunpack.c.h.s8.bf16 %v287_v34  ;;  %v1473_v47 = vunpack.c.h.s8.bf16 %v289_v36  ;;  %v351_v34 = vld [vmem:[#allocation8 + $0x6a0] sm:$0xff]  ;;  %v353_v36 = vld [vmem:[#allocation8 + $0x6b0] sm:$0xff] }
 0x29e   :  { %3891 = vmatprep.subr.bf16.mxu0 %v1360_v48  ;;  %4219 = vmatprep.subr.bf16.mxu1 %v1362_v49  ;;  %v1488_v48 = vunpack.c.l.s8.bf16 %v304_v42  ;;  %v1490_v49 = vunpack.c.l.s8.bf16 %v306_v44 }
 0x2a1   :  { %3892 = vmatpush1.bf16.msra.mxu0 %v1359_v54  ;;  %4220 = vmatpush1.bf16.msra.mxu1 %v1361_v55  ;;  %v1487_v54 = vunpack.c.l.s8.bf16 %v303_v51  ;;  %v1489_v55 = vunpack.c.l.s8.bf16 %v305_v52 }
 0x2a2   :  { %3893 = vmatprep.subr.bf16.mxu0 %v1376_v56  ;;  %4221 = vmatprep.subr.bf16.mxu1 %v1378_v57  ;;  %v1504_v56 = vunpack.c.h.s8.bf16 %v304_v42  ;;  %v1506_v57 = vunpack.c.h.s8.bf16 %v306_v44  ;;  %v368_v42 = vld [vmem:[#allocation8 + $0x728] sm:$0xff]  ;;  %v370_v44 = vld [vmem:[#allocation8 + $0x738] sm:$0xff] }
 0x2a5   :  { %3894 = vmatpush1.bf16.msra.mxu0 %v1375_v60  ;;  %4222 = vmatpush1.bf16.msra.mxu1 %v1377_v61  ;;  %v1503_v60 = vunpack.c.h.s8.bf16 %v303_v51  ;;  %v1505_v61 = vunpack.c.h.s8.bf16 %v305_v52  ;;  %v367_v51 = vld [vmem:[#allocation8 + $0x720] sm:$0xff]  ;;  %v369_v52 = vld [vmem:[#allocation8 + $0x730] sm:$0xff] }
 0x2a6   :  { %3895 = vmatprep.subr.bf16.mxu0 %v1392_v63  ;;  %4223 = vmatprep.subr.bf16.mxu1 %v1394_v0  ;;  %v1520_v63 = vunpack.c.l.s8.bf16 %v320_v58  ;;  %v1522_v0 = vunpack.c.l.s8.bf16 %v322_v59 }
 0x2a9   :  { %3896 = vmatpush1.bf16.msra.mxu0 %v1391_v3  ;;  %4224 = vmatpush1.bf16.msra.mxu1 %v1393_v4  ;;  %v1519_v3 = vunpack.c.l.s8.bf16 %v319_v1  ;;  %v1521_v4 = vunpack.c.l.s8.bf16 %v321_v2 }
 0x2aa   :  { %3897 = vmatprep.subr.bf16.mxu0 %v1408_v6  ;;  %4225 = vmatprep.subr.bf16.mxu1 %v1410_v7  ;;  %v1536_v6 = vunpack.c.h.s8.bf16 %v320_v58  ;;  %v1538_v7 = vunpack.c.h.s8.bf16 %v322_v59  ;;  %v384_v58 = vld [vmem:[#allocation8 + $0x7a8] sm:$0xff]  ;;  %v386_v59 = vld [vmem:[#allocation8 + $0x7b8] sm:$0xff] }
 0x2ad   :  { %3898 = vmatpush1.bf16.msra.mxu0 %v1407_v10  ;;  %4226 = vmatpush1.bf16.msra.mxu1 %v1409_v11  ;;  %v1535_v10 = vunpack.c.h.s8.bf16 %v319_v1  ;;  %v1537_v11 = vunpack.c.h.s8.bf16 %v321_v2  ;;  %v383_v1 = vld [vmem:[#allocation8 + $0x7a0] sm:$0xff]  ;;  %v385_v2 = vld [vmem:[#allocation8 + $0x7b0] sm:$0xff] }
 0x2ae   :  { %3908 = vmatprep.subr.bf16.mxu0 %v1424_v12  ;;  %4236 = vmatprep.subr.bf16.mxu1 %v1426_v13  ;;  %v1552_v12 = vunpack.c.l.s8.bf16 %v336_v8  ;;  %v1554_v13 = vunpack.c.l.s8.bf16 %v338_v9 }
 0x2b0   :  { %3900 = vmatmul.mubr.bf16.vlgmr.msra.gmra.mrb[4].mxu0 %v12924_v43  ;;  %4228 = vmatmul.mubr.bf16.vlgmr.msra.gmra.mrb[4].mxu1 %v12924_v43 }
 0x2b1   :  { %3909 = vmatpush1.bf16.msra.mxu0 %v1423_v19  ;;  %4237 = vmatpush1.bf16.msra.mxu1 %v1425_v20  ;;  %v1551_v19 = vunpack.c.l.s8.bf16 %v335_v14  ;;  %v1553_v20 = vunpack.c.l.s8.bf16 %v337_v15 }
 0x2b2   :  { %3910 = vmatprep.subr.bf16.mxu0 %v1440_v22  ;;  %4238 = vmatprep.subr.bf16.mxu1 %v1442_v23  ;;  %v1568_v22 = vunpack.c.h.s8.bf16 %v336_v8  ;;  %v1570_v23 = vunpack.c.h.s8.bf16 %v338_v9  ;;  %v400_v8 = vld [vmem:[#allocation8 + $0x828] sm:$0xff]  ;;  %v402_v9 = vld [vmem:[#allocation8 + $0x838] sm:$0xff] }
 0x2b3   :  { %3940 = vmatprep.mubr.bf16.mxu0 %v12926_v50  ;;  %4268 = vmatprep.mubr.bf16.mxu1 %v12926_v50 }
 0x2b5   :  { %3911 = vmatpush1.bf16.msra.mxu0 %v1439_v28  ;;  %4239 = vmatpush1.bf16.msra.mxu1 %v1441_v29  ;;  %v1567_v28 = vunpack.c.h.s8.bf16 %v335_v14  ;;  %v1569_v29 = vunpack.c.h.s8.bf16 %v337_v15  ;;  %v399_v14 = vld [vmem:[#allocation8 + $0x820] sm:$0xff]  ;;  %v401_v15 = vld [vmem:[#allocation8 + $0x830] sm:$0xff] }
 0x2b6   :  { %3912 = vmatprep.subr.bf16.mxu0 %v1456_v32  ;;  %4240 = vmatprep.subr.bf16.mxu1 %v1458_v33  ;;  %v1584_v32 = vunpack.c.l.s8.bf16 %v352_v24  ;;  %v1586_v33 = vunpack.c.l.s8.bf16 %v354_v26 }
 0x2b9   :  { %3913 = vmatpush1.bf16.msra.mxu0 %v1455_v37  ;;  %4241 = vmatpush1.bf16.msra.mxu1 %v1457_v38  ;;  %v1583_v37 = vunpack.c.l.s8.bf16 %v351_v34  ;;  %v1585_v38 = vunpack.c.l.s8.bf16 %v353_v36 }
 0x2ba   :  { %3914 = vmatprep.subr.bf16.mxu0 %v1472_v40  ;;  %4242 = vmatprep.subr.bf16.mxu1 %v1474_v41  ;;  %v1600_v40 = vunpack.c.h.s8.bf16 %v352_v24  ;;  %v1602_v41 = vunpack.c.h.s8.bf16 %v354_v26  ;;  %v416_v24 = vld [vmem:[#allocation8 + $0x8a8] sm:$0xff]  ;;  %v418_v26 = vld [vmem:[#allocation8 + $0x8b8] sm:$0xff] }
 0x2bd   :  { %3915 = vmatpush1.bf16.msra.mxu0 %v1471_v46  ;;  %4243 = vmatpush1.bf16.msra.mxu1 %v1473_v47  ;;  %v1599_v46 = vunpack.c.h.s8.bf16 %v351_v34  ;;  %v1601_v47 = vunpack.c.h.s8.bf16 %v353_v36  ;;  %v415_v34 = vld [vmem:[#allocation8 + $0x8a0] sm:$0xff]  ;;  %v417_v36 = vld [vmem:[#allocation8 + $0x8b0] sm:$0xff] }
 0x2be   :  { %3916 = vmatprep.subr.bf16.mxu0 %v1488_v48  ;;  %4244 = vmatprep.subr.bf16.mxu1 %v1490_v49  ;;  %v1616_v48 = vunpack.c.l.s8.bf16 %v368_v42  ;;  %v1618_v49 = vunpack.c.l.s8.bf16 %v370_v44 }
 0x2c1   :  { %3917 = vmatpush1.bf16.msra.mxu0 %v1487_v54  ;;  %4245 = vmatpush1.bf16.msra.mxu1 %v1489_v55  ;;  %v1615_v54 = vunpack.c.l.s8.bf16 %v367_v51  ;;  %v1617_v55 = vunpack.c.l.s8.bf16 %v369_v52 }
 0x2c2   :  { %3918 = vmatprep.subr.bf16.mxu0 %v1504_v56  ;;  %4246 = vmatprep.subr.bf16.mxu1 %v1506_v57  ;;  %v1632_v56 = vunpack.c.h.s8.bf16 %v368_v42  ;;  %v1634_v57 = vunpack.c.h.s8.bf16 %v370_v44  ;;  %v432_v42 = vld [vmem:[#allocation8 + $0x928] sm:$0xff]  ;;  %v434_v44 = vld [vmem:[#allocation8 + $0x938] sm:$0xff] }
 0x2c5   :  { %3919 = vmatpush1.bf16.msra.mxu0 %v1503_v60  ;;  %4247 = vmatpush1.bf16.msra.mxu1 %v1505_v61  ;;  %v1631_v60 = vunpack.c.h.s8.bf16 %v367_v51  ;;  %v1633_v61 = vunpack.c.h.s8.bf16 %v369_v52  ;;  %v431_v51 = vld [vmem:[#allocation8 + $0x920] sm:$0xff]  ;;  %v433_v52 = vld [vmem:[#allocation8 + $0x930] sm:$0xff] }
 0x2c6   :  { %3920 = vmatprep.subr.bf16.mxu0 %v1520_v63  ;;  %4248 = vmatprep.subr.bf16.mxu1 %v1522_v0  ;;  %v1648_v63 = vunpack.c.l.s8.bf16 %v384_v58  ;;  %v1650_v0 = vunpack.c.l.s8.bf16 %v386_v59 }
 0x2c9   :  { %3921 = vmatpush1.bf16.msra.mxu0 %v1519_v3  ;;  %4249 = vmatpush1.bf16.msra.mxu1 %v1521_v4  ;;  %v1647_v3 = vunpack.c.l.s8.bf16 %v383_v1  ;;  %v1649_v4 = vunpack.c.l.s8.bf16 %v385_v2 }
 0x2ca   :  { %3922 = vmatprep.subr.bf16.mxu0 %v1536_v6  ;;  %4250 = vmatprep.subr.bf16.mxu1 %v1538_v7  ;;  %v1664_v6 = vunpack.c.h.s8.bf16 %v384_v58  ;;  %v1666_v7 = vunpack.c.h.s8.bf16 %v386_v59  ;;  %v448_v58 = vld [vmem:[#allocation8 + $0x9a8] sm:$0xff]  ;;  %v450_v59 = vld [vmem:[#allocation8 + $0x9b8] sm:$0xff] }
 0x2cd   :  { %3923 = vmatpush1.bf16.msra.mxu0 %v1535_v10  ;;  %4251 = vmatpush1.bf16.msra.mxu1 %v1537_v11  ;;  %v1663_v10 = vunpack.c.h.s8.bf16 %v383_v1  ;;  %v1665_v11 = vunpack.c.h.s8.bf16 %v385_v2  ;;  %v447_v1 = vld [vmem:[#allocation8 + $0x9a0] sm:$0xff]  ;;  %v449_v2 = vld [vmem:[#allocation8 + $0x9b0] sm:$0xff] }
 0x2ce   :  { %3924 = vmatprep.subr.bf16.mxu0 %v1552_v12  ;;  %4252 = vmatprep.subr.bf16.mxu1 %v1554_v13  ;;  %v1680_v12 = vunpack.c.l.s8.bf16 %v400_v8  ;;  %v1682_v13 = vunpack.c.l.s8.bf16 %v402_v9 }
 0x2d1   :  { %3925 = vmatpush1.bf16.msra.mxu0 %v1551_v19  ;;  %4253 = vmatpush1.bf16.msra.mxu1 %v1553_v20  ;;  %v1679_v19 = vunpack.c.l.s8.bf16 %v399_v14  ;;  %v1681_v20 = vunpack.c.l.s8.bf16 %v401_v15 }
 0x2d2   :  { %3926 = vmatprep.subr.bf16.mxu0 %v1568_v22  ;;  %4254 = vmatprep.subr.bf16.mxu1 %v1570_v23  ;;  %v1696_v22 = vunpack.c.h.s8.bf16 %v400_v8  ;;  %v1698_v23 = vunpack.c.h.s8.bf16 %v402_v9  ;;  %v464_v8 = vld [vmem:[#allocation8 + $0xa28] sm:$0xff]  ;;  %v466_v9 = vld [vmem:[#allocation8 + $0xa38] sm:$0xff] }
 0x2d5   :  { %3927 = vmatpush1.bf16.msra.mxu0 %v1567_v28  ;;  %4255 = vmatpush1.bf16.msra.mxu1 %v1569_v29  ;;  %v1695_v28 = vunpack.c.h.s8.bf16 %v399_v14  ;;  %v1697_v29 = vunpack.c.h.s8.bf16 %v401_v15  ;;  %v463_v14 = vld [vmem:[#allocation8 + $0xa20] sm:$0xff]  ;;  %v465_v15 = vld [vmem:[#allocation8 + $0xa30] sm:$0xff] }
 0x2d6   :  { %3928 = vmatprep.subr.bf16.mxu0 %v1584_v32  ;;  %4256 = vmatprep.subr.bf16.mxu1 %v1586_v33  ;;  %v1712_v32 = vunpack.c.l.s8.bf16 %v416_v24  ;;  %v1714_v33 = vunpack.c.l.s8.bf16 %v418_v26 }
 0x2d9   :  { %3929 = vmatpush1.bf16.msra.mxu0 %v1583_v37  ;;  %4257 = vmatpush1.bf16.msra.mxu1 %v1585_v38  ;;  %v1711_v37 = vunpack.c.l.s8.bf16 %v415_v34  ;;  %v1713_v38 = vunpack.c.l.s8.bf16 %v417_v36 }
 0x2da   :  { %3930 = vmatprep.subr.bf16.mxu0 %v1600_v40  ;;  %4258 = vmatprep.subr.bf16.mxu1 %v1602_v41  ;;  %v1728_v40 = vunpack.c.h.s8.bf16 %v416_v24  ;;  %v1730_v41 = vunpack.c.h.s8.bf16 %v418_v26  ;;  %v480_v24 = vld [vmem:[#allocation8 + $0xaa8] sm:$0xff]  ;;  %v482_v26 = vld [vmem:[#allocation8 + $0xab8] sm:$0xff] }
 0x2dd   :  { %3931 = vmatpush1.bf16.msra.mxu0 %v1599_v46  ;;  %4259 = vmatpush1.bf16.msra.mxu1 %v1601_v47  ;;  %v1727_v46 = vunpack.c.h.s8.bf16 %v415_v34  ;;  %v1729_v47 = vunpack.c.h.s8.bf16 %v417_v36  ;;  %v479_v34 = vld [vmem:[#allocation8 + $0xaa0] sm:$0xff]  ;;  %v481_v36 = vld [vmem:[#allocation8 + $0xab0] sm:$0xff] }
 0x2de   :  { %3932 = vmatprep.subr.bf16.mxu0 %v1616_v48  ;;  %4260 = vmatprep.subr.bf16.mxu1 %v1618_v49  ;;  %v1744_v48 = vunpack.c.l.s8.bf16 %v432_v42  ;;  %v1746_v49 = vunpack.c.l.s8.bf16 %v434_v44 }
 0x2e1   :  { %3933 = vmatpush1.bf16.msra.mxu0 %v1615_v54  ;;  %4261 = vmatpush1.bf16.msra.mxu1 %v1617_v55  ;;  %v1743_v54 = vunpack.c.l.s8.bf16 %v431_v51  ;;  %v1745_v55 = vunpack.c.l.s8.bf16 %v433_v52 }
 0x2e2   :  { %3934 = vmatprep.subr.bf16.mxu0 %v1632_v56  ;;  %4262 = vmatprep.subr.bf16.mxu1 %v1634_v57  ;;  %v1760_v56 = vunpack.c.h.s8.bf16 %v432_v42  ;;  %v1762_v57 = vunpack.c.h.s8.bf16 %v434_v44  ;;  %v496_v42 = vld [vmem:[#allocation8 + $0xb28] sm:$0xff]  ;;  %v498_v44 = vld [vmem:[#allocation8 + $0xb38] sm:$0xff] }
 0x2e5   :  { %3935 = vmatpush1.bf16.msra.mxu0 %v1631_v60  ;;  %4263 = vmatpush1.bf16.msra.mxu1 %v1633_v61  ;;  %v1759_v60 = vunpack.c.h.s8.bf16 %v431_v51  ;;  %v1761_v61 = vunpack.c.h.s8.bf16 %v433_v52  ;;  %v495_v51 = vld [vmem:[#allocation8 + $0xb20] sm:$0xff]  ;;  %v497_v52 = vld [vmem:[#allocation8 + $0xb30] sm:$0xff] }
 0x2e6   :  { %3936 = vmatprep.subr.bf16.mxu0 %v1648_v63  ;;  %4264 = vmatprep.subr.bf16.mxu1 %v1650_v0  ;;  %v1776_v63 = vunpack.c.l.s8.bf16 %v448_v58  ;;  %v1778_v0 = vunpack.c.l.s8.bf16 %v450_v59 }
 0x2e9   :  { %3937 = vmatpush1.bf16.msra.mxu0 %v1647_v3  ;;  %4265 = vmatpush1.bf16.msra.mxu1 %v1649_v4  ;;  %v1775_v3 = vunpack.c.l.s8.bf16 %v447_v1  ;;  %v1777_v4 = vunpack.c.l.s8.bf16 %v449_v2 }
 0x2ea   :  { %3938 = vmatprep.subr.bf16.mxu0 %v1664_v6  ;;  %4266 = vmatprep.subr.bf16.mxu1 %v1666_v7  ;;  %v1792_v6 = vunpack.c.h.s8.bf16 %v448_v58  ;;  %v1794_v7 = vunpack.c.h.s8.bf16 %v450_v59  ;;  %v512_v58 = vld [vmem:[#allocation8 + $0xba8] sm:$0xff]  ;;  %v514_v59 = vld [vmem:[#allocation8 + $0xbb8] sm:$0xff] }
 0x2ed   :  { %3939 = vmatpush1.bf16.msra.mxu0 %v1663_v10  ;;  %4267 = vmatpush1.bf16.msra.mxu1 %v1665_v11  ;;  %v1791_v10 = vunpack.c.h.s8.bf16 %v447_v1  ;;  %v1793_v11 = vunpack.c.h.s8.bf16 %v449_v2  ;;  %v511_v1 = vld [vmem:[#allocation8 + $0xba0] sm:$0xff]  ;;  %v513_v2 = vld [vmem:[#allocation8 + $0xbb0] sm:$0xff] }
 0x2ee   :  { %3949 = vmatprep.subr.bf16.mxu0 %v1680_v12  ;;  %4277 = vmatprep.subr.bf16.mxu1 %v1682_v13  ;;  %v1808_v12 = vunpack.c.l.s8.bf16 %v464_v8  ;;  %v1810_v13 = vunpack.c.l.s8.bf16 %v466_v9 }
 0x2f0   :  { %3941 = vmatmul.mubr.bf16.vlgmr.msra.gmra.mrb[4].mxu0 %v12932_v18  ;;  %4269 = vmatmul.mubr.bf16.vlgmr.msra.gmra.mrb[4].mxu1 %v12932_v18 }
 0x2f1   :  { %3950 = vmatpush1.bf16.msra.mxu0 %v1679_v19  ;;  %4278 = vmatpush1.bf16.msra.mxu1 %v1681_v20  ;;  %v1807_v19 = vunpack.c.l.s8.bf16 %v463_v14  ;;  %v1809_v20 = vunpack.c.l.s8.bf16 %v465_v15 }
 0x2f2   :  { %3951 = vmatprep.subr.bf16.mxu0 %v1696_v22  ;;  %4279 = vmatprep.subr.bf16.mxu1 %v1698_v23  ;;  %v1824_v22 = vunpack.c.h.s8.bf16 %v464_v8  ;;  %v1826_v23 = vunpack.c.h.s8.bf16 %v466_v9  ;;  %v528_v8 = vld [vmem:[#allocation8 + $0xc28] sm:$0xff]  ;;  %v530_v9 = vld [vmem:[#allocation8 + $0xc38] sm:$0xff] }
 0x2f3   :  { %3981 = vmatprep.mubr.bf16.mxu0 %v12934_v25  ;;  %4309 = vmatprep.mubr.bf16.mxu1 %v12934_v25 }
 0x2f5   :  { %3952 = vmatpush1.bf16.msra.mxu0 %v1695_v28  ;;  %4280 = vmatpush1.bf16.msra.mxu1 %v1697_v29  ;;  %v1823_v28 = vunpack.c.h.s8.bf16 %v463_v14  ;;  %v1825_v29 = vunpack.c.h.s8.bf16 %v465_v15  ;;  %v527_v14 = vld [vmem:[#allocation8 + $0xc20] sm:$0xff]  ;;  %v529_v15 = vld [vmem:[#allocation8 + $0xc30] sm:$0xff] }
 0x2f6   :  { %3953 = vmatprep.subr.bf16.mxu0 %v1712_v32  ;;  %4281 = vmatprep.subr.bf16.mxu1 %v1714_v33  ;;  %v1840_v32 = vunpack.c.l.s8.bf16 %v480_v24  ;;  %v1842_v33 = vunpack.c.l.s8.bf16 %v482_v26 }
 0x2f9   :  { %3954 = vmatpush1.bf16.msra.mxu0 %v1711_v37  ;;  %4282 = vmatpush1.bf16.msra.mxu1 %v1713_v38  ;;  %v1839_v37 = vunpack.c.l.s8.bf16 %v479_v34  ;;  %v1841_v38 = vunpack.c.l.s8.bf16 %v481_v36 }
 0x2fa   :  { %3955 = vmatprep.subr.bf16.mxu0 %v1728_v40  ;;  %4283 = vmatprep.subr.bf16.mxu1 %v1730_v41  ;;  %v1856_v40 = vunpack.c.h.s8.bf16 %v480_v24  ;;  %v1858_v41 = vunpack.c.h.s8.bf16 %v482_v26  ;;  %v544_v24 = vld [vmem:[#allocation8 + $0xca8] sm:$0xff]  ;;  %v546_v26 = vld [vmem:[#allocation8 + $0xcb8] sm:$0xff] }
 0x2fd   :  { %3956 = vmatpush1.bf16.msra.mxu0 %v1727_v46  ;;  %4284 = vmatpush1.bf16.msra.mxu1 %v1729_v47  ;;  %v1855_v46 = vunpack.c.h.s8.bf16 %v479_v34  ;;  %v1857_v47 = vunpack.c.h.s8.bf16 %v481_v36  ;;  %v543_v34 = vld [vmem:[#allocation8 + $0xca0] sm:$0xff]  ;;  %v545_v36 = vld [vmem:[#allocation8 + $0xcb0] sm:$0xff] }
 0x2fe   :  { %3957 = vmatprep.subr.bf16.mxu0 %v1744_v48  ;;  %4285 = vmatprep.subr.bf16.mxu1 %v1746_v49  ;;  %v1872_v48 = vunpack.c.l.s8.bf16 %v496_v42  ;;  %v1874_v49 = vunpack.c.l.s8.bf16 %v498_v44 }
 0x301   :  { %3958 = vmatpush1.bf16.msra.mxu0 %v1743_v54  ;;  %4286 = vmatpush1.bf16.msra.mxu1 %v1745_v55  ;;  %v1871_v54 = vunpack.c.l.s8.bf16 %v495_v51  ;;  %v1873_v55 = vunpack.c.l.s8.bf16 %v497_v52 }
 0x302   :  { %3959 = vmatprep.subr.bf16.mxu0 %v1760_v56  ;;  %4287 = vmatprep.subr.bf16.mxu1 %v1762_v57  ;;  %v1888_v56 = vunpack.c.h.s8.bf16 %v496_v42  ;;  %v1890_v57 = vunpack.c.h.s8.bf16 %v498_v44  ;;  %v560_v42 = vld [vmem:[#allocation8 + $0xd28] sm:$0xff]  ;;  %v562_v44 = vld [vmem:[#allocation8 + $0xd38] sm:$0xff] }
 0x305   :  { %3960 = vmatpush1.bf16.msra.mxu0 %v1759_v60  ;;  %4288 = vmatpush1.bf16.msra.mxu1 %v1761_v61  ;;  %v1887_v60 = vunpack.c.h.s8.bf16 %v495_v51  ;;  %v1889_v61 = vunpack.c.h.s8.bf16 %v497_v52  ;;  %v559_v51 = vld [vmem:[#allocation8 + $0xd20] sm:$0xff]  ;;  %v561_v52 = vld [vmem:[#allocation8 + $0xd30] sm:$0xff] }
 0x306   :  { %3961 = vmatprep.subr.bf16.mxu0 %v1776_v63  ;;  %4289 = vmatprep.subr.bf16.mxu1 %v1778_v0  ;;  %v1904_v63 = vunpack.c.l.s8.bf16 %v512_v58  ;;  %v1906_v0 = vunpack.c.l.s8.bf16 %v514_v59 }
 0x309   :  { %3962 = vmatpush1.bf16.msra.mxu0 %v1775_v3  ;;  %4290 = vmatpush1.bf16.msra.mxu1 %v1777_v4  ;;  %v1903_v3 = vunpack.c.l.s8.bf16 %v511_v1  ;;  %v1905_v4 = vunpack.c.l.s8.bf16 %v513_v2 }
 0x30a   :  { %3963 = vmatprep.subr.bf16.mxu0 %v1792_v6  ;;  %4291 = vmatprep.subr.bf16.mxu1 %v1794_v7  ;;  %v1920_v6 = vunpack.c.h.s8.bf16 %v512_v58  ;;  %v1922_v7 = vunpack.c.h.s8.bf16 %v514_v59  ;;  %v576_v58 = vld [vmem:[#allocation8 + $0xda8] sm:$0xff]  ;;  %v578_v59 = vld [vmem:[#allocation8 + $0xdb8] sm:$0xff] }
 0x30d   :  { %3964 = vmatpush1.bf16.msra.mxu0 %v1791_v10  ;;  %4292 = vmatpush1.bf16.msra.mxu1 %v1793_v11  ;;  %v1919_v10 = vunpack.c.h.s8.bf16 %v511_v1  ;;  %v1921_v11 = vunpack.c.h.s8.bf16 %v513_v2  ;;  %v575_v1 = vld [vmem:[#allocation8 + $0xda0] sm:$0xff]  ;;  %v577_v2 = vld [vmem:[#allocation8 + $0xdb0] sm:$0xff] }
 0x30e   :  { %3965 = vmatprep.subr.bf16.mxu0 %v1808_v12  ;;  %4293 = vmatprep.subr.bf16.mxu1 %v1810_v13  ;;  %v1936_v12 = vunpack.c.l.s8.bf16 %v528_v8  ;;  %v1938_v13 = vunpack.c.l.s8.bf16 %v530_v9 }
 0x311   :  { %3966 = vmatpush1.bf16.msra.mxu0 %v1807_v19  ;;  %4294 = vmatpush1.bf16.msra.mxu1 %v1809_v20  ;;  %v1935_v19 = vunpack.c.l.s8.bf16 %v527_v14  ;;  %v1937_v20 = vunpack.c.l.s8.bf16 %v529_v15 }
 0x312   :  { %3967 = vmatprep.subr.bf16.mxu0 %v1824_v22  ;;  %4295 = vmatprep.subr.bf16.mxu1 %v1826_v23  ;;  %v1952_v22 = vunpack.c.h.s8.bf16 %v528_v8  ;;  %v1954_v23 = vunpack.c.h.s8.bf16 %v530_v9 }
 0x315   :  { %3968 = vmatpush1.bf16.msra.mxu0 %v1823_v28  ;;  %4296 = vmatpush1.bf16.msra.mxu1 %v1825_v29  ;;  %v1951_v28 = vunpack.c.h.s8.bf16 %v527_v14  ;;  %v1953_v29 = vunpack.c.h.s8.bf16 %v529_v15  ;;  %v2048_v14 = vunpack.c.h.s8.bf16 %v576_v58  ;;  %v2050_v15 = vunpack.c.h.s8.bf16 %v578_v59 }
 0x316   :  { %3969 = vmatprep.subr.bf16.mxu0 %v1840_v32  ;;  %4297 = vmatprep.subr.bf16.mxu1 %v1842_v33  ;;  %v1968_v32 = vunpack.c.l.s8.bf16 %v544_v24  ;;  %v1970_v33 = vunpack.c.l.s8.bf16 %v546_v26 }
 0x319   :  { %3970 = vmatpush1.bf16.msra.mxu0 %v1839_v37  ;;  %4298 = vmatpush1.bf16.msra.mxu1 %v1841_v38  ;;  %v1967_v37 = vunpack.c.l.s8.bf16 %v543_v34  ;;  %v1969_v38 = vunpack.c.l.s8.bf16 %v545_v36 }
 0x31a   :  { %3971 = vmatprep.subr.bf16.mxu0 %v1856_v40  ;;  %4299 = vmatprep.subr.bf16.mxu1 %v1858_v41  ;;  %v1984_v40 = vunpack.c.h.s8.bf16 %v544_v24  ;;  %v1986_v41 = vunpack.c.h.s8.bf16 %v546_v26 }
 0x31d   :  { %3972 = vmatpush1.bf16.msra.mxu0 %v1855_v46  ;;  %4300 = vmatpush1.bf16.msra.mxu1 %v1857_v47  ;;  %v1983_v46 = vunpack.c.h.s8.bf16 %v543_v34  ;;  %v1985_v47 = vunpack.c.h.s8.bf16 %v545_v36 }
 0x31e   :  { %3973 = vmatprep.subr.bf16.mxu0 %v1872_v48  ;;  %4301 = vmatprep.subr.bf16.mxu1 %v1874_v49  ;;  %v2000_v48 = vunpack.c.l.s8.bf16 %v560_v42  ;;  %v2002_v49 = vunpack.c.l.s8.bf16 %v562_v44 }
 0x321   :  { %3974 = vmatpush1.bf16.msra.mxu0 %v1871_v54  ;;  %4302 = vmatpush1.bf16.msra.mxu1 %v1873_v55  ;;  %v1999_v54 = vunpack.c.l.s8.bf16 %v559_v51  ;;  %v2001_v55 = vunpack.c.l.s8.bf16 %v561_v52 }
 0x322   :  { %3975 = vmatprep.subr.bf16.mxu0 %v1888_v56  ;;  %4303 = vmatprep.subr.bf16.mxu1 %v1890_v57  ;;  %v2016_v56 = vunpack.c.h.s8.bf16 %v560_v42  ;;  %v2018_v57 = vunpack.c.h.s8.bf16 %v562_v44 }
 0x325   :  { %3976 = vmatpush1.bf16.msra.mxu0 %v1887_v60  ;;  %4304 = vmatpush1.bf16.msra.mxu1 %v1889_v61  ;;  %v2015_v60 = vunpack.c.h.s8.bf16 %v559_v51  ;;  %v2017_v61 = vunpack.c.h.s8.bf16 %v561_v52 }
 0x326   :  { %3977 = vmatprep.subr.bf16.mxu0 %v1904_v63  ;;  %4305 = vmatprep.subr.bf16.mxu1 %v1906_v0  ;;  %v2032_v63 = vunpack.c.l.s8.bf16 %v576_v58  ;;  %v2034_v0 = vunpack.c.l.s8.bf16 %v578_v59 }
 0x329   :  { %3978 = vmatpush1.bf16.msra.mxu0 %v1903_v3  ;;  %4306 = vmatpush1.bf16.msra.mxu1 %v1905_v4 }
 0x32a   :  { %3979 = vmatprep.subr.bf16.mxu0 %v1920_v6  ;;  %4307 = vmatprep.subr.bf16.mxu1 %v1922_v7 }
 0x32d   :  { %3980 = vmatpush1.bf16.msra.mxu0 %v1919_v10  ;;  %4308 = vmatpush1.bf16.msra.mxu1 %v1921_v11  ;;  %v2031_v10 = vunpack.c.l.s8.bf16 %v575_v1  ;;  %v2033_v11 = vunpack.c.l.s8.bf16 %v577_v2 }
 0x32e   :  { %3990 = vmatprep.subr.bf16.mxu0 %v1936_v12  ;;  %4318 = vmatprep.subr.bf16.mxu1 %v1938_v13 }
 0x330   :  { %3982 = vmatmul.mubr.bf16.vlgmr.msra.gmra.mrb[4].mxu0 %v12940_v62  ;;  %4310 = vmatmul.mubr.bf16.vlgmr.msra.gmra.mrb[4].mxu1 %v12940_v62 }
 0x331   :  { %3991 = vmatpush1.bf16.msra.mxu0 %v1935_v19  ;;  %4319 = vmatpush1.bf16.msra.mxu1 %v1937_v20  ;;  %v592_v19 = vld [vmem:[#allocation8 + $0xe28] sm:$0xff]  ;;  %v594_v20 = vld [vmem:[#allocation8 + $0xe38] sm:$0xff] }
 0x332   :  { %3992 = vmatprep.subr.bf16.mxu0 %v1952_v22  ;;  %4320 = vmatprep.subr.bf16.mxu1 %v1954_v23  ;;  %v2047_v22 = vunpack.c.h.s8.bf16 %v575_v1  ;;  %v2049_v23 = vunpack.c.h.s8.bf16 %v577_v2  ;;  %v2064_v24 = vunpack.c.l.s8.bf16 %v592_v19  ;;  %v2066_v26 = vunpack.c.l.s8.bf16 %v594_v20 }
 0x333   :  { %4022 = vmatprep.mubr.bf16.mxu0 %v12942_v5  ;;  %4350 = vmatprep.mubr.bf16.mxu1 %v12942_v5  ;;  %v2080_v34 = vunpack.c.h.s8.bf16 %v592_v19  ;;  %v2082_v36 = vunpack.c.h.s8.bf16 %v594_v20 }
 0x335   :  { %3993 = vmatpush1.bf16.msra.mxu0 %v1951_v28  ;;  %4321 = vmatpush1.bf16.msra.mxu1 %v1953_v29  ;;  %v591_v28 = vld [vmem:[#allocation8 + $0xe20] sm:$0xff]  ;;  %v593_v29 = vld [vmem:[#allocation8 + $0xe30] sm:$0xff] }
 0x336   :  { %3994 = vmatprep.subr.bf16.mxu0 %v1968_v32  ;;  %4322 = vmatprep.subr.bf16.mxu1 %v1970_v33  ;;  %v2063_v32 = vunpack.c.l.s8.bf16 %v591_v28  ;;  %v2065_v33 = vunpack.c.l.s8.bf16 %v593_v29 }
 0x339   :  { %3995 = vmatpush1.bf16.msra.mxu0 %v1967_v37  ;;  %4323 = vmatpush1.bf16.msra.mxu1 %v1969_v38  ;;  %v608_v37 = vld [vmem:[#allocation8 + $0xea8] sm:$0xff]  ;;  %v610_v38 = vld [vmem:[#allocation8 + $0xeb8] sm:$0xff] }
 0x33a   :  { %3996 = vmatprep.subr.bf16.mxu0 %v1984_v40  ;;  %4324 = vmatprep.subr.bf16.mxu1 %v1986_v41  ;;  %v2079_v40 = vunpack.c.h.s8.bf16 %v591_v28  ;;  %v2081_v41 = vunpack.c.h.s8.bf16 %v593_v29  ;;  %v2096_v42 = vunpack.c.l.s8.bf16 %v608_v37  ;;  %v2098_v44 = vunpack.c.l.s8.bf16 %v610_v38 }
 0x33b   :  { %v2112_v51 = vunpack.c.h.s8.bf16 %v608_v37  ;;  %v2114_v52 = vunpack.c.h.s8.bf16 %v610_v38 }
 0x33d   :  { %3997 = vmatpush1.bf16.msra.mxu0 %v1983_v46  ;;  %4325 = vmatpush1.bf16.msra.mxu1 %v1985_v47  ;;  %v607_v46 = vld [vmem:[#allocation8 + $0xea0] sm:$0xff]  ;;  %v609_v47 = vld [vmem:[#allocation8 + $0xeb0] sm:$0xff] }
 0x33e   :  { %3998 = vmatprep.subr.bf16.mxu0 %v2000_v48  ;;  %4326 = vmatprep.subr.bf16.mxu1 %v2002_v49  ;;  %v2095_v48 = vunpack.c.l.s8.bf16 %v607_v46  ;;  %v2097_v49 = vunpack.c.l.s8.bf16 %v609_v47 }
 0x341   :  { %3999 = vmatpush1.bf16.msra.mxu0 %v1999_v54  ;;  %4327 = vmatpush1.bf16.msra.mxu1 %v2001_v55  ;;  %v624_v54 = vld [vmem:[#allocation8 + $0xf28] sm:$0xff]  ;;  %v626_v55 = vld [vmem:[#allocation8 + $0xf38] sm:$0xff] }
 0x342   :  { %4000 = vmatprep.subr.bf16.mxu0 %v2016_v56  ;;  %4328 = vmatprep.subr.bf16.mxu1 %v2018_v57  ;;  %v2111_v56 = vunpack.c.h.s8.bf16 %v607_v46  ;;  %v2113_v57 = vunpack.c.h.s8.bf16 %v609_v47  ;;  %v2128_v58 = vunpack.c.l.s8.bf16 %v624_v54  ;;  %v2130_v59 = vunpack.c.l.s8.bf16 %v626_v55 }
 0x343   :  { %v12998_v3 = vpop.f32.mrb[0].mxu0  ;;  %v13000_v4 = vpop.f32.mrb[0].mxu1  ;;  %v2144_v1 = vunpack.c.h.s8.bf16 %v624_v54  ;;  %v2146_v2 = vunpack.c.h.s8.bf16 %v626_v55 }
 0x344   :  { %v13002_v6 = vpop.f32.mrb[1].mxu0  ;;  %v13004_v7 = vpop.f32.mrb[1].mxu1 }
 0x345   :  { %v3536_v8 = vpop.f32.mrb[2].mxu0  ;;  %v3864_v9 = vpop.f32.mrb[2].mxu1  ;;  %4001 = vmatpush1.bf16.msra.mxu0 %v2015_v60  ;;  %4329 = vmatpush1.bf16.msra.mxu1 %v2017_v61  ;;  %v623_v60 = vld [vmem:[#allocation8 + $0xf20] sm:$0xff]  ;;  %v625_v61 = vld [vmem:[#allocation8 + $0xf30] sm:$0xff] }
 0x346   :  { %v3537_v12 = vpop.f32.mrb[3].mxu0  ;;  %v3865_v13 = vpop.f32.mrb[3].mxu1  ;;  %4002 = vmatprep.subr.bf16.mxu0 %v2032_v63  ;;  %4330 = vmatprep.subr.bf16.mxu1 %v2034_v0  ;;  %v2127_v63 = vunpack.c.l.s8.bf16 %v623_v60  ;;  %v2129_v0 = vunpack.c.l.s8.bf16 %v625_v61  ;;  %v640_v8 = vld [vmem:[#allocation8 + $0xfa8] sm:$0xff]  ;;  %v642_v9 = vld [vmem:[#allocation8 + $0xfb8] sm:$0xff] }
 0x347   :  { %v2160_v12 = vunpack.c.l.s8.bf16 %v640_v8  ;;  %v2162_v13 = vunpack.c.l.s8.bf16 %v642_v9 }
 0x349   :  { %4003 = vmatpush1.bf16.msra.mxu0 %v2031_v10  ;;  %4331 = vmatpush1.bf16.msra.mxu1 %v2033_v11  ;;  %v2143_v10 = vunpack.c.h.s8.bf16 %v623_v60  ;;  %v2145_v11 = vunpack.c.h.s8.bf16 %v625_v61 }
 0x34a   :  { %4004 = vmatprep.subr.bf16.mxu0 %v2048_v14  ;;  %4332 = vmatprep.subr.bf16.mxu1 %v2050_v15  ;;  %v639_v14 = vld [vmem:[#allocation8 + $0xfa0] sm:$0xff]  ;;  %v641_v15 = vld [vmem:[#allocation8 + $0xfb0] sm:$0xff] }
 0x34b   :  { %v2159_v19 = vunpack.c.l.s8.bf16 %v639_v14  ;;  %v2161_v20 = vunpack.c.l.s8.bf16 %v641_v15  ;;  %v2175_v28 = vunpack.c.h.s8.bf16 %v639_v14  ;;  %v2177_v29 = vunpack.c.h.s8.bf16 %v641_v15 }
 0x34d   :  { %4005 = vmatpush1.bf16.msra.mxu0 %v2047_v22  ;;  %4333 = vmatpush1.bf16.msra.mxu1 %v2049_v23  ;;  %v2176_v22 = vunpack.c.h.s8.bf16 %v640_v8  ;;  %v2178_v23 = vunpack.c.h.s8.bf16 %v642_v9 }
 0x34e   :  { %4006 = vmatprep.subr.bf16.mxu0 %v2064_v24  ;;  %4334 = vmatprep.subr.bf16.mxu1 %v2066_v26  ;;  %v656_v24 = vld [vmem:[#allocation8 + $0x1028] sm:$0xff]  ;;  %v658_v26 = vld [vmem:[#allocation8 + $0x1038] sm:$0xff] }
 0x351   :  { %4007 = vmatpush1.bf16.msra.mxu0 %v2063_v32  ;;  %4335 = vmatpush1.bf16.msra.mxu1 %v2065_v33  ;;  %v2192_v32 = vunpack.c.l.s8.bf16 %v656_v24  ;;  %v2194_v33 = vunpack.c.l.s8.bf16 %v658_v26 }
 0x352   :  { %4008 = vmatprep.subr.bf16.mxu0 %v2080_v34  ;;  %4336 = vmatprep.subr.bf16.mxu1 %v2082_v36  ;;  %v655_v34 = vld [vmem:[#allocation8 + $0x1020] sm:$0xff]  ;;  %v657_v36 = vld [vmem:[#allocation8 + $0x1030] sm:$0xff] }
 0x353   :  { %v2191_v37 = vunpack.c.l.s8.bf16 %v655_v34  ;;  %v2193_v38 = vunpack.c.l.s8.bf16 %v657_v36  ;;  %v2207_v46 = vunpack.c.h.s8.bf16 %v655_v34  ;;  %v2209_v47 = vunpack.c.h.s8.bf16 %v657_v36 }
 0x355   :  { %4009 = vmatpush1.bf16.msra.mxu0 %v2079_v40  ;;  %4337 = vmatpush1.bf16.msra.mxu1 %v2081_v41  ;;  %v2208_v40 = vunpack.c.h.s8.bf16 %v656_v24  ;;  %v2210_v41 = vunpack.c.h.s8.bf16 %v658_v26 }
 0x356   :  { %4010 = vmatprep.subr.bf16.mxu0 %v2096_v42  ;;  %4338 = vmatprep.subr.bf16.mxu1 %v2098_v44  ;;  %v672_v42 = vld [vmem:[#allocation8 + $0x10a8] sm:$0xff]  ;;  %v674_v44 = vld [vmem:[#allocation8 + $0x10b8] sm:$0xff] }
 0x359   :  { %4011 = vmatpush1.bf16.msra.mxu0 %v2095_v48  ;;  %4339 = vmatpush1.bf16.msra.mxu1 %v2097_v49  ;;  %v2224_v48 = vunpack.c.l.s8.bf16 %v672_v42  ;;  %v2226_v49 = vunpack.c.l.s8.bf16 %v674_v44 }
 0x35a   :  { %4012 = vmatprep.subr.bf16.mxu0 %v2112_v51  ;;  %4340 = vmatprep.subr.bf16.mxu1 %v2114_v52  ;;  %v671_v51 = vld [vmem:[#allocation8 + $0x10a0] sm:$0xff]  ;;  %v673_v52 = vld [vmem:[#allocation8 + $0x10b0] sm:$0xff] }
 0x35b   :  { %v2223_v54 = vunpack.c.l.s8.bf16 %v671_v51  ;;  %v2225_v55 = vunpack.c.l.s8.bf16 %v673_v52  ;;  %v2239_v60 = vunpack.c.h.s8.bf16 %v671_v51  ;;  %v2241_v61 = vunpack.c.h.s8.bf16 %v673_v52 }
 0x35d   :  { %4013 = vmatpush1.bf16.msra.mxu0 %v2111_v56  ;;  %4341 = vmatpush1.bf16.msra.mxu1 %v2113_v57  ;;  %v2240_v56 = vunpack.c.h.s8.bf16 %v672_v42  ;;  %v2242_v57 = vunpack.c.h.s8.bf16 %v674_v44 }
 0x35e   :  { %4014 = vmatprep.subr.bf16.mxu0 %v2128_v58  ;;  %4342 = vmatprep.subr.bf16.mxu1 %v2130_v59  ;;  %v688_v58 = vld [vmem:[#allocation8 + $0x1128] sm:$0xff]  ;;  %v690_v59 = vld [vmem:[#allocation8 + $0x1138] sm:$0xff] }
 0x361   :  { %4015 = vmatpush1.bf16.msra.mxu0 %v2127_v63  ;;  %4343 = vmatpush1.bf16.msra.mxu1 %v2129_v0  ;;  %v2256_v63 = vunpack.c.l.s8.bf16 %v688_v58  ;;  %v2258_v0 = vunpack.c.l.s8.bf16 %v690_v59 }
 0x362   :  { %4016 = vmatprep.subr.bf16.mxu0 %v2144_v1  ;;  %4344 = vmatprep.subr.bf16.mxu1 %v2146_v2  ;;  %v687_v1 = vld [vmem:[#allocation8 + $0x1120] sm:$0xff]  ;;  %v689_v2 = vld [vmem:[#allocation8 + $0x1130] sm:$0xff] }
 0x363   :  { %v2255_v8 = vunpack.c.l.s8.bf16 %v687_v1  ;;  %v2257_v9 = vunpack.c.l.s8.bf16 %v689_v2  ;;  %v2271_v14 = vunpack.c.h.s8.bf16 %v687_v1  ;;  %v2273_v15 = vunpack.c.h.s8.bf16 %v689_v2 }
 0x365   :  { %4017 = vmatpush1.bf16.msra.mxu0 %v2143_v10  ;;  %4345 = vmatpush1.bf16.msra.mxu1 %v2145_v11  ;;  %v2272_v10 = vunpack.c.h.s8.bf16 %v688_v58  ;;  %v2274_v11 = vunpack.c.h.s8.bf16 %v690_v59 }
 0x366   :  { %4018 = vmatprep.subr.bf16.mxu0 %v2160_v12  ;;  %4346 = vmatprep.subr.bf16.mxu1 %v2162_v13  ;;  %v704_v12 = vld [vmem:[#allocation8 + $0x11a8] sm:$0xff]  ;;  %v706_v13 = vld [vmem:[#allocation8 + $0x11b8] sm:$0xff] }
 0x369   :  { %4019 = vmatpush1.bf16.msra.mxu0 %v2159_v19  ;;  %4347 = vmatpush1.bf16.msra.mxu1 %v2161_v20  ;;  %v2288_v19 = vunpack.c.l.s8.bf16 %v704_v12  ;;  %v2290_v20 = vunpack.c.l.s8.bf16 %v706_v13 }
 0x36a   :  { %4020 = vmatprep.subr.bf16.mxu0 %v2176_v22  ;;  %4348 = vmatprep.subr.bf16.mxu1 %v2178_v23  ;;  %v703_v22 = vld [vmem:[#allocation8 + $0x11a0] sm:$0xff]  ;;  %v705_v23 = vld [vmem:[#allocation8 + $0x11b0] sm:$0xff] }
 0x36b   :  { %v2287_v24 = vunpack.c.l.s8.bf16 %v703_v22  ;;  %v2289_v26 = vunpack.c.l.s8.bf16 %v705_v23  ;;  %v2303_v34 = vunpack.c.h.s8.bf16 %v703_v22  ;;  %v2305_v36 = vunpack.c.h.s8.bf16 %v705_v23 }
 0x36d   :  { %4021 = vmatpush1.bf16.msra.mxu0 %v2175_v28  ;;  %4349 = vmatpush1.bf16.msra.mxu1 %v2177_v29  ;;  %v2304_v28 = vunpack.c.h.s8.bf16 %v704_v12  ;;  %v2306_v29 = vunpack.c.h.s8.bf16 %v706_v13 }
 0x36e   :  { %4031 = vmatprep.subr.bf16.mxu0 %v2192_v32  ;;  %4359 = vmatprep.subr.bf16.mxu1 %v2194_v33  ;;  %v720_v32 = vld [vmem:[#allocation8 + $0x1228] sm:$0xff]  ;;  %v722_v33 = vld [vmem:[#allocation8 + $0x1238] sm:$0xff] }
 0x370   :  { %4023 = vmatmul.mubr.bf16.vlgmr.msra.gmra.mrb[4].mxu0 %v12948_v45  ;;  %4351 = vmatmul.mubr.bf16.vlgmr.msra.gmra.mrb[4].mxu1 %v12948_v45 }
 0x371   :  { %4032 = vmatpush1.bf16.msra.mxu0 %v2191_v37  ;;  %4360 = vmatpush1.bf16.msra.mxu1 %v2193_v38  ;;  %v2320_v37 = vunpack.c.l.s8.bf16 %v720_v32  ;;  %v2322_v38 = vunpack.c.l.s8.bf16 %v722_v33 }
 0x372   :  { %4033 = vmatprep.subr.bf16.mxu0 %v2208_v40  ;;  %4361 = vmatprep.subr.bf16.mxu1 %v2210_v41  ;;  %v719_v40 = vld [vmem:[#allocation8 + $0x1220] sm:$0xff]  ;;  %v721_v41 = vld [vmem:[#allocation8 + $0x1230] sm:$0xff] }
 0x373   :  { %4063 = vmatprep.mubr.bf16.mxu0 %v12950_v53  ;;  %4391 = vmatprep.mubr.bf16.mxu1 %v12950_v53  ;;  %v2319_v42 = vunpack.c.l.s8.bf16 %v719_v40  ;;  %v2321_v44 = vunpack.c.l.s8.bf16 %v721_v41  ;;  %v2335_v51 = vunpack.c.h.s8.bf16 %v719_v40  ;;  %v2337_v52 = vunpack.c.h.s8.bf16 %v721_v41 }
 0x375   :  { %4034 = vmatpush1.bf16.msra.mxu0 %v2207_v46  ;;  %4362 = vmatpush1.bf16.msra.mxu1 %v2209_v47  ;;  %v2336_v46 = vunpack.c.h.s8.bf16 %v720_v32  ;;  %v2338_v47 = vunpack.c.h.s8.bf16 %v722_v33 }
 0x376   :  { %4035 = vmatprep.subr.bf16.mxu0 %v2224_v48  ;;  %4363 = vmatprep.subr.bf16.mxu1 %v2226_v49  ;;  %v736_v48 = vld [vmem:[#allocation8 + $0x12a8] sm:$0xff]  ;;  %v738_v49 = vld [vmem:[#allocation8 + $0x12b8] sm:$0xff] }
 0x379   :  { %4036 = vmatpush1.bf16.msra.mxu0 %v2223_v54  ;;  %4364 = vmatpush1.bf16.msra.mxu1 %v2225_v55  ;;  %v2352_v54 = vunpack.c.l.s8.bf16 %v736_v48  ;;  %v2354_v55 = vunpack.c.l.s8.bf16 %v738_v49 }
 0x37a   :  { %4037 = vmatprep.subr.bf16.mxu0 %v2240_v56  ;;  %4365 = vmatprep.subr.bf16.mxu1 %v2242_v57  ;;  %v735_v56 = vld [vmem:[#allocation8 + $0x12a0] sm:$0xff]  ;;  %v737_v57 = vld [vmem:[#allocation8 + $0x12b0] sm:$0xff] }
 0x37b   :  { %v2351_v58 = vunpack.c.l.s8.bf16 %v735_v56  ;;  %v2353_v59 = vunpack.c.l.s8.bf16 %v737_v57  ;;  %v2367_v1 = vunpack.c.h.s8.bf16 %v735_v56  ;;  %v2369_v2 = vunpack.c.h.s8.bf16 %v737_v57 }
 0x37d   :  { %4038 = vmatpush1.bf16.msra.mxu0 %v2239_v60  ;;  %4366 = vmatpush1.bf16.msra.mxu1 %v2241_v61  ;;  %v2368_v60 = vunpack.c.h.s8.bf16 %v736_v48  ;;  %v2370_v61 = vunpack.c.h.s8.bf16 %v738_v49 }
 0x37e   :  { %4039 = vmatprep.subr.bf16.mxu0 %v2256_v63  ;;  %4367 = vmatprep.subr.bf16.mxu1 %v2258_v0  ;;  %v752_v63 = vld [vmem:[#allocation8 + $0x1328] sm:$0xff]  ;;  %v754_v0 = vld [vmem:[#allocation8 + $0x1338] sm:$0xff] }
 0x381   :  { %4040 = vmatpush1.bf16.msra.mxu0 %v2255_v8  ;;  %4368 = vmatpush1.bf16.msra.mxu1 %v2257_v9  ;;  %v2384_v8 = vunpack.c.l.s8.bf16 %v752_v63  ;;  %v2386_v9 = vunpack.c.l.s8.bf16 %v754_v0 }
 0x382   :  { %4041 = vmatprep.subr.bf16.mxu0 %v2272_v10  ;;  %4369 = vmatprep.subr.bf16.mxu1 %v2274_v11  ;;  %v751_v10 = vld [vmem:[#allocation8 + $0x1320] sm:$0xff]  ;;  %v753_v11 = vld [vmem:[#allocation8 + $0x1330] sm:$0xff] }
 0x383   :  { %v2383_v12 = vunpack.c.l.s8.bf16 %v751_v10  ;;  %v2385_v13 = vunpack.c.l.s8.bf16 %v753_v11  ;;  %v2399_v22 = vunpack.c.h.s8.bf16 %v751_v10  ;;  %v2401_v23 = vunpack.c.h.s8.bf16 %v753_v11 }
 0x385   :  { %4042 = vmatpush1.bf16.msra.mxu0 %v2271_v14  ;;  %4370 = vmatpush1.bf16.msra.mxu1 %v2273_v15  ;;  %v2400_v14 = vunpack.c.h.s8.bf16 %v752_v63  ;;  %v2402_v15 = vunpack.c.h.s8.bf16 %v754_v0 }
 0x386   :  { %4043 = vmatprep.subr.bf16.mxu0 %v2288_v19  ;;  %4371 = vmatprep.subr.bf16.mxu1 %v2290_v20  ;;  %v768_v19 = vld [vmem:[#allocation8 + $0x13a8] sm:$0xff]  ;;  %v770_v20 = vld [vmem:[#allocation8 + $0x13b8] sm:$0xff] }
 0x389   :  { %4044 = vmatpush1.bf16.msra.mxu0 %v2287_v24  ;;  %4372 = vmatpush1.bf16.msra.mxu1 %v2289_v26  ;;  %v2416_v24 = vunpack.c.l.s8.bf16 %v768_v19  ;;  %v2418_v26 = vunpack.c.l.s8.bf16 %v770_v20 }
 0x38a   :  { %4045 = vmatprep.subr.bf16.mxu0 %v2304_v28  ;;  %4373 = vmatprep.subr.bf16.mxu1 %v2306_v29  ;;  %v767_v28 = vld [vmem:[#allocation8 + $0x13a0] sm:$0xff]  ;;  %v769_v29 = vld [vmem:[#allocation8 + $0x13b0] sm:$0xff] }
 0x38b   :  { %v2415_v32 = vunpack.c.l.s8.bf16 %v767_v28  ;;  %v2417_v33 = vunpack.c.l.s8.bf16 %v769_v29  ;;  %v2431_v40 = vunpack.c.h.s8.bf16 %v767_v28  ;;  %v2433_v41 = vunpack.c.h.s8.bf16 %v769_v29 }
 0x38d   :  { %4046 = vmatpush1.bf16.msra.mxu0 %v2303_v34  ;;  %4374 = vmatpush1.bf16.msra.mxu1 %v2305_v36  ;;  %v2432_v34 = vunpack.c.h.s8.bf16 %v768_v19  ;;  %v2434_v36 = vunpack.c.h.s8.bf16 %v770_v20 }
 0x38e   :  { %4047 = vmatprep.subr.bf16.mxu0 %v2320_v37  ;;  %4375 = vmatprep.subr.bf16.mxu1 %v2322_v38  ;;  %v784_v37 = vld [vmem:[#allocation8 + $0x1428] sm:$0xff]  ;;  %v786_v38 = vld [vmem:[#allocation8 + $0x1438] sm:$0xff] }
 0x391   :  { %4048 = vmatpush1.bf16.msra.mxu0 %v2319_v42  ;;  %4376 = vmatpush1.bf16.msra.mxu1 %v2321_v44  ;;  %v2448_v42 = vunpack.c.l.s8.bf16 %v784_v37  ;;  %v2450_v44 = vunpack.c.l.s8.bf16 %v786_v38 }
 0x392   :  { %4049 = vmatprep.subr.bf16.mxu0 %v2336_v46  ;;  %4377 = vmatprep.subr.bf16.mxu1 %v2338_v47  ;;  %v783_v46 = vld [vmem:[#allocation8 + $0x1420] sm:$0xff]  ;;  %v785_v47 = vld [vmem:[#allocation8 + $0x1430] sm:$0xff] }
 0x393   :  { %v2447_v48 = vunpack.c.l.s8.bf16 %v783_v46  ;;  %v2449_v49 = vunpack.c.l.s8.bf16 %v785_v47  ;;  %v2463_v56 = vunpack.c.h.s8.bf16 %v783_v46  ;;  %v2465_v57 = vunpack.c.h.s8.bf16 %v785_v47 }
 0x395   :  { %4050 = vmatpush1.bf16.msra.mxu0 %v2335_v51  ;;  %4378 = vmatpush1.bf16.msra.mxu1 %v2337_v52  ;;  %v2464_v51 = vunpack.c.h.s8.bf16 %v784_v37  ;;  %v2466_v52 = vunpack.c.h.s8.bf16 %v786_v38 }
 0x396   :  { %4051 = vmatprep.subr.bf16.mxu0 %v2352_v54  ;;  %4379 = vmatprep.subr.bf16.mxu1 %v2354_v55  ;;  %v800_v54 = vld [vmem:[#allocation8 + $0x14a8] sm:$0xff]  ;;  %v802_v55 = vld [vmem:[#allocation8 + $0x14b8] sm:$0xff] }
 0x399   :  { %4052 = vmatpush1.bf16.msra.mxu0 %v2351_v58  ;;  %4380 = vmatpush1.bf16.msra.mxu1 %v2353_v59  ;;  %v2480_v58 = vunpack.c.l.s8.bf16 %v800_v54  ;;  %v2482_v59 = vunpack.c.l.s8.bf16 %v802_v55 }
 0x39a   :  { %4053 = vmatprep.subr.bf16.mxu0 %v2368_v60  ;;  %4381 = vmatprep.subr.bf16.mxu1 %v2370_v61  ;;  %v799_v60 = vld [vmem:[#allocation8 + $0x14a0] sm:$0xff]  ;;  %v801_v61 = vld [vmem:[#allocation8 + $0x14b0] sm:$0xff] }
 0x39b   :  { %v2479_v63 = vunpack.c.l.s8.bf16 %v799_v60  ;;  %v2481_v0 = vunpack.c.l.s8.bf16 %v801_v61  ;;  %v2495_v10 = vunpack.c.h.s8.bf16 %v799_v60  ;;  %v2497_v11 = vunpack.c.h.s8.bf16 %v801_v61 }
 0x39d   :  { %4054 = vmatpush1.bf16.msra.mxu0 %v2367_v1  ;;  %4382 = vmatpush1.bf16.msra.mxu1 %v2369_v2  ;;  %v2496_v1 = vunpack.c.h.s8.bf16 %v800_v54  ;;  %v2498_v2 = vunpack.c.h.s8.bf16 %v802_v55 }
 0x39e   :  { %4055 = vmatprep.subr.bf16.mxu0 %v2384_v8  ;;  %4383 = vmatprep.subr.bf16.mxu1 %v2386_v9  ;;  %v816_v8 = vld [vmem:[#allocation8 + $0x1528] sm:$0xff]  ;;  %v818_v9 = vld [vmem:[#allocation8 + $0x1538] sm:$0xff] }
 0x3a1   :  { %4056 = vmatpush1.bf16.msra.mxu0 %v2383_v12  ;;  %4384 = vmatpush1.bf16.msra.mxu1 %v2385_v13  ;;  %v2512_v12 = vunpack.c.l.s8.bf16 %v816_v8  ;;  %v2514_v13 = vunpack.c.l.s8.bf16 %v818_v9 }
 0x3a2   :  { %4057 = vmatprep.subr.bf16.mxu0 %v2400_v14  ;;  %4385 = vmatprep.subr.bf16.mxu1 %v2402_v15  ;;  %v815_v14 = vld [vmem:[#allocation8 + $0x1520] sm:$0xff]  ;;  %v817_v15 = vld [vmem:[#allocation8 + $0x1530] sm:$0xff] }
 0x3a3   :  { %v2511_v19 = vunpack.c.l.s8.bf16 %v815_v14  ;;  %v2513_v20 = vunpack.c.l.s8.bf16 %v817_v15  ;;  %v2527_v28 = vunpack.c.h.s8.bf16 %v815_v14  ;;  %v2529_v29 = vunpack.c.h.s8.bf16 %v817_v15 }
 0x3a5   :  { %4058 = vmatpush1.bf16.msra.mxu0 %v2399_v22  ;;  %4386 = vmatpush1.bf16.msra.mxu1 %v2401_v23  ;;  %v2528_v22 = vunpack.c.h.s8.bf16 %v816_v8  ;;  %v2530_v23 = vunpack.c.h.s8.bf16 %v818_v9 }
 0x3a6   :  { %4059 = vmatprep.subr.bf16.mxu0 %v2416_v24  ;;  %4387 = vmatprep.subr.bf16.mxu1 %v2418_v26  ;;  %v832_v24 = vld [vmem:[#allocation8 + $0x15a8] sm:$0xff]  ;;  %v834_v26 = vld [vmem:[#allocation8 + $0x15b8] sm:$0xff] }
 0x3a9   :  { %4060 = vmatpush1.bf16.msra.mxu0 %v2415_v32  ;;  %4388 = vmatpush1.bf16.msra.mxu1 %v2417_v33  ;;  %v2544_v32 = vunpack.c.l.s8.bf16 %v832_v24  ;;  %v2546_v33 = vunpack.c.l.s8.bf16 %v834_v26 }
 0x3aa   :  { %4061 = vmatprep.subr.bf16.mxu0 %v2432_v34  ;;  %4389 = vmatprep.subr.bf16.mxu1 %v2434_v36  ;;  %v831_v34 = vld [vmem:[#allocation8 + $0x15a0] sm:$0xff]  ;;  %v833_v36 = vld [vmem:[#allocation8 + $0x15b0] sm:$0xff] }
 0x3ab   :  { %v2543_v37 = vunpack.c.l.s8.bf16 %v831_v34  ;;  %v2545_v38 = vunpack.c.l.s8.bf16 %v833_v36  ;;  %v2559_v46 = vunpack.c.h.s8.bf16 %v831_v34  ;;  %v2561_v47 = vunpack.c.h.s8.bf16 %v833_v36 }
 0x3ad   :  { %4062 = vmatpush1.bf16.msra.mxu0 %v2431_v40  ;;  %4390 = vmatpush1.bf16.msra.mxu1 %v2433_v41  ;;  %v2560_v40 = vunpack.c.h.s8.bf16 %v832_v24  ;;  %v2562_v41 = vunpack.c.h.s8.bf16 %v834_v26 }
 0x3ae   :  { %4072 = vmatprep.subr.bf16.mxu0 %v2448_v42  ;;  %4400 = vmatprep.subr.bf16.mxu1 %v2450_v44  ;;  %v848_v42 = vld [vmem:[#allocation8 + $0x1628] sm:$0xff]  ;;  %v850_v44 = vld [vmem:[#allocation8 + $0x1638] sm:$0xff] }
 0x3b0   :  { %4064 = vmatmul.mubr.bf16.vlgmr.msra.gmra.mrb[4].mxu0 %v12956_v30  ;;  %4392 = vmatmul.mubr.bf16.vlgmr.msra.gmra.mrb[4].mxu1 %v12956_v30 }
 0x3b1   :  { %4073 = vmatpush1.bf16.msra.mxu0 %v2447_v48  ;;  %4401 = vmatpush1.bf16.msra.mxu1 %v2449_v49  ;;  %v2576_v48 = vunpack.c.l.s8.bf16 %v848_v42  ;;  %v2578_v49 = vunpack.c.l.s8.bf16 %v850_v44 }
 0x3b2   :  { %4074 = vmatprep.subr.bf16.mxu0 %v2464_v51  ;;  %4402 = vmatprep.subr.bf16.mxu1 %v2466_v52  ;;  %v847_v51 = vld [vmem:[#allocation8 + $0x1620] sm:$0xff]  ;;  %v849_v52 = vld [vmem:[#allocation8 + $0x1630] sm:$0xff] }
 0x3b3   :  { %4104 = vmatprep.mubr.bf16.mxu0 %v12958_v39  ;;  %4432 = vmatprep.mubr.bf16.mxu1 %v12958_v39  ;;  %v2575_v54 = vunpack.c.l.s8.bf16 %v847_v51  ;;  %v2577_v55 = vunpack.c.l.s8.bf16 %v849_v52  ;;  %v2591_v60 = vunpack.c.h.s8.bf16 %v847_v51  ;;  %v2593_v61 = vunpack.c.h.s8.bf16 %v849_v52 }
 0x3b5   :  { %4075 = vmatpush1.bf16.msra.mxu0 %v2463_v56  ;;  %4403 = vmatpush1.bf16.msra.mxu1 %v2465_v57  ;;  %v2592_v56 = vunpack.c.h.s8.bf16 %v848_v42  ;;  %v2594_v57 = vunpack.c.h.s8.bf16 %v850_v44 }
 0x3b6   :  { %4076 = vmatprep.subr.bf16.mxu0 %v2480_v58  ;;  %4404 = vmatprep.subr.bf16.mxu1 %v2482_v59  ;;  %v864_v58 = vld [vmem:[#allocation8 + $0x16a8] sm:$0xff]  ;;  %v866_v59 = vld [vmem:[#allocation8 + $0x16b8] sm:$0xff] }
 0x3b9   :  { %4077 = vmatpush1.bf16.msra.mxu0 %v2479_v63  ;;  %4405 = vmatpush1.bf16.msra.mxu1 %v2481_v0  ;;  %v2608_v63 = vunpack.c.l.s8.bf16 %v864_v58  ;;  %v2610_v0 = vunpack.c.l.s8.bf16 %v866_v59 }
 0x3ba   :  { %4078 = vmatprep.subr.bf16.mxu0 %v2496_v1  ;;  %4406 = vmatprep.subr.bf16.mxu1 %v2498_v2  ;;  %v863_v1 = vld [vmem:[#allocation8 + $0x16a0] sm:$0xff]  ;;  %v865_v2 = vld [vmem:[#allocation8 + $0x16b0] sm:$0xff] }
 0x3bb   :  { %v2607_v8 = vunpack.c.l.s8.bf16 %v863_v1  ;;  %v2609_v9 = vunpack.c.l.s8.bf16 %v865_v2  ;;  %v2623_v14 = vunpack.c.h.s8.bf16 %v863_v1  ;;  %v2625_v15 = vunpack.c.h.s8.bf16 %v865_v2 }
 0x3bd   :  { %4079 = vmatpush1.bf16.msra.mxu0 %v2495_v10  ;;  %4407 = vmatpush1.bf16.msra.mxu1 %v2497_v11  ;;  %v2624_v10 = vunpack.c.h.s8.bf16 %v864_v58  ;;  %v2626_v11 = vunpack.c.h.s8.bf16 %v866_v59 }
 0x3be   :  { %4080 = vmatprep.subr.bf16.mxu0 %v2512_v12  ;;  %4408 = vmatprep.subr.bf16.mxu1 %v2514_v13  ;;  %v880_v12 = vld [vmem:[#allocation8 + $0x1728] sm:$0xff]  ;;  %v882_v13 = vld [vmem:[#allocation8 + $0x1738] sm:$0xff] }
 0x3c1   :  { %4081 = vmatpush1.bf16.msra.mxu0 %v2511_v19  ;;  %4409 = vmatpush1.bf16.msra.mxu1 %v2513_v20  ;;  %v2640_v19 = vunpack.c.l.s8.bf16 %v880_v12  ;;  %v2642_v20 = vunpack.c.l.s8.bf16 %v882_v13 }
 0x3c2   :  { %4082 = vmatprep.subr.bf16.mxu0 %v2528_v22  ;;  %4410 = vmatprep.subr.bf16.mxu1 %v2530_v23  ;;  %v879_v22 = vld [vmem:[#allocation8 + $0x1720] sm:$0xff]  ;;  %v881_v23 = vld [vmem:[#allocation8 + $0x1730] sm:$0xff] }
 0x3c3   :  { %v2639_v24 = vunpack.c.l.s8.bf16 %v879_v22  ;;  %v2641_v26 = vunpack.c.l.s8.bf16 %v881_v23  ;;  %v2655_v34 = vunpack.c.h.s8.bf16 %v879_v22  ;;  %v2657_v36 = vunpack.c.h.s8.bf16 %v881_v23 }
 0x3c5   :  { %4083 = vmatpush1.bf16.msra.mxu0 %v2527_v28  ;;  %4411 = vmatpush1.bf16.msra.mxu1 %v2529_v29  ;;  %v2656_v28 = vunpack.c.h.s8.bf16 %v880_v12  ;;  %v2658_v29 = vunpack.c.h.s8.bf16 %v882_v13 }
 0x3c6   :  { %4084 = vmatprep.subr.bf16.mxu0 %v2544_v32  ;;  %4412 = vmatprep.subr.bf16.mxu1 %v2546_v33  ;;  %v896_v32 = vld [vmem:[#allocation8 + $0x17a8] sm:$0xff]  ;;  %v898_v33 = vld [vmem:[#allocation8 + $0x17b8] sm:$0xff] }
 0x3c9   :  { %4085 = vmatpush1.bf16.msra.mxu0 %v2543_v37  ;;  %4413 = vmatpush1.bf16.msra.mxu1 %v2545_v38  ;;  %v2672_v37 = vunpack.c.l.s8.bf16 %v896_v32  ;;  %v2674_v38 = vunpack.c.l.s8.bf16 %v898_v33 }
 0x3ca   :  { %4086 = vmatprep.subr.bf16.mxu0 %v2560_v40  ;;  %4414 = vmatprep.subr.bf16.mxu1 %v2562_v41  ;;  %v895_v40 = vld [vmem:[#allocation8 + $0x17a0] sm:$0xff]  ;;  %v897_v41 = vld [vmem:[#allocation8 + $0x17b0] sm:$0xff] }
 0x3cb   :  { %v2671_v42 = vunpack.c.l.s8.bf16 %v895_v40  ;;  %v2673_v44 = vunpack.c.l.s8.bf16 %v897_v41  ;;  %v2687_v51 = vunpack.c.h.s8.bf16 %v895_v40  ;;  %v2689_v52 = vunpack.c.h.s8.bf16 %v897_v41 }
 0x3cd   :  { %4087 = vmatpush1.bf16.msra.mxu0 %v2559_v46  ;;  %4415 = vmatpush1.bf16.msra.mxu1 %v2561_v47  ;;  %v2688_v46 = vunpack.c.h.s8.bf16 %v896_v32  ;;  %v2690_v47 = vunpack.c.h.s8.bf16 %v898_v33 }
 0x3ce   :  { %4088 = vmatprep.subr.bf16.mxu0 %v2576_v48  ;;  %4416 = vmatprep.subr.bf16.mxu1 %v2578_v49  ;;  %v912_v48 = vld [vmem:[#allocation8 + $0x1828] sm:$0xff]  ;;  %v914_v49 = vld [vmem:[#allocation8 + $0x1838] sm:$0xff] }
 0x3d1   :  { %4089 = vmatpush1.bf16.msra.mxu0 %v2575_v54  ;;  %4417 = vmatpush1.bf16.msra.mxu1 %v2577_v55  ;;  %v2704_v54 = vunpack.c.l.s8.bf16 %v912_v48  ;;  %v2706_v55 = vunpack.c.l.s8.bf16 %v914_v49 }
 0x3d2   :  { %4090 = vmatprep.subr.bf16.mxu0 %v2592_v56  ;;  %4418 = vmatprep.subr.bf16.mxu1 %v2594_v57  ;;  %v911_v56 = vld [vmem:[#allocation8 + $0x1820] sm:$0xff]  ;;  %v913_v57 = vld [vmem:[#allocation8 + $0x1830] sm:$0xff] }
 0x3d3   :  { %v2703_v58 = vunpack.c.l.s8.bf16 %v911_v56  ;;  %v2705_v59 = vunpack.c.l.s8.bf16 %v913_v57  ;;  %v2719_v1 = vunpack.c.h.s8.bf16 %v911_v56  ;;  %v2721_v2 = vunpack.c.h.s8.bf16 %v913_v57 }
 0x3d5   :  { %4091 = vmatpush1.bf16.msra.mxu0 %v2591_v60  ;;  %4419 = vmatpush1.bf16.msra.mxu1 %v2593_v61  ;;  %v2720_v60 = vunpack.c.h.s8.bf16 %v912_v48  ;;  %v2722_v61 = vunpack.c.h.s8.bf16 %v914_v49 }
 0x3d6   :  { %4092 = vmatprep.subr.bf16.mxu0 %v2608_v63  ;;  %4420 = vmatprep.subr.bf16.mxu1 %v2610_v0  ;;  %v928_v63 = vld [vmem:[#allocation8 + $0x18a8] sm:$0xff]  ;;  %v930_v0 = vld [vmem:[#allocation8 + $0x18b8] sm:$0xff] }
 0x3d9   :  { %4093 = vmatpush1.bf16.msra.mxu0 %v2607_v8  ;;  %4421 = vmatpush1.bf16.msra.mxu1 %v2609_v9  ;;  %v2736_v8 = vunpack.c.l.s8.bf16 %v928_v63  ;;  %v2738_v9 = vunpack.c.l.s8.bf16 %v930_v0 }
 0x3da   :  { %4094 = vmatprep.subr.bf16.mxu0 %v2624_v10  ;;  %4422 = vmatprep.subr.bf16.mxu1 %v2626_v11  ;;  %v927_v10 = vld [vmem:[#allocation8 + $0x18a0] sm:$0xff]  ;;  %v929_v11 = vld [vmem:[#allocation8 + $0x18b0] sm:$0xff] }
 0x3db   :  { %v2735_v12 = vunpack.c.l.s8.bf16 %v927_v10  ;;  %v2737_v13 = vunpack.c.l.s8.bf16 %v929_v11  ;;  %v2751_v22 = vunpack.c.h.s8.bf16 %v927_v10  ;;  %v2753_v23 = vunpack.c.h.s8.bf16 %v929_v11 }
 0x3dd   :  { %4095 = vmatpush1.bf16.msra.mxu0 %v2623_v14  ;;  %4423 = vmatpush1.bf16.msra.mxu1 %v2625_v15  ;;  %v2752_v14 = vunpack.c.h.s8.bf16 %v928_v63  ;;  %v2754_v15 = vunpack.c.h.s8.bf16 %v930_v0 }
 0x3de   :  { %4096 = vmatprep.subr.bf16.mxu0 %v2640_v19  ;;  %4424 = vmatprep.subr.bf16.mxu1 %v2642_v20  ;;  %v944_v19 = vld [vmem:[#allocation8 + $0x1928] sm:$0xff]  ;;  %v946_v20 = vld [vmem:[#allocation8 + $0x1938] sm:$0xff] }
 0x3e1   :  { %4097 = vmatpush1.bf16.msra.mxu0 %v2639_v24  ;;  %4425 = vmatpush1.bf16.msra.mxu1 %v2641_v26  ;;  %v2768_v24 = vunpack.c.l.s8.bf16 %v944_v19  ;;  %v2770_v26 = vunpack.c.l.s8.bf16 %v946_v20 }
 0x3e2   :  { %4098 = vmatprep.subr.bf16.mxu0 %v2656_v28  ;;  %4426 = vmatprep.subr.bf16.mxu1 %v2658_v29  ;;  %v943_v28 = vld [vmem:[#allocation8 + $0x1920] sm:$0xff]  ;;  %v945_v29 = vld [vmem:[#allocation8 + $0x1930] sm:$0xff] }
 0x3e3   :  { %v2767_v32 = vunpack.c.l.s8.bf16 %v943_v28  ;;  %v2769_v33 = vunpack.c.l.s8.bf16 %v945_v29  ;;  %v2783_v40 = vunpack.c.h.s8.bf16 %v943_v28  ;;  %v2785_v41 = vunpack.c.h.s8.bf16 %v945_v29 }
 0x3e5   :  { %4099 = vmatpush1.bf16.msra.mxu0 %v2655_v34  ;;  %4427 = vmatpush1.bf16.msra.mxu1 %v2657_v36  ;;  %v2784_v34 = vunpack.c.h.s8.bf16 %v944_v19  ;;  %v2786_v36 = vunpack.c.h.s8.bf16 %v946_v20 }
 0x3e6   :  { %4100 = vmatprep.subr.bf16.mxu0 %v2672_v37  ;;  %4428 = vmatprep.subr.bf16.mxu1 %v2674_v38  ;;  %v960_v37 = vld [vmem:[#allocation8 + $0x19a8] sm:$0xff]  ;;  %v962_v38 = vld [vmem:[#allocation8 + $0x19b8] sm:$0xff] }
 0x3e9   :  { %4101 = vmatpush1.bf16.msra.mxu0 %v2671_v42  ;;  %4429 = vmatpush1.bf16.msra.mxu1 %v2673_v44  ;;  %v2800_v42 = vunpack.c.l.s8.bf16 %v960_v37  ;;  %v2802_v44 = vunpack.c.l.s8.bf16 %v962_v38 }
 0x3ea   :  { %4102 = vmatprep.subr.bf16.mxu0 %v2688_v46  ;;  %4430 = vmatprep.subr.bf16.mxu1 %v2690_v47  ;;  %v959_v46 = vld [vmem:[#allocation8 + $0x19a0] sm:$0xff]  ;;  %v961_v47 = vld [vmem:[#allocation8 + $0x19b0] sm:$0xff] }
 0x3eb   :  { %v2799_v48 = vunpack.c.l.s8.bf16 %v959_v46  ;;  %v2801_v49 = vunpack.c.l.s8.bf16 %v961_v47  ;;  %v2815_v56 = vunpack.c.h.s8.bf16 %v959_v46  ;;  %v2817_v57 = vunpack.c.h.s8.bf16 %v961_v47 }
 0x3ed   :  { %4103 = vmatpush1.bf16.msra.mxu0 %v2687_v51  ;;  %4431 = vmatpush1.bf16.msra.mxu1 %v2689_v52  ;;  %v2816_v51 = vunpack.c.h.s8.bf16 %v960_v37  ;;  %v2818_v52 = vunpack.c.h.s8.bf16 %v962_v38 }
 0x3ee   :  { %4113 = vmatprep.subr.bf16.mxu0 %v2704_v54  ;;  %4441 = vmatprep.subr.bf16.mxu1 %v2706_v55  ;;  %v976_v54 = vld [vmem:[#allocation8 + $0x1a28] sm:$0xff]  ;;  %v978_v55 = vld [vmem:[#allocation8 + $0x1a38] sm:$0xff] }
 0x3f0   :  { %4105 = vmatmul.mubr.bf16.vlgmr.msra.gmra.mrb[4].mxu0 %v12964_v21  ;;  %4433 = vmatmul.mubr.bf16.vlgmr.msra.gmra.mrb[4].mxu1 %v12964_v21 }
 0x3f1   :  { %4114 = vmatpush1.bf16.msra.mxu0 %v2703_v58  ;;  %4442 = vmatpush1.bf16.msra.mxu1 %v2705_v59  ;;  %v2832_v58 = vunpack.c.l.s8.bf16 %v976_v54  ;;  %v2834_v59 = vunpack.c.l.s8.bf16 %v978_v55 }
 0x3f2   :  { %4115 = vmatprep.subr.bf16.mxu0 %v2720_v60  ;;  %4443 = vmatprep.subr.bf16.mxu1 %v2722_v61  ;;  %v975_v60 = vld [vmem:[#allocation8 + $0x1a20] sm:$0xff]  ;;  %v977_v61 = vld [vmem:[#allocation8 + $0x1a30] sm:$0xff] }
 0x3f3   :  { %4145 = vmatprep.mubr.bf16.mxu0 %v12966_v31  ;;  %4473 = vmatprep.mubr.bf16.mxu1 %v12966_v31  ;;  %v2831_v63 = vunpack.c.l.s8.bf16 %v975_v60  ;;  %v2833_v0 = vunpack.c.l.s8.bf16 %v977_v61  ;;  %v2847_v10 = vunpack.c.h.s8.bf16 %v975_v60  ;;  %v2849_v11 = vunpack.c.h.s8.bf16 %v977_v61 }
 0x3f5   :  { %4116 = vmatpush1.bf16.msra.mxu0 %v2719_v1  ;;  %4444 = vmatpush1.bf16.msra.mxu1 %v2721_v2  ;;  %v2848_v1 = vunpack.c.h.s8.bf16 %v976_v54  ;;  %v2850_v2 = vunpack.c.h.s8.bf16 %v978_v55 }
 0x3f6   :  { %4117 = vmatprep.subr.bf16.mxu0 %v2736_v8  ;;  %4445 = vmatprep.subr.bf16.mxu1 %v2738_v9  ;;  %v992_v8 = vld [vmem:[#allocation8 + $0x1aa8] sm:$0xff]  ;;  %v994_v9 = vld [vmem:[#allocation8 + $0x1ab8] sm:$0xff] }
 0x3f9   :  { %4118 = vmatpush1.bf16.msra.mxu0 %v2735_v12  ;;  %4446 = vmatpush1.bf16.msra.mxu1 %v2737_v13  ;;  %v2864_v12 = vunpack.c.l.s8.bf16 %v992_v8  ;;  %v2866_v13 = vunpack.c.l.s8.bf16 %v994_v9 }
 0x3fa   :  { %4119 = vmatprep.subr.bf16.mxu0 %v2752_v14  ;;  %4447 = vmatprep.subr.bf16.mxu1 %v2754_v15  ;;  %v991_v14 = vld [vmem:[#allocation8 + $0x1aa0] sm:$0xff]  ;;  %v993_v15 = vld [vmem:[#allocation8 + $0x1ab0] sm:$0xff] }
 0x3fb   :  { %v2863_v19 = vunpack.c.l.s8.bf16 %v991_v14  ;;  %v2865_v20 = vunpack.c.l.s8.bf16 %v993_v15  ;;  %v2879_v28 = vunpack.c.h.s8.bf16 %v991_v14  ;;  %v2881_v29 = vunpack.c.h.s8.bf16 %v993_v15 }
 0x3fd   :  { %4120 = vmatpush1.bf16.msra.mxu0 %v2751_v22  ;;  %4448 = vmatpush1.bf16.msra.mxu1 %v2753_v23  ;;  %v2880_v22 = vunpack.c.h.s8.bf16 %v992_v8  ;;  %v2882_v23 = vunpack.c.h.s8.bf16 %v994_v9 }
 0x3fe   :  { %4121 = vmatprep.subr.bf16.mxu0 %v2768_v24  ;;  %4449 = vmatprep.subr.bf16.mxu1 %v2770_v26  ;;  %v1008_v24 = vld [vmem:[#allocation8 + $0x1b28] sm:$0xff]  ;;  %v1010_v26 = vld [vmem:[#allocation8 + $0x1b38] sm:$0xff] }
 0x401   :  { %4122 = vmatpush1.bf16.msra.mxu0 %v2767_v32  ;;  %4450 = vmatpush1.bf16.msra.mxu1 %v2769_v33  ;;  %v2896_v32 = vunpack.c.l.s8.bf16 %v1008_v24  ;;  %v2898_v33 = vunpack.c.l.s8.bf16 %v1010_v26 }
 0x402   :  { %4123 = vmatprep.subr.bf16.mxu0 %v2784_v34  ;;  %4451 = vmatprep.subr.bf16.mxu1 %v2786_v36  ;;  %v1007_v34 = vld [vmem:[#allocation8 + $0x1b20] sm:$0xff]  ;;  %v1009_v36 = vld [vmem:[#allocation8 + $0x1b30] sm:$0xff] }
 0x403   :  { %v2895_v37 = vunpack.c.l.s8.bf16 %v1007_v34  ;;  %v2897_v38 = vunpack.c.l.s8.bf16 %v1009_v36  ;;  %v2911_v46 = vunpack.c.h.s8.bf16 %v1007_v34  ;;  %v2913_v47 = vunpack.c.h.s8.bf16 %v1009_v36 }
 0x405   :  { %4124 = vmatpush1.bf16.msra.mxu0 %v2783_v40  ;;  %4452 = vmatpush1.bf16.msra.mxu1 %v2785_v41  ;;  %v2912_v40 = vunpack.c.h.s8.bf16 %v1008_v24  ;;  %v2914_v41 = vunpack.c.h.s8.bf16 %v1010_v26 }
 0x406   :  { %4125 = vmatprep.subr.bf16.mxu0 %v2800_v42  ;;  %4453 = vmatprep.subr.bf16.mxu1 %v2802_v44  ;;  %v1024_v42 = vld [vmem:[#allocation8 + $0x1ba8] sm:$0xff]  ;;  %v1026_v44 = vld [vmem:[#allocation8 + $0x1bb8] sm:$0xff] }
 0x409   :  { %4126 = vmatpush1.bf16.msra.mxu0 %v2799_v48  ;;  %4454 = vmatpush1.bf16.msra.mxu1 %v2801_v49  ;;  %v2928_v48 = vunpack.c.l.s8.bf16 %v1024_v42  ;;  %v2930_v49 = vunpack.c.l.s8.bf16 %v1026_v44 }
 0x40a   :  { %4127 = vmatprep.subr.bf16.mxu0 %v2816_v51  ;;  %4455 = vmatprep.subr.bf16.mxu1 %v2818_v52  ;;  %v1023_v51 = vld [vmem:[#allocation8 + $0x1ba0] sm:$0xff]  ;;  %v1025_v52 = vld [vmem:[#allocation8 + $0x1bb0] sm:$0xff] }
 0x40b   :  { %v2927_v54 = vunpack.c.l.s8.bf16 %v1023_v51  ;;  %v2929_v55 = vunpack.c.l.s8.bf16 %v1025_v52  ;;  %v2943_v60 = vunpack.c.h.s8.bf16 %v1023_v51  ;;  %v2945_v61 = vunpack.c.h.s8.bf16 %v1025_v52 }
 0x40d   :  { %4128 = vmatpush1.bf16.msra.mxu0 %v2815_v56  ;;  %4456 = vmatpush1.bf16.msra.mxu1 %v2817_v57  ;;  %v2944_v56 = vunpack.c.h.s8.bf16 %v1024_v42  ;;  %v2946_v57 = vunpack.c.h.s8.bf16 %v1026_v44 }
 0x40e   :  { %4129 = vmatprep.subr.bf16.mxu0 %v2832_v58  ;;  %4457 = vmatprep.subr.bf16.mxu1 %v2834_v59  ;;  %v1040_v58 = vld [vmem:[#allocation8 + $0x1c28] sm:$0xff]  ;;  %v1042_v59 = vld [vmem:[#allocation8 + $0x1c38] sm:$0xff] }
 0x411   :  { %4130 = vmatpush1.bf16.msra.mxu0 %v2831_v63  ;;  %4458 = vmatpush1.bf16.msra.mxu1 %v2833_v0  ;;  %v2960_v63 = vunpack.c.l.s8.bf16 %v1040_v58  ;;  %v2962_v0 = vunpack.c.l.s8.bf16 %v1042_v59 }
 0x412   :  { %4131 = vmatprep.subr.bf16.mxu0 %v2848_v1  ;;  %4459 = vmatprep.subr.bf16.mxu1 %v2850_v2  ;;  %v1039_v1 = vld [vmem:[#allocation8 + $0x1c20] sm:$0xff]  ;;  %v1041_v2 = vld [vmem:[#allocation8 + $0x1c30] sm:$0xff] }
 0x413   :  { %v2959_v8 = vunpack.c.l.s8.bf16 %v1039_v1  ;;  %v2961_v9 = vunpack.c.l.s8.bf16 %v1041_v2  ;;  %v2975_v14 = vunpack.c.h.s8.bf16 %v1039_v1  ;;  %v2977_v15 = vunpack.c.h.s8.bf16 %v1041_v2 }
 0x415   :  { %4132 = vmatpush1.bf16.msra.mxu0 %v2847_v10  ;;  %4460 = vmatpush1.bf16.msra.mxu1 %v2849_v11  ;;  %v2976_v10 = vunpack.c.h.s8.bf16 %v1040_v58  ;;  %v2978_v11 = vunpack.c.h.s8.bf16 %v1042_v59 }
 0x416   :  { %4133 = vmatprep.subr.bf16.mxu0 %v2864_v12  ;;  %4461 = vmatprep.subr.bf16.mxu1 %v2866_v13  ;;  %v1056_v12 = vld [vmem:[#allocation8 + $0x1ca8] sm:$0xff]  ;;  %v1058_v13 = vld [vmem:[#allocation8 + $0x1cb8] sm:$0xff] }
 0x419   :  { %4134 = vmatpush1.bf16.msra.mxu0 %v2863_v19  ;;  %4462 = vmatpush1.bf16.msra.mxu1 %v2865_v20  ;;  %v2992_v19 = vunpack.c.l.s8.bf16 %v1056_v12  ;;  %v2994_v20 = vunpack.c.l.s8.bf16 %v1058_v13 }
 0x41a   :  { %4135 = vmatprep.subr.bf16.mxu0 %v2880_v22  ;;  %4463 = vmatprep.subr.bf16.mxu1 %v2882_v23  ;;  %v1055_v22 = vld [vmem:[#allocation8 + $0x1ca0] sm:$0xff]  ;;  %v1057_v23 = vld [vmem:[#allocation8 + $0x1cb0] sm:$0xff] }
 0x41b   :  { %v2991_v24 = vunpack.c.l.s8.bf16 %v1055_v22  ;;  %v2993_v26 = vunpack.c.l.s8.bf16 %v1057_v23  ;;  %v3007_v34 = vunpack.c.h.s8.bf16 %v1055_v22  ;;  %v3009_v36 = vunpack.c.h.s8.bf16 %v1057_v23 }
 0x41d   :  { %4136 = vmatpush1.bf16.msra.mxu0 %v2879_v28  ;;  %4464 = vmatpush1.bf16.msra.mxu1 %v2881_v29  ;;  %v3008_v28 = vunpack.c.h.s8.bf16 %v1056_v12  ;;  %v3010_v29 = vunpack.c.h.s8.bf16 %v1058_v13 }
 0x41e   :  { %4137 = vmatprep.subr.bf16.mxu0 %v2896_v32  ;;  %4465 = vmatprep.subr.bf16.mxu1 %v2898_v33  ;;  %v1072_v32 = vld [vmem:[#allocation8 + $0x1d28] sm:$0xff]  ;;  %v1074_v33 = vld [vmem:[#allocation8 + $0x1d38] sm:$0xff] }
 0x421   :  { %4138 = vmatpush1.bf16.msra.mxu0 %v2895_v37  ;;  %4466 = vmatpush1.bf16.msra.mxu1 %v2897_v38  ;;  %v3024_v37 = vunpack.c.l.s8.bf16 %v1072_v32  ;;  %v3026_v38 = vunpack.c.l.s8.bf16 %v1074_v33 }
 0x422   :  { %4139 = vmatprep.subr.bf16.mxu0 %v2912_v40  ;;  %4467 = vmatprep.subr.bf16.mxu1 %v2914_v41  ;;  %v1071_v40 = vld [vmem:[#allocation8 + $0x1d20] sm:$0xff]  ;;  %v1073_v41 = vld [vmem:[#allocation8 + $0x1d30] sm:$0xff] }
 0x423   :  { %v3023_v42 = vunpack.c.l.s8.bf16 %v1071_v40  ;;  %v3025_v44 = vunpack.c.l.s8.bf16 %v1073_v41  ;;  %v3039_v51 = vunpack.c.h.s8.bf16 %v1071_v40  ;;  %v3041_v52 = vunpack.c.h.s8.bf16 %v1073_v41 }
 0x425   :  { %4140 = vmatpush1.bf16.msra.mxu0 %v2911_v46  ;;  %4468 = vmatpush1.bf16.msra.mxu1 %v2913_v47  ;;  %v3040_v46 = vunpack.c.h.s8.bf16 %v1072_v32  ;;  %v3042_v47 = vunpack.c.h.s8.bf16 %v1074_v33 }
 0x426   :  { %4141 = vmatprep.subr.bf16.mxu0 %v2928_v48  ;;  %4469 = vmatprep.subr.bf16.mxu1 %v2930_v49  ;;  %v1088_v48 = vld [vmem:[#allocation8 + $0x1da8] sm:$0xff]  ;;  %v1090_v49 = vld [vmem:[#allocation8 + $0x1db8] sm:$0xff] }
 0x429   :  { %4142 = vmatpush1.bf16.msra.mxu0 %v2927_v54  ;;  %4470 = vmatpush1.bf16.msra.mxu1 %v2929_v55  ;;  %v3056_v54 = vunpack.c.l.s8.bf16 %v1088_v48  ;;  %v3058_v55 = vunpack.c.l.s8.bf16 %v1090_v49 }
 0x42a   :  { %4143 = vmatprep.subr.bf16.mxu0 %v2944_v56  ;;  %4471 = vmatprep.subr.bf16.mxu1 %v2946_v57  ;;  %v1087_v56 = vld [vmem:[#allocation8 + $0x1da0] sm:$0xff]  ;;  %v1089_v57 = vld [vmem:[#allocation8 + $0x1db0] sm:$0xff] }
 0x42b   :  { %v3055_v58 = vunpack.c.l.s8.bf16 %v1087_v56  ;;  %v3057_v59 = vunpack.c.l.s8.bf16 %v1089_v57  ;;  %v3071_v1 = vunpack.c.h.s8.bf16 %v1087_v56  ;;  %v3073_v2 = vunpack.c.h.s8.bf16 %v1089_v57 }
 0x42d   :  { %4144 = vmatpush1.bf16.msra.mxu0 %v2943_v60  ;;  %4472 = vmatpush1.bf16.msra.mxu1 %v2945_v61  ;;  %v3072_v60 = vunpack.c.h.s8.bf16 %v1088_v48  ;;  %v3074_v61 = vunpack.c.h.s8.bf16 %v1090_v49 }
 0x42e   :  { %4154 = vmatprep.subr.bf16.mxu0 %v2960_v63  ;;  %4482 = vmatprep.subr.bf16.mxu1 %v2962_v0  ;;  %v1104_v63 = vld [vmem:[#allocation8 + $0x1e28] sm:$0xff]  ;;  %v1106_v0 = vld [vmem:[#allocation8 + $0x1e38] sm:$0xff] }
 0x430   :  { %4146 = vmatmul.mubr.bf16.vlgmr.msra.gmra.mrb[4].mxu0 %v12972_v16  ;;  %4474 = vmatmul.mubr.bf16.vlgmr.msra.gmra.mrb[4].mxu1 %v12972_v16 }
 0x431   :  { %4155 = vmatpush1.bf16.msra.mxu0 %v2959_v8  ;;  %4483 = vmatpush1.bf16.msra.mxu1 %v2961_v9  ;;  %v3088_v8 = vunpack.c.l.s8.bf16 %v1104_v63  ;;  %v3090_v9 = vunpack.c.l.s8.bf16 %v1106_v0 }
 0x432   :  { %4156 = vmatprep.subr.bf16.mxu0 %v2976_v10  ;;  %4484 = vmatprep.subr.bf16.mxu1 %v2978_v11  ;;  %v1103_v10 = vld [vmem:[#allocation8 + $0x1e20] sm:$0xff]  ;;  %v1105_v11 = vld [vmem:[#allocation8 + $0x1e30] sm:$0xff] }
 0x433   :  { %4186 = vmatprep.mubr.bf16.mxu0 %v12974_v27  ;;  %4514 = vmatprep.mubr.bf16.mxu1 %v12974_v27  ;;  %v3087_v12 = vunpack.c.l.s8.bf16 %v1103_v10  ;;  %v3089_v13 = vunpack.c.l.s8.bf16 %v1105_v11  ;;  %v3103_v22 = vunpack.c.h.s8.bf16 %v1103_v10  ;;  %v3105_v23 = vunpack.c.h.s8.bf16 %v1105_v11 }
 0x435   :  { %4157 = vmatpush1.bf16.msra.mxu0 %v2975_v14  ;;  %4485 = vmatpush1.bf16.msra.mxu1 %v2977_v15  ;;  %v3104_v14 = vunpack.c.h.s8.bf16 %v1104_v63  ;;  %v3106_v15 = vunpack.c.h.s8.bf16 %v1106_v0 }
 0x436   :  { %4158 = vmatprep.subr.bf16.mxu0 %v2992_v19  ;;  %4486 = vmatprep.subr.bf16.mxu1 %v2994_v20  ;;  %v1120_v19 = vld [vmem:[#allocation8 + $0x1ea8] sm:$0xff]  ;;  %v1122_v20 = vld [vmem:[#allocation8 + $0x1eb8] sm:$0xff] }
 0x439   :  { %4159 = vmatpush1.bf16.msra.mxu0 %v2991_v24  ;;  %4487 = vmatpush1.bf16.msra.mxu1 %v2993_v26  ;;  %v3120_v24 = vunpack.c.l.s8.bf16 %v1120_v19  ;;  %v3122_v26 = vunpack.c.l.s8.bf16 %v1122_v20 }
 0x43a   :  { %4160 = vmatprep.subr.bf16.mxu0 %v3008_v28  ;;  %4488 = vmatprep.subr.bf16.mxu1 %v3010_v29  ;;  %v1119_v28 = vld [vmem:[#allocation8 + $0x1ea0] sm:$0xff]  ;;  %v1121_v29 = vld [vmem:[#allocation8 + $0x1eb0] sm:$0xff] }
 0x43b   :  { %v3119_v32 = vunpack.c.l.s8.bf16 %v1119_v28  ;;  %v3121_v33 = vunpack.c.l.s8.bf16 %v1121_v29  ;;  %v3135_v40 = vunpack.c.h.s8.bf16 %v1119_v28  ;;  %v3137_v41 = vunpack.c.h.s8.bf16 %v1121_v29 }
 0x43d   :  { %4161 = vmatpush1.bf16.msra.mxu0 %v3007_v34  ;;  %4489 = vmatpush1.bf16.msra.mxu1 %v3009_v36  ;;  %v3136_v34 = vunpack.c.h.s8.bf16 %v1120_v19  ;;  %v3138_v36 = vunpack.c.h.s8.bf16 %v1122_v20 }
 0x43e   :  { %4162 = vmatprep.subr.bf16.mxu0 %v3024_v37  ;;  %4490 = vmatprep.subr.bf16.mxu1 %v3026_v38  ;;  %v1136_v37 = vld [vmem:[#allocation8 + $0x1f28] sm:$0xff]  ;;  %v1138_v38 = vld [vmem:[#allocation8 + $0x1f38] sm:$0xff] }
 0x441   :  { %4163 = vmatpush1.bf16.msra.mxu0 %v3023_v42  ;;  %4491 = vmatpush1.bf16.msra.mxu1 %v3025_v44  ;;  %v3152_v42 = vunpack.c.l.s8.bf16 %v1136_v37  ;;  %v3154_v44 = vunpack.c.l.s8.bf16 %v1138_v38 }
 0x442   :  { %4164 = vmatprep.subr.bf16.mxu0 %v3040_v46  ;;  %4492 = vmatprep.subr.bf16.mxu1 %v3042_v47  ;;  %v1135_v46 = vld [vmem:[#allocation8 + $0x1f20] sm:$0xff]  ;;  %v1137_v47 = vld [vmem:[#allocation8 + $0x1f30] sm:$0xff] }
 0x443   :  { %v3151_v48 = vunpack.c.l.s8.bf16 %v1135_v46  ;;  %v3153_v49 = vunpack.c.l.s8.bf16 %v1137_v47  ;;  %v3167_v56 = vunpack.c.h.s8.bf16 %v1135_v46  ;;  %v3169_v57 = vunpack.c.h.s8.bf16 %v1137_v47 }
 0x445   :  { %4165 = vmatpush1.bf16.msra.mxu0 %v3039_v51  ;;  %4493 = vmatpush1.bf16.msra.mxu1 %v3041_v52  ;;  %v3168_v51 = vunpack.c.h.s8.bf16 %v1136_v37  ;;  %v3170_v52 = vunpack.c.h.s8.bf16 %v1138_v38 }
 0x446   :  { %4166 = vmatprep.subr.bf16.mxu0 %v3056_v54  ;;  %4494 = vmatprep.subr.bf16.mxu1 %v3058_v55  ;;  %v1152_v54 = vld [vmem:[#allocation8 + $0x1fa8] sm:$0xff]  ;;  %v1154_v55 = vld [vmem:[#allocation8 + $0x1fb8] sm:$0xff] }
 0x449   :  { %4167 = vmatpush1.bf16.msra.mxu0 %v3055_v58  ;;  %4495 = vmatpush1.bf16.msra.mxu1 %v3057_v59  ;;  %v3184_v58 = vunpack.c.l.s8.bf16 %v1152_v54  ;;  %v3186_v59 = vunpack.c.l.s8.bf16 %v1154_v55 }
 0x44a   :  { %4168 = vmatprep.subr.bf16.mxu0 %v3072_v60  ;;  %4496 = vmatprep.subr.bf16.mxu1 %v3074_v61  ;;  %v1151_v60 = vld [vmem:[#allocation8 + $0x1fa0] sm:$0xff]  ;;  %v1153_v61 = vld [vmem:[#allocation8 + $0x1fb0] sm:$0xff] }
 0x44b   :  { %v3183_v63 = vunpack.c.l.s8.bf16 %v1151_v60  ;;  %v3185_v0 = vunpack.c.l.s8.bf16 %v1153_v61  ;;  %v3199_v10 = vunpack.c.h.s8.bf16 %v1151_v60  ;;  %v3201_v11 = vunpack.c.h.s8.bf16 %v1153_v61 }
 0x44d   :  { %4169 = vmatpush1.bf16.msra.mxu0 %v3071_v1  ;;  %4497 = vmatpush1.bf16.msra.mxu1 %v3073_v2  ;;  %v3200_v1 = vunpack.c.h.s8.bf16 %v1152_v54  ;;  %v3202_v2 = vunpack.c.h.s8.bf16 %v1154_v55 }
 0x44e   :  { %4170 = vmatprep.subr.bf16.mxu0 %v3088_v8  ;;  %4498 = vmatprep.subr.bf16.mxu1 %v3090_v9  ;;  %v148_v8 = vld [vmem:[#allocation8 + $0x48] sm:$0xff]  ;;  %v150_v9 = vld [vmem:[#allocation8 + $0x58] sm:$0xff] }
 0x451   :  { %4171 = vmatpush1.bf16.msra.mxu0 %v3087_v12  ;;  %4499 = vmatpush1.bf16.msra.mxu1 %v3089_v13  ;;  %v1172_v12 = vunpack.c.l.s8.bf16 %v148_v8  ;;  %v1174_v13 = vunpack.c.l.s8.bf16 %v150_v9 }
 0x452   :  { %4172 = vmatprep.subr.bf16.mxu0 %v3104_v14  ;;  %4500 = vmatprep.subr.bf16.mxu1 %v3106_v15  ;;  %v147_v14 = vld [vmem:[#allocation8 + $0x40] sm:$0xff]  ;;  %v149_v15 = vld [vmem:[#allocation8 + $0x50] sm:$0xff] }
 0x453   :  { %v1171_v19 = vunpack.c.l.s8.bf16 %v147_v14  ;;  %v1173_v20 = vunpack.c.l.s8.bf16 %v149_v15  ;;  %v1187_v28 = vunpack.c.h.s8.bf16 %v147_v14  ;;  %v1189_v29 = vunpack.c.h.s8.bf16 %v149_v15 }
 0x455   :  { %4173 = vmatpush1.bf16.msra.mxu0 %v3103_v22  ;;  %4501 = vmatpush1.bf16.msra.mxu1 %v3105_v23  ;;  %v1188_v22 = vunpack.c.h.s8.bf16 %v148_v8  ;;  %v1190_v23 = vunpack.c.h.s8.bf16 %v150_v9 }
 0x456   :  { %4174 = vmatprep.subr.bf16.mxu0 %v3120_v24  ;;  %4502 = vmatprep.subr.bf16.mxu1 %v3122_v26  ;;  %v164_v24 = vld [vmem:[#allocation8 + $0xc8] sm:$0xff]  ;;  %v166_v26 = vld [vmem:[#allocation8 + $0xd8] sm:$0xff] }
 0x459   :  { %4175 = vmatpush1.bf16.msra.mxu0 %v3119_v32  ;;  %4503 = vmatpush1.bf16.msra.mxu1 %v3121_v33  ;;  %v1204_v32 = vunpack.c.l.s8.bf16 %v164_v24  ;;  %v1206_v33 = vunpack.c.l.s8.bf16 %v166_v26 }
 0x45a   :  { %4176 = vmatprep.subr.bf16.mxu0 %v3136_v34  ;;  %4504 = vmatprep.subr.bf16.mxu1 %v3138_v36  ;;  %v163_v34 = vld [vmem:[#allocation8 + $0xc0] sm:$0xff]  ;;  %v165_v36 = vld [vmem:[#allocation8 + $0xd0] sm:$0xff] }
 0x45b   :  { %v1203_v37 = vunpack.c.l.s8.bf16 %v163_v34  ;;  %v1205_v38 = vunpack.c.l.s8.bf16 %v165_v36  ;;  %v1219_v46 = vunpack.c.h.s8.bf16 %v163_v34  ;;  %v1221_v47 = vunpack.c.h.s8.bf16 %v165_v36 }
 0x45d   :  { %4177 = vmatpush1.bf16.msra.mxu0 %v3135_v40  ;;  %4505 = vmatpush1.bf16.msra.mxu1 %v3137_v41  ;;  %v1220_v40 = vunpack.c.h.s8.bf16 %v164_v24  ;;  %v1222_v41 = vunpack.c.h.s8.bf16 %v166_v26 }
 0x45e   :  { %4178 = vmatprep.subr.bf16.mxu0 %v3152_v42  ;;  %4506 = vmatprep.subr.bf16.mxu1 %v3154_v44  ;;  %v180_v42 = vld [vmem:[#allocation8 + $0x148] sm:$0xff]  ;;  %v182_v44 = vld [vmem:[#allocation8 + $0x158] sm:$0xff] }
 0x461   :  { %4179 = vmatpush1.bf16.msra.mxu0 %v3151_v48  ;;  %4507 = vmatpush1.bf16.msra.mxu1 %v3153_v49  ;;  %v1236_v48 = vunpack.c.l.s8.bf16 %v180_v42  ;;  %v1238_v49 = vunpack.c.l.s8.bf16 %v182_v44 }
 0x462   :  { %4180 = vmatprep.subr.bf16.mxu0 %v3168_v51  ;;  %4508 = vmatprep.subr.bf16.mxu1 %v3170_v52  ;;  %v179_v51 = vld [vmem:[#allocation8 + $0x140] sm:$0xff]  ;;  %v181_v52 = vld [vmem:[#allocation8 + $0x150] sm:$0xff] }
 0x463   :  { %v1235_v54 = vunpack.c.l.s8.bf16 %v179_v51  ;;  %v1237_v55 = vunpack.c.l.s8.bf16 %v181_v52  ;;  %v1251_v60 = vunpack.c.h.s8.bf16 %v179_v51  ;;  %v1253_v61 = vunpack.c.h.s8.bf16 %v181_v52 }
 0x465   :  { %4181 = vmatpush1.bf16.msra.mxu0 %v3167_v56  ;;  %4509 = vmatpush1.bf16.msra.mxu1 %v3169_v57  ;;  %v1252_v56 = vunpack.c.h.s8.bf16 %v180_v42  ;;  %v1254_v57 = vunpack.c.h.s8.bf16 %v182_v44 }
 0x466   :  { %4182 = vmatprep.subr.bf16.mxu0 %v3184_v58  ;;  %4510 = vmatprep.subr.bf16.mxu1 %v3186_v59  ;;  %v196_v58 = vld [vmem:[#allocation8 + $0x1c8] sm:$0xff]  ;;  %v198_v59 = vld [vmem:[#allocation8 + $0x1d8] sm:$0xff] }
 0x469   :  { %4183 = vmatpush1.bf16.msra.mxu0 %v3183_v63  ;;  %4511 = vmatpush1.bf16.msra.mxu1 %v3185_v0  ;;  %v1268_v63 = vunpack.c.l.s8.bf16 %v196_v58  ;;  %v1270_v0 = vunpack.c.l.s8.bf16 %v198_v59 }
 0x46a   :  { %4184 = vmatprep.subr.bf16.mxu0 %v3200_v1  ;;  %4512 = vmatprep.subr.bf16.mxu1 %v3202_v2  ;;  %v195_v1 = vld [vmem:[#allocation8 + $0x1c0] sm:$0xff]  ;;  %v197_v2 = vld [vmem:[#allocation8 + $0x1d0] sm:$0xff] }
 0x46b   :  { %v1267_v8 = vunpack.c.l.s8.bf16 %v195_v1  ;;  %v1269_v9 = vunpack.c.l.s8.bf16 %v197_v2  ;;  %v1283_v14 = vunpack.c.h.s8.bf16 %v195_v1  ;;  %v1285_v15 = vunpack.c.h.s8.bf16 %v197_v2 }
 0x46d   :  { %4185 = vmatpush1.bf16.msra.mxu0 %v3199_v10  ;;  %4513 = vmatpush1.bf16.msra.mxu1 %v3201_v11  ;;  %v1284_v10 = vunpack.c.h.s8.bf16 %v196_v58  ;;  %v1286_v11 = vunpack.c.h.s8.bf16 %v198_v59 }
 0x46e   :  { %4523 = vmatprep.subr.bf16.mxu0 %v1172_v12  ;;  %4851 = vmatprep.subr.bf16.mxu1 %v1174_v13  ;;  %v212_v12 = vld [vmem:[#allocation8 + $0x248] sm:$0xff]  ;;  %v214_v13 = vld [vmem:[#allocation8 + $0x258] sm:$0xff] }
 0x470   :  { %4187 = vmatmul.mubr.bf16.vlgmr.msra.gmra.mrb[4].mxu0 %v12980_v17  ;;  %4515 = vmatmul.mubr.bf16.vlgmr.msra.gmra.mrb[4].mxu1 %v12980_v17 }
 0x471   :  { %4524 = vmatpush1.bf16.msra.mxu0 %v1171_v19  ;;  %4852 = vmatpush1.bf16.msra.mxu1 %v1173_v20  ;;  %v1300_v19 = vunpack.c.l.s8.bf16 %v212_v12  ;;  %v1302_v20 = vunpack.c.l.s8.bf16 %v214_v13 }
 0x472   :  { %4525 = vmatprep.subr.bf16.mxu0 %v1188_v22  ;;  %4853 = vmatprep.subr.bf16.mxu1 %v1190_v23  ;;  %v211_v22 = vld [vmem:[#allocation8 + $0x240] sm:$0xff]  ;;  %v213_v23 = vld [vmem:[#allocation8 + $0x250] sm:$0xff] }
 0x473   :  { %4555 = vmatprep.mubr.bf16.mxu0 %v12920_v35  ;;  %4883 = vmatprep.mubr.bf16.mxu1 %v12920_v35  ;;  %v1299_v24 = vunpack.c.l.s8.bf16 %v211_v22  ;;  %v1301_v26 = vunpack.c.l.s8.bf16 %v213_v23  ;;  %v1315_v34 = vunpack.c.h.s8.bf16 %v211_v22  ;;  %v1317_v36 = vunpack.c.h.s8.bf16 %v213_v23 }
 0x475   :  { %4526 = vmatpush1.bf16.msra.mxu0 %v1187_v28  ;;  %4854 = vmatpush1.bf16.msra.mxu1 %v1189_v29  ;;  %v1316_v28 = vunpack.c.h.s8.bf16 %v212_v12  ;;  %v1318_v29 = vunpack.c.h.s8.bf16 %v214_v13 }
 0x476   :  { %4527 = vmatprep.subr.bf16.mxu0 %v1204_v32  ;;  %4855 = vmatprep.subr.bf16.mxu1 %v1206_v33  ;;  %v228_v32 = vld [vmem:[#allocation8 + $0x2c8] sm:$0xff]  ;;  %v230_v33 = vld [vmem:[#allocation8 + $0x2d8] sm:$0xff] }
 0x479   :  { %4528 = vmatpush1.bf16.msra.mxu0 %v1203_v37  ;;  %4856 = vmatpush1.bf16.msra.mxu1 %v1205_v38  ;;  %v1332_v37 = vunpack.c.l.s8.bf16 %v228_v32  ;;  %v1334_v38 = vunpack.c.l.s8.bf16 %v230_v33 }
 0x47a   :  { %4529 = vmatprep.subr.bf16.mxu0 %v1220_v40  ;;  %4857 = vmatprep.subr.bf16.mxu1 %v1222_v41  ;;  %v227_v40 = vld [vmem:[#allocation8 + $0x2c0] sm:$0xff]  ;;  %v229_v41 = vld [vmem:[#allocation8 + $0x2d0] sm:$0xff] }
 0x47b   :  { %v1331_v42 = vunpack.c.l.s8.bf16 %v227_v40  ;;  %v1333_v44 = vunpack.c.l.s8.bf16 %v229_v41  ;;  %v1347_v51 = vunpack.c.h.s8.bf16 %v227_v40  ;;  %v1349_v52 = vunpack.c.h.s8.bf16 %v229_v41 }
 0x47d   :  { %4530 = vmatpush1.bf16.msra.mxu0 %v1219_v46  ;;  %4858 = vmatpush1.bf16.msra.mxu1 %v1221_v47  ;;  %v1348_v46 = vunpack.c.h.s8.bf16 %v228_v32  ;;  %v1350_v47 = vunpack.c.h.s8.bf16 %v230_v33 }
 0x47e   :  { %4531 = vmatprep.subr.bf16.mxu0 %v1236_v48  ;;  %4859 = vmatprep.subr.bf16.mxu1 %v1238_v49  ;;  %v244_v48 = vld [vmem:[#allocation8 + $0x348] sm:$0xff]  ;;  %v246_v49 = vld [vmem:[#allocation8 + $0x358] sm:$0xff] }
 0x481   :  { %4532 = vmatpush1.bf16.msra.mxu0 %v1235_v54  ;;  %4860 = vmatpush1.bf16.msra.mxu1 %v1237_v55  ;;  %v1364_v54 = vunpack.c.l.s8.bf16 %v244_v48  ;;  %v1366_v55 = vunpack.c.l.s8.bf16 %v246_v49 }
 0x482   :  { %4533 = vmatprep.subr.bf16.mxu0 %v1252_v56  ;;  %4861 = vmatprep.subr.bf16.mxu1 %v1254_v57  ;;  %v243_v56 = vld [vmem:[#allocation8 + $0x340] sm:$0xff]  ;;  %v245_v57 = vld [vmem:[#allocation8 + $0x350] sm:$0xff] }
 0x483   :  { %v1363_v58 = vunpack.c.l.s8.bf16 %v243_v56  ;;  %v1365_v59 = vunpack.c.l.s8.bf16 %v245_v57  ;;  %v1379_v1 = vunpack.c.h.s8.bf16 %v243_v56  ;;  %v1381_v2 = vunpack.c.h.s8.bf16 %v245_v57 }
 0x485   :  { %4534 = vmatpush1.bf16.msra.mxu0 %v1251_v60  ;;  %4862 = vmatpush1.bf16.msra.mxu1 %v1253_v61  ;;  %v1380_v60 = vunpack.c.h.s8.bf16 %v244_v48  ;;  %v1382_v61 = vunpack.c.h.s8.bf16 %v246_v49 }
 0x486   :  { %4535 = vmatprep.subr.bf16.mxu0 %v1268_v63  ;;  %4863 = vmatprep.subr.bf16.mxu1 %v1270_v0  ;;  %v260_v63 = vld [vmem:[#allocation8 + $0x3c8] sm:$0xff]  ;;  %v262_v0 = vld [vmem:[#allocation8 + $0x3d8] sm:$0xff] }
 0x489   :  { %4536 = vmatpush1.bf16.msra.mxu0 %v1267_v8  ;;  %4864 = vmatpush1.bf16.msra.mxu1 %v1269_v9  ;;  %v1396_v8 = vunpack.c.l.s8.bf16 %v260_v63  ;;  %v1398_v9 = vunpack.c.l.s8.bf16 %v262_v0 }
 0x48a   :  { %4537 = vmatprep.subr.bf16.mxu0 %v1284_v10  ;;  %4865 = vmatprep.subr.bf16.mxu1 %v1286_v11  ;;  %v259_v10 = vld [vmem:[#allocation8 + $0x3c0] sm:$0xff]  ;;  %v261_v11 = vld [vmem:[#allocation8 + $0x3d0] sm:$0xff] }
 0x48b   :  { %v1395_v12 = vunpack.c.l.s8.bf16 %v259_v10  ;;  %v1397_v13 = vunpack.c.l.s8.bf16 %v261_v11  ;;  %v1411_v22 = vunpack.c.h.s8.bf16 %v259_v10  ;;  %v1413_v23 = vunpack.c.h.s8.bf16 %v261_v11 }
 0x48d   :  { %4538 = vmatpush1.bf16.msra.mxu0 %v1283_v14  ;;  %4866 = vmatpush1.bf16.msra.mxu1 %v1285_v15  ;;  %v1412_v14 = vunpack.c.h.s8.bf16 %v260_v63  ;;  %v1414_v15 = vunpack.c.h.s8.bf16 %v262_v0 }
 0x48e   :  { %4539 = vmatprep.subr.bf16.mxu0 %v1300_v19  ;;  %4867 = vmatprep.subr.bf16.mxu1 %v1302_v20  ;;  %v276_v19 = vld [vmem:[#allocation8 + $0x448] sm:$0xff]  ;;  %v278_v20 = vld [vmem:[#allocation8 + $0x458] sm:$0xff] }
 0x491   :  { %4540 = vmatpush1.bf16.msra.mxu0 %v1299_v24  ;;  %4868 = vmatpush1.bf16.msra.mxu1 %v1301_v26  ;;  %v1428_v24 = vunpack.c.l.s8.bf16 %v276_v19  ;;  %v1430_v26 = vunpack.c.l.s8.bf16 %v278_v20 }
 0x492   :  { %4541 = vmatprep.subr.bf16.mxu0 %v1316_v28  ;;  %4869 = vmatprep.subr.bf16.mxu1 %v1318_v29  ;;  %v275_v28 = vld [vmem:[#allocation8 + $0x440] sm:$0xff]  ;;  %v277_v29 = vld [vmem:[#allocation8 + $0x450] sm:$0xff] }
 0x493   :  { %v1427_v32 = vunpack.c.l.s8.bf16 %v275_v28  ;;  %v1429_v33 = vunpack.c.l.s8.bf16 %v277_v29  ;;  %v1443_v40 = vunpack.c.h.s8.bf16 %v275_v28  ;;  %v1445_v41 = vunpack.c.h.s8.bf16 %v277_v29 }
 0x495   :  { %4542 = vmatpush1.bf16.msra.mxu0 %v1315_v34  ;;  %4870 = vmatpush1.bf16.msra.mxu1 %v1317_v36  ;;  %v1444_v34 = vunpack.c.h.s8.bf16 %v276_v19  ;;  %v1446_v36 = vunpack.c.h.s8.bf16 %v278_v20 }
 0x496   :  { %4543 = vmatprep.subr.bf16.mxu0 %v1332_v37  ;;  %4871 = vmatprep.subr.bf16.mxu1 %v1334_v38  ;;  %v292_v37 = vld [vmem:[#allocation8 + $0x4c8] sm:$0xff]  ;;  %v294_v38 = vld [vmem:[#allocation8 + $0x4d8] sm:$0xff] }
 0x499   :  { %4544 = vmatpush1.bf16.msra.mxu0 %v1331_v42  ;;  %4872 = vmatpush1.bf16.msra.mxu1 %v1333_v44  ;;  %v1460_v42 = vunpack.c.l.s8.bf16 %v292_v37  ;;  %v1462_v44 = vunpack.c.l.s8.bf16 %v294_v38 }
 0x49a   :  { %4545 = vmatprep.subr.bf16.mxu0 %v1348_v46  ;;  %4873 = vmatprep.subr.bf16.mxu1 %v1350_v47  ;;  %v291_v46 = vld [vmem:[#allocation8 + $0x4c0] sm:$0xff]  ;;  %v293_v47 = vld [vmem:[#allocation8 + $0x4d0] sm:$0xff] }
 0x49b   :  { %v1459_v48 = vunpack.c.l.s8.bf16 %v291_v46  ;;  %v1461_v49 = vunpack.c.l.s8.bf16 %v293_v47  ;;  %v1475_v56 = vunpack.c.h.s8.bf16 %v291_v46  ;;  %v1477_v57 = vunpack.c.h.s8.bf16 %v293_v47 }
 0x49d   :  { %4546 = vmatpush1.bf16.msra.mxu0 %v1347_v51  ;;  %4874 = vmatpush1.bf16.msra.mxu1 %v1349_v52  ;;  %v1476_v51 = vunpack.c.h.s8.bf16 %v292_v37  ;;  %v1478_v52 = vunpack.c.h.s8.bf16 %v294_v38 }
 0x49e   :  { %4547 = vmatprep.subr.bf16.mxu0 %v1364_v54  ;;  %4875 = vmatprep.subr.bf16.mxu1 %v1366_v55  ;;  %v308_v54 = vld [vmem:[#allocation8 + $0x548] sm:$0xff]  ;;  %v310_v55 = vld [vmem:[#allocation8 + $0x558] sm:$0xff] }
 0x4a1   :  { %4548 = vmatpush1.bf16.msra.mxu0 %v1363_v58  ;;  %4876 = vmatpush1.bf16.msra.mxu1 %v1365_v59  ;;  %v1492_v58 = vunpack.c.l.s8.bf16 %v308_v54  ;;  %v1494_v59 = vunpack.c.l.s8.bf16 %v310_v55 }
 0x4a2   :  { %4549 = vmatprep.subr.bf16.mxu0 %v1380_v60  ;;  %4877 = vmatprep.subr.bf16.mxu1 %v1382_v61  ;;  %v307_v60 = vld [vmem:[#allocation8 + $0x540] sm:$0xff]  ;;  %v309_v61 = vld [vmem:[#allocation8 + $0x550] sm:$0xff] }
 0x4a3   :  { %v1491_v63 = vunpack.c.l.s8.bf16 %v307_v60  ;;  %v1493_v0 = vunpack.c.l.s8.bf16 %v309_v61  ;;  %v1507_v10 = vunpack.c.h.s8.bf16 %v307_v60  ;;  %v1509_v11 = vunpack.c.h.s8.bf16 %v309_v61 }
 0x4a5   :  { %4550 = vmatpush1.bf16.msra.mxu0 %v1379_v1  ;;  %4878 = vmatpush1.bf16.msra.mxu1 %v1381_v2  ;;  %v1508_v1 = vunpack.c.h.s8.bf16 %v308_v54  ;;  %v1510_v2 = vunpack.c.h.s8.bf16 %v310_v55 }
 0x4a6   :  { %4551 = vmatprep.subr.bf16.mxu0 %v1396_v8  ;;  %4879 = vmatprep.subr.bf16.mxu1 %v1398_v9  ;;  %v324_v8 = vld [vmem:[#allocation8 + $0x5c8] sm:$0xff]  ;;  %v326_v9 = vld [vmem:[#allocation8 + $0x5d8] sm:$0xff] }
 0x4a9   :  { %4552 = vmatpush1.bf16.msra.mxu0 %v1395_v12  ;;  %4880 = vmatpush1.bf16.msra.mxu1 %v1397_v13  ;;  %v1524_v12 = vunpack.c.l.s8.bf16 %v324_v8  ;;  %v1526_v13 = vunpack.c.l.s8.bf16 %v326_v9 }
 0x4aa   :  { %4553 = vmatprep.subr.bf16.mxu0 %v1412_v14  ;;  %4881 = vmatprep.subr.bf16.mxu1 %v1414_v15  ;;  %v323_v14 = vld [vmem:[#allocation8 + $0x5c0] sm:$0xff]  ;;  %v325_v15 = vld [vmem:[#allocation8 + $0x5d0] sm:$0xff] }
 0x4ab   :  { %v1523_v19 = vunpack.c.l.s8.bf16 %v323_v14  ;;  %v1525_v20 = vunpack.c.l.s8.bf16 %v325_v15  ;;  %v1539_v28 = vunpack.c.h.s8.bf16 %v323_v14  ;;  %v1541_v29 = vunpack.c.h.s8.bf16 %v325_v15 }
 0x4ad   :  { %4554 = vmatpush1.bf16.msra.mxu0 %v1411_v22  ;;  %4882 = vmatpush1.bf16.msra.mxu1 %v1413_v23  ;;  %v1540_v22 = vunpack.c.h.s8.bf16 %v324_v8  ;;  %v1542_v23 = vunpack.c.h.s8.bf16 %v326_v9 }
 0x4ae   :  { %4564 = vmatprep.subr.bf16.mxu0 %v1428_v24  ;;  %4892 = vmatprep.subr.bf16.mxu1 %v1430_v26  ;;  %v340_v24 = vld [vmem:[#allocation8 + $0x648] sm:$0xff]  ;;  %v342_v26 = vld [vmem:[#allocation8 + $0x658] sm:$0xff] }
 0x4b0   :  { %4556 = vmatmul.mubr.bf16.vlgmr.msra.gmra.mrb[8].mxu0 %v12924_v43  ;;  %4884 = vmatmul.mubr.bf16.vlgmr.msra.gmra.mrb[8].mxu1 %v12924_v43 }
 0x4b1   :  { %4565 = vmatpush1.bf16.msra.mxu0 %v1427_v32  ;;  %4893 = vmatpush1.bf16.msra.mxu1 %v1429_v33  ;;  %v1556_v32 = vunpack.c.l.s8.bf16 %v340_v24  ;;  %v1558_v33 = vunpack.c.l.s8.bf16 %v342_v26 }
 0x4b2   :  { %4566 = vmatprep.subr.bf16.mxu0 %v1444_v34  ;;  %4894 = vmatprep.subr.bf16.mxu1 %v1446_v36  ;;  %v339_v34 = vld [vmem:[#allocation8 + $0x640] sm:$0xff]  ;;  %v341_v36 = vld [vmem:[#allocation8 + $0x650] sm:$0xff] }
 0x4b3   :  { %4596 = vmatprep.mubr.bf16.mxu0 %v12926_v50  ;;  %4924 = vmatprep.mubr.bf16.mxu1 %v12926_v50  ;;  %v1555_v37 = vunpack.c.l.s8.bf16 %v339_v34  ;;  %v1557_v38 = vunpack.c.l.s8.bf16 %v341_v36  ;;  %v1571_v46 = vunpack.c.h.s8.bf16 %v339_v34  ;;  %v1573_v47 = vunpack.c.h.s8.bf16 %v341_v36 }
 0x4b5   :  { %4567 = vmatpush1.bf16.msra.mxu0 %v1443_v40  ;;  %4895 = vmatpush1.bf16.msra.mxu1 %v1445_v41  ;;  %v1572_v40 = vunpack.c.h.s8.bf16 %v340_v24  ;;  %v1574_v41 = vunpack.c.h.s8.bf16 %v342_v26 }
 0x4b6   :  { %4568 = vmatprep.subr.bf16.mxu0 %v1460_v42  ;;  %4896 = vmatprep.subr.bf16.mxu1 %v1462_v44  ;;  %v356_v42 = vld [vmem:[#allocation8 + $0x6c8] sm:$0xff]  ;;  %v358_v44 = vld [vmem:[#allocation8 + $0x6d8] sm:$0xff] }
 0x4b9   :  { %4569 = vmatpush1.bf16.msra.mxu0 %v1459_v48  ;;  %4897 = vmatpush1.bf16.msra.mxu1 %v1461_v49  ;;  %v1588_v48 = vunpack.c.l.s8.bf16 %v356_v42  ;;  %v1590_v49 = vunpack.c.l.s8.bf16 %v358_v44 }
 0x4ba   :  { %4570 = vmatprep.subr.bf16.mxu0 %v1476_v51  ;;  %4898 = vmatprep.subr.bf16.mxu1 %v1478_v52  ;;  %v355_v51 = vld [vmem:[#allocation8 + $0x6c0] sm:$0xff]  ;;  %v357_v52 = vld [vmem:[#allocation8 + $0x6d0] sm:$0xff] }
 0x4bb   :  { %v1587_v54 = vunpack.c.l.s8.bf16 %v355_v51  ;;  %v1589_v55 = vunpack.c.l.s8.bf16 %v357_v52  ;;  %v1603_v60 = vunpack.c.h.s8.bf16 %v355_v51  ;;  %v1605_v61 = vunpack.c.h.s8.bf16 %v357_v52 }
 0x4bd   :  { %4571 = vmatpush1.bf16.msra.mxu0 %v1475_v56  ;;  %4899 = vmatpush1.bf16.msra.mxu1 %v1477_v57  ;;  %v1604_v56 = vunpack.c.h.s8.bf16 %v356_v42  ;;  %v1606_v57 = vunpack.c.h.s8.bf16 %v358_v44 }
 0x4be   :  { %4572 = vmatprep.subr.bf16.mxu0 %v1492_v58  ;;  %4900 = vmatprep.subr.bf16.mxu1 %v1494_v59  ;;  %v372_v58 = vld [vmem:[#allocation8 + $0x748] sm:$0xff]  ;;  %v374_v59 = vld [vmem:[#allocation8 + $0x758] sm:$0xff] }
 0x4c1   :  { %4573 = vmatpush1.bf16.msra.mxu0 %v1491_v63  ;;  %4901 = vmatpush1.bf16.msra.mxu1 %v1493_v0  ;;  %v1620_v63 = vunpack.c.l.s8.bf16 %v372_v58  ;;  %v1622_v0 = vunpack.c.l.s8.bf16 %v374_v59 }
 0x4c2   :  { %4574 = vmatprep.subr.bf16.mxu0 %v1508_v1  ;;  %4902 = vmatprep.subr.bf16.mxu1 %v1510_v2  ;;  %v371_v1 = vld [vmem:[#allocation8 + $0x740] sm:$0xff]  ;;  %v373_v2 = vld [vmem:[#allocation8 + $0x750] sm:$0xff] }
 0x4c3   :  { %v1619_v8 = vunpack.c.l.s8.bf16 %v371_v1  ;;  %v1621_v9 = vunpack.c.l.s8.bf16 %v373_v2  ;;  %v1635_v14 = vunpack.c.h.s8.bf16 %v371_v1  ;;  %v1637_v15 = vunpack.c.h.s8.bf16 %v373_v2 }
 0x4c5   :  { %4575 = vmatpush1.bf16.msra.mxu0 %v1507_v10  ;;  %4903 = vmatpush1.bf16.msra.mxu1 %v1509_v11  ;;  %v1636_v10 = vunpack.c.h.s8.bf16 %v372_v58  ;;  %v1638_v11 = vunpack.c.h.s8.bf16 %v374_v59 }
 0x4c6   :  { %4576 = vmatprep.subr.bf16.mxu0 %v1524_v12  ;;  %4904 = vmatprep.subr.bf16.mxu1 %v1526_v13  ;;  %v388_v12 = vld [vmem:[#allocation8 + $0x7c8] sm:$0xff]  ;;  %v390_v13 = vld [vmem:[#allocation8 + $0x7d8] sm:$0xff] }
 0x4c9   :  { %4577 = vmatpush1.bf16.msra.mxu0 %v1523_v19  ;;  %4905 = vmatpush1.bf16.msra.mxu1 %v1525_v20  ;;  %v1652_v19 = vunpack.c.l.s8.bf16 %v388_v12  ;;  %v1654_v20 = vunpack.c.l.s8.bf16 %v390_v13 }
 0x4ca   :  { %4578 = vmatprep.subr.bf16.mxu0 %v1540_v22  ;;  %4906 = vmatprep.subr.bf16.mxu1 %v1542_v23  ;;  %v387_v22 = vld [vmem:[#allocation8 + $0x7c0] sm:$0xff]  ;;  %v389_v23 = vld [vmem:[#allocation8 + $0x7d0] sm:$0xff] }
 0x4cb   :  { %v1651_v24 = vunpack.c.l.s8.bf16 %v387_v22  ;;  %v1653_v26 = vunpack.c.l.s8.bf16 %v389_v23  ;;  %v1667_v34 = vunpack.c.h.s8.bf16 %v387_v22  ;;  %v1669_v36 = vunpack.c.h.s8.bf16 %v389_v23 }
 0x4cd   :  { %4579 = vmatpush1.bf16.msra.mxu0 %v1539_v28  ;;  %4907 = vmatpush1.bf16.msra.mxu1 %v1541_v29  ;;  %v1668_v28 = vunpack.c.h.s8.bf16 %v388_v12  ;;  %v1670_v29 = vunpack.c.h.s8.bf16 %v390_v13 }
 0x4ce   :  { %4580 = vmatprep.subr.bf16.mxu0 %v1556_v32  ;;  %4908 = vmatprep.subr.bf16.mxu1 %v1558_v33  ;;  %v404_v32 = vld [vmem:[#allocation8 + $0x848] sm:$0xff]  ;;  %v406_v33 = vld [vmem:[#allocation8 + $0x858] sm:$0xff] }
 0x4d1   :  { %4581 = vmatpush1.bf16.msra.mxu0 %v1555_v37  ;;  %4909 = vmatpush1.bf16.msra.mxu1 %v1557_v38  ;;  %v1684_v37 = vunpack.c.l.s8.bf16 %v404_v32  ;;  %v1686_v38 = vunpack.c.l.s8.bf16 %v406_v33 }
 0x4d2   :  { %4582 = vmatprep.subr.bf16.mxu0 %v1572_v40  ;;  %4910 = vmatprep.subr.bf16.mxu1 %v1574_v41  ;;  %v403_v40 = vld [vmem:[#allocation8 + $0x840] sm:$0xff]  ;;  %v405_v41 = vld [vmem:[#allocation8 + $0x850] sm:$0xff] }
 0x4d3   :  { %v1683_v42 = vunpack.c.l.s8.bf16 %v403_v40  ;;  %v1685_v44 = vunpack.c.l.s8.bf16 %v405_v41  ;;  %v1699_v51 = vunpack.c.h.s8.bf16 %v403_v40  ;;  %v1701_v52 = vunpack.c.h.s8.bf16 %v405_v41 }
 0x4d5   :  { %4583 = vmatpush1.bf16.msra.mxu0 %v1571_v46  ;;  %4911 = vmatpush1.bf16.msra.mxu1 %v1573_v47  ;;  %v1700_v46 = vunpack.c.h.s8.bf16 %v404_v32  ;;  %v1702_v47 = vunpack.c.h.s8.bf16 %v406_v33 }
 0x4d6   :  { %4584 = vmatprep.subr.bf16.mxu0 %v1588_v48  ;;  %4912 = vmatprep.subr.bf16.mxu1 %v1590_v49  ;;  %v420_v48 = vld [vmem:[#allocation8 + $0x8c8] sm:$0xff]  ;;  %v422_v49 = vld [vmem:[#allocation8 + $0x8d8] sm:$0xff] }
 0x4d9   :  { %4585 = vmatpush1.bf16.msra.mxu0 %v1587_v54  ;;  %4913 = vmatpush1.bf16.msra.mxu1 %v1589_v55  ;;  %v1716_v54 = vunpack.c.l.s8.bf16 %v420_v48  ;;  %v1718_v55 = vunpack.c.l.s8.bf16 %v422_v49 }
 0x4da   :  { %4586 = vmatprep.subr.bf16.mxu0 %v1604_v56  ;;  %4914 = vmatprep.subr.bf16.mxu1 %v1606_v57  ;;  %v419_v56 = vld [vmem:[#allocation8 + $0x8c0] sm:$0xff]  ;;  %v421_v57 = vld [vmem:[#allocation8 + $0x8d0] sm:$0xff] }
 0x4db   :  { %v1715_v58 = vunpack.c.l.s8.bf16 %v419_v56  ;;  %v1717_v59 = vunpack.c.l.s8.bf16 %v421_v57  ;;  %v1731_v1 = vunpack.c.h.s8.bf16 %v419_v56  ;;  %v1733_v2 = vunpack.c.h.s8.bf16 %v421_v57 }
 0x4dd   :  { %4587 = vmatpush1.bf16.msra.mxu0 %v1603_v60  ;;  %4915 = vmatpush1.bf16.msra.mxu1 %v1605_v61  ;;  %v1732_v60 = vunpack.c.h.s8.bf16 %v420_v48  ;;  %v1734_v61 = vunpack.c.h.s8.bf16 %v422_v49 }
 0x4de   :  { %4588 = vmatprep.subr.bf16.mxu0 %v1620_v63  ;;  %4916 = vmatprep.subr.bf16.mxu1 %v1622_v0  ;;  %v436_v63 = vld [vmem:[#allocation8 + $0x948] sm:$0xff]  ;;  %v438_v0 = vld [vmem:[#allocation8 + $0x958] sm:$0xff] }
 0x4e1   :  { %4589 = vmatpush1.bf16.msra.mxu0 %v1619_v8  ;;  %4917 = vmatpush1.bf16.msra.mxu1 %v1621_v9  ;;  %v1748_v8 = vunpack.c.l.s8.bf16 %v436_v63  ;;  %v1750_v9 = vunpack.c.l.s8.bf16 %v438_v0 }
 0x4e2   :  { %4590 = vmatprep.subr.bf16.mxu0 %v1636_v10  ;;  %4918 = vmatprep.subr.bf16.mxu1 %v1638_v11  ;;  %v435_v10 = vld [vmem:[#allocation8 + $0x940] sm:$0xff]  ;;  %v437_v11 = vld [vmem:[#allocation8 + $0x950] sm:$0xff] }
 0x4e3   :  { %v1747_v12 = vunpack.c.l.s8.bf16 %v435_v10  ;;  %v1749_v13 = vunpack.c.l.s8.bf16 %v437_v11  ;;  %v1763_v22 = vunpack.c.h.s8.bf16 %v435_v10  ;;  %v1765_v23 = vunpack.c.h.s8.bf16 %v437_v11 }
 0x4e5   :  { %4591 = vmatpush1.bf16.msra.mxu0 %v1635_v14  ;;  %4919 = vmatpush1.bf16.msra.mxu1 %v1637_v15  ;;  %v1764_v14 = vunpack.c.h.s8.bf16 %v436_v63  ;;  %v1766_v15 = vunpack.c.h.s8.bf16 %v438_v0 }
 0x4e6   :  { %4592 = vmatprep.subr.bf16.mxu0 %v1652_v19  ;;  %4920 = vmatprep.subr.bf16.mxu1 %v1654_v20  ;;  %v452_v19 = vld [vmem:[#allocation8 + $0x9c8] sm:$0xff]  ;;  %v454_v20 = vld [vmem:[#allocation8 + $0x9d8] sm:$0xff] }
 0x4e9   :  { %4593 = vmatpush1.bf16.msra.mxu0 %v1651_v24  ;;  %4921 = vmatpush1.bf16.msra.mxu1 %v1653_v26  ;;  %v1780_v24 = vunpack.c.l.s8.bf16 %v452_v19  ;;  %v1782_v26 = vunpack.c.l.s8.bf16 %v454_v20 }
 0x4ea   :  { %4594 = vmatprep.subr.bf16.mxu0 %v1668_v28  ;;  %4922 = vmatprep.subr.bf16.mxu1 %v1670_v29  ;;  %v451_v28 = vld [vmem:[#allocation8 + $0x9c0] sm:$0xff]  ;;  %v453_v29 = vld [vmem:[#allocation8 + $0x9d0] sm:$0xff] }
 0x4eb   :  { %v1779_v32 = vunpack.c.l.s8.bf16 %v451_v28  ;;  %v1781_v33 = vunpack.c.l.s8.bf16 %v453_v29  ;;  %v1795_v40 = vunpack.c.h.s8.bf16 %v451_v28  ;;  %v1797_v41 = vunpack.c.h.s8.bf16 %v453_v29 }
 0x4ed   :  { %4595 = vmatpush1.bf16.msra.mxu0 %v1667_v34  ;;  %4923 = vmatpush1.bf16.msra.mxu1 %v1669_v36  ;;  %v1796_v34 = vunpack.c.h.s8.bf16 %v452_v19  ;;  %v1798_v36 = vunpack.c.h.s8.bf16 %v454_v20 }
 0x4ee   :  { %4605 = vmatprep.subr.bf16.mxu0 %v1684_v37  ;;  %4933 = vmatprep.subr.bf16.mxu1 %v1686_v38  ;;  %v468_v37 = vld [vmem:[#allocation8 + $0xa48] sm:$0xff]  ;;  %v470_v38 = vld [vmem:[#allocation8 + $0xa58] sm:$0xff] }
 0x4f0   :  { %4597 = vmatmul.mubr.bf16.vlgmr.msra.gmra.mrb[8].mxu0 %v12932_v18  ;;  %4925 = vmatmul.mubr.bf16.vlgmr.msra.gmra.mrb[8].mxu1 %v12932_v18 }
 0x4f1   :  { %4606 = vmatpush1.bf16.msra.mxu0 %v1683_v42  ;;  %4934 = vmatpush1.bf16.msra.mxu1 %v1685_v44  ;;  %v1812_v42 = vunpack.c.l.s8.bf16 %v468_v37  ;;  %v1814_v44 = vunpack.c.l.s8.bf16 %v470_v38 }
 0x4f2   :  { %4607 = vmatprep.subr.bf16.mxu0 %v1700_v46  ;;  %4935 = vmatprep.subr.bf16.mxu1 %v1702_v47  ;;  %v467_v46 = vld [vmem:[#allocation8 + $0xa40] sm:$0xff]  ;;  %v469_v47 = vld [vmem:[#allocation8 + $0xa50] sm:$0xff] }
 0x4f3   :  { %4637 = vmatprep.mubr.bf16.mxu0 %v12934_v25  ;;  %4965 = vmatprep.mubr.bf16.mxu1 %v12934_v25  ;;  %v1811_v48 = vunpack.c.l.s8.bf16 %v467_v46  ;;  %v1813_v49 = vunpack.c.l.s8.bf16 %v469_v47  ;;  %v1827_v56 = vunpack.c.h.s8.bf16 %v467_v46  ;;  %v1829_v57 = vunpack.c.h.s8.bf16 %v469_v47 }
 0x4f5   :  { %4608 = vmatpush1.bf16.msra.mxu0 %v1699_v51  ;;  %4936 = vmatpush1.bf16.msra.mxu1 %v1701_v52  ;;  %v1828_v51 = vunpack.c.h.s8.bf16 %v468_v37  ;;  %v1830_v52 = vunpack.c.h.s8.bf16 %v470_v38 }
 0x4f6   :  { %4609 = vmatprep.subr.bf16.mxu0 %v1716_v54  ;;  %4937 = vmatprep.subr.bf16.mxu1 %v1718_v55  ;;  %v484_v54 = vld [vmem:[#allocation8 + $0xac8] sm:$0xff]  ;;  %v486_v55 = vld [vmem:[#allocation8 + $0xad8] sm:$0xff] }
 0x4f9   :  { %4610 = vmatpush1.bf16.msra.mxu0 %v1715_v58  ;;  %4938 = vmatpush1.bf16.msra.mxu1 %v1717_v59  ;;  %v1844_v58 = vunpack.c.l.s8.bf16 %v484_v54  ;;  %v1846_v59 = vunpack.c.l.s8.bf16 %v486_v55 }
 0x4fa   :  { %4611 = vmatprep.subr.bf16.mxu0 %v1732_v60  ;;  %4939 = vmatprep.subr.bf16.mxu1 %v1734_v61  ;;  %v483_v60 = vld [vmem:[#allocation8 + $0xac0] sm:$0xff]  ;;  %v485_v61 = vld [vmem:[#allocation8 + $0xad0] sm:$0xff] }
 0x4fb   :  { %v1843_v63 = vunpack.c.l.s8.bf16 %v483_v60  ;;  %v1845_v0 = vunpack.c.l.s8.bf16 %v485_v61  ;;  %v1859_v10 = vunpack.c.h.s8.bf16 %v483_v60  ;;  %v1861_v11 = vunpack.c.h.s8.bf16 %v485_v61 }
 0x4fd   :  { %4612 = vmatpush1.bf16.msra.mxu0 %v1731_v1  ;;  %4940 = vmatpush1.bf16.msra.mxu1 %v1733_v2  ;;  %v1860_v1 = vunpack.c.h.s8.bf16 %v484_v54  ;;  %v1862_v2 = vunpack.c.h.s8.bf16 %v486_v55 }
 0x4fe   :  { %4613 = vmatprep.subr.bf16.mxu0 %v1748_v8  ;;  %4941 = vmatprep.subr.bf16.mxu1 %v1750_v9  ;;  %v500_v8 = vld [vmem:[#allocation8 + $0xb48] sm:$0xff]  ;;  %v502_v9 = vld [vmem:[#allocation8 + $0xb58] sm:$0xff] }
 0x501   :  { %4614 = vmatpush1.bf16.msra.mxu0 %v1747_v12  ;;  %4942 = vmatpush1.bf16.msra.mxu1 %v1749_v13  ;;  %v1876_v12 = vunpack.c.l.s8.bf16 %v500_v8  ;;  %v1878_v13 = vunpack.c.l.s8.bf16 %v502_v9 }
 0x502   :  { %4615 = vmatprep.subr.bf16.mxu0 %v1764_v14  ;;  %4943 = vmatprep.subr.bf16.mxu1 %v1766_v15  ;;  %v499_v14 = vld [vmem:[#allocation8 + $0xb40] sm:$0xff]  ;;  %v501_v15 = vld [vmem:[#allocation8 + $0xb50] sm:$0xff] }
 0x503   :  { %v1875_v19 = vunpack.c.l.s8.bf16 %v499_v14  ;;  %v1877_v20 = vunpack.c.l.s8.bf16 %v501_v15  ;;  %v1891_v28 = vunpack.c.h.s8.bf16 %v499_v14  ;;  %v1893_v29 = vunpack.c.h.s8.bf16 %v501_v15 }
 0x505   :  { %4616 = vmatpush1.bf16.msra.mxu0 %v1763_v22  ;;  %4944 = vmatpush1.bf16.msra.mxu1 %v1765_v23  ;;  %v1892_v22 = vunpack.c.h.s8.bf16 %v500_v8  ;;  %v1894_v23 = vunpack.c.h.s8.bf16 %v502_v9 }
 0x506   :  { %4617 = vmatprep.subr.bf16.mxu0 %v1780_v24  ;;  %4945 = vmatprep.subr.bf16.mxu1 %v1782_v26  ;;  %v516_v24 = vld [vmem:[#allocation8 + $0xbc8] sm:$0xff]  ;;  %v518_v26 = vld [vmem:[#allocation8 + $0xbd8] sm:$0xff] }
 0x509   :  { %4618 = vmatpush1.bf16.msra.mxu0 %v1779_v32  ;;  %4946 = vmatpush1.bf16.msra.mxu1 %v1781_v33  ;;  %v1908_v32 = vunpack.c.l.s8.bf16 %v516_v24  ;;  %v1910_v33 = vunpack.c.l.s8.bf16 %v518_v26 }
 0x50a   :  { %4619 = vmatprep.subr.bf16.mxu0 %v1796_v34  ;;  %4947 = vmatprep.subr.bf16.mxu1 %v1798_v36  ;;  %v515_v34 = vld [vmem:[#allocation8 + $0xbc0] sm:$0xff]  ;;  %v517_v36 = vld [vmem:[#allocation8 + $0xbd0] sm:$0xff] }
 0x50b   :  { %v1907_v37 = vunpack.c.l.s8.bf16 %v515_v34  ;;  %v1909_v38 = vunpack.c.l.s8.bf16 %v517_v36  ;;  %v1923_v46 = vunpack.c.h.s8.bf16 %v515_v34  ;;  %v1925_v47 = vunpack.c.h.s8.bf16 %v517_v36 }
 0x50d   :  { %4620 = vmatpush1.bf16.msra.mxu0 %v1795_v40  ;;  %4948 = vmatpush1.bf16.msra.mxu1 %v1797_v41  ;;  %v1924_v40 = vunpack.c.h.s8.bf16 %v516_v24  ;;  %v1926_v41 = vunpack.c.h.s8.bf16 %v518_v26 }
 0x50e   :  { %4621 = vmatprep.subr.bf16.mxu0 %v1812_v42  ;;  %4949 = vmatprep.subr.bf16.mxu1 %v1814_v44  ;;  %v532_v42 = vld [vmem:[#allocation8 + $0xc48] sm:$0xff]  ;;  %v534_v44 = vld [vmem:[#allocation8 + $0xc58] sm:$0xff] }
 0x511   :  { %4622 = vmatpush1.bf16.msra.mxu0 %v1811_v48  ;;  %4950 = vmatpush1.bf16.msra.mxu1 %v1813_v49  ;;  %v1940_v48 = vunpack.c.l.s8.bf16 %v532_v42  ;;  %v1942_v49 = vunpack.c.l.s8.bf16 %v534_v44 }
 0x512   :  { %4623 = vmatprep.subr.bf16.mxu0 %v1828_v51  ;;  %4951 = vmatprep.subr.bf16.mxu1 %v1830_v52  ;;  %v531_v51 = vld [vmem:[#allocation8 + $0xc40] sm:$0xff]  ;;  %v533_v52 = vld [vmem:[#allocation8 + $0xc50] sm:$0xff] }
 0x513   :  { %v1939_v54 = vunpack.c.l.s8.bf16 %v531_v51  ;;  %v1941_v55 = vunpack.c.l.s8.bf16 %v533_v52  ;;  %v1955_v60 = vunpack.c.h.s8.bf16 %v531_v51  ;;  %v1957_v61 = vunpack.c.h.s8.bf16 %v533_v52 }
 0x515   :  { %4624 = vmatpush1.bf16.msra.mxu0 %v1827_v56  ;;  %4952 = vmatpush1.bf16.msra.mxu1 %v1829_v57  ;;  %v1956_v56 = vunpack.c.h.s8.bf16 %v532_v42  ;;  %v1958_v57 = vunpack.c.h.s8.bf16 %v534_v44 }
 0x516   :  { %4625 = vmatprep.subr.bf16.mxu0 %v1844_v58  ;;  %4953 = vmatprep.subr.bf16.mxu1 %v1846_v59  ;;  %v548_v58 = vld [vmem:[#allocation8 + $0xcc8] sm:$0xff]  ;;  %v550_v59 = vld [vmem:[#allocation8 + $0xcd8] sm:$0xff] }
 0x519   :  { %4626 = vmatpush1.bf16.msra.mxu0 %v1843_v63  ;;  %4954 = vmatpush1.bf16.msra.mxu1 %v1845_v0  ;;  %v1972_v63 = vunpack.c.l.s8.bf16 %v548_v58  ;;  %v1974_v0 = vunpack.c.l.s8.bf16 %v550_v59 }
 0x51a   :  { %4627 = vmatprep.subr.bf16.mxu0 %v1860_v1  ;;  %4955 = vmatprep.subr.bf16.mxu1 %v1862_v2  ;;  %v547_v1 = vld [vmem:[#allocation8 + $0xcc0] sm:$0xff]  ;;  %v549_v2 = vld [vmem:[#allocation8 + $0xcd0] sm:$0xff] }
 0x51b   :  { %v1971_v8 = vunpack.c.l.s8.bf16 %v547_v1  ;;  %v1973_v9 = vunpack.c.l.s8.bf16 %v549_v2  ;;  %v1987_v14 = vunpack.c.h.s8.bf16 %v547_v1  ;;  %v1989_v15 = vunpack.c.h.s8.bf16 %v549_v2  ;;  %v595_v1 = vld [vmem:[#allocation8 + $0xe40] sm:$0xff]  ;;  %v597_v2 = vld [vmem:[#allocation8 + $0xe50] sm:$0xff] }
 0x51d   :  { %4628 = vmatpush1.bf16.msra.mxu0 %v1859_v10  ;;  %4956 = vmatpush1.bf16.msra.mxu1 %v1861_v11  ;;  %v1988_v10 = vunpack.c.h.s8.bf16 %v548_v58  ;;  %v1990_v11 = vunpack.c.h.s8.bf16 %v550_v59  ;;  %v596_v58 = vld [vmem:[#allocation8 + $0xe48] sm:$0xff]  ;;  %v598_v59 = vld [vmem:[#allocation8 + $0xe58] sm:$0xff] }
 0x51e   :  { %4629 = vmatprep.subr.bf16.mxu0 %v1876_v12  ;;  %4957 = vmatprep.subr.bf16.mxu1 %v1878_v13  ;;  %v564_v12 = vld [vmem:[#allocation8 + $0xd48] sm:$0xff]  ;;  %v566_v13 = vld [vmem:[#allocation8 + $0xd58] sm:$0xff] }
 0x521   :  { %4630 = vmatpush1.bf16.msra.mxu0 %v1875_v19  ;;  %4958 = vmatpush1.bf16.msra.mxu1 %v1877_v20  ;;  %v2004_v19 = vunpack.c.l.s8.bf16 %v564_v12  ;;  %v2006_v20 = vunpack.c.l.s8.bf16 %v566_v13 }
 0x522   :  { %4631 = vmatprep.subr.bf16.mxu0 %v1892_v22  ;;  %4959 = vmatprep.subr.bf16.mxu1 %v1894_v23  ;;  %v563_v22 = vld [vmem:[#allocation8 + $0xd40] sm:$0xff]  ;;  %v565_v23 = vld [vmem:[#allocation8 + $0xd50] sm:$0xff] }
 0x523   :  { %v2003_v24 = vunpack.c.l.s8.bf16 %v563_v22  ;;  %v2005_v26 = vunpack.c.l.s8.bf16 %v565_v23  ;;  %v2019_v34 = vunpack.c.h.s8.bf16 %v563_v22  ;;  %v2021_v36 = vunpack.c.h.s8.bf16 %v565_v23  ;;  %v611_v22 = vld [vmem:[#allocation8 + $0xec0] sm:$0xff]  ;;  %v613_v23 = vld [vmem:[#allocation8 + $0xed0] sm:$0xff] }
 0x525   :  { %4632 = vmatpush1.bf16.msra.mxu0 %v1891_v28  ;;  %4960 = vmatpush1.bf16.msra.mxu1 %v1893_v29  ;;  %v2020_v28 = vunpack.c.h.s8.bf16 %v564_v12  ;;  %v2022_v29 = vunpack.c.h.s8.bf16 %v566_v13  ;;  %v612_v12 = vld [vmem:[#allocation8 + $0xec8] sm:$0xff]  ;;  %v614_v13 = vld [vmem:[#allocation8 + $0xed8] sm:$0xff] }
 0x526   :  { %4633 = vmatprep.subr.bf16.mxu0 %v1908_v32  ;;  %4961 = vmatprep.subr.bf16.mxu1 %v1910_v33  ;;  %v580_v32 = vld [vmem:[#allocation8 + $0xdc8] sm:$0xff]  ;;  %v582_v33 = vld [vmem:[#allocation8 + $0xdd8] sm:$0xff] }
 0x529   :  { %4634 = vmatpush1.bf16.msra.mxu0 %v1907_v37  ;;  %4962 = vmatpush1.bf16.msra.mxu1 %v1909_v38  ;;  %v2036_v37 = vunpack.c.l.s8.bf16 %v580_v32  ;;  %v2038_v38 = vunpack.c.l.s8.bf16 %v582_v33 }
 0x52a   :  { %4635 = vmatprep.subr.bf16.mxu0 %v1924_v40  ;;  %4963 = vmatprep.subr.bf16.mxu1 %v1926_v41  ;;  %v579_v40 = vld [vmem:[#allocation8 + $0xdc0] sm:$0xff]  ;;  %v581_v41 = vld [vmem:[#allocation8 + $0xdd0] sm:$0xff] }
 0x52b   :  { %v2035_v51 = vunpack.c.l.s8.bf16 %v579_v40  ;;  %v2037_v52 = vunpack.c.l.s8.bf16 %v581_v41 }
 0x52d   :  { %4636 = vmatpush1.bf16.msra.mxu0 %v1923_v46  ;;  %4964 = vmatpush1.bf16.msra.mxu1 %v1925_v47 }
 0x52e   :  { %4646 = vmatprep.subr.bf16.mxu0 %v1940_v48  ;;  %4974 = vmatprep.subr.bf16.mxu1 %v1942_v49 }
 0x530   :  { %4638 = vmatmul.mubr.bf16.vlgmr.msra.gmra.mrb[8].mxu0 %v12940_v62  ;;  %4966 = vmatmul.mubr.bf16.vlgmr.msra.gmra.mrb[8].mxu1 %v12940_v62 }
 0x531   :  { %4647 = vmatpush1.bf16.msra.mxu0 %v1939_v54  ;;  %4975 = vmatpush1.bf16.msra.mxu1 %v1941_v55 }
 0x532   :  { %4648 = vmatprep.subr.bf16.mxu0 %v1956_v56  ;;  %4976 = vmatprep.subr.bf16.mxu1 %v1958_v57  ;;  %v2052_v56 = vunpack.c.h.s8.bf16 %v580_v32  ;;  %v2054_v57 = vunpack.c.h.s8.bf16 %v582_v33  ;;  %v628_v32 = vld [vmem:[#allocation8 + $0xf48] sm:$0xff]  ;;  %v630_v33 = vld [vmem:[#allocation8 + $0xf58] sm:$0xff] }
 0x533   :  { %4678 = vmatprep.mubr.bf16.mxu0 %v12942_v5  ;;  %5006 = vmatprep.mubr.bf16.mxu1 %v12942_v5 }
 0x535   :  { %4649 = vmatpush1.bf16.msra.mxu0 %v1955_v60  ;;  %4977 = vmatpush1.bf16.msra.mxu1 %v1957_v61  ;;  %v2051_v60 = vunpack.c.h.s8.bf16 %v579_v40  ;;  %v2053_v61 = vunpack.c.h.s8.bf16 %v581_v41  ;;  %v627_v40 = vld [vmem:[#allocation8 + $0xf40] sm:$0xff]  ;;  %v629_v41 = vld [vmem:[#allocation8 + $0xf50] sm:$0xff] }
 0x536   :  { %4650 = vmatprep.subr.bf16.mxu0 %v1972_v63  ;;  %4978 = vmatprep.subr.bf16.mxu1 %v1974_v0  ;;  %v2068_v63 = vunpack.c.l.s8.bf16 %v596_v58  ;;  %v2070_v0 = vunpack.c.l.s8.bf16 %v598_v59 }
 0x539   :  { %4651 = vmatpush1.bf16.msra.mxu0 %v1971_v8  ;;  %4979 = vmatpush1.bf16.msra.mxu1 %v1973_v9  ;;  %v2067_v8 = vunpack.c.l.s8.bf16 %v595_v1  ;;  %v2069_v9 = vunpack.c.l.s8.bf16 %v597_v2 }
 0x53a   :  { %4652 = vmatprep.subr.bf16.mxu0 %v1988_v10  ;;  %4980 = vmatprep.subr.bf16.mxu1 %v1990_v11  ;;  %v2084_v10 = vunpack.c.h.s8.bf16 %v596_v58  ;;  %v2086_v11 = vunpack.c.h.s8.bf16 %v598_v59 }
 0x53d   :  { %4653 = vmatpush1.bf16.msra.mxu0 %v1987_v14  ;;  %4981 = vmatpush1.bf16.msra.mxu1 %v1989_v15  ;;  %v2083_v14 = vunpack.c.h.s8.bf16 %v595_v1  ;;  %v2085_v15 = vunpack.c.h.s8.bf16 %v597_v2 }
 0x53e   :  { %4654 = vmatprep.subr.bf16.mxu0 %v2004_v19  ;;  %4982 = vmatprep.subr.bf16.mxu1 %v2006_v20  ;;  %v2100_v19 = vunpack.c.l.s8.bf16 %v612_v12  ;;  %v2102_v20 = vunpack.c.l.s8.bf16 %v614_v13 }
 0x541   :  { %4655 = vmatpush1.bf16.msra.mxu0 %v2003_v24  ;;  %4983 = vmatpush1.bf16.msra.mxu1 %v2005_v26  ;;  %v2099_v24 = vunpack.c.l.s8.bf16 %v611_v22  ;;  %v2101_v26 = vunpack.c.l.s8.bf16 %v613_v23 }
 0x542   :  { %4656 = vmatprep.subr.bf16.mxu0 %v2020_v28  ;;  %4984 = vmatprep.subr.bf16.mxu1 %v2022_v29  ;;  %v2116_v28 = vunpack.c.h.s8.bf16 %v612_v12  ;;  %v2118_v29 = vunpack.c.h.s8.bf16 %v614_v13 }
 0x543   :  { %v13038_v42 = vpop.f32.mrb[4].mxu0  ;;  %v13040_v44 = vpop.f32.mrb[4].mxu1 }
 0x544   :  { %v13042_v46 = vpop.f32.mrb[5].mxu0  ;;  %v13044_v47 = vpop.f32.mrb[5].mxu1 }
 0x545   :  { %v4192_v48 = vpop.f32.mrb[6].mxu0  ;;  %v4520_v49 = vpop.f32.mrb[6].mxu1  ;;  %4657 = vmatpush1.bf16.msra.mxu0 %v2019_v34  ;;  %4985 = vmatpush1.bf16.msra.mxu1 %v2021_v36  ;;  %v2115_v34 = vunpack.c.h.s8.bf16 %v611_v22  ;;  %v2117_v36 = vunpack.c.h.s8.bf16 %v613_v23 }
 0x546   :  { %v4193_v54 = vpop.f32.mrb[7].mxu0  ;;  %v4521_v55 = vpop.f32.mrb[7].mxu1  ;;  %4658 = vmatprep.subr.bf16.mxu0 %v2036_v37  ;;  %4986 = vmatprep.subr.bf16.mxu1 %v2038_v38  ;;  %v2132_v37 = vunpack.c.l.s8.bf16 %v628_v32  ;;  %v2134_v38 = vunpack.c.l.s8.bf16 %v630_v33  ;;  %v2131_v48 = vunpack.c.l.s8.bf16 %v627_v40  ;;  %v2133_v49 = vunpack.c.l.s8.bf16 %v629_v41 }
 0x547   :  { %v644_v54 = vld [vmem:[#allocation8 + $0xfc8] sm:$0xff]  ;;  %v646_v55 = vld [vmem:[#allocation8 + $0xfd8] sm:$0xff] }
 0x548   :  { %v2164_v58 = vunpack.c.l.s8.bf16 %v644_v54  ;;  %v2166_v59 = vunpack.c.l.s8.bf16 %v646_v55  ;;  %v2180_v1 = vunpack.c.h.s8.bf16 %v644_v54  ;;  %v2182_v2 = vunpack.c.h.s8.bf16 %v646_v55 }
 0x549   :  { %4659 = vmatpush1.bf16.msra.mxu0 %v2035_v51  ;;  %4987 = vmatpush1.bf16.msra.mxu1 %v2037_v52  ;;  %v2148_v51 = vunpack.c.h.s8.bf16 %v628_v32  ;;  %v2150_v52 = vunpack.c.h.s8.bf16 %v630_v33 }
 0x54a   :  { %4660 = vmatprep.subr.bf16.mxu0 %v2052_v56  ;;  %4988 = vmatprep.subr.bf16.mxu1 %v2054_v57  ;;  %v2147_v56 = vunpack.c.h.s8.bf16 %v627_v40  ;;  %v2149_v57 = vunpack.c.h.s8.bf16 %v629_v41 }
 0x54d   :  { %4661 = vmatpush1.bf16.msra.mxu0 %v2051_v60  ;;  %4989 = vmatpush1.bf16.msra.mxu1 %v2053_v61  ;;  %v643_v60 = vld [vmem:[#allocation8 + $0xfc0] sm:$0xff]  ;;  %v645_v61 = vld [vmem:[#allocation8 + $0xfd0] sm:$0xff] }
 0x54e   :  { %4662 = vmatprep.subr.bf16.mxu0 %v2068_v63  ;;  %4990 = vmatprep.subr.bf16.mxu1 %v2070_v0  ;;  %v2163_v63 = vunpack.c.l.s8.bf16 %v643_v60  ;;  %v2165_v0 = vunpack.c.l.s8.bf16 %v645_v61 }
 0x551   :  { %4663 = vmatpush1.bf16.msra.mxu0 %v2067_v8  ;;  %4991 = vmatpush1.bf16.msra.mxu1 %v2069_v9  ;;  %v660_v8 = vld [vmem:[#allocation8 + $0x1048] sm:$0xff]  ;;  %v662_v9 = vld [vmem:[#allocation8 + $0x1058] sm:$0xff] }
 0x552   :  { %4664 = vmatprep.subr.bf16.mxu0 %v2084_v10  ;;  %4992 = vmatprep.subr.bf16.mxu1 %v2086_v11  ;;  %v2179_v10 = vunpack.c.h.s8.bf16 %v643_v60  ;;  %v2181_v11 = vunpack.c.h.s8.bf16 %v645_v61  ;;  %v2196_v12 = vunpack.c.l.s8.bf16 %v660_v8  ;;  %v2198_v13 = vunpack.c.l.s8.bf16 %v662_v9 }
 0x553   :  { %v2212_v22 = vunpack.c.h.s8.bf16 %v660_v8  ;;  %v2214_v23 = vunpack.c.h.s8.bf16 %v662_v9 }
 0x555   :  { %4665 = vmatpush1.bf16.msra.mxu0 %v2083_v14  ;;  %4993 = vmatpush1.bf16.msra.mxu1 %v2085_v15  ;;  %v659_v14 = vld [vmem:[#allocation8 + $0x1040] sm:$0xff]  ;;  %v661_v15 = vld [vmem:[#allocation8 + $0x1050] sm:$0xff] }
 0x556   :  { %4666 = vmatprep.subr.bf16.mxu0 %v2100_v19  ;;  %4994 = vmatprep.subr.bf16.mxu1 %v2102_v20  ;;  %v2195_v19 = vunpack.c.l.s8.bf16 %v659_v14  ;;  %v2197_v20 = vunpack.c.l.s8.bf16 %v661_v15 }
 0x559   :  { %4667 = vmatpush1.bf16.msra.mxu0 %v2099_v24  ;;  %4995 = vmatpush1.bf16.msra.mxu1 %v2101_v26  ;;  %v676_v24 = vld [vmem:[#allocation8 + $0x10c8] sm:$0xff]  ;;  %v678_v26 = vld [vmem:[#allocation8 + $0x10d8] sm:$0xff] }
 0x55a   :  { %4668 = vmatprep.subr.bf16.mxu0 %v2116_v28  ;;  %4996 = vmatprep.subr.bf16.mxu1 %v2118_v29  ;;  %v2211_v28 = vunpack.c.h.s8.bf16 %v659_v14  ;;  %v2213_v29 = vunpack.c.h.s8.bf16 %v661_v15  ;;  %v2228_v32 = vunpack.c.l.s8.bf16 %v676_v24  ;;  %v2230_v33 = vunpack.c.l.s8.bf16 %v678_v26 }
 0x55b   :  { %v2244_v40 = vunpack.c.h.s8.bf16 %v676_v24  ;;  %v2246_v41 = vunpack.c.h.s8.bf16 %v678_v26 }
 0x55d   :  { %4669 = vmatpush1.bf16.msra.mxu0 %v2115_v34  ;;  %4997 = vmatpush1.bf16.msra.mxu1 %v2117_v36  ;;  %v675_v34 = vld [vmem:[#allocation8 + $0x10c0] sm:$0xff]  ;;  %v677_v36 = vld [vmem:[#allocation8 + $0x10d0] sm:$0xff] }
 0x55e   :  { %4670 = vmatprep.subr.bf16.mxu0 %v2132_v37  ;;  %4998 = vmatprep.subr.bf16.mxu1 %v2134_v38  ;;  %v2227_v37 = vunpack.c.l.s8.bf16 %v675_v34  ;;  %v2229_v38 = vunpack.c.l.s8.bf16 %v677_v36 }
 0x561   :  { %4671 = vmatpush1.bf16.msra.mxu0 %v2131_v48  ;;  %4999 = vmatpush1.bf16.msra.mxu1 %v2133_v49  ;;  %v692_v48 = vld [vmem:[#allocation8 + $0x1148] sm:$0xff]  ;;  %v694_v49 = vld [vmem:[#allocation8 + $0x1158] sm:$0xff] }
 0x562   :  { %4672 = vmatprep.subr.bf16.mxu0 %v2148_v51  ;;  %5000 = vmatprep.subr.bf16.mxu1 %v2150_v52  ;;  %v2243_v51 = vunpack.c.h.s8.bf16 %v675_v34  ;;  %v2245_v52 = vunpack.c.h.s8.bf16 %v677_v36  ;;  %v2260_v54 = vunpack.c.l.s8.bf16 %v692_v48  ;;  %v2262_v55 = vunpack.c.l.s8.bf16 %v694_v49 }
 0x563   :  { %v2276_v60 = vunpack.c.h.s8.bf16 %v692_v48  ;;  %v2278_v61 = vunpack.c.h.s8.bf16 %v694_v49 }
 0x565   :  { %4673 = vmatpush1.bf16.msra.mxu0 %v2147_v56  ;;  %5001 = vmatpush1.bf16.msra.mxu1 %v2149_v57  ;;  %v691_v56 = vld [vmem:[#allocation8 + $0x1140] sm:$0xff]  ;;  %v693_v57 = vld [vmem:[#allocation8 + $0x1150] sm:$0xff] }
 0x566   :  { %4674 = vmatprep.subr.bf16.mxu0 %v2164_v58  ;;  %5002 = vmatprep.subr.bf16.mxu1 %v2166_v59  ;;  %v2259_v58 = vunpack.c.l.s8.bf16 %v691_v56  ;;  %v2261_v59 = vunpack.c.l.s8.bf16 %v693_v57 }
 0x569   :  { %4675 = vmatpush1.bf16.msra.mxu0 %v2163_v63  ;;  %5003 = vmatpush1.bf16.msra.mxu1 %v2165_v0  ;;  %v708_v63 = vld [vmem:[#allocation8 + $0x11c8] sm:$0xff]  ;;  %v710_v0 = vld [vmem:[#allocation8 + $0x11d8] sm:$0xff] }
 0x56a   :  { %4676 = vmatprep.subr.bf16.mxu0 %v2180_v1  ;;  %5004 = vmatprep.subr.bf16.mxu1 %v2182_v2  ;;  %v2275_v1 = vunpack.c.h.s8.bf16 %v691_v56  ;;  %v2277_v2 = vunpack.c.h.s8.bf16 %v693_v57  ;;  %v2292_v8 = vunpack.c.l.s8.bf16 %v708_v63  ;;  %v2294_v9 = vunpack.c.l.s8.bf16 %v710_v0 }
 0x56b   :  { %v2308_v14 = vunpack.c.h.s8.bf16 %v708_v63  ;;  %v2310_v15 = vunpack.c.h.s8.bf16 %v710_v0 }
 0x56d   :  { %4677 = vmatpush1.bf16.msra.mxu0 %v2179_v10  ;;  %5005 = vmatpush1.bf16.msra.mxu1 %v2181_v11  ;;  %v707_v10 = vld [vmem:[#allocation8 + $0x11c0] sm:$0xff]  ;;  %v709_v11 = vld [vmem:[#allocation8 + $0x11d0] sm:$0xff] }
 0x56e   :  { %4687 = vmatprep.subr.bf16.mxu0 %v2196_v12  ;;  %5015 = vmatprep.subr.bf16.mxu1 %v2198_v13  ;;  %v2291_v12 = vunpack.c.l.s8.bf16 %v707_v10  ;;  %v2293_v13 = vunpack.c.l.s8.bf16 %v709_v11 }
 0x570   :  { %4679 = vmatmul.mubr.bf16.vlgmr.msra.gmra.mrb[8].mxu0 %v12948_v45  ;;  %5007 = vmatmul.mubr.bf16.vlgmr.msra.gmra.mrb[8].mxu1 %v12948_v45 }
 0x571   :  { %4688 = vmatpush1.bf16.msra.mxu0 %v2195_v19  ;;  %5016 = vmatpush1.bf16.msra.mxu1 %v2197_v20  ;;  %v724_v19 = vld [vmem:[#allocation8 + $0x1248] sm:$0xff]  ;;  %v726_v20 = vld [vmem:[#allocation8 + $0x1258] sm:$0xff] }
 0x572   :  { %4689 = vmatprep.subr.bf16.mxu0 %v2212_v22  ;;  %5017 = vmatprep.subr.bf16.mxu1 %v2214_v23  ;;  %v2307_v22 = vunpack.c.h.s8.bf16 %v707_v10  ;;  %v2309_v23 = vunpack.c.h.s8.bf16 %v709_v11  ;;  %v2324_v24 = vunpack.c.l.s8.bf16 %v724_v19  ;;  %v2326_v26 = vunpack.c.l.s8.bf16 %v726_v20 }
 0x573   :  { %4719 = vmatprep.mubr.bf16.mxu0 %v12950_v53  ;;  %5047 = vmatprep.mubr.bf16.mxu1 %v12950_v53  ;;  %v2340_v34 = vunpack.c.h.s8.bf16 %v724_v19  ;;  %v2342_v36 = vunpack.c.h.s8.bf16 %v726_v20 }
 0x575   :  { %4690 = vmatpush1.bf16.msra.mxu0 %v2211_v28  ;;  %5018 = vmatpush1.bf16.msra.mxu1 %v2213_v29  ;;  %v723_v28 = vld [vmem:[#allocation8 + $0x1240] sm:$0xff]  ;;  %v725_v29 = vld [vmem:[#allocation8 + $0x1250] sm:$0xff] }
 0x576   :  { %4691 = vmatprep.subr.bf16.mxu0 %v2228_v32  ;;  %5019 = vmatprep.subr.bf16.mxu1 %v2230_v33  ;;  %v2323_v32 = vunpack.c.l.s8.bf16 %v723_v28  ;;  %v2325_v33 = vunpack.c.l.s8.bf16 %v725_v29 }
 0x579   :  { %4692 = vmatpush1.bf16.msra.mxu0 %v2227_v37  ;;  %5020 = vmatpush1.bf16.msra.mxu1 %v2229_v38  ;;  %v740_v37 = vld [vmem:[#allocation8 + $0x12c8] sm:$0xff]  ;;  %v742_v38 = vld [vmem:[#allocation8 + $0x12d8] sm:$0xff] }
 0x57a   :  { %4693 = vmatprep.subr.bf16.mxu0 %v2244_v40  ;;  %5021 = vmatprep.subr.bf16.mxu1 %v2246_v41  ;;  %v2339_v40 = vunpack.c.h.s8.bf16 %v723_v28  ;;  %v2341_v41 = vunpack.c.h.s8.bf16 %v725_v29  ;;  %v2356_v48 = vunpack.c.l.s8.bf16 %v740_v37  ;;  %v2358_v49 = vunpack.c.l.s8.bf16 %v742_v38 }
 0x57b   :  { %v2372_v56 = vunpack.c.h.s8.bf16 %v740_v37  ;;  %v2374_v57 = vunpack.c.h.s8.bf16 %v742_v38 }
 0x57d   :  { %4694 = vmatpush1.bf16.msra.mxu0 %v2243_v51  ;;  %5022 = vmatpush1.bf16.msra.mxu1 %v2245_v52  ;;  %v739_v51 = vld [vmem:[#allocation8 + $0x12c0] sm:$0xff]  ;;  %v741_v52 = vld [vmem:[#allocation8 + $0x12d0] sm:$0xff] }
 0x57e   :  { %4695 = vmatprep.subr.bf16.mxu0 %v2260_v54  ;;  %5023 = vmatprep.subr.bf16.mxu1 %v2262_v55  ;;  %v2355_v54 = vunpack.c.l.s8.bf16 %v739_v51  ;;  %v2357_v55 = vunpack.c.l.s8.bf16 %v741_v52 }
 0x581   :  { %4696 = vmatpush1.bf16.msra.mxu0 %v2259_v58  ;;  %5024 = vmatpush1.bf16.msra.mxu1 %v2261_v59  ;;  %v756_v58 = vld [vmem:[#allocation8 + $0x1348] sm:$0xff]  ;;  %v758_v59 = vld [vmem:[#allocation8 + $0x1358] sm:$0xff] }
 0x582   :  { %4697 = vmatprep.subr.bf16.mxu0 %v2276_v60  ;;  %5025 = vmatprep.subr.bf16.mxu1 %v2278_v61  ;;  %v2371_v60 = vunpack.c.h.s8.bf16 %v739_v51  ;;  %v2373_v61 = vunpack.c.h.s8.bf16 %v741_v52  ;;  %v2388_v63 = vunpack.c.l.s8.bf16 %v756_v58  ;;  %v2390_v0 = vunpack.c.l.s8.bf16 %v758_v59 }
 0x583   :  { %v2404_v10 = vunpack.c.h.s8.bf16 %v756_v58  ;;  %v2406_v11 = vunpack.c.h.s8.bf16 %v758_v59 }
 0x585   :  { %4698 = vmatpush1.bf16.msra.mxu0 %v2275_v1  ;;  %5026 = vmatpush1.bf16.msra.mxu1 %v2277_v2  ;;  %v755_v1 = vld [vmem:[#allocation8 + $0x1340] sm:$0xff]  ;;  %v757_v2 = vld [vmem:[#allocation8 + $0x1350] sm:$0xff] }
 0x586   :  { %4699 = vmatprep.subr.bf16.mxu0 %v2292_v8  ;;  %5027 = vmatprep.subr.bf16.mxu1 %v2294_v9  ;;  %v2387_v8 = vunpack.c.l.s8.bf16 %v755_v1  ;;  %v2389_v9 = vunpack.c.l.s8.bf16 %v757_v2 }
 0x589   :  { %4700 = vmatpush1.bf16.msra.mxu0 %v2291_v12  ;;  %5028 = vmatpush1.bf16.msra.mxu1 %v2293_v13  ;;  %v772_v12 = vld [vmem:[#allocation8 + $0x13c8] sm:$0xff]  ;;  %v774_v13 = vld [vmem:[#allocation8 + $0x13d8] sm:$0xff] }
 0x58a   :  { %4701 = vmatprep.subr.bf16.mxu0 %v2308_v14  ;;  %5029 = vmatprep.subr.bf16.mxu1 %v2310_v15  ;;  %v2403_v14 = vunpack.c.h.s8.bf16 %v755_v1  ;;  %v2405_v15 = vunpack.c.h.s8.bf16 %v757_v2  ;;  %v2420_v19 = vunpack.c.l.s8.bf16 %v772_v12  ;;  %v2422_v20 = vunpack.c.l.s8.bf16 %v774_v13 }
 0x58b   :  { %v2436_v28 = vunpack.c.h.s8.bf16 %v772_v12  ;;  %v2438_v29 = vunpack.c.h.s8.bf16 %v774_v13 }
 0x58d   :  { %4702 = vmatpush1.bf16.msra.mxu0 %v2307_v22  ;;  %5030 = vmatpush1.bf16.msra.mxu1 %v2309_v23  ;;  %v771_v22 = vld [vmem:[#allocation8 + $0x13c0] sm:$0xff]  ;;  %v773_v23 = vld [vmem:[#allocation8 + $0x13d0] sm:$0xff] }
 0x58e   :  { %4703 = vmatprep.subr.bf16.mxu0 %v2324_v24  ;;  %5031 = vmatprep.subr.bf16.mxu1 %v2326_v26  ;;  %v2419_v24 = vunpack.c.l.s8.bf16 %v771_v22  ;;  %v2421_v26 = vunpack.c.l.s8.bf16 %v773_v23 }
 0x591   :  { %4704 = vmatpush1.bf16.msra.mxu0 %v2323_v32  ;;  %5032 = vmatpush1.bf16.msra.mxu1 %v2325_v33  ;;  %v788_v32 = vld [vmem:[#allocation8 + $0x1448] sm:$0xff]  ;;  %v790_v33 = vld [vmem:[#allocation8 + $0x1458] sm:$0xff] }
 0x592   :  { %4705 = vmatprep.subr.bf16.mxu0 %v2340_v34  ;;  %5033 = vmatprep.subr.bf16.mxu1 %v2342_v36  ;;  %v2435_v34 = vunpack.c.h.s8.bf16 %v771_v22  ;;  %v2437_v36 = vunpack.c.h.s8.bf16 %v773_v23  ;;  %v2452_v37 = vunpack.c.l.s8.bf16 %v788_v32  ;;  %v2454_v38 = vunpack.c.l.s8.bf16 %v790_v33 }
 0x593   :  { %v2468_v51 = vunpack.c.h.s8.bf16 %v788_v32  ;;  %v2470_v52 = vunpack.c.h.s8.bf16 %v790_v33 }
 0x595   :  { %4706 = vmatpush1.bf16.msra.mxu0 %v2339_v40  ;;  %5034 = vmatpush1.bf16.msra.mxu1 %v2341_v41  ;;  %v787_v40 = vld [vmem:[#allocation8 + $0x1440] sm:$0xff]  ;;  %v789_v41 = vld [vmem:[#allocation8 + $0x1450] sm:$0xff] }
 0x596   :  { %4707 = vmatprep.subr.bf16.mxu0 %v2356_v48  ;;  %5035 = vmatprep.subr.bf16.mxu1 %v2358_v49  ;;  %v2451_v48 = vunpack.c.l.s8.bf16 %v787_v40  ;;  %v2453_v49 = vunpack.c.l.s8.bf16 %v789_v41 }
 0x599   :  { %4708 = vmatpush1.bf16.msra.mxu0 %v2355_v54  ;;  %5036 = vmatpush1.bf16.msra.mxu1 %v2357_v55  ;;  %v804_v54 = vld [vmem:[#allocation8 + $0x14c8] sm:$0xff]  ;;  %v806_v55 = vld [vmem:[#allocation8 + $0x14d8] sm:$0xff] }
 0x59a   :  { %4709 = vmatprep.subr.bf16.mxu0 %v2372_v56  ;;  %5037 = vmatprep.subr.bf16.mxu1 %v2374_v57  ;;  %v2467_v56 = vunpack.c.h.s8.bf16 %v787_v40  ;;  %v2469_v57 = vunpack.c.h.s8.bf16 %v789_v41  ;;  %v2484_v58 = vunpack.c.l.s8.bf16 %v804_v54  ;;  %v2486_v59 = vunpack.c.l.s8.bf16 %v806_v55 }
 0x59b   :  { %v2500_v1 = vunpack.c.h.s8.bf16 %v804_v54  ;;  %v2502_v2 = vunpack.c.h.s8.bf16 %v806_v55 }
 0x59d   :  { %4710 = vmatpush1.bf16.msra.mxu0 %v2371_v60  ;;  %5038 = vmatpush1.bf16.msra.mxu1 %v2373_v61  ;;  %v803_v60 = vld [vmem:[#allocation8 + $0x14c0] sm:$0xff]  ;;  %v805_v61 = vld [vmem:[#allocation8 + $0x14d0] sm:$0xff] }
 0x59e   :  { %4711 = vmatprep.subr.bf16.mxu0 %v2388_v63  ;;  %5039 = vmatprep.subr.bf16.mxu1 %v2390_v0  ;;  %v2483_v63 = vunpack.c.l.s8.bf16 %v803_v60  ;;  %v2485_v0 = vunpack.c.l.s8.bf16 %v805_v61 }
 0x5a1   :  { %4712 = vmatpush1.bf16.msra.mxu0 %v2387_v8  ;;  %5040 = vmatpush1.bf16.msra.mxu1 %v2389_v9  ;;  %v820_v8 = vld [vmem:[#allocation8 + $0x1548] sm:$0xff]  ;;  %v822_v9 = vld [vmem:[#allocation8 + $0x1558] sm:$0xff] }
 0x5a2   :  { %4713 = vmatprep.subr.bf16.mxu0 %v2404_v10  ;;  %5041 = vmatprep.subr.bf16.mxu1 %v2406_v11  ;;  %v2499_v10 = vunpack.c.h.s8.bf16 %v803_v60  ;;  %v2501_v11 = vunpack.c.h.s8.bf16 %v805_v61  ;;  %v2516_v12 = vunpack.c.l.s8.bf16 %v820_v8  ;;  %v2518_v13 = vunpack.c.l.s8.bf16 %v822_v9 }
 0x5a3   :  { %v2532_v22 = vunpack.c.h.s8.bf16 %v820_v8  ;;  %v2534_v23 = vunpack.c.h.s8.bf16 %v822_v9 }
 0x5a5   :  { %4714 = vmatpush1.bf16.msra.mxu0 %v2403_v14  ;;  %5042 = vmatpush1.bf16.msra.mxu1 %v2405_v15  ;;  %v819_v14 = vld [vmem:[#allocation8 + $0x1540] sm:$0xff]  ;;  %v821_v15 = vld [vmem:[#allocation8 + $0x1550] sm:$0xff] }
 0x5a6   :  { %4715 = vmatprep.subr.bf16.mxu0 %v2420_v19  ;;  %5043 = vmatprep.subr.bf16.mxu1 %v2422_v20  ;;  %v2515_v19 = vunpack.c.l.s8.bf16 %v819_v14  ;;  %v2517_v20 = vunpack.c.l.s8.bf16 %v821_v15 }
 0x5a9   :  { %4716 = vmatpush1.bf16.msra.mxu0 %v2419_v24  ;;  %5044 = vmatpush1.bf16.msra.mxu1 %v2421_v26  ;;  %v836_v24 = vld [vmem:[#allocation8 + $0x15c8] sm:$0xff]  ;;  %v838_v26 = vld [vmem:[#allocation8 + $0x15d8] sm:$0xff] }
 0x5aa   :  { %4717 = vmatprep.subr.bf16.mxu0 %v2436_v28  ;;  %5045 = vmatprep.subr.bf16.mxu1 %v2438_v29  ;;  %v2531_v28 = vunpack.c.h.s8.bf16 %v819_v14  ;;  %v2533_v29 = vunpack.c.h.s8.bf16 %v821_v15  ;;  %v2548_v32 = vunpack.c.l.s8.bf16 %v836_v24  ;;  %v2550_v33 = vunpack.c.l.s8.bf16 %v838_v26 }
 0x5ab   :  { %v2564_v40 = vunpack.c.h.s8.bf16 %v836_v24  ;;  %v2566_v41 = vunpack.c.h.s8.bf16 %v838_v26 }
 0x5ad   :  { %4718 = vmatpush1.bf16.msra.mxu0 %v2435_v34  ;;  %5046 = vmatpush1.bf16.msra.mxu1 %v2437_v36  ;;  %v835_v34 = vld [vmem:[#allocation8 + $0x15c0] sm:$0xff]  ;;  %v837_v36 = vld [vmem:[#allocation8 + $0x15d0] sm:$0xff] }
 0x5ae   :  { %4728 = vmatprep.subr.bf16.mxu0 %v2452_v37  ;;  %5056 = vmatprep.subr.bf16.mxu1 %v2454_v38  ;;  %v2547_v37 = vunpack.c.l.s8.bf16 %v835_v34  ;;  %v2549_v38 = vunpack.c.l.s8.bf16 %v837_v36 }
 0x5b0   :  { %4720 = vmatmul.mubr.bf16.vlgmr.msra.gmra.mrb[8].mxu0 %v12956_v30  ;;  %5048 = vmatmul.mubr.bf16.vlgmr.msra.gmra.mrb[8].mxu1 %v12956_v30 }
 0x5b1   :  { %4729 = vmatpush1.bf16.msra.mxu0 %v2451_v48  ;;  %5057 = vmatpush1.bf16.msra.mxu1 %v2453_v49  ;;  %v852_v48 = vld [vmem:[#allocation8 + $0x1648] sm:$0xff]  ;;  %v854_v49 = vld [vmem:[#allocation8 + $0x1658] sm:$0xff] }
 0x5b2   :  { %4730 = vmatprep.subr.bf16.mxu0 %v2468_v51  ;;  %5058 = vmatprep.subr.bf16.mxu1 %v2470_v52  ;;  %v2563_v51 = vunpack.c.h.s8.bf16 %v835_v34  ;;  %v2565_v52 = vunpack.c.h.s8.bf16 %v837_v36  ;;  %v2580_v54 = vunpack.c.l.s8.bf16 %v852_v48  ;;  %v2582_v55 = vunpack.c.l.s8.bf16 %v854_v49 }
 0x5b3   :  { %4760 = vmatprep.mubr.bf16.mxu0 %v12958_v39  ;;  %5088 = vmatprep.mubr.bf16.mxu1 %v12958_v39  ;;  %v2596_v60 = vunpack.c.h.s8.bf16 %v852_v48  ;;  %v2598_v61 = vunpack.c.h.s8.bf16 %v854_v49 }
 0x5b5   :  { %4731 = vmatpush1.bf16.msra.mxu0 %v2467_v56  ;;  %5059 = vmatpush1.bf16.msra.mxu1 %v2469_v57  ;;  %v851_v56 = vld [vmem:[#allocation8 + $0x1640] sm:$0xff]  ;;  %v853_v57 = vld [vmem:[#allocation8 + $0x1650] sm:$0xff] }
 0x5b6   :  { %4732 = vmatprep.subr.bf16.mxu0 %v2484_v58  ;;  %5060 = vmatprep.subr.bf16.mxu1 %v2486_v59  ;;  %v2579_v58 = vunpack.c.l.s8.bf16 %v851_v56  ;;  %v2581_v59 = vunpack.c.l.s8.bf16 %v853_v57 }
 0x5b9   :  { %4733 = vmatpush1.bf16.msra.mxu0 %v2483_v63  ;;  %5061 = vmatpush1.bf16.msra.mxu1 %v2485_v0  ;;  %v868_v63 = vld [vmem:[#allocation8 + $0x16c8] sm:$0xff]  ;;  %v870_v0 = vld [vmem:[#allocation8 + $0x16d8] sm:$0xff] }
 0x5ba   :  { %4734 = vmatprep.subr.bf16.mxu0 %v2500_v1  ;;  %5062 = vmatprep.subr.bf16.mxu1 %v2502_v2  ;;  %v2595_v1 = vunpack.c.h.s8.bf16 %v851_v56  ;;  %v2597_v2 = vunpack.c.h.s8.bf16 %v853_v57  ;;  %v2612_v8 = vunpack.c.l.s8.bf16 %v868_v63  ;;  %v2614_v9 = vunpack.c.l.s8.bf16 %v870_v0 }
 0x5bb   :  { %v2628_v14 = vunpack.c.h.s8.bf16 %v868_v63  ;;  %v2630_v15 = vunpack.c.h.s8.bf16 %v870_v0 }
 0x5bd   :  { %4735 = vmatpush1.bf16.msra.mxu0 %v2499_v10  ;;  %5063 = vmatpush1.bf16.msra.mxu1 %v2501_v11  ;;  %v867_v10 = vld [vmem:[#allocation8 + $0x16c0] sm:$0xff]  ;;  %v869_v11 = vld [vmem:[#allocation8 + $0x16d0] sm:$0xff] }
 0x5be   :  { %4736 = vmatprep.subr.bf16.mxu0 %v2516_v12  ;;  %5064 = vmatprep.subr.bf16.mxu1 %v2518_v13  ;;  %v2611_v12 = vunpack.c.l.s8.bf16 %v867_v10  ;;  %v2613_v13 = vunpack.c.l.s8.bf16 %v869_v11 }
 0x5c1   :  { %4737 = vmatpush1.bf16.msra.mxu0 %v2515_v19  ;;  %5065 = vmatpush1.bf16.msra.mxu1 %v2517_v20  ;;  %v884_v19 = vld [vmem:[#allocation8 + $0x1748] sm:$0xff]  ;;  %v886_v20 = vld [vmem:[#allocation8 + $0x1758] sm:$0xff] }
 0x5c2   :  { %4738 = vmatprep.subr.bf16.mxu0 %v2532_v22  ;;  %5066 = vmatprep.subr.bf16.mxu1 %v2534_v23  ;;  %v2627_v22 = vunpack.c.h.s8.bf16 %v867_v10  ;;  %v2629_v23 = vunpack.c.h.s8.bf16 %v869_v11  ;;  %v2644_v24 = vunpack.c.l.s8.bf16 %v884_v19  ;;  %v2646_v26 = vunpack.c.l.s8.bf16 %v886_v20 }
 0x5c3   :  { %v2660_v34 = vunpack.c.h.s8.bf16 %v884_v19  ;;  %v2662_v36 = vunpack.c.h.s8.bf16 %v886_v20 }
 0x5c5   :  { %4739 = vmatpush1.bf16.msra.mxu0 %v2531_v28  ;;  %5067 = vmatpush1.bf16.msra.mxu1 %v2533_v29  ;;  %v883_v28 = vld [vmem:[#allocation8 + $0x1740] sm:$0xff]  ;;  %v885_v29 = vld [vmem:[#allocation8 + $0x1750] sm:$0xff] }
 0x5c6   :  { %4740 = vmatprep.subr.bf16.mxu0 %v2548_v32  ;;  %5068 = vmatprep.subr.bf16.mxu1 %v2550_v33  ;;  %v2643_v32 = vunpack.c.l.s8.bf16 %v883_v28  ;;  %v2645_v33 = vunpack.c.l.s8.bf16 %v885_v29 }
 0x5c9   :  { %4741 = vmatpush1.bf16.msra.mxu0 %v2547_v37  ;;  %5069 = vmatpush1.bf16.msra.mxu1 %v2549_v38  ;;  %v900_v37 = vld [vmem:[#allocation8 + $0x17c8] sm:$0xff]  ;;  %v902_v38 = vld [vmem:[#allocation8 + $0x17d8] sm:$0xff] }
 0x5ca   :  { %4742 = vmatprep.subr.bf16.mxu0 %v2564_v40  ;;  %5070 = vmatprep.subr.bf16.mxu1 %v2566_v41  ;;  %v2659_v40 = vunpack.c.h.s8.bf16 %v883_v28  ;;  %v2661_v41 = vunpack.c.h.s8.bf16 %v885_v29  ;;  %v2676_v48 = vunpack.c.l.s8.bf16 %v900_v37  ;;  %v2678_v49 = vunpack.c.l.s8.bf16 %v902_v38 }
 0x5cb   :  { %v2692_v56 = vunpack.c.h.s8.bf16 %v900_v37  ;;  %v2694_v57 = vunpack.c.h.s8.bf16 %v902_v38 }
 0x5cd   :  { %4743 = vmatpush1.bf16.msra.mxu0 %v2563_v51  ;;  %5071 = vmatpush1.bf16.msra.mxu1 %v2565_v52  ;;  %v899_v51 = vld [vmem:[#allocation8 + $0x17c0] sm:$0xff]  ;;  %v901_v52 = vld [vmem:[#allocation8 + $0x17d0] sm:$0xff] }
 0x5ce   :  { %4744 = vmatprep.subr.bf16.mxu0 %v2580_v54  ;;  %5072 = vmatprep.subr.bf16.mxu1 %v2582_v55  ;;  %v2675_v54 = vunpack.c.l.s8.bf16 %v899_v51  ;;  %v2677_v55 = vunpack.c.l.s8.bf16 %v901_v52 }
 0x5d1   :  { %4745 = vmatpush1.bf16.msra.mxu0 %v2579_v58  ;;  %5073 = vmatpush1.bf16.msra.mxu1 %v2581_v59  ;;  %v916_v58 = vld [vmem:[#allocation8 + $0x1848] sm:$0xff]  ;;  %v918_v59 = vld [vmem:[#allocation8 + $0x1858] sm:$0xff] }
 0x5d2   :  { %4746 = vmatprep.subr.bf16.mxu0 %v2596_v60  ;;  %5074 = vmatprep.subr.bf16.mxu1 %v2598_v61  ;;  %v2691_v60 = vunpack.c.h.s8.bf16 %v899_v51  ;;  %v2693_v61 = vunpack.c.h.s8.bf16 %v901_v52  ;;  %v2708_v63 = vunpack.c.l.s8.bf16 %v916_v58  ;;  %v2710_v0 = vunpack.c.l.s8.bf16 %v918_v59 }
 0x5d3   :  { %v2724_v10 = vunpack.c.h.s8.bf16 %v916_v58  ;;  %v2726_v11 = vunpack.c.h.s8.bf16 %v918_v59 }
 0x5d5   :  { %4747 = vmatpush1.bf16.msra.mxu0 %v2595_v1  ;;  %5075 = vmatpush1.bf16.msra.mxu1 %v2597_v2  ;;  %v915_v1 = vld [vmem:[#allocation8 + $0x1840] sm:$0xff]  ;;  %v917_v2 = vld [vmem:[#allocation8 + $0x1850] sm:$0xff] }
 0x5d6   :  { %4748 = vmatprep.subr.bf16.mxu0 %v2612_v8  ;;  %5076 = vmatprep.subr.bf16.mxu1 %v2614_v9  ;;  %v2707_v8 = vunpack.c.l.s8.bf16 %v915_v1  ;;  %v2709_v9 = vunpack.c.l.s8.bf16 %v917_v2 }
 0x5d9   :  { %4749 = vmatpush1.bf16.msra.mxu0 %v2611_v12  ;;  %5077 = vmatpush1.bf16.msra.mxu1 %v2613_v13  ;;  %v932_v12 = vld [vmem:[#allocation8 + $0x18c8] sm:$0xff]  ;;  %v934_v13 = vld [vmem:[#allocation8 + $0x18d8] sm:$0xff] }
 0x5da   :  { %4750 = vmatprep.subr.bf16.mxu0 %v2628_v14  ;;  %5078 = vmatprep.subr.bf16.mxu1 %v2630_v15  ;;  %v2723_v14 = vunpack.c.h.s8.bf16 %v915_v1  ;;  %v2725_v15 = vunpack.c.h.s8.bf16 %v917_v2  ;;  %v2740_v19 = vunpack.c.l.s8.bf16 %v932_v12  ;;  %v2742_v20 = vunpack.c.l.s8.bf16 %v934_v13 }
 0x5db   :  { %v2756_v28 = vunpack.c.h.s8.bf16 %v932_v12  ;;  %v2758_v29 = vunpack.c.h.s8.bf16 %v934_v13 }
 0x5dd   :  { %4751 = vmatpush1.bf16.msra.mxu0 %v2627_v22  ;;  %5079 = vmatpush1.bf16.msra.mxu1 %v2629_v23  ;;  %v931_v22 = vld [vmem:[#allocation8 + $0x18c0] sm:$0xff]  ;;  %v933_v23 = vld [vmem:[#allocation8 + $0x18d0] sm:$0xff] }
 0x5de   :  { %4752 = vmatprep.subr.bf16.mxu0 %v2644_v24  ;;  %5080 = vmatprep.subr.bf16.mxu1 %v2646_v26  ;;  %v2739_v24 = vunpack.c.l.s8.bf16 %v931_v22  ;;  %v2741_v26 = vunpack.c.l.s8.bf16 %v933_v23 }
 0x5e1   :  { %4753 = vmatpush1.bf16.msra.mxu0 %v2643_v32  ;;  %5081 = vmatpush1.bf16.msra.mxu1 %v2645_v33  ;;  %v948_v32 = vld [vmem:[#allocation8 + $0x1948] sm:$0xff]  ;;  %v950_v33 = vld [vmem:[#allocation8 + $0x1958] sm:$0xff] }
 0x5e2   :  { %4754 = vmatprep.subr.bf16.mxu0 %v2660_v34  ;;  %5082 = vmatprep.subr.bf16.mxu1 %v2662_v36  ;;  %v2755_v34 = vunpack.c.h.s8.bf16 %v931_v22  ;;  %v2757_v36 = vunpack.c.h.s8.bf16 %v933_v23  ;;  %v2772_v37 = vunpack.c.l.s8.bf16 %v948_v32  ;;  %v2774_v38 = vunpack.c.l.s8.bf16 %v950_v33 }
 0x5e3   :  { %v2788_v51 = vunpack.c.h.s8.bf16 %v948_v32  ;;  %v2790_v52 = vunpack.c.h.s8.bf16 %v950_v33 }
 0x5e5   :  { %4755 = vmatpush1.bf16.msra.mxu0 %v2659_v40  ;;  %5083 = vmatpush1.bf16.msra.mxu1 %v2661_v41  ;;  %v947_v40 = vld [vmem:[#allocation8 + $0x1940] sm:$0xff]  ;;  %v949_v41 = vld [vmem:[#allocation8 + $0x1950] sm:$0xff] }
 0x5e6   :  { %4756 = vmatprep.subr.bf16.mxu0 %v2676_v48  ;;  %5084 = vmatprep.subr.bf16.mxu1 %v2678_v49  ;;  %v2771_v48 = vunpack.c.l.s8.bf16 %v947_v40  ;;  %v2773_v49 = vunpack.c.l.s8.bf16 %v949_v41 }
 0x5e9   :  { %4757 = vmatpush1.bf16.msra.mxu0 %v2675_v54  ;;  %5085 = vmatpush1.bf16.msra.mxu1 %v2677_v55  ;;  %v964_v54 = vld [vmem:[#allocation8 + $0x19c8] sm:$0xff]  ;;  %v966_v55 = vld [vmem:[#allocation8 + $0x19d8] sm:$0xff] }
 0x5ea   :  { %4758 = vmatprep.subr.bf16.mxu0 %v2692_v56  ;;  %5086 = vmatprep.subr.bf16.mxu1 %v2694_v57  ;;  %v2787_v56 = vunpack.c.h.s8.bf16 %v947_v40  ;;  %v2789_v57 = vunpack.c.h.s8.bf16 %v949_v41  ;;  %v2804_v58 = vunpack.c.l.s8.bf16 %v964_v54  ;;  %v2806_v59 = vunpack.c.l.s8.bf16 %v966_v55 }
 0x5eb   :  { %v2820_v1 = vunpack.c.h.s8.bf16 %v964_v54  ;;  %v2822_v2 = vunpack.c.h.s8.bf16 %v966_v55 }
 0x5ed   :  { %4759 = vmatpush1.bf16.msra.mxu0 %v2691_v60  ;;  %5087 = vmatpush1.bf16.msra.mxu1 %v2693_v61  ;;  %v963_v60 = vld [vmem:[#allocation8 + $0x19c0] sm:$0xff]  ;;  %v965_v61 = vld [vmem:[#allocation8 + $0x19d0] sm:$0xff] }
 0x5ee   :  { %4769 = vmatprep.subr.bf16.mxu0 %v2708_v63  ;;  %5097 = vmatprep.subr.bf16.mxu1 %v2710_v0  ;;  %v2803_v63 = vunpack.c.l.s8.bf16 %v963_v60  ;;  %v2805_v0 = vunpack.c.l.s8.bf16 %v965_v61 }
 0x5f0   :  { %4761 = vmatmul.mubr.bf16.vlgmr.msra.gmra.mrb[8].mxu0 %v12964_v21  ;;  %5089 = vmatmul.mubr.bf16.vlgmr.msra.gmra.mrb[8].mxu1 %v12964_v21 }
 0x5f1   :  { %4770 = vmatpush1.bf16.msra.mxu0 %v2707_v8  ;;  %5098 = vmatpush1.bf16.msra.mxu1 %v2709_v9  ;;  %v980_v8 = vld [vmem:[#allocation8 + $0x1a48] sm:$0xff]  ;;  %v982_v9 = vld [vmem:[#allocation8 + $0x1a58] sm:$0xff] }
 0x5f2   :  { %4771 = vmatprep.subr.bf16.mxu0 %v2724_v10  ;;  %5099 = vmatprep.subr.bf16.mxu1 %v2726_v11  ;;  %v2819_v10 = vunpack.c.h.s8.bf16 %v963_v60  ;;  %v2821_v11 = vunpack.c.h.s8.bf16 %v965_v61  ;;  %v2836_v12 = vunpack.c.l.s8.bf16 %v980_v8  ;;  %v2838_v13 = vunpack.c.l.s8.bf16 %v982_v9 }
 0x5f3   :  { %4801 = vmatprep.mubr.bf16.mxu0 %v12966_v31  ;;  %5129 = vmatprep.mubr.bf16.mxu1 %v12966_v31  ;;  %v2852_v22 = vunpack.c.h.s8.bf16 %v980_v8  ;;  %v2854_v23 = vunpack.c.h.s8.bf16 %v982_v9 }
 0x5f5   :  { %4772 = vmatpush1.bf16.msra.mxu0 %v2723_v14  ;;  %5100 = vmatpush1.bf16.msra.mxu1 %v2725_v15  ;;  %v979_v14 = vld [vmem:[#allocation8 + $0x1a40] sm:$0xff]  ;;  %v981_v15 = vld [vmem:[#allocation8 + $0x1a50] sm:$0xff] }
 0x5f6   :  { %4773 = vmatprep.subr.bf16.mxu0 %v2740_v19  ;;  %5101 = vmatprep.subr.bf16.mxu1 %v2742_v20  ;;  %v2835_v19 = vunpack.c.l.s8.bf16 %v979_v14  ;;  %v2837_v20 = vunpack.c.l.s8.bf16 %v981_v15 }
 0x5f9   :  { %4774 = vmatpush1.bf16.msra.mxu0 %v2739_v24  ;;  %5102 = vmatpush1.bf16.msra.mxu1 %v2741_v26  ;;  %v996_v24 = vld [vmem:[#allocation8 + $0x1ac8] sm:$0xff]  ;;  %v998_v26 = vld [vmem:[#allocation8 + $0x1ad8] sm:$0xff] }
 0x5fa   :  { %4775 = vmatprep.subr.bf16.mxu0 %v2756_v28  ;;  %5103 = vmatprep.subr.bf16.mxu1 %v2758_v29  ;;  %v2851_v28 = vunpack.c.h.s8.bf16 %v979_v14  ;;  %v2853_v29 = vunpack.c.h.s8.bf16 %v981_v15  ;;  %v2868_v32 = vunpack.c.l.s8.bf16 %v996_v24  ;;  %v2870_v33 = vunpack.c.l.s8.bf16 %v998_v26 }
 0x5fb   :  { %v2884_v40 = vunpack.c.h.s8.bf16 %v996_v24  ;;  %v2886_v41 = vunpack.c.h.s8.bf16 %v998_v26 }
 0x5fd   :  { %4776 = vmatpush1.bf16.msra.mxu0 %v2755_v34  ;;  %5104 = vmatpush1.bf16.msra.mxu1 %v2757_v36  ;;  %v995_v34 = vld [vmem:[#allocation8 + $0x1ac0] sm:$0xff]  ;;  %v997_v36 = vld [vmem:[#allocation8 + $0x1ad0] sm:$0xff] }
 0x5fe   :  { %4777 = vmatprep.subr.bf16.mxu0 %v2772_v37  ;;  %5105 = vmatprep.subr.bf16.mxu1 %v2774_v38  ;;  %v2867_v37 = vunpack.c.l.s8.bf16 %v995_v34  ;;  %v2869_v38 = vunpack.c.l.s8.bf16 %v997_v36 }
 0x601   :  { %4778 = vmatpush1.bf16.msra.mxu0 %v2771_v48  ;;  %5106 = vmatpush1.bf16.msra.mxu1 %v2773_v49  ;;  %v1012_v48 = vld [vmem:[#allocation8 + $0x1b48] sm:$0xff]  ;;  %v1014_v49 = vld [vmem:[#allocation8 + $0x1b58] sm:$0xff] }
 0x602   :  { %4779 = vmatprep.subr.bf16.mxu0 %v2788_v51  ;;  %5107 = vmatprep.subr.bf16.mxu1 %v2790_v52  ;;  %v2883_v51 = vunpack.c.h.s8.bf16 %v995_v34  ;;  %v2885_v52 = vunpack.c.h.s8.bf16 %v997_v36  ;;  %v2900_v54 = vunpack.c.l.s8.bf16 %v1012_v48  ;;  %v2902_v55 = vunpack.c.l.s8.bf16 %v1014_v49 }
 0x603   :  { %v2916_v60 = vunpack.c.h.s8.bf16 %v1012_v48  ;;  %v2918_v61 = vunpack.c.h.s8.bf16 %v1014_v49 }
 0x605   :  { %4780 = vmatpush1.bf16.msra.mxu0 %v2787_v56  ;;  %5108 = vmatpush1.bf16.msra.mxu1 %v2789_v57  ;;  %v1011_v56 = vld [vmem:[#allocation8 + $0x1b40] sm:$0xff]  ;;  %v1013_v57 = vld [vmem:[#allocation8 + $0x1b50] sm:$0xff] }
 0x606   :  { %4781 = vmatprep.subr.bf16.mxu0 %v2804_v58  ;;  %5109 = vmatprep.subr.bf16.mxu1 %v2806_v59  ;;  %v2899_v58 = vunpack.c.l.s8.bf16 %v1011_v56  ;;  %v2901_v59 = vunpack.c.l.s8.bf16 %v1013_v57 }
 0x609   :  { %4782 = vmatpush1.bf16.msra.mxu0 %v2803_v63  ;;  %5110 = vmatpush1.bf16.msra.mxu1 %v2805_v0  ;;  %v1028_v63 = vld [vmem:[#allocation8 + $0x1bc8] sm:$0xff]  ;;  %v1030_v0 = vld [vmem:[#allocation8 + $0x1bd8] sm:$0xff] }
 0x60a   :  { %4783 = vmatprep.subr.bf16.mxu0 %v2820_v1  ;;  %5111 = vmatprep.subr.bf16.mxu1 %v2822_v2  ;;  %v2915_v1 = vunpack.c.h.s8.bf16 %v1011_v56  ;;  %v2917_v2 = vunpack.c.h.s8.bf16 %v1013_v57  ;;  %v2932_v8 = vunpack.c.l.s8.bf16 %v1028_v63  ;;  %v2934_v9 = vunpack.c.l.s8.bf16 %v1030_v0 }
 0x60b   :  { %v2948_v14 = vunpack.c.h.s8.bf16 %v1028_v63  ;;  %v2950_v15 = vunpack.c.h.s8.bf16 %v1030_v0 }
 0x60d   :  { %4784 = vmatpush1.bf16.msra.mxu0 %v2819_v10  ;;  %5112 = vmatpush1.bf16.msra.mxu1 %v2821_v11  ;;  %v1027_v10 = vld [vmem:[#allocation8 + $0x1bc0] sm:$0xff]  ;;  %v1029_v11 = vld [vmem:[#allocation8 + $0x1bd0] sm:$0xff] }
 0x60e   :  { %4785 = vmatprep.subr.bf16.mxu0 %v2836_v12  ;;  %5113 = vmatprep.subr.bf16.mxu1 %v2838_v13  ;;  %v2931_v12 = vunpack.c.l.s8.bf16 %v1027_v10  ;;  %v2933_v13 = vunpack.c.l.s8.bf16 %v1029_v11 }
 0x611   :  { %4786 = vmatpush1.bf16.msra.mxu0 %v2835_v19  ;;  %5114 = vmatpush1.bf16.msra.mxu1 %v2837_v20  ;;  %v1044_v19 = vld [vmem:[#allocation8 + $0x1c48] sm:$0xff]  ;;  %v1046_v20 = vld [vmem:[#allocation8 + $0x1c58] sm:$0xff] }
 0x612   :  { %4787 = vmatprep.subr.bf16.mxu0 %v2852_v22  ;;  %5115 = vmatprep.subr.bf16.mxu1 %v2854_v23  ;;  %v2947_v22 = vunpack.c.h.s8.bf16 %v1027_v10  ;;  %v2949_v23 = vunpack.c.h.s8.bf16 %v1029_v11  ;;  %v2964_v24 = vunpack.c.l.s8.bf16 %v1044_v19  ;;  %v2966_v26 = vunpack.c.l.s8.bf16 %v1046_v20 }
 0x613   :  { %v2980_v34 = vunpack.c.h.s8.bf16 %v1044_v19  ;;  %v2982_v36 = vunpack.c.h.s8.bf16 %v1046_v20 }
 0x615   :  { %4788 = vmatpush1.bf16.msra.mxu0 %v2851_v28  ;;  %5116 = vmatpush1.bf16.msra.mxu1 %v2853_v29  ;;  %v1043_v28 = vld [vmem:[#allocation8 + $0x1c40] sm:$0xff]  ;;  %v1045_v29 = vld [vmem:[#allocation8 + $0x1c50] sm:$0xff] }
 0x616   :  { %4789 = vmatprep.subr.bf16.mxu0 %v2868_v32  ;;  %5117 = vmatprep.subr.bf16.mxu1 %v2870_v33  ;;  %v2963_v32 = vunpack.c.l.s8.bf16 %v1043_v28  ;;  %v2965_v33 = vunpack.c.l.s8.bf16 %v1045_v29 }
 0x619   :  { %4790 = vmatpush1.bf16.msra.mxu0 %v2867_v37  ;;  %5118 = vmatpush1.bf16.msra.mxu1 %v2869_v38  ;;  %v1060_v37 = vld [vmem:[#allocation8 + $0x1cc8] sm:$0xff]  ;;  %v1062_v38 = vld [vmem:[#allocation8 + $0x1cd8] sm:$0xff] }
 0x61a   :  { %4791 = vmatprep.subr.bf16.mxu0 %v2884_v40  ;;  %5119 = vmatprep.subr.bf16.mxu1 %v2886_v41  ;;  %v2979_v40 = vunpack.c.h.s8.bf16 %v1043_v28  ;;  %v2981_v41 = vunpack.c.h.s8.bf16 %v1045_v29  ;;  %v2996_v48 = vunpack.c.l.s8.bf16 %v1060_v37  ;;  %v2998_v49 = vunpack.c.l.s8.bf16 %v1062_v38 }
 0x61b   :  { %v3012_v56 = vunpack.c.h.s8.bf16 %v1060_v37  ;;  %v3014_v57 = vunpack.c.h.s8.bf16 %v1062_v38 }
 0x61d   :  { %4792 = vmatpush1.bf16.msra.mxu0 %v2883_v51  ;;  %5120 = vmatpush1.bf16.msra.mxu1 %v2885_v52  ;;  %v1059_v51 = vld [vmem:[#allocation8 + $0x1cc0] sm:$0xff]  ;;  %v1061_v52 = vld [vmem:[#allocation8 + $0x1cd0] sm:$0xff] }
 0x61e   :  { %4793 = vmatprep.subr.bf16.mxu0 %v2900_v54  ;;  %5121 = vmatprep.subr.bf16.mxu1 %v2902_v55  ;;  %v2995_v54 = vunpack.c.l.s8.bf16 %v1059_v51  ;;  %v2997_v55 = vunpack.c.l.s8.bf16 %v1061_v52 }
 0x621   :  { %4794 = vmatpush1.bf16.msra.mxu0 %v2899_v58  ;;  %5122 = vmatpush1.bf16.msra.mxu1 %v2901_v59  ;;  %v1076_v58 = vld [vmem:[#allocation8 + $0x1d48] sm:$0xff]  ;;  %v1078_v59 = vld [vmem:[#allocation8 + $0x1d58] sm:$0xff] }
 0x622   :  { %4795 = vmatprep.subr.bf16.mxu0 %v2916_v60  ;;  %5123 = vmatprep.subr.bf16.mxu1 %v2918_v61  ;;  %v3011_v60 = vunpack.c.h.s8.bf16 %v1059_v51  ;;  %v3013_v61 = vunpack.c.h.s8.bf16 %v1061_v52  ;;  %v3028_v63 = vunpack.c.l.s8.bf16 %v1076_v58  ;;  %v3030_v0 = vunpack.c.l.s8.bf16 %v1078_v59 }
 0x623   :  { %v3044_v10 = vunpack.c.h.s8.bf16 %v1076_v58  ;;  %v3046_v11 = vunpack.c.h.s8.bf16 %v1078_v59 }
 0x625   :  { %4796 = vmatpush1.bf16.msra.mxu0 %v2915_v1  ;;  %5124 = vmatpush1.bf16.msra.mxu1 %v2917_v2  ;;  %v1075_v1 = vld [vmem:[#allocation8 + $0x1d40] sm:$0xff]  ;;  %v1077_v2 = vld [vmem:[#allocation8 + $0x1d50] sm:$0xff] }
 0x626   :  { %4797 = vmatprep.subr.bf16.mxu0 %v2932_v8  ;;  %5125 = vmatprep.subr.bf16.mxu1 %v2934_v9  ;;  %v3027_v8 = vunpack.c.l.s8.bf16 %v1075_v1  ;;  %v3029_v9 = vunpack.c.l.s8.bf16 %v1077_v2 }
 0x629   :  { %4798 = vmatpush1.bf16.msra.mxu0 %v2931_v12  ;;  %5126 = vmatpush1.bf16.msra.mxu1 %v2933_v13  ;;  %v1092_v12 = vld [vmem:[#allocation8 + $0x1dc8] sm:$0xff]  ;;  %v1094_v13 = vld [vmem:[#allocation8 + $0x1dd8] sm:$0xff] }
 0x62a   :  { %4799 = vmatprep.subr.bf16.mxu0 %v2948_v14  ;;  %5127 = vmatprep.subr.bf16.mxu1 %v2950_v15  ;;  %v3043_v14 = vunpack.c.h.s8.bf16 %v1075_v1  ;;  %v3045_v15 = vunpack.c.h.s8.bf16 %v1077_v2  ;;  %v3060_v19 = vunpack.c.l.s8.bf16 %v1092_v12  ;;  %v3062_v20 = vunpack.c.l.s8.bf16 %v1094_v13 }
 0x62b   :  { %v3076_v28 = vunpack.c.h.s8.bf16 %v1092_v12  ;;  %v3078_v29 = vunpack.c.h.s8.bf16 %v1094_v13 }
 0x62d   :  { %4800 = vmatpush1.bf16.msra.mxu0 %v2947_v22  ;;  %5128 = vmatpush1.bf16.msra.mxu1 %v2949_v23  ;;  %v1091_v22 = vld [vmem:[#allocation8 + $0x1dc0] sm:$0xff]  ;;  %v1093_v23 = vld [vmem:[#allocation8 + $0x1dd0] sm:$0xff] }
 0x62e   :  { %4810 = vmatprep.subr.bf16.mxu0 %v2964_v24  ;;  %5138 = vmatprep.subr.bf16.mxu1 %v2966_v26  ;;  %v3059_v24 = vunpack.c.l.s8.bf16 %v1091_v22  ;;  %v3061_v26 = vunpack.c.l.s8.bf16 %v1093_v23 }
 0x630   :  { %4802 = vmatmul.mubr.bf16.vlgmr.msra.gmra.mrb[8].mxu0 %v12972_v16  ;;  %5130 = vmatmul.mubr.bf16.vlgmr.msra.gmra.mrb[8].mxu1 %v12972_v16 }
 0x631   :  { %4811 = vmatpush1.bf16.msra.mxu0 %v2963_v32  ;;  %5139 = vmatpush1.bf16.msra.mxu1 %v2965_v33  ;;  %v1108_v32 = vld [vmem:[#allocation8 + $0x1e48] sm:$0xff]  ;;  %v1110_v33 = vld [vmem:[#allocation8 + $0x1e58] sm:$0xff] }
 0x632   :  { %4812 = vmatprep.subr.bf16.mxu0 %v2980_v34  ;;  %5140 = vmatprep.subr.bf16.mxu1 %v2982_v36  ;;  %v3075_v34 = vunpack.c.h.s8.bf16 %v1091_v22  ;;  %v3077_v36 = vunpack.c.h.s8.bf16 %v1093_v23  ;;  %v3092_v37 = vunpack.c.l.s8.bf16 %v1108_v32  ;;  %v3094_v38 = vunpack.c.l.s8.bf16 %v1110_v33 }
 0x633   :  { %4842 = vmatprep.mubr.bf16.mxu0 %v12974_v27  ;;  %5170 = vmatprep.mubr.bf16.mxu1 %v12974_v27  ;;  %v3108_v51 = vunpack.c.h.s8.bf16 %v1108_v32  ;;  %v3110_v52 = vunpack.c.h.s8.bf16 %v1110_v33 }
 0x635   :  { %4813 = vmatpush1.bf16.msra.mxu0 %v2979_v40  ;;  %5141 = vmatpush1.bf16.msra.mxu1 %v2981_v41  ;;  %v1107_v40 = vld [vmem:[#allocation8 + $0x1e40] sm:$0xff]  ;;  %v1109_v41 = vld [vmem:[#allocation8 + $0x1e50] sm:$0xff] }
 0x636   :  { %4814 = vmatprep.subr.bf16.mxu0 %v2996_v48  ;;  %5142 = vmatprep.subr.bf16.mxu1 %v2998_v49  ;;  %v3091_v48 = vunpack.c.l.s8.bf16 %v1107_v40  ;;  %v3093_v49 = vunpack.c.l.s8.bf16 %v1109_v41 }
 0x639   :  { %4815 = vmatpush1.bf16.msra.mxu0 %v2995_v54  ;;  %5143 = vmatpush1.bf16.msra.mxu1 %v2997_v55  ;;  %v1124_v54 = vld [vmem:[#allocation8 + $0x1ec8] sm:$0xff]  ;;  %v1126_v55 = vld [vmem:[#allocation8 + $0x1ed8] sm:$0xff] }
 0x63a   :  { %4816 = vmatprep.subr.bf16.mxu0 %v3012_v56  ;;  %5144 = vmatprep.subr.bf16.mxu1 %v3014_v57  ;;  %v3107_v56 = vunpack.c.h.s8.bf16 %v1107_v40  ;;  %v3109_v57 = vunpack.c.h.s8.bf16 %v1109_v41  ;;  %v3124_v58 = vunpack.c.l.s8.bf16 %v1124_v54  ;;  %v3126_v59 = vunpack.c.l.s8.bf16 %v1126_v55 }
 0x63b   :  { %v3140_v1 = vunpack.c.h.s8.bf16 %v1124_v54  ;;  %v3142_v2 = vunpack.c.h.s8.bf16 %v1126_v55 }
 0x63d   :  { %4817 = vmatpush1.bf16.msra.mxu0 %v3011_v60  ;;  %5145 = vmatpush1.bf16.msra.mxu1 %v3013_v61  ;;  %v1123_v60 = vld [vmem:[#allocation8 + $0x1ec0] sm:$0xff]  ;;  %v1125_v61 = vld [vmem:[#allocation8 + $0x1ed0] sm:$0xff] }
 0x63e   :  { %4818 = vmatprep.subr.bf16.mxu0 %v3028_v63  ;;  %5146 = vmatprep.subr.bf16.mxu1 %v3030_v0  ;;  %v3123_v63 = vunpack.c.l.s8.bf16 %v1123_v60  ;;  %v3125_v0 = vunpack.c.l.s8.bf16 %v1125_v61 }
 0x641   :  { %4819 = vmatpush1.bf16.msra.mxu0 %v3027_v8  ;;  %5147 = vmatpush1.bf16.msra.mxu1 %v3029_v9  ;;  %v1140_v8 = vld [vmem:[#allocation8 + $0x1f48] sm:$0xff]  ;;  %v1142_v9 = vld [vmem:[#allocation8 + $0x1f58] sm:$0xff] }
 0x642   :  { %4820 = vmatprep.subr.bf16.mxu0 %v3044_v10  ;;  %5148 = vmatprep.subr.bf16.mxu1 %v3046_v11  ;;  %v3139_v10 = vunpack.c.h.s8.bf16 %v1123_v60  ;;  %v3141_v11 = vunpack.c.h.s8.bf16 %v1125_v61  ;;  %v3156_v12 = vunpack.c.l.s8.bf16 %v1140_v8  ;;  %v3158_v13 = vunpack.c.l.s8.bf16 %v1142_v9 }
 0x643   :  { %v3172_v22 = vunpack.c.h.s8.bf16 %v1140_v8  ;;  %v3174_v23 = vunpack.c.h.s8.bf16 %v1142_v9 }
 0x645   :  { %4821 = vmatpush1.bf16.msra.mxu0 %v3043_v14  ;;  %5149 = vmatpush1.bf16.msra.mxu1 %v3045_v15  ;;  %v1139_v14 = vld [vmem:[#allocation8 + $0x1f40] sm:$0xff]  ;;  %v1141_v15 = vld [vmem:[#allocation8 + $0x1f50] sm:$0xff] }
 0x646   :  { %4822 = vmatprep.subr.bf16.mxu0 %v3060_v19  ;;  %5150 = vmatprep.subr.bf16.mxu1 %v3062_v20  ;;  %v3155_v19 = vunpack.c.l.s8.bf16 %v1139_v14  ;;  %v3157_v20 = vunpack.c.l.s8.bf16 %v1141_v15 }
 0x649   :  { %4823 = vmatpush1.bf16.msra.mxu0 %v3059_v24  ;;  %5151 = vmatpush1.bf16.msra.mxu1 %v3061_v26  ;;  %v1156_v24 = vld [vmem:[#allocation8 + $0x1fc8] sm:$0xff]  ;;  %v1158_v26 = vld [vmem:[#allocation8 + $0x1fd8] sm:$0xff] }
 0x64a   :  { %4824 = vmatprep.subr.bf16.mxu0 %v3076_v28  ;;  %5152 = vmatprep.subr.bf16.mxu1 %v3078_v29  ;;  %v3171_v28 = vunpack.c.h.s8.bf16 %v1139_v14  ;;  %v3173_v29 = vunpack.c.h.s8.bf16 %v1141_v15  ;;  %v3188_v32 = vunpack.c.l.s8.bf16 %v1156_v24  ;;  %v3190_v33 = vunpack.c.l.s8.bf16 %v1158_v26 }
 0x64b   :  { %v3204_v40 = vunpack.c.h.s8.bf16 %v1156_v24  ;;  %v3206_v41 = vunpack.c.h.s8.bf16 %v1158_v26 }
 0x64d   :  { %4825 = vmatpush1.bf16.msra.mxu0 %v3075_v34  ;;  %5153 = vmatpush1.bf16.msra.mxu1 %v3077_v36  ;;  %v1155_v34 = vld [vmem:[#allocation8 + $0x1fc0] sm:$0xff]  ;;  %v1157_v36 = vld [vmem:[#allocation8 + $0x1fd0] sm:$0xff] }
 0x64e   :  { %4826 = vmatprep.subr.bf16.mxu0 %v3092_v37  ;;  %5154 = vmatprep.subr.bf16.mxu1 %v3094_v38  ;;  %v3187_v37 = vunpack.c.l.s8.bf16 %v1155_v34  ;;  %v3189_v38 = vunpack.c.l.s8.bf16 %v1157_v36 }
 0x651   :  { %4827 = vmatpush1.bf16.msra.mxu0 %v3091_v48  ;;  %5155 = vmatpush1.bf16.msra.mxu1 %v3093_v49  ;;  %v152_v48 = vld [vmem:[#allocation8 + $0x68] sm:$0xff]  ;;  %v154_v49 = vld [vmem:[#allocation8 + $0x78] sm:$0xff] }
 0x652   :  { %4828 = vmatprep.subr.bf16.mxu0 %v3108_v51  ;;  %5156 = vmatprep.subr.bf16.mxu1 %v3110_v52  ;;  %v3203_v51 = vunpack.c.h.s8.bf16 %v1155_v34  ;;  %v3205_v52 = vunpack.c.h.s8.bf16 %v1157_v36  ;;  %v1176_v54 = vunpack.c.l.s8.bf16 %v152_v48  ;;  %v1178_v55 = vunpack.c.l.s8.bf16 %v154_v49  ;;  %v200_v36 = vld [vmem:[#allocation8 + $0x1e8] sm:$0xff] }
 0x653   :  { %v1192_v60 = vunpack.c.h.s8.bf16 %v152_v48  ;;  %v1194_v61 = vunpack.c.h.s8.bf16 %v154_v49  ;;  %v199_v49 = vld [vmem:[#allocation8 + $0x1e0] sm:$0xff] }
 0x655   :  { %4829 = vmatpush1.bf16.msra.mxu0 %v3107_v56  ;;  %5157 = vmatpush1.bf16.msra.mxu1 %v3109_v57  ;;  %v151_v56 = vld [vmem:[#allocation8 + $0x60] sm:$0xff]  ;;  %v153_v57 = vld [vmem:[#allocation8 + $0x70] sm:$0xff] }
 0x656   :  { %4830 = vmatprep.subr.bf16.mxu0 %v3124_v58  ;;  %5158 = vmatprep.subr.bf16.mxu1 %v3126_v59  ;;  %v1175_v58 = vunpack.c.l.s8.bf16 %v151_v56  ;;  %v1177_v59 = vunpack.c.l.s8.bf16 %v153_v57 }
 0x659   :  { %4831 = vmatpush1.bf16.msra.mxu0 %v3123_v63  ;;  %5159 = vmatpush1.bf16.msra.mxu1 %v3125_v0  ;;  %v168_v63 = vld [vmem:[#allocation8 + $0xe8] sm:$0xff]  ;;  %v170_v0 = vld [vmem:[#allocation8 + $0xf8] sm:$0xff] }
 0x65a   :  { %4832 = vmatprep.subr.bf16.mxu0 %v3140_v1  ;;  %5160 = vmatprep.subr.bf16.mxu1 %v3142_v2  ;;  %v1191_v1 = vunpack.c.h.s8.bf16 %v151_v56  ;;  %v1193_v2 = vunpack.c.h.s8.bf16 %v153_v57  ;;  %v1208_v8 = vunpack.c.l.s8.bf16 %v168_v63  ;;  %v1210_v9 = vunpack.c.l.s8.bf16 %v170_v0  ;;  %v216_v57 = vld [vmem:[#allocation8 + $0x268] sm:$0xff] }
 0x65b   :  { %v1224_v14 = vunpack.c.h.s8.bf16 %v168_v63  ;;  %v1226_v15 = vunpack.c.h.s8.bf16 %v170_v0  ;;  %v215_v0 = vld [vmem:[#allocation8 + $0x260] sm:$0xff] }
 0x65d   :  { %4833 = vmatpush1.bf16.msra.mxu0 %v3139_v10  ;;  %5161 = vmatpush1.bf16.msra.mxu1 %v3141_v11  ;;  %v167_v10 = vld [vmem:[#allocation8 + $0xe0] sm:$0xff]  ;;  %v169_v11 = vld [vmem:[#allocation8 + $0xf0] sm:$0xff] }
 0x65e   :  { %4834 = vmatprep.subr.bf16.mxu0 %v3156_v12  ;;  %5162 = vmatprep.subr.bf16.mxu1 %v3158_v13  ;;  %v1207_v12 = vunpack.c.l.s8.bf16 %v167_v10  ;;  %v1209_v13 = vunpack.c.l.s8.bf16 %v169_v11 }
 0x661   :  { %4835 = vmatpush1.bf16.msra.mxu0 %v3155_v19  ;;  %5163 = vmatpush1.bf16.msra.mxu1 %v3157_v20  ;;  %v184_v19 = vld [vmem:[#allocation8 + $0x168] sm:$0xff]  ;;  %v186_v20 = vld [vmem:[#allocation8 + $0x178] sm:$0xff] }
 0x662   :  { %4836 = vmatprep.subr.bf16.mxu0 %v3172_v22  ;;  %5164 = vmatprep.subr.bf16.mxu1 %v3174_v23  ;;  %v1223_v22 = vunpack.c.h.s8.bf16 %v167_v10  ;;  %v1225_v23 = vunpack.c.h.s8.bf16 %v169_v11  ;;  %v1240_v24 = vunpack.c.l.s8.bf16 %v184_v19  ;;  %v1242_v26 = vunpack.c.l.s8.bf16 %v186_v20  ;;  %v232_v11 = vld [vmem:[#allocation8 + $0x2e8] sm:$0xff] }
 0x663   :  { %v1258_v34 = vunpack.c.h.s8.bf16 %v186_v20  ;;  %v231_v20 = vld [vmem:[#allocation8 + $0x2e0] sm:$0xff] }
 0x665   :  { %4837 = vmatpush1.bf16.msra.mxu0 %v3171_v28  ;;  %5165 = vmatpush1.bf16.msra.mxu1 %v3173_v29  ;;  %v183_v28 = vld [vmem:[#allocation8 + $0x160] sm:$0xff] }
 0x666   :  { %4838 = vmatprep.subr.bf16.mxu0 %v3188_v32  ;;  %5166 = vmatprep.subr.bf16.mxu1 %v3190_v33  ;;  %v1239_v29 = vunpack.c.l.s8.bf16 %v183_v28  ;;  %v1256_v33 = vunpack.c.h.s8.bf16 %v184_v19 }
 0x669   :  { %4839 = vmatpush1.bf16.msra.mxu0 %v3187_v37  ;;  %5167 = vmatpush1.bf16.msra.mxu1 %v3189_v38  ;;  %v202_v37 = vld [vmem:[#allocation8 + $0x1f8] sm:$0xff]  ;;  %v1255_v38 = vunpack.c.h.s8.bf16 %v183_v28 }
 0x66a   :  { %4840 = vmatprep.subr.bf16.mxu0 %v3204_v40  ;;  %5168 = vmatprep.subr.bf16.mxu1 %v3206_v41  ;;  %v1272_v41 = vunpack.c.l.s8.bf16 %v200_v36  ;;  %v1274_v48 = vunpack.c.l.s8.bf16 %v202_v37  ;;  %v1290_v56 = vunpack.c.h.s8.bf16 %v202_v37  ;;  %v247_v37 = vld [vmem:[#allocation8 + $0x360] sm:$0xff] }
 0x66d   :  { %4841 = vmatpush1.bf16.msra.mxu0 %v3203_v51  ;;  %5169 = vmatpush1.bf16.msra.mxu1 %v3205_v52  ;;  %v201_v51 = vld [vmem:[#allocation8 + $0x1f0] sm:$0xff]  ;;  %v1271_v52 = vunpack.c.l.s8.bf16 %v199_v49 }
 0x66e   :  { %5179 = vmatprep.subr.bf16.mxu0 %v1176_v54  ;;  %5507 = vmatprep.subr.bf16.mxu1 %v1178_v55  ;;  %v1273_v54 = vunpack.c.l.s8.bf16 %v201_v51  ;;  %v1288_v55 = vunpack.c.h.s8.bf16 %v200_v36 }
 0x670   :  { %4843 = vmatmul.mubr.bf16.vlgmr.msra.gmra.mrb[8].mxu0 %v12980_v17  ;;  %5171 = vmatmul.mubr.bf16.vlgmr.msra.gmra.mrb[8].mxu1 %v12980_v17 }
 0x671   :  { %5180 = vmatpush1.bf16.msra.mxu0 %v1175_v58  ;;  %5508 = vmatpush1.bf16.msra.mxu1 %v1177_v59  ;;  %v218_v58 = vld [vmem:[#allocation8 + $0x278] sm:$0xff]  ;;  %v1287_v59 = vunpack.c.h.s8.bf16 %v199_v49 }
 0x672   :  { %5181 = vmatprep.subr.bf16.mxu0 %v1192_v60  ;;  %5509 = vmatprep.subr.bf16.mxu1 %v1194_v61  ;;  %v1289_v60 = vunpack.c.h.s8.bf16 %v201_v51  ;;  %v1304_v61 = vunpack.c.l.s8.bf16 %v216_v57  ;;  %v1306_v63 = vunpack.c.l.s8.bf16 %v218_v58  ;;  %v1322_v10 = vunpack.c.h.s8.bf16 %v218_v58  ;;  %v264_v51 = vld [vmem:[#allocation8 + $0x3e8] sm:$0xff]  ;;  %v263_v58 = vld [vmem:[#allocation8 + $0x3e0] sm:$0xff] }
 0x673   :  { %5211 = vmatprep.mubr.bf16.mxu0 %v12920_v35  ;;  %5539 = vmatprep.mubr.bf16.mxu1 %v12920_v35  ;;  %v185_v35 = vld [vmem:[#allocation8 + $0x170] sm:$0xff] }
 0x674   :  { %v1241_v32 = vunpack.c.l.s8.bf16 %v185_v35  ;;  %v1257_v40 = vunpack.c.h.s8.bf16 %v185_v35  ;;  %v248_v35 = vld [vmem:[#allocation8 + $0x368] sm:$0xff] }
 0x675   :  { %5182 = vmatpush1.bf16.msra.mxu0 %v1191_v1  ;;  %5510 = vmatpush1.bf16.msra.mxu1 %v1193_v2  ;;  %v217_v1 = vld [vmem:[#allocation8 + $0x270] sm:$0xff]  ;;  %v1303_v2 = vunpack.c.l.s8.bf16 %v215_v0 }
 0x676   :  { %5183 = vmatprep.subr.bf16.mxu0 %v1208_v8  ;;  %5511 = vmatprep.subr.bf16.mxu1 %v1210_v9  ;;  %v1305_v8 = vunpack.c.l.s8.bf16 %v217_v1  ;;  %v1320_v9 = vunpack.c.h.s8.bf16 %v216_v57 }
 0x679   :  { %5184 = vmatpush1.bf16.msra.mxu0 %v1207_v12  ;;  %5512 = vmatpush1.bf16.msra.mxu1 %v1209_v13  ;;  %v234_v12 = vld [vmem:[#allocation8 + $0x2f8] sm:$0xff]  ;;  %v1319_v13 = vunpack.c.h.s8.bf16 %v215_v0 }
 0x67a   :  { %5185 = vmatprep.subr.bf16.mxu0 %v1224_v14  ;;  %5513 = vmatprep.subr.bf16.mxu1 %v1226_v15  ;;  %v1321_v14 = vunpack.c.h.s8.bf16 %v217_v1  ;;  %v1336_v15 = vunpack.c.l.s8.bf16 %v232_v11  ;;  %v1338_v19 = vunpack.c.l.s8.bf16 %v234_v12  ;;  %v1354_v28 = vunpack.c.h.s8.bf16 %v234_v12  ;;  %v280_v1 = vld [vmem:[#allocation8 + $0x468] sm:$0xff]  ;;  %v279_v12 = vld [vmem:[#allocation8 + $0x460] sm:$0xff] }
 0x67d   :  { %5186 = vmatpush1.bf16.msra.mxu0 %v1223_v22  ;;  %5514 = vmatpush1.bf16.msra.mxu1 %v1225_v23  ;;  %v233_v22 = vld [vmem:[#allocation8 + $0x2f0] sm:$0xff]  ;;  %v1335_v23 = vunpack.c.l.s8.bf16 %v231_v20 }
 0x67e   :  { %5187 = vmatprep.subr.bf16.mxu0 %v1240_v24  ;;  %5515 = vmatprep.subr.bf16.mxu1 %v1242_v26  ;;  %v1337_v24 = vunpack.c.l.s8.bf16 %v233_v22  ;;  %v1352_v26 = vunpack.c.h.s8.bf16 %v232_v11 }
 0x681   :  { %5188 = vmatpush1.bf16.msra.mxu0 %v1239_v29  ;;  %5516 = vmatpush1.bf16.msra.mxu1 %v1241_v32  ;;  %v250_v29 = vld [vmem:[#allocation8 + $0x378] sm:$0xff]  ;;  %v1351_v32 = vunpack.c.h.s8.bf16 %v231_v20 }
 0x682   :  { %5189 = vmatprep.subr.bf16.mxu0 %v1256_v33  ;;  %5517 = vmatprep.subr.bf16.mxu1 %v1258_v34  ;;  %v1353_v33 = vunpack.c.h.s8.bf16 %v233_v22  ;;  %v1368_v34 = vunpack.c.l.s8.bf16 %v248_v35  ;;  %v1370_v36 = vunpack.c.l.s8.bf16 %v250_v29  ;;  %v1386_v49 = vunpack.c.h.s8.bf16 %v250_v29  ;;  %v296_v22 = vld [vmem:[#allocation8 + $0x4e8] sm:$0xff]  ;;  %v295_v29 = vld [vmem:[#allocation8 + $0x4e0] sm:$0xff] }
 0x685   :  { %5190 = vmatpush1.bf16.msra.mxu0 %v1255_v38  ;;  %5518 = vmatpush1.bf16.msra.mxu1 %v1257_v40  ;;  %v249_v38 = vld [vmem:[#allocation8 + $0x370] sm:$0xff]  ;;  %v1367_v40 = vunpack.c.l.s8.bf16 %v247_v37 }
 0x686   :  { %5191 = vmatprep.subr.bf16.mxu0 %v1272_v41  ;;  %5519 = vmatprep.subr.bf16.mxu1 %v1274_v48  ;;  %v1369_v41 = vunpack.c.l.s8.bf16 %v249_v38  ;;  %v1384_v48 = vunpack.c.h.s8.bf16 %v248_v35 }
 0x689   :  { %5192 = vmatpush1.bf16.msra.mxu0 %v1271_v52  ;;  %5520 = vmatpush1.bf16.msra.mxu1 %v1273_v54  ;;  %v266_v52 = vld [vmem:[#allocation8 + $0x3f8] sm:$0xff]  ;;  %v1383_v54 = vunpack.c.h.s8.bf16 %v247_v37  ;;  %v312_v37 = vld [vmem:[#allocation8 + $0x568] sm:$0xff] }
 0x68a   :  { %5193 = vmatprep.subr.bf16.mxu0 %v1288_v55  ;;  %5521 = vmatprep.subr.bf16.mxu1 %v1290_v56  ;;  %v1385_v55 = vunpack.c.h.s8.bf16 %v249_v38  ;;  %v1400_v56 = vunpack.c.l.s8.bf16 %v264_v51  ;;  %v1402_v57 = vunpack.c.l.s8.bf16 %v266_v52  ;;  %v1418_v0 = vunpack.c.h.s8.bf16 %v266_v52  ;;  %v314_v38 = vld [vmem:[#allocation8 + $0x578] sm:$0xff] }
 0x68d   :  { %5194 = vmatpush1.bf16.msra.mxu0 %v1287_v59  ;;  %5522 = vmatpush1.bf16.msra.mxu1 %v1289_v60  ;;  %v265_v59 = vld [vmem:[#allocation8 + $0x3f0] sm:$0xff]  ;;  %v1399_v60 = vunpack.c.l.s8.bf16 %v263_v58 }
 0x68e   :  { %5195 = vmatprep.subr.bf16.mxu0 %v1304_v61  ;;  %5523 = vmatprep.subr.bf16.mxu1 %v1306_v63  ;;  %v1401_v61 = vunpack.c.l.s8.bf16 %v265_v59  ;;  %v1416_v63 = vunpack.c.h.s8.bf16 %v264_v51  ;;  %v311_v51 = vld [vmem:[#allocation8 + $0x560] sm:$0xff] }
 0x68f   :  { %v1495_v52 = vunpack.c.l.s8.bf16 %v311_v51 }
 0x691   :  { %5196 = vmatpush1.bf16.msra.mxu0 %v1303_v2  ;;  %5524 = vmatpush1.bf16.msra.mxu1 %v1305_v8  ;;  %v282_v2 = vld [vmem:[#allocation8 + $0x478] sm:$0xff]  ;;  %v1415_v8 = vunpack.c.h.s8.bf16 %v263_v58 }
 0x692   :  { %5197 = vmatprep.subr.bf16.mxu0 %v1320_v9  ;;  %5525 = vmatprep.subr.bf16.mxu1 %v1322_v10  ;;  %v1417_v9 = vunpack.c.h.s8.bf16 %v265_v59  ;;  %v1432_v10 = vunpack.c.l.s8.bf16 %v280_v1  ;;  %v1434_v11 = vunpack.c.l.s8.bf16 %v282_v2  ;;  %v1450_v20 = vunpack.c.h.s8.bf16 %v282_v2  ;;  %v330_v58 = vld [vmem:[#allocation8 + $0x5f8] sm:$0xff] }
 0x693   :  { %v1511_v59 = vunpack.c.h.s8.bf16 %v311_v51  ;;  %v378_v51 = vld [vmem:[#allocation8 + $0x778] sm:$0xff] }
 0x695   :  { %5198 = vmatpush1.bf16.msra.mxu0 %v1319_v13  ;;  %5526 = vmatpush1.bf16.msra.mxu1 %v1321_v14  ;;  %v281_v13 = vld [vmem:[#allocation8 + $0x470] sm:$0xff]  ;;  %v1431_v14 = vunpack.c.l.s8.bf16 %v279_v12 }
 0x696   :  { %5199 = vmatprep.subr.bf16.mxu0 %v1336_v15  ;;  %5527 = vmatprep.subr.bf16.mxu1 %v1338_v19  ;;  %v1433_v15 = vunpack.c.l.s8.bf16 %v281_v13  ;;  %v1448_v19 = vunpack.c.h.s8.bf16 %v280_v1  ;;  %v329_v1 = vld [vmem:[#allocation8 + $0x5f0] sm:$0xff] }
 0x699   :  { %5200 = vmatpush1.bf16.msra.mxu0 %v1335_v23  ;;  %5528 = vmatpush1.bf16.msra.mxu1 %v1337_v24  ;;  %v298_v23 = vld [vmem:[#allocation8 + $0x4f8] sm:$0xff]  ;;  %v1447_v24 = vunpack.c.h.s8.bf16 %v279_v12 }
 0x69a   :  { %5201 = vmatprep.subr.bf16.mxu0 %v1352_v26  ;;  %5529 = vmatprep.subr.bf16.mxu1 %v1354_v28  ;;  %v1449_v26 = vunpack.c.h.s8.bf16 %v281_v13  ;;  %v1464_v28 = vunpack.c.l.s8.bf16 %v296_v22  ;;  %v1466_v35 = vunpack.c.l.s8.bf16 %v298_v23  ;;  %v346_v12 = vld [vmem:[#allocation8 + $0x678] sm:$0xff] }
 0x69d   :  { %5202 = vmatpush1.bf16.msra.mxu0 %v1351_v32  ;;  %5530 = vmatpush1.bf16.msra.mxu1 %v1353_v33  ;;  %v297_v32 = vld [vmem:[#allocation8 + $0x4f0] sm:$0xff]  ;;  %v1463_v33 = vunpack.c.l.s8.bf16 %v295_v29 }
 0x69e   :  { %5203 = vmatprep.subr.bf16.mxu0 %v1368_v34  ;;  %5531 = vmatprep.subr.bf16.mxu1 %v1370_v36  ;;  %v1465_v34 = vunpack.c.l.s8.bf16 %v297_v32  ;;  %v1482_v36 = vunpack.c.h.s8.bf16 %v298_v23 }
 0x6a1   :  { %5204 = vmatpush1.bf16.msra.mxu0 %v1367_v40  ;;  %5532 = vmatpush1.bf16.msra.mxu1 %v1369_v41  ;;  %v1479_v40 = vunpack.c.h.s8.bf16 %v295_v29  ;;  %v1481_v41 = vunpack.c.h.s8.bf16 %v297_v32  ;;  %v362_v29 = vld [vmem:[#allocation8 + $0x6f8] sm:$0xff] }
 0x6a2   :  { %5205 = vmatprep.subr.bf16.mxu0 %v1384_v48  ;;  %5533 = vmatprep.subr.bf16.mxu1 %v1386_v49  ;;  %v1496_v48 = vunpack.c.l.s8.bf16 %v312_v37  ;;  %v1498_v49 = vunpack.c.l.s8.bf16 %v314_v38 }
 0x6a5   :  { %5206 = vmatpush1.bf16.msra.mxu0 %v1383_v54  ;;  %5534 = vmatpush1.bf16.msra.mxu1 %v1385_v55  ;;  %v1512_v55 = vunpack.c.h.s8.bf16 %v312_v37  ;;  %v361_v37 = vld [vmem:[#allocation8 + $0x6f0] sm:$0xff] }
 0x6a6   :  { %5207 = vmatprep.subr.bf16.mxu0 %v1400_v56  ;;  %5535 = vmatprep.subr.bf16.mxu1 %v1402_v57  ;;  %v1514_v56 = vunpack.c.h.s8.bf16 %v314_v38  ;;  %v328_v57 = vld [vmem:[#allocation8 + $0x5e8] sm:$0xff] }
 0x6a9   :  { %5208 = vmatpush1.bf16.msra.mxu0 %v1399_v60  ;;  %5536 = vmatpush1.bf16.msra.mxu1 %v1401_v61  ;;  %v1528_v61 = vunpack.c.l.s8.bf16 %v328_v57 }
 0x6aa   :  { %5209 = vmatprep.subr.bf16.mxu0 %v1416_v63  ;;  %5537 = vmatprep.subr.bf16.mxu1 %v1418_v0  ;;  %v1530_v63 = vunpack.c.l.s8.bf16 %v330_v58  ;;  %v327_v0 = vld [vmem:[#allocation8 + $0x5e0] sm:$0xff] }
 0x6ab   :  { %v1527_v2 = vunpack.c.l.s8.bf16 %v327_v0  ;;  %v1543_v13 = vunpack.c.h.s8.bf16 %v327_v0  ;;  %v394_v0 = vld [vmem:[#allocation8 + $0x7f8] sm:$0xff] }
 0x6ad   :  { %5210 = vmatpush1.bf16.msra.mxu0 %v1415_v8  ;;  %5538 = vmatpush1.bf16.msra.mxu1 %v1417_v9  ;;  %v1529_v8 = vunpack.c.l.s8.bf16 %v329_v1  ;;  %v1544_v9 = vunpack.c.h.s8.bf16 %v328_v57  ;;  %v377_v57 = vld [vmem:[#allocation8 + $0x770] sm:$0xff] }
 0x6ae   :  { %5220 = vmatprep.subr.bf16.mxu0 %v1432_v10  ;;  %5548 = vmatprep.subr.bf16.mxu1 %v1434_v11  ;;  %v1546_v10 = vunpack.c.h.s8.bf16 %v330_v58  ;;  %v344_v11 = vld [vmem:[#allocation8 + $0x668] sm:$0xff] }
 0x6b0   :  { %5212 = vmatmul.mubr.bf16.vlgmr.msra.gmra.mrb[12].mxu0 %v12924_v43  ;;  %5540 = vmatmul.mubr.bf16.vlgmr.msra.gmra.mrb[12].mxu1 %v12924_v43  ;;  %v1480_v43 = vunpack.c.h.s8.bf16 %v296_v22  ;;  %v345_v22 = vld [vmem:[#allocation8 + $0x670] sm:$0xff] }
 0x6b1   :  { %5221 = vmatpush1.bf16.msra.mxu0 %v1431_v14  ;;  %5549 = vmatpush1.bf16.msra.mxu1 %v1433_v15  ;;  %v1545_v14 = vunpack.c.h.s8.bf16 %v329_v1  ;;  %v1560_v15 = vunpack.c.l.s8.bf16 %v344_v11 }
 0x6b2   :  { %5222 = vmatprep.subr.bf16.mxu0 %v1448_v19  ;;  %5550 = vmatprep.subr.bf16.mxu1 %v1450_v20  ;;  %v1562_v19 = vunpack.c.l.s8.bf16 %v346_v12  ;;  %v343_v20 = vld [vmem:[#allocation8 + $0x660] sm:$0xff] }
 0x6b3   :  { %5252 = vmatprep.mubr.bf16.mxu0 %v12926_v50  ;;  %5580 = vmatprep.mubr.bf16.mxu1 %v12926_v50  ;;  %v313_v50 = vld [vmem:[#allocation8 + $0x570] sm:$0xff]  ;;  %v1559_v23 = vunpack.c.l.s8.bf16 %v343_v20  ;;  %v1575_v32 = vunpack.c.h.s8.bf16 %v343_v20  ;;  %v410_v20 = vld [vmem:[#allocation8 + $0x878] sm:$0xff] }
 0x6b4   :  { %v1497_v54 = vunpack.c.l.s8.bf16 %v313_v50  ;;  %v1513_v60 = vunpack.c.h.s8.bf16 %v313_v50 }
 0x6b5   :  { %5223 = vmatpush1.bf16.msra.mxu0 %v1447_v24  ;;  %5551 = vmatpush1.bf16.msra.mxu1 %v1449_v26  ;;  %v1561_v24 = vunpack.c.l.s8.bf16 %v345_v22  ;;  %v1576_v26 = vunpack.c.h.s8.bf16 %v344_v11  ;;  %v393_v11 = vld [vmem:[#allocation8 + $0x7f0] sm:$0xff] }
 0x6b6   :  { %5224 = vmatprep.subr.bf16.mxu0 %v1464_v28  ;;  %5552 = vmatprep.subr.bf16.mxu1 %v1466_v35  ;;  %v1578_v28 = vunpack.c.h.s8.bf16 %v346_v12  ;;  %v360_v35 = vld [vmem:[#allocation8 + $0x6e8] sm:$0xff] }
 0x6b9   :  { %5225 = vmatpush1.bf16.msra.mxu0 %v1463_v33  ;;  %5553 = vmatpush1.bf16.msra.mxu1 %v1465_v34  ;;  %v1577_v33 = vunpack.c.h.s8.bf16 %v345_v22  ;;  %v1592_v34 = vunpack.c.l.s8.bf16 %v360_v35 }
 0x6ba   :  { %5226 = vmatprep.subr.bf16.mxu0 %v1480_v43  ;;  %5554 = vmatprep.subr.bf16.mxu1 %v1482_v36  ;;  %v1594_v43 = vunpack.c.l.s8.bf16 %v362_v29  ;;  %v359_v36 = vld [vmem:[#allocation8 + $0x6e0] sm:$0xff] }
 0x6bb   :  { %v1591_v38 = vunpack.c.l.s8.bf16 %v359_v36  ;;  %v1607_v50 = vunpack.c.h.s8.bf16 %v359_v36  ;;  %v426_v36 = vld [vmem:[#allocation8 + $0x8f8] sm:$0xff] }
 0x6bd   :  { %5227 = vmatpush1.bf16.msra.mxu0 %v1479_v40  ;;  %5555 = vmatpush1.bf16.msra.mxu1 %v1481_v41  ;;  %v1593_v40 = vunpack.c.l.s8.bf16 %v361_v37  ;;  %v1608_v41 = vunpack.c.h.s8.bf16 %v360_v35  ;;  %v409_v35 = vld [vmem:[#allocation8 + $0x870] sm:$0xff] }
 0x6be   :  { %5228 = vmatprep.subr.bf16.mxu0 %v1496_v48  ;;  %5556 = vmatprep.subr.bf16.mxu1 %v1498_v49  ;;  %v1610_v48 = vunpack.c.h.s8.bf16 %v362_v29  ;;  %v376_v49 = vld [vmem:[#allocation8 + $0x768] sm:$0xff] }
 0x6c1   :  { %5229 = vmatpush1.bf16.msra.mxu0 %v1495_v52  ;;  %5557 = vmatpush1.bf16.msra.mxu1 %v1497_v54  ;;  %v1609_v52 = vunpack.c.h.s8.bf16 %v361_v37  ;;  %v1624_v54 = vunpack.c.l.s8.bf16 %v376_v49 }
 0x6c2   :  { %5230 = vmatprep.subr.bf16.mxu0 %v1512_v55  ;;  %5558 = vmatprep.subr.bf16.mxu1 %v1514_v56  ;;  %v1626_v55 = vunpack.c.l.s8.bf16 %v378_v51  ;;  %v375_v56 = vld [vmem:[#allocation8 + $0x760] sm:$0xff] }
 0x6c3   :  { %v1623_v58 = vunpack.c.l.s8.bf16 %v375_v56  ;;  %v1639_v1 = vunpack.c.h.s8.bf16 %v375_v56 }
 0x6c5   :  { %5231 = vmatpush1.bf16.msra.mxu0 %v1511_v59  ;;  %5559 = vmatpush1.bf16.msra.mxu1 %v1513_v60  ;;  %v1625_v59 = vunpack.c.l.s8.bf16 %v377_v57  ;;  %v1640_v60 = vunpack.c.h.s8.bf16 %v376_v49  ;;  %v425_v49 = vld [vmem:[#allocation8 + $0x8f0] sm:$0xff] }
 0x6c6   :  { %5232 = vmatprep.subr.bf16.mxu0 %v1528_v61  ;;  %5560 = vmatprep.subr.bf16.mxu1 %v1530_v63  ;;  %v1642_v61 = vunpack.c.h.s8.bf16 %v378_v51  ;;  %v392_v63 = vld [vmem:[#allocation8 + $0x7e8] sm:$0xff] }
 0x6c9   :  { %5233 = vmatpush1.bf16.msra.mxu0 %v1527_v2  ;;  %5561 = vmatpush1.bf16.msra.mxu1 %v1529_v8  ;;  %v1641_v2 = vunpack.c.h.s8.bf16 %v377_v57  ;;  %v1656_v8 = vunpack.c.l.s8.bf16 %v392_v63  ;;  %v1737_v57 = vunpack.c.h.s8.bf16 %v425_v49 }
 0x6ca   :  { %5234 = vmatprep.subr.bf16.mxu0 %v1544_v9  ;;  %5562 = vmatprep.subr.bf16.mxu1 %v1546_v10  ;;  %v1658_v9 = vunpack.c.l.s8.bf16 %v394_v0  ;;  %v391_v10 = vld [vmem:[#allocation8 + $0x7e0] sm:$0xff] }
 0x6cb   :  { %v1655_v12 = vunpack.c.l.s8.bf16 %v391_v10  ;;  %v1671_v22 = vunpack.c.h.s8.bf16 %v391_v10 }
 0x6cd   :  { %5235 = vmatpush1.bf16.msra.mxu0 %v1543_v13  ;;  %5563 = vmatpush1.bf16.msra.mxu1 %v1545_v14  ;;  %v1657_v13 = vunpack.c.l.s8.bf16 %v393_v11  ;;  %v1672_v14 = vunpack.c.h.s8.bf16 %v392_v63 }
 0x6ce   :  { %5236 = vmatprep.subr.bf16.mxu0 %v1560_v15  ;;  %5564 = vmatprep.subr.bf16.mxu1 %v1562_v19  ;;  %v1674_v15 = vunpack.c.h.s8.bf16 %v394_v0  ;;  %v408_v19 = vld [vmem:[#allocation8 + $0x868] sm:$0xff] }
 0x6d1   :  { %5237 = vmatpush1.bf16.msra.mxu0 %v1559_v23  ;;  %5565 = vmatpush1.bf16.msra.mxu1 %v1561_v24  ;;  %v1673_v23 = vunpack.c.h.s8.bf16 %v393_v11  ;;  %v1688_v24 = vunpack.c.l.s8.bf16 %v408_v19 }
 0x6d2   :  { %5238 = vmatprep.subr.bf16.mxu0 %v1576_v26  ;;  %5566 = vmatprep.subr.bf16.mxu1 %v1578_v28  ;;  %v1690_v26 = vunpack.c.l.s8.bf16 %v410_v20  ;;  %v407_v28 = vld [vmem:[#allocation8 + $0x860] sm:$0xff] }
 0x6d3   :  { %v1687_v29 = vunpack.c.l.s8.bf16 %v407_v28  ;;  %v1703_v37 = vunpack.c.h.s8.bf16 %v407_v28 }
 0x6d5   :  { %5239 = vmatpush1.bf16.msra.mxu0 %v1575_v32  ;;  %5567 = vmatpush1.bf16.msra.mxu1 %v1577_v33  ;;  %v1689_v32 = vunpack.c.l.s8.bf16 %v409_v35  ;;  %v1704_v33 = vunpack.c.h.s8.bf16 %v408_v19 }
 0x6d6   :  { %5240 = vmatprep.subr.bf16.mxu0 %v1592_v34  ;;  %5568 = vmatprep.subr.bf16.mxu1 %v1594_v43  ;;  %v1706_v34 = vunpack.c.h.s8.bf16 %v410_v20  ;;  %v424_v43 = vld [vmem:[#allocation8 + $0x8e8] sm:$0xff] }
 0x6d9   :  { %5241 = vmatpush1.bf16.msra.mxu0 %v1591_v38  ;;  %5569 = vmatpush1.bf16.msra.mxu1 %v1593_v40  ;;  %v1705_v38 = vunpack.c.h.s8.bf16 %v409_v35  ;;  %v1720_v40 = vunpack.c.l.s8.bf16 %v424_v43 }
 0x6da   :  { %5242 = vmatprep.subr.bf16.mxu0 %v1608_v41  ;;  %5570 = vmatprep.subr.bf16.mxu1 %v1610_v48  ;;  %v1722_v41 = vunpack.c.l.s8.bf16 %v426_v36  ;;  %v423_v48 = vld [vmem:[#allocation8 + $0x8e0] sm:$0xff] }
 0x6db   :  { %v1719_v51 = vunpack.c.l.s8.bf16 %v423_v48  ;;  %v1735_v56 = vunpack.c.h.s8.bf16 %v423_v48 }
 0x6dd   :  { %5243 = vmatpush1.bf16.msra.mxu0 %v1607_v50  ;;  %5571 = vmatpush1.bf16.msra.mxu1 %v1609_v52  ;;  %v1721_v50 = vunpack.c.l.s8.bf16 %v425_v49  ;;  %v1738_v52 = vunpack.c.h.s8.bf16 %v426_v36 }
 0x6de   :  { %5244 = vmatprep.subr.bf16.mxu0 %v1624_v54  ;;  %5572 = vmatprep.subr.bf16.mxu1 %v1626_v55  ;;  %v440_v54 = vld [vmem:[#allocation8 + $0x968] sm:$0xff]  ;;  %v442_v55 = vld [vmem:[#allocation8 + $0x978] sm:$0xff] }
 0x6df   :  { %v1768_v0 = vunpack.c.h.s8.bf16 %v440_v54 }
 0x6e1   :  { %5245 = vmatpush1.bf16.msra.mxu0 %v1623_v58  ;;  %5573 = vmatpush1.bf16.msra.mxu1 %v1625_v59  ;;  %v1752_v58 = vunpack.c.l.s8.bf16 %v440_v54  ;;  %v1754_v59 = vunpack.c.l.s8.bf16 %v442_v55 }
 0x6e2   :  { %5246 = vmatprep.subr.bf16.mxu0 %v1640_v60  ;;  %5574 = vmatprep.subr.bf16.mxu1 %v1642_v61  ;;  %v439_v60 = vld [vmem:[#allocation8 + $0x960] sm:$0xff] }
 0x6e3   :  { %v1751_v61 = vunpack.c.l.s8.bf16 %v439_v60 }
 0x6e5   :  { %5247 = vmatpush1.bf16.msra.mxu0 %v1639_v1  ;;  %5575 = vmatpush1.bf16.msra.mxu1 %v1641_v2  ;;  %v1770_v1 = vunpack.c.h.s8.bf16 %v442_v55  ;;  %v456_v2 = vld [vmem:[#allocation8 + $0x9e8] sm:$0xff] }
 0x6e6   :  { %5248 = vmatprep.subr.bf16.mxu0 %v1656_v8  ;;  %5576 = vmatprep.subr.bf16.mxu1 %v1658_v9  ;;  %v458_v8 = vld [vmem:[#allocation8 + $0x9f8] sm:$0xff]  ;;  %v1767_v9 = vunpack.c.h.s8.bf16 %v439_v60  ;;  %v1784_v11 = vunpack.c.l.s8.bf16 %v456_v2  ;;  %v1800_v20 = vunpack.c.h.s8.bf16 %v456_v2 }
 0x6e9   :  { %5249 = vmatpush1.bf16.msra.mxu0 %v1655_v12  ;;  %5577 = vmatpush1.bf16.msra.mxu1 %v1657_v13  ;;  %v1786_v12 = vunpack.c.l.s8.bf16 %v458_v8  ;;  %v455_v13 = vld [vmem:[#allocation8 + $0x9e0] sm:$0xff] }
 0x6ea   :  { %5250 = vmatprep.subr.bf16.mxu0 %v1672_v14  ;;  %5578 = vmatprep.subr.bf16.mxu1 %v1674_v15  ;;  %v457_v14 = vld [vmem:[#allocation8 + $0x9f0] sm:$0xff]  ;;  %v1783_v15 = vunpack.c.l.s8.bf16 %v455_v13 }
 0x6eb   :  { %v1785_v19 = vunpack.c.l.s8.bf16 %v457_v14  ;;  %v1801_v28 = vunpack.c.h.s8.bf16 %v457_v14 }
 0x6ed   :  { %5251 = vmatpush1.bf16.msra.mxu0 %v1671_v22  ;;  %5579 = vmatpush1.bf16.msra.mxu1 %v1673_v23  ;;  %v1802_v22 = vunpack.c.h.s8.bf16 %v458_v8  ;;  %v472_v23 = vld [vmem:[#allocation8 + $0xa68] sm:$0xff] }
 0x6ee   :  { %5261 = vmatprep.subr.bf16.mxu0 %v1688_v24  ;;  %5589 = vmatprep.subr.bf16.mxu1 %v1690_v26  ;;  %v474_v24 = vld [vmem:[#allocation8 + $0xa78] sm:$0xff]  ;;  %v1799_v26 = vunpack.c.h.s8.bf16 %v455_v13  ;;  %v1816_v35 = vunpack.c.l.s8.bf16 %v472_v23  ;;  %v1832_v36 = vunpack.c.h.s8.bf16 %v472_v23 }
 0x6f0   :  { %5253 = vmatmul.mubr.bf16.vlgmr.msra.gmra.mrb[12].mxu0 %v12932_v18  ;;  %5581 = vmatmul.mubr.bf16.vlgmr.msra.gmra.mrb[12].mxu1 %v12932_v18  ;;  %v1736_v18 = vunpack.c.h.s8.bf16 %v424_v43 }
 0x6f1   :  { %5262 = vmatpush1.bf16.msra.mxu0 %v1687_v29  ;;  %5590 = vmatpush1.bf16.msra.mxu1 %v1689_v32  ;;  %v1818_v29 = vunpack.c.l.s8.bf16 %v474_v24  ;;  %v471_v32 = vld [vmem:[#allocation8 + $0xa60] sm:$0xff] }
 0x6f2   :  { %5263 = vmatprep.subr.bf16.mxu0 %v1704_v33  ;;  %5591 = vmatprep.subr.bf16.mxu1 %v1706_v34  ;;  %v473_v33 = vld [vmem:[#allocation8 + $0xa70] sm:$0xff]  ;;  %v1815_v34 = vunpack.c.l.s8.bf16 %v471_v32 }
 0x6f3   :  { %5293 = vmatprep.mubr.bf16.mxu0 %v12934_v25  ;;  %5621 = vmatprep.mubr.bf16.mxu1 %v12934_v25  ;;  %v441_v25 = vld [vmem:[#allocation8 + $0x970] sm:$0xff]  ;;  %v1817_v43 = vunpack.c.l.s8.bf16 %v473_v33  ;;  %v1833_v48 = vunpack.c.h.s8.bf16 %v473_v33 }
 0x6f4   :  { %v1753_v63 = vunpack.c.l.s8.bf16 %v441_v25  ;;  %v1769_v10 = vunpack.c.h.s8.bf16 %v441_v25 }
 0x6f5   :  { %5264 = vmatpush1.bf16.msra.mxu0 %v1703_v37  ;;  %5592 = vmatpush1.bf16.msra.mxu1 %v1705_v38  ;;  %v1834_v37 = vunpack.c.h.s8.bf16 %v474_v24  ;;  %v488_v38 = vld [vmem:[#allocation8 + $0xae8] sm:$0xff] }
 0x6f6   :  { %5265 = vmatprep.subr.bf16.mxu0 %v1720_v40  ;;  %5593 = vmatprep.subr.bf16.mxu1 %v1722_v41  ;;  %v490_v40 = vld [vmem:[#allocation8 + $0xaf8] sm:$0xff]  ;;  %v1831_v41 = vunpack.c.h.s8.bf16 %v471_v32  ;;  %v1848_v49 = vunpack.c.l.s8.bf16 %v488_v38  ;;  %v1864_v55 = vunpack.c.h.s8.bf16 %v488_v38 }
 0x6f9   :  { %5266 = vmatpush1.bf16.msra.mxu0 %v1719_v51  ;;  %5594 = vmatpush1.bf16.msra.mxu1 %v1721_v50  ;;  %v1850_v51 = vunpack.c.l.s8.bf16 %v490_v40  ;;  %v487_v50 = vld [vmem:[#allocation8 + $0xae0] sm:$0xff] }
 0x6fa   :  { %5267 = vmatprep.subr.bf16.mxu0 %v1736_v18  ;;  %5595 = vmatprep.subr.bf16.mxu1 %v1738_v52  ;;  %v489_v18 = vld [vmem:[#allocation8 + $0xaf0] sm:$0xff]  ;;  %v1847_v52 = vunpack.c.l.s8.bf16 %v487_v50 }
 0x6fb   :  { %v1849_v54 = vunpack.c.l.s8.bf16 %v489_v18  ;;  %v1865_v60 = vunpack.c.h.s8.bf16 %v489_v18 }
 0x6fd   :  { %5268 = vmatpush1.bf16.msra.mxu0 %v1735_v56  ;;  %5596 = vmatpush1.bf16.msra.mxu1 %v1737_v57  ;;  %v1866_v56 = vunpack.c.h.s8.bf16 %v490_v40  ;;  %v504_v57 = vld [vmem:[#allocation8 + $0xb68] sm:$0xff] }
 0x6fe   :  { %5269 = vmatprep.subr.bf16.mxu0 %v1752_v58  ;;  %5597 = vmatprep.subr.bf16.mxu1 %v1754_v59  ;;  %v506_v58 = vld [vmem:[#allocation8 + $0xb78] sm:$0xff]  ;;  %v1863_v59 = vunpack.c.h.s8.bf16 %v487_v50  ;;  %v1880_v25 = vunpack.c.l.s8.bf16 %v504_v57  ;;  %v1896_v8 = vunpack.c.h.s8.bf16 %v504_v57 }
 0x701   :  { %5270 = vmatpush1.bf16.msra.mxu0 %v1751_v61  ;;  %5598 = vmatpush1.bf16.msra.mxu1 %v1753_v63  ;;  %v1882_v61 = vunpack.c.l.s8.bf16 %v506_v58  ;;  %v503_v63 = vld [vmem:[#allocation8 + $0xb60] sm:$0xff] }
 0x702   :  { %5271 = vmatprep.subr.bf16.mxu0 %v1768_v0  ;;  %5599 = vmatprep.subr.bf16.mxu1 %v1770_v1  ;;  %v505_v0 = vld [vmem:[#allocation8 + $0xb70] sm:$0xff]  ;;  %v1879_v1 = vunpack.c.l.s8.bf16 %v503_v63 }
 0x703   :  { %v1881_v2 = vunpack.c.l.s8.bf16 %v505_v0  ;;  %v1897_v13 = vunpack.c.h.s8.bf16 %v505_v0 }
 0x705   :  { %5272 = vmatpush1.bf16.msra.mxu0 %v1767_v9  ;;  %5600 = vmatpush1.bf16.msra.mxu1 %v1769_v10  ;;  %v1898_v9 = vunpack.c.h.s8.bf16 %v506_v58  ;;  %v520_v10 = vld [vmem:[#allocation8 + $0xbe8] sm:$0xff] }
 0x706   :  { %5273 = vmatprep.subr.bf16.mxu0 %v1784_v11  ;;  %5601 = vmatprep.subr.bf16.mxu1 %v1786_v12  ;;  %v522_v11 = vld [vmem:[#allocation8 + $0xbf8] sm:$0xff]  ;;  %v1895_v12 = vunpack.c.h.s8.bf16 %v503_v63  ;;  %v1912_v14 = vunpack.c.l.s8.bf16 %v520_v10  ;;  %v1928_v24 = vunpack.c.h.s8.bf16 %v520_v10 }
 0x709   :  { %5274 = vmatpush1.bf16.msra.mxu0 %v1783_v15  ;;  %5602 = vmatpush1.bf16.msra.mxu1 %v1785_v19  ;;  %v1914_v15 = vunpack.c.l.s8.bf16 %v522_v11  ;;  %v519_v19 = vld [vmem:[#allocation8 + $0xbe0] sm:$0xff] }
 0x70a   :  { %5275 = vmatprep.subr.bf16.mxu0 %v1800_v20  ;;  %5603 = vmatprep.subr.bf16.mxu1 %v1802_v22  ;;  %v521_v20 = vld [vmem:[#allocation8 + $0xbf0] sm:$0xff]  ;;  %v1911_v22 = vunpack.c.l.s8.bf16 %v519_v19 }
 0x70b   :  { %v1913_v23 = vunpack.c.l.s8.bf16 %v521_v20  ;;  %v1929_v32 = vunpack.c.h.s8.bf16 %v521_v20  ;;  %v583_v20 = vld [vmem:[#allocation8 + $0xde0] sm:$0xff] }
 0x70d   :  { %5276 = vmatpush1.bf16.msra.mxu0 %v1799_v26  ;;  %5604 = vmatpush1.bf16.msra.mxu1 %v1801_v28  ;;  %v1930_v26 = vunpack.c.h.s8.bf16 %v522_v11  ;;  %v536_v28 = vld [vmem:[#allocation8 + $0xc68] sm:$0xff] }
 0x70e   :  { %5277 = vmatprep.subr.bf16.mxu0 %v1816_v35  ;;  %5605 = vmatprep.subr.bf16.mxu1 %v1818_v29  ;;  %v538_v35 = vld [vmem:[#allocation8 + $0xc78] sm:$0xff]  ;;  %v1927_v29 = vunpack.c.h.s8.bf16 %v519_v19  ;;  %v1944_v33 = vunpack.c.l.s8.bf16 %v536_v28  ;;  %v1960_v40 = vunpack.c.h.s8.bf16 %v536_v28  ;;  %v584_v11 = vld [vmem:[#allocation8 + $0xde8] sm:$0xff] }
 0x711   :  { %5278 = vmatpush1.bf16.msra.mxu0 %v1815_v34  ;;  %5606 = vmatpush1.bf16.msra.mxu1 %v1817_v43  ;;  %v1946_v34 = vunpack.c.l.s8.bf16 %v538_v35  ;;  %v535_v43 = vld [vmem:[#allocation8 + $0xc60] sm:$0xff] }
 0x712   :  { %5279 = vmatprep.subr.bf16.mxu0 %v1832_v36  ;;  %5607 = vmatprep.subr.bf16.mxu1 %v1834_v37  ;;  %v537_v36 = vld [vmem:[#allocation8 + $0xc70] sm:$0xff]  ;;  %v1943_v37 = vunpack.c.l.s8.bf16 %v535_v43 }
 0x713   :  { %v1945_v38 = vunpack.c.l.s8.bf16 %v537_v36  ;;  %v1961_v50 = vunpack.c.h.s8.bf16 %v537_v36  ;;  %v2056_v36 = vunpack.c.h.s8.bf16 %v584_v11 }
 0x715   :  { %5280 = vmatpush1.bf16.msra.mxu0 %v1831_v41  ;;  %5608 = vmatpush1.bf16.msra.mxu1 %v1833_v48  ;;  %v1962_v41 = vunpack.c.h.s8.bf16 %v538_v35  ;;  %v552_v48 = vld [vmem:[#allocation8 + $0xce8] sm:$0xff] }
 0x716   :  { %5281 = vmatprep.subr.bf16.mxu0 %v1848_v49  ;;  %5609 = vmatprep.subr.bf16.mxu1 %v1850_v51  ;;  %v554_v49 = vld [vmem:[#allocation8 + $0xcf8] sm:$0xff]  ;;  %v1959_v51 = vunpack.c.h.s8.bf16 %v535_v43  ;;  %v1976_v18 = vunpack.c.l.s8.bf16 %v552_v48 }
 0x717   :  { %v1994_v58 = vunpack.c.h.s8.bf16 %v554_v49 }
 0x719   :  { %5282 = vmatpush1.bf16.msra.mxu0 %v1847_v52  ;;  %5610 = vmatpush1.bf16.msra.mxu1 %v1849_v54  ;;  %v1978_v52 = vunpack.c.l.s8.bf16 %v554_v49  ;;  %v551_v54 = vld [vmem:[#allocation8 + $0xce0] sm:$0xff] }
 0x71a   :  { %5283 = vmatprep.subr.bf16.mxu0 %v1864_v55  ;;  %5611 = vmatprep.subr.bf16.mxu1 %v1866_v56  ;;  %v553_v55 = vld [vmem:[#allocation8 + $0xcf0] sm:$0xff]  ;;  %v1975_v56 = vunpack.c.l.s8.bf16 %v551_v54 }
 0x71b   :  { %v1977_v57 = vunpack.c.l.s8.bf16 %v553_v55 }
 0x71d   :  { %5284 = vmatpush1.bf16.msra.mxu0 %v1863_v59  ;;  %5612 = vmatpush1.bf16.msra.mxu1 %v1865_v60  ;;  %v568_v59 = vld [vmem:[#allocation8 + $0xd68] sm:$0xff]  ;;  %v570_v60 = vld [vmem:[#allocation8 + $0xd78] sm:$0xff] }
 0x71e   :  { %5285 = vmatprep.subr.bf16.mxu0 %v1880_v25  ;;  %5613 = vmatprep.subr.bf16.mxu1 %v1882_v61  ;;  %v1991_v25 = vunpack.c.h.s8.bf16 %v551_v54  ;;  %v1993_v61 = vunpack.c.h.s8.bf16 %v553_v55  ;;  %v2008_v63 = vunpack.c.l.s8.bf16 %v568_v59  ;;  %v2010_v0 = vunpack.c.l.s8.bf16 %v570_v60 }
 0x71f   :  { %v2026_v10 = vunpack.c.h.s8.bf16 %v570_v60 }
 0x721   :  { %5286 = vmatpush1.bf16.msra.mxu0 %v1879_v1  ;;  %5614 = vmatpush1.bf16.msra.mxu1 %v1881_v2  ;;  %v567_v1 = vld [vmem:[#allocation8 + $0xd60] sm:$0xff] }
 0x722   :  { %5287 = vmatprep.subr.bf16.mxu0 %v1896_v8  ;;  %5615 = vmatprep.subr.bf16.mxu1 %v1898_v9  ;;  %v2007_v2 = vunpack.c.l.s8.bf16 %v567_v1  ;;  %v2024_v9 = vunpack.c.h.s8.bf16 %v568_v59 }
 0x725   :  { %5288 = vmatpush1.bf16.msra.mxu0 %v1895_v12  ;;  %5616 = vmatpush1.bf16.msra.mxu1 %v1897_v13  ;;  %v586_v12 = vld [vmem:[#allocation8 + $0xdf8] sm:$0xff]  ;;  %v2023_v13 = vunpack.c.h.s8.bf16 %v567_v1 }
 0x726   :  { %5289 = vmatprep.subr.bf16.mxu0 %v1912_v14  ;;  %5617 = vmatprep.subr.bf16.mxu1 %v1914_v15  ;;  %v2040_v15 = vunpack.c.l.s8.bf16 %v584_v11  ;;  %v2042_v19 = vunpack.c.l.s8.bf16 %v586_v12 }
 0x729   :  { %5290 = vmatpush1.bf16.msra.mxu0 %v1911_v22  ;;  %5618 = vmatpush1.bf16.msra.mxu1 %v1913_v23  ;;  %v585_v22 = vld [vmem:[#allocation8 + $0xdf0] sm:$0xff] }
 0x72a   :  { %5291 = vmatprep.subr.bf16.mxu0 %v1928_v24  ;;  %5619 = vmatprep.subr.bf16.mxu1 %v1930_v26 }
 0x72d   :  { %5292 = vmatpush1.bf16.msra.mxu0 %v1927_v29  ;;  %5620 = vmatpush1.bf16.msra.mxu1 %v1929_v32  ;;  %v2039_v32 = vunpack.c.l.s8.bf16 %v583_v20 }
 0x72e   :  { %5302 = vmatprep.subr.bf16.mxu0 %v1944_v33  ;;  %5630 = vmatprep.subr.bf16.mxu1 %v1946_v34  ;;  %v2041_v33 = vunpack.c.l.s8.bf16 %v585_v22 }
 0x730   :  { %5294 = vmatmul.mubr.bf16.vlgmr.msra.gmra.mrb[12].mxu0 %v12940_v62  ;;  %5622 = vmatmul.mubr.bf16.vlgmr.msra.gmra.mrb[12].mxu1 %v12940_v62  ;;  %v1992_v62 = vunpack.c.h.s8.bf16 %v552_v48  ;;  %v2057_v48 = vunpack.c.h.s8.bf16 %v585_v22 }
 0x731   :  { %5303 = vmatpush1.bf16.msra.mxu0 %v1943_v37  ;;  %5631 = vmatpush1.bf16.msra.mxu1 %v1945_v38  ;;  %v2058_v37 = vunpack.c.h.s8.bf16 %v586_v12  ;;  %v600_v38 = vld [vmem:[#allocation8 + $0xe68] sm:$0xff] }
 0x732   :  { %5304 = vmatprep.subr.bf16.mxu0 %v1960_v40  ;;  %5632 = vmatprep.subr.bf16.mxu1 %v1962_v41  ;;  %v602_v40 = vld [vmem:[#allocation8 + $0xe78] sm:$0xff]  ;;  %v2055_v41 = vunpack.c.h.s8.bf16 %v583_v20  ;;  %v2072_v49 = vunpack.c.l.s8.bf16 %v600_v38  ;;  %v2088_v55 = vunpack.c.h.s8.bf16 %v600_v38  ;;  %v649_v38 = vld [vmem:[#allocation8 + $0xff0] sm:$0xff] }
 0x733   :  { %5334 = vmatprep.mubr.bf16.mxu0 %v12942_v5  ;;  %5662 = vmatprep.mubr.bf16.mxu1 %v12942_v5  ;;  %v569_v5 = vld [vmem:[#allocation8 + $0xd70] sm:$0xff] }
 0x734   :  { %v2009_v8 = vunpack.c.l.s8.bf16 %v569_v5  ;;  %v2025_v14 = vunpack.c.h.s8.bf16 %v569_v5 }
 0x735   :  { %5305 = vmatpush1.bf16.msra.mxu0 %v1959_v51  ;;  %5633 = vmatpush1.bf16.msra.mxu1 %v1961_v50  ;;  %v2074_v51 = vunpack.c.l.s8.bf16 %v602_v40  ;;  %v599_v50 = vld [vmem:[#allocation8 + $0xe60] sm:$0xff] }
 0x736   :  { %5306 = vmatprep.subr.bf16.mxu0 %v1976_v18  ;;  %5634 = vmatprep.subr.bf16.mxu1 %v1978_v52  ;;  %v601_v18 = vld [vmem:[#allocation8 + $0xe70] sm:$0xff]  ;;  %v2071_v52 = vunpack.c.l.s8.bf16 %v599_v50 }
 0x737   :  { %v2073_v54 = vunpack.c.l.s8.bf16 %v601_v18  ;;  %v2089_v59 = vunpack.c.h.s8.bf16 %v601_v18 }
 0x739   :  { %5307 = vmatpush1.bf16.msra.mxu0 %v1975_v56  ;;  %5635 = vmatpush1.bf16.msra.mxu1 %v1977_v57  ;;  %v2090_v56 = vunpack.c.h.s8.bf16 %v602_v40  ;;  %v616_v57 = vld [vmem:[#allocation8 + $0xee8] sm:$0xff] }
 0x73a   :  { %5308 = vmatprep.subr.bf16.mxu0 %v1992_v62  ;;  %5636 = vmatprep.subr.bf16.mxu1 %v1994_v58  ;;  %v618_v62 = vld [vmem:[#allocation8 + $0xef8] sm:$0xff]  ;;  %v2087_v58 = vunpack.c.h.s8.bf16 %v599_v50  ;;  %v2104_v60 = vunpack.c.l.s8.bf16 %v616_v57  ;;  %v2120_v5 = vunpack.c.h.s8.bf16 %v616_v57  ;;  %v665_v57 = vld [vmem:[#allocation8 + $0x1070] sm:$0xff] }
 0x73b   :  { %v666_v50 = vld [vmem:[#allocation8 + $0x1078] sm:$0xff] }
 0x73d   :  { %5309 = vmatpush1.bf16.msra.mxu0 %v1991_v25  ;;  %5637 = vmatpush1.bf16.msra.mxu1 %v1993_v61  ;;  %v2106_v25 = vunpack.c.l.s8.bf16 %v618_v62  ;;  %v615_v61 = vld [vmem:[#allocation8 + $0xee0] sm:$0xff] }
 0x73e   :  { %5310 = vmatprep.subr.bf16.mxu0 %v2008_v63  ;;  %5638 = vmatprep.subr.bf16.mxu1 %v2010_v0  ;;  %v617_v63 = vld [vmem:[#allocation8 + $0xef0] sm:$0xff]  ;;  %v2103_v0 = vunpack.c.l.s8.bf16 %v615_v61 }
 0x73f   :  { %v2105_v1 = vunpack.c.l.s8.bf16 %v617_v63  ;;  %v2121_v11 = vunpack.c.h.s8.bf16 %v617_v63 }
 0x741   :  { %5311 = vmatpush1.bf16.msra.mxu0 %v2007_v2  ;;  %5639 = vmatpush1.bf16.msra.mxu1 %v2009_v8  ;;  %v2122_v2 = vunpack.c.h.s8.bf16 %v618_v62  ;;  %v632_v8 = vld [vmem:[#allocation8 + $0xf68] sm:$0xff] }
 0x742   :  { %5312 = vmatprep.subr.bf16.mxu0 %v2024_v9  ;;  %5640 = vmatprep.subr.bf16.mxu1 %v2026_v10  ;;  %v634_v9 = vld [vmem:[#allocation8 + $0xf78] sm:$0xff]  ;;  %v2119_v10 = vunpack.c.h.s8.bf16 %v615_v61  ;;  %v2136_v12 = vunpack.c.l.s8.bf16 %v632_v8  ;;  %v2152_v22 = vunpack.c.h.s8.bf16 %v632_v8  ;;  %v681_v8 = vld [vmem:[#allocation8 + $0x10f0] sm:$0xff] }
 0x743   :  { %v13078_v23 = vpop.f32.mrb[8].mxu0  ;;  %v13080_v24 = vpop.f32.mrb[8].mxu1  ;;  %v682_v61 = vld [vmem:[#allocation8 + $0x10f8] sm:$0xff] }
 0x744   :  { %v13082_v26 = vpop.f32.mrb[9].mxu0  ;;  %v13084_v28 = vpop.f32.mrb[9].mxu1 }
 0x745   :  { %v4848_v35 = vpop.f32.mrb[10].mxu0  ;;  %v5176_v29 = vpop.f32.mrb[10].mxu1  ;;  %5313 = vmatpush1.bf16.msra.mxu0 %v2023_v13  ;;  %5641 = vmatpush1.bf16.msra.mxu1 %v2025_v14  ;;  %v2138_v13 = vunpack.c.l.s8.bf16 %v634_v9  ;;  %v631_v14 = vld [vmem:[#allocation8 + $0xf60] sm:$0xff] }
 0x746   :  { %v4849_v34 = vpop.f32.mrb[11].mxu0  ;;  %v5177_v43 = vpop.f32.mrb[11].mxu1  ;;  %5314 = vmatprep.subr.bf16.mxu0 %v2040_v15  ;;  %5642 = vmatprep.subr.bf16.mxu1 %v2042_v19  ;;  %v633_v15 = vld [vmem:[#allocation8 + $0xf70] sm:$0xff]  ;;  %v2135_v19 = vunpack.c.l.s8.bf16 %v631_v14  ;;  %v2154_v35 = vunpack.c.h.s8.bf16 %v634_v9  ;;  %v648_v29 = vld [vmem:[#allocation8 + $0xfe8] sm:$0xff] }
 0x747   :  { %v2137_v20 = vunpack.c.l.s8.bf16 %v633_v15  ;;  %v2153_v34 = vunpack.c.h.s8.bf16 %v633_v15  ;;  %v2168_v43 = vunpack.c.l.s8.bf16 %v648_v29  ;;  %v2249_v15 = vunpack.c.h.s8.bf16 %v681_v8 }
 0x749   :  { %5315 = vmatpush1.bf16.msra.mxu0 %v2039_v32  ;;  %5643 = vmatpush1.bf16.msra.mxu1 %v2041_v33  ;;  %v650_v32 = vld [vmem:[#allocation8 + $0xff8] sm:$0xff]  ;;  %v2151_v33 = vunpack.c.h.s8.bf16 %v631_v14 }
 0x74a   :  { %5316 = vmatprep.subr.bf16.mxu0 %v2056_v36  ;;  %5644 = vmatprep.subr.bf16.mxu1 %v2058_v37  ;;  %v2170_v36 = vunpack.c.l.s8.bf16 %v650_v32  ;;  %v647_v37 = vld [vmem:[#allocation8 + $0xfe0] sm:$0xff] }
 0x74b   :  { %v2167_v40 = vunpack.c.l.s8.bf16 %v647_v37  ;;  %v2183_v18 = vunpack.c.h.s8.bf16 %v647_v37 }
 0x74d   :  { %5317 = vmatpush1.bf16.msra.mxu0 %v2055_v41  ;;  %5645 = vmatpush1.bf16.msra.mxu1 %v2057_v48  ;;  %v2169_v41 = vunpack.c.l.s8.bf16 %v649_v38  ;;  %v2184_v48 = vunpack.c.h.s8.bf16 %v648_v29 }
 0x74e   :  { %5318 = vmatprep.subr.bf16.mxu0 %v2072_v49  ;;  %5646 = vmatprep.subr.bf16.mxu1 %v2074_v51  ;;  %v2186_v49 = vunpack.c.h.s8.bf16 %v650_v32  ;;  %v664_v51 = vld [vmem:[#allocation8 + $0x1068] sm:$0xff] }
 0x751   :  { %5319 = vmatpush1.bf16.msra.mxu0 %v2071_v52  ;;  %5647 = vmatpush1.bf16.msra.mxu1 %v2073_v54  ;;  %v2185_v52 = vunpack.c.h.s8.bf16 %v649_v38  ;;  %v2200_v54 = vunpack.c.l.s8.bf16 %v664_v51 }
 0x752   :  { %5320 = vmatprep.subr.bf16.mxu0 %v2088_v55  ;;  %5648 = vmatprep.subr.bf16.mxu1 %v2090_v56  ;;  %v2202_v55 = vunpack.c.l.s8.bf16 %v666_v50  ;;  %v663_v56 = vld [vmem:[#allocation8 + $0x1060] sm:$0xff] }
 0x753   :  { %v2199_v62 = vunpack.c.l.s8.bf16 %v663_v56  ;;  %v2215_v63 = vunpack.c.h.s8.bf16 %v663_v56 }
 0x755   :  { %5321 = vmatpush1.bf16.msra.mxu0 %v2087_v58  ;;  %5649 = vmatpush1.bf16.msra.mxu1 %v2089_v59  ;;  %v2201_v58 = vunpack.c.l.s8.bf16 %v665_v57  ;;  %v2216_v59 = vunpack.c.h.s8.bf16 %v664_v51 }
 0x756   :  { %5322 = vmatprep.subr.bf16.mxu0 %v2104_v60  ;;  %5650 = vmatprep.subr.bf16.mxu1 %v2106_v25  ;;  %v2218_v60 = vunpack.c.h.s8.bf16 %v666_v50  ;;  %v680_v25 = vld [vmem:[#allocation8 + $0x10e8] sm:$0xff] }
 0x759   :  { %5323 = vmatpush1.bf16.msra.mxu0 %v2103_v0  ;;  %5651 = vmatpush1.bf16.msra.mxu1 %v2105_v1  ;;  %v2217_v0 = vunpack.c.h.s8.bf16 %v665_v57  ;;  %v2232_v1 = vunpack.c.l.s8.bf16 %v680_v25 }
 0x75a   :  { %5324 = vmatprep.subr.bf16.mxu0 %v2120_v5  ;;  %5652 = vmatprep.subr.bf16.mxu1 %v2122_v2  ;;  %v2234_v5 = vunpack.c.l.s8.bf16 %v682_v61  ;;  %v679_v2 = vld [vmem:[#allocation8 + $0x10e0] sm:$0xff] }
 0x75b   :  { %v2231_v9 = vunpack.c.l.s8.bf16 %v679_v2  ;;  %v2247_v14 = vunpack.c.h.s8.bf16 %v679_v2 }
 0x75d   :  { %5325 = vmatpush1.bf16.msra.mxu0 %v2119_v10  ;;  %5653 = vmatpush1.bf16.msra.mxu1 %v2121_v11  ;;  %v2233_v10 = vunpack.c.l.s8.bf16 %v681_v8  ;;  %v2250_v11 = vunpack.c.h.s8.bf16 %v682_v61 }
 0x75e   :  { %5326 = vmatprep.subr.bf16.mxu0 %v2136_v12  ;;  %5654 = vmatprep.subr.bf16.mxu1 %v2138_v13  ;;  %v696_v12 = vld [vmem:[#allocation8 + $0x1168] sm:$0xff]  ;;  %v698_v13 = vld [vmem:[#allocation8 + $0x1178] sm:$0xff] }
 0x75f   :  { %v2280_v32 = vunpack.c.h.s8.bf16 %v696_v12 }
 0x761   :  { %5327 = vmatpush1.bf16.msra.mxu0 %v2135_v19  ;;  %5655 = vmatpush1.bf16.msra.mxu1 %v2137_v20  ;;  %v2264_v19 = vunpack.c.l.s8.bf16 %v696_v12  ;;  %v2266_v20 = vunpack.c.l.s8.bf16 %v698_v13 }
 0x762   :  { %5328 = vmatprep.subr.bf16.mxu0 %v2152_v22  ;;  %5656 = vmatprep.subr.bf16.mxu1 %v2154_v35  ;;  %v695_v22 = vld [vmem:[#allocation8 + $0x1160] sm:$0xff] }
 0x763   :  { %v2263_v35 = vunpack.c.l.s8.bf16 %v695_v22 }
 0x765   :  { %5329 = vmatpush1.bf16.msra.mxu0 %v2151_v33  ;;  %5657 = vmatpush1.bf16.msra.mxu1 %v2153_v34  ;;  %v2282_v33 = vunpack.c.h.s8.bf16 %v698_v13  ;;  %v712_v34 = vld [vmem:[#allocation8 + $0x11e8] sm:$0xff] }
 0x766   :  { %5330 = vmatprep.subr.bf16.mxu0 %v2168_v43  ;;  %5658 = vmatprep.subr.bf16.mxu1 %v2170_v36  ;;  %v714_v43 = vld [vmem:[#allocation8 + $0x11f8] sm:$0xff]  ;;  %v2279_v36 = vunpack.c.h.s8.bf16 %v695_v22  ;;  %v2296_v38 = vunpack.c.l.s8.bf16 %v712_v34  ;;  %v2312_v50 = vunpack.c.h.s8.bf16 %v712_v34 }
 0x769   :  { %5331 = vmatpush1.bf16.msra.mxu0 %v2167_v40  ;;  %5659 = vmatpush1.bf16.msra.mxu1 %v2169_v41  ;;  %v2298_v40 = vunpack.c.l.s8.bf16 %v714_v43  ;;  %v711_v41 = vld [vmem:[#allocation8 + $0x11e0] sm:$0xff] }
 0x76a   :  { %5332 = vmatprep.subr.bf16.mxu0 %v2184_v48  ;;  %5660 = vmatprep.subr.bf16.mxu1 %v2186_v49  ;;  %v713_v48 = vld [vmem:[#allocation8 + $0x11f0] sm:$0xff]  ;;  %v2295_v49 = vunpack.c.l.s8.bf16 %v711_v41 }
 0x76b   :  { %v2297_v51 = vunpack.c.l.s8.bf16 %v713_v48  ;;  %v2313_v56 = vunpack.c.h.s8.bf16 %v713_v48 }
 0x76d   :  { %5333 = vmatpush1.bf16.msra.mxu0 %v2183_v18  ;;  %5661 = vmatpush1.bf16.msra.mxu1 %v2185_v52  ;;  %v2314_v18 = vunpack.c.h.s8.bf16 %v714_v43  ;;  %v728_v52 = vld [vmem:[#allocation8 + $0x1268] sm:$0xff] }
 0x76e   :  { %5343 = vmatprep.subr.bf16.mxu0 %v2200_v54  ;;  %5671 = vmatprep.subr.bf16.mxu1 %v2202_v55  ;;  %v730_v54 = vld [vmem:[#allocation8 + $0x1278] sm:$0xff]  ;;  %v2311_v55 = vunpack.c.h.s8.bf16 %v711_v41  ;;  %v2328_v57 = vunpack.c.l.s8.bf16 %v728_v52  ;;  %v2344_v61 = vunpack.c.h.s8.bf16 %v728_v52 }
 0x770   :  { %5335 = vmatmul.mubr.bf16.vlgmr.msra.gmra.mrb[12].mxu0 %v12948_v45  ;;  %5663 = vmatmul.mubr.bf16.vlgmr.msra.gmra.mrb[12].mxu1 %v12948_v45  ;;  %v2248_v45 = vunpack.c.h.s8.bf16 %v680_v25 }
 0x771   :  { %5344 = vmatpush1.bf16.msra.mxu0 %v2199_v62  ;;  %5672 = vmatpush1.bf16.msra.mxu1 %v2201_v58  ;;  %v2330_v62 = vunpack.c.l.s8.bf16 %v730_v54  ;;  %v727_v58 = vld [vmem:[#allocation8 + $0x1260] sm:$0xff] }
 0x772   :  { %5345 = vmatprep.subr.bf16.mxu0 %v2216_v59  ;;  %5673 = vmatprep.subr.bf16.mxu1 %v2218_v60  ;;  %v729_v59 = vld [vmem:[#allocation8 + $0x1270] sm:$0xff]  ;;  %v2327_v60 = vunpack.c.l.s8.bf16 %v727_v58 }
 0x773   :  { %5375 = vmatprep.mubr.bf16.mxu0 %v12950_v53  ;;  %5703 = vmatprep.mubr.bf16.mxu1 %v12950_v53  ;;  %v697_v53 = vld [vmem:[#allocation8 + $0x1170] sm:$0xff]  ;;  %v2329_v25 = vunpack.c.l.s8.bf16 %v729_v59  ;;  %v2345_v2 = vunpack.c.h.s8.bf16 %v729_v59 }
 0x774   :  { %v2265_v29 = vunpack.c.l.s8.bf16 %v697_v53  ;;  %v2281_v37 = vunpack.c.h.s8.bf16 %v697_v53 }
 0x775   :  { %5346 = vmatpush1.bf16.msra.mxu0 %v2215_v63  ;;  %5674 = vmatpush1.bf16.msra.mxu1 %v2217_v0  ;;  %v2346_v63 = vunpack.c.h.s8.bf16 %v730_v54  ;;  %v744_v0 = vld [vmem:[#allocation8 + $0x12e8] sm:$0xff] }
 0x776   :  { %5347 = vmatprep.subr.bf16.mxu0 %v2232_v1  ;;  %5675 = vmatprep.subr.bf16.mxu1 %v2234_v5  ;;  %v746_v1 = vld [vmem:[#allocation8 + $0x12f8] sm:$0xff]  ;;  %v2343_v5 = vunpack.c.h.s8.bf16 %v727_v58  ;;  %v2360_v8 = vunpack.c.l.s8.bf16 %v744_v0  ;;  %v2376_v13 = vunpack.c.h.s8.bf16 %v744_v0 }
 0x779   :  { %5348 = vmatpush1.bf16.msra.mxu0 %v2231_v9  ;;  %5676 = vmatpush1.bf16.msra.mxu1 %v2233_v10  ;;  %v2362_v9 = vunpack.c.l.s8.bf16 %v746_v1  ;;  %v743_v10 = vld [vmem:[#allocation8 + $0x12e0] sm:$0xff] }
 0x77a   :  { %5349 = vmatprep.subr.bf16.mxu0 %v2248_v45  ;;  %5677 = vmatprep.subr.bf16.mxu1 %v2250_v11  ;;  %v745_v45 = vld [vmem:[#allocation8 + $0x12f0] sm:$0xff]  ;;  %v2359_v11 = vunpack.c.l.s8.bf16 %v743_v10 }
 0x77b   :  { %v2361_v12 = vunpack.c.l.s8.bf16 %v745_v45  ;;  %v2377_v22 = vunpack.c.h.s8.bf16 %v745_v45 }
 0x77d   :  { %5350 = vmatpush1.bf16.msra.mxu0 %v2247_v14  ;;  %5678 = vmatpush1.bf16.msra.mxu1 %v2249_v15  ;;  %v2378_v14 = vunpack.c.h.s8.bf16 %v746_v1  ;;  %v760_v15 = vld [vmem:[#allocation8 + $0x1368] sm:$0xff] }
 0x77e   :  { %5351 = vmatprep.subr.bf16.mxu0 %v2264_v19  ;;  %5679 = vmatprep.subr.bf16.mxu1 %v2266_v20  ;;  %v762_v19 = vld [vmem:[#allocation8 + $0x1378] sm:$0xff]  ;;  %v2375_v20 = vunpack.c.h.s8.bf16 %v743_v10  ;;  %v2392_v53 = vunpack.c.l.s8.bf16 %v760_v15  ;;  %v2408_v43 = vunpack.c.h.s8.bf16 %v760_v15 }
 0x781   :  { %5352 = vmatpush1.bf16.msra.mxu0 %v2263_v35  ;;  %5680 = vmatpush1.bf16.msra.mxu1 %v2265_v29  ;;  %v2394_v35 = vunpack.c.l.s8.bf16 %v762_v19  ;;  %v759_v29 = vld [vmem:[#allocation8 + $0x1360] sm:$0xff] }
 0x782   :  { %5353 = vmatprep.subr.bf16.mxu0 %v2280_v32  ;;  %5681 = vmatprep.subr.bf16.mxu1 %v2282_v33  ;;  %v761_v32 = vld [vmem:[#allocation8 + $0x1370] sm:$0xff]  ;;  %v2391_v33 = vunpack.c.l.s8.bf16 %v759_v29 }
 0x783   :  { %v2393_v34 = vunpack.c.l.s8.bf16 %v761_v32  ;;  %v2409_v41 = vunpack.c.h.s8.bf16 %v761_v32 }
 0x785   :  { %5354 = vmatpush1.bf16.msra.mxu0 %v2279_v36  ;;  %5682 = vmatpush1.bf16.msra.mxu1 %v2281_v37  ;;  %v2410_v36 = vunpack.c.h.s8.bf16 %v762_v19  ;;  %v776_v37 = vld [vmem:[#allocation8 + $0x13e8] sm:$0xff] }
 0x786   :  { %5355 = vmatprep.subr.bf16.mxu0 %v2296_v38  ;;  %5683 = vmatprep.subr.bf16.mxu1 %v2298_v40  ;;  %v778_v38 = vld [vmem:[#allocation8 + $0x13f8] sm:$0xff]  ;;  %v2407_v40 = vunpack.c.h.s8.bf16 %v759_v29  ;;  %v2424_v48 = vunpack.c.l.s8.bf16 %v776_v37  ;;  %v2440_v54 = vunpack.c.h.s8.bf16 %v776_v37 }
 0x789   :  { %5356 = vmatpush1.bf16.msra.mxu0 %v2295_v49  ;;  %5684 = vmatpush1.bf16.msra.mxu1 %v2297_v51  ;;  %v2426_v49 = vunpack.c.l.s8.bf16 %v778_v38  ;;  %v775_v51 = vld [vmem:[#allocation8 + $0x13e0] sm:$0xff] }
 0x78a   :  { %5357 = vmatprep.subr.bf16.mxu0 %v2312_v50  ;;  %5685 = vmatprep.subr.bf16.mxu1 %v2314_v18  ;;  %v777_v50 = vld [vmem:[#allocation8 + $0x13f0] sm:$0xff]  ;;  %v2423_v18 = vunpack.c.l.s8.bf16 %v775_v51 }
 0x78b   :  { %v2425_v52 = vunpack.c.l.s8.bf16 %v777_v50  ;;  %v2441_v58 = vunpack.c.h.s8.bf16 %v777_v50  ;;  %v839_v50 = vld [vmem:[#allocation8 + $0x15e0] sm:$0xff] }
 0x78d   :  { %5358 = vmatpush1.bf16.msra.mxu0 %v2311_v55  ;;  %5686 = vmatpush1.bf16.msra.mxu1 %v2313_v56  ;;  %v2442_v55 = vunpack.c.h.s8.bf16 %v778_v38  ;;  %v792_v56 = vld [vmem:[#allocation8 + $0x1468] sm:$0xff] }
 0x78e   :  { %5359 = vmatprep.subr.bf16.mxu0 %v2328_v57  ;;  %5687 = vmatprep.subr.bf16.mxu1 %v2330_v62  ;;  %v794_v57 = vld [vmem:[#allocation8 + $0x1478] sm:$0xff]  ;;  %v2439_v62 = vunpack.c.h.s8.bf16 %v775_v51  ;;  %v2456_v59 = vunpack.c.l.s8.bf16 %v792_v56  ;;  %v2472_v1 = vunpack.c.h.s8.bf16 %v792_v56  ;;  %v840_v38 = vld [vmem:[#allocation8 + $0x15e8] sm:$0xff] }
 0x791   :  { %5360 = vmatpush1.bf16.msra.mxu0 %v2327_v60  ;;  %5688 = vmatpush1.bf16.msra.mxu1 %v2329_v25  ;;  %v2458_v60 = vunpack.c.l.s8.bf16 %v794_v57  ;;  %v791_v25 = vld [vmem:[#allocation8 + $0x1460] sm:$0xff] }
 0x792   :  { %5361 = vmatprep.subr.bf16.mxu0 %v2344_v61  ;;  %5689 = vmatprep.subr.bf16.mxu1 %v2346_v63  ;;  %v793_v61 = vld [vmem:[#allocation8 + $0x1470] sm:$0xff]  ;;  %v2455_v63 = vunpack.c.l.s8.bf16 %v791_v25 }
 0x793   :  { %v2457_v0 = vunpack.c.l.s8.bf16 %v793_v61  ;;  %v2473_v10 = vunpack.c.h.s8.bf16 %v793_v61  ;;  %v855_v61 = vld [vmem:[#allocation8 + $0x1660] sm:$0xff] }
 0x795   :  { %5362 = vmatpush1.bf16.msra.mxu0 %v2343_v5  ;;  %5690 = vmatpush1.bf16.msra.mxu1 %v2345_v2  ;;  %v2474_v5 = vunpack.c.h.s8.bf16 %v794_v57  ;;  %v808_v2 = vld [vmem:[#allocation8 + $0x14e8] sm:$0xff] }
 0x796   :  { %5363 = vmatprep.subr.bf16.mxu0 %v2360_v8  ;;  %5691 = vmatprep.subr.bf16.mxu1 %v2362_v9  ;;  %v810_v8 = vld [vmem:[#allocation8 + $0x14f8] sm:$0xff]  ;;  %v2471_v9 = vunpack.c.h.s8.bf16 %v791_v25  ;;  %v2488_v45 = vunpack.c.l.s8.bf16 %v808_v2  ;;  %v856_v57 = vld [vmem:[#allocation8 + $0x1668] sm:$0xff] }
 0x797   :  { %v2506_v19 = vunpack.c.h.s8.bf16 %v810_v8 }
 0x799   :  { %5364 = vmatpush1.bf16.msra.mxu0 %v2359_v11  ;;  %5692 = vmatpush1.bf16.msra.mxu1 %v2361_v12  ;;  %v2490_v11 = vunpack.c.l.s8.bf16 %v810_v8  ;;  %v807_v12 = vld [vmem:[#allocation8 + $0x14e0] sm:$0xff]  ;;  %v872_v8 = vld [vmem:[#allocation8 + $0x16e8] sm:$0xff] }
 0x79a   :  { %5365 = vmatprep.subr.bf16.mxu0 %v2376_v13  ;;  %5693 = vmatprep.subr.bf16.mxu1 %v2378_v14  ;;  %v809_v13 = vld [vmem:[#allocation8 + $0x14f0] sm:$0xff]  ;;  %v2487_v14 = vunpack.c.l.s8.bf16 %v807_v12 }
 0x79b   :  { %v2489_v15 = vunpack.c.l.s8.bf16 %v809_v13 }
 0x79d   :  { %5366 = vmatpush1.bf16.msra.mxu0 %v2375_v20  ;;  %5694 = vmatpush1.bf16.msra.mxu1 %v2377_v22  ;;  %v824_v20 = vld [vmem:[#allocation8 + $0x1568] sm:$0xff]  ;;  %v826_v22 = vld [vmem:[#allocation8 + $0x1578] sm:$0xff] }
 0x79e   :  { %5367 = vmatprep.subr.bf16.mxu0 %v2392_v53  ;;  %5695 = vmatprep.subr.bf16.mxu1 %v2394_v35  ;;  %v2503_v53 = vunpack.c.h.s8.bf16 %v807_v12  ;;  %v2505_v35 = vunpack.c.h.s8.bf16 %v809_v13  ;;  %v2520_v29 = vunpack.c.l.s8.bf16 %v824_v20  ;;  %v2522_v32 = vunpack.c.l.s8.bf16 %v826_v22  ;;  %v871_v13 = vld [vmem:[#allocation8 + $0x16e0] sm:$0xff] }
 0x79f   :  { %v2538_v37 = vunpack.c.h.s8.bf16 %v826_v22  ;;  %v888_v22 = vld [vmem:[#allocation8 + $0x1768] sm:$0xff] }
 0x7a1   :  { %5368 = vmatpush1.bf16.msra.mxu0 %v2391_v33  ;;  %5696 = vmatpush1.bf16.msra.mxu1 %v2393_v34  ;;  %v823_v33 = vld [vmem:[#allocation8 + $0x1560] sm:$0xff] }
 0x7a2   :  { %5369 = vmatprep.subr.bf16.mxu0 %v2408_v43  ;;  %5697 = vmatprep.subr.bf16.mxu1 %v2410_v36  ;;  %v2519_v34 = vunpack.c.l.s8.bf16 %v823_v33  ;;  %v2536_v36 = vunpack.c.h.s8.bf16 %v824_v20 }
 0x7a5   :  { %5370 = vmatpush1.bf16.msra.mxu0 %v2407_v40  ;;  %5698 = vmatpush1.bf16.msra.mxu1 %v2409_v41  ;;  %v842_v40 = vld [vmem:[#allocation8 + $0x15f8] sm:$0xff]  ;;  %v2535_v41 = vunpack.c.h.s8.bf16 %v823_v33 }
 0x7a6   :  { %5371 = vmatprep.subr.bf16.mxu0 %v2424_v48  ;;  %5699 = vmatprep.subr.bf16.mxu1 %v2426_v49  ;;  %v2552_v49 = vunpack.c.l.s8.bf16 %v840_v38  ;;  %v2554_v51 = vunpack.c.l.s8.bf16 %v842_v40  ;;  %v2570_v56 = vunpack.c.h.s8.bf16 %v842_v40  ;;  %v904_v40 = vld [vmem:[#allocation8 + $0x17e8] sm:$0xff] }
 0x7a9   :  { %5372 = vmatpush1.bf16.msra.mxu0 %v2423_v18  ;;  %5700 = vmatpush1.bf16.msra.mxu1 %v2425_v52  ;;  %v841_v18 = vld [vmem:[#allocation8 + $0x15f0] sm:$0xff]  ;;  %v2551_v52 = vunpack.c.l.s8.bf16 %v839_v50 }
 0x7aa   :  { %5373 = vmatprep.subr.bf16.mxu0 %v2440_v54  ;;  %5701 = vmatprep.subr.bf16.mxu1 %v2442_v55  ;;  %v2553_v54 = vunpack.c.l.s8.bf16 %v841_v18  ;;  %v2568_v55 = vunpack.c.h.s8.bf16 %v840_v38 }
 0x7ad   :  { %5374 = vmatpush1.bf16.msra.mxu0 %v2439_v62  ;;  %5702 = vmatpush1.bf16.msra.mxu1 %v2441_v58  ;;  %v858_v62 = vld [vmem:[#allocation8 + $0x1678] sm:$0xff]  ;;  %v2567_v58 = vunpack.c.h.s8.bf16 %v839_v50 }
 0x7ae   :  { %5384 = vmatprep.subr.bf16.mxu0 %v2456_v59  ;;  %5712 = vmatprep.subr.bf16.mxu1 %v2458_v60  ;;  %v2569_v59 = vunpack.c.h.s8.bf16 %v841_v18  ;;  %v2584_v60 = vunpack.c.l.s8.bf16 %v856_v57  ;;  %v2586_v25 = vunpack.c.l.s8.bf16 %v858_v62  ;;  %v903_v18 = vld [vmem:[#allocation8 + $0x17e0] sm:$0xff] }
 0x7b0   :  { %5376 = vmatmul.mubr.bf16.vlgmr.msra.gmra.mrb[12].mxu0 %v12956_v30  ;;  %5704 = vmatmul.mubr.bf16.vlgmr.msra.gmra.mrb[12].mxu1 %v12956_v30  ;;  %v2504_v30 = vunpack.c.h.s8.bf16 %v808_v2  ;;  %v2602_v2 = vunpack.c.h.s8.bf16 %v858_v62  ;;  %v920_v62 = vld [vmem:[#allocation8 + $0x1868] sm:$0xff] }
 0x7b1   :  { %5385 = vmatpush1.bf16.msra.mxu0 %v2455_v63  ;;  %5713 = vmatpush1.bf16.msra.mxu1 %v2457_v0  ;;  %v857_v63 = vld [vmem:[#allocation8 + $0x1670] sm:$0xff]  ;;  %v2583_v0 = vunpack.c.l.s8.bf16 %v855_v61 }
 0x7b2   :  { %5386 = vmatprep.subr.bf16.mxu0 %v2472_v1  ;;  %5714 = vmatprep.subr.bf16.mxu1 %v2474_v5  ;;  %v2585_v1 = vunpack.c.l.s8.bf16 %v857_v63  ;;  %v2600_v5 = vunpack.c.h.s8.bf16 %v856_v57 }
 0x7b3   :  { %5416 = vmatprep.mubr.bf16.mxu0 %v12958_v39  ;;  %5744 = vmatprep.mubr.bf16.mxu1 %v12958_v39  ;;  %v825_v39 = vld [vmem:[#allocation8 + $0x1570] sm:$0xff] }
 0x7b4   :  { %v2521_v43 = vunpack.c.l.s8.bf16 %v825_v39  ;;  %v2537_v48 = vunpack.c.h.s8.bf16 %v825_v39  ;;  %v887_v39 = vld [vmem:[#allocation8 + $0x1760] sm:$0xff] }
 0x7b5   :  { %5387 = vmatpush1.bf16.msra.mxu0 %v2471_v9  ;;  %5715 = vmatpush1.bf16.msra.mxu1 %v2473_v10  ;;  %v874_v9 = vld [vmem:[#allocation8 + $0x16f8] sm:$0xff]  ;;  %v2599_v10 = vunpack.c.h.s8.bf16 %v855_v61 }
 0x7b6   :  { %5388 = vmatprep.subr.bf16.mxu0 %v2488_v45  ;;  %5716 = vmatprep.subr.bf16.mxu1 %v2490_v11  ;;  %v2601_v45 = vunpack.c.h.s8.bf16 %v857_v63  ;;  %v2616_v11 = vunpack.c.l.s8.bf16 %v872_v8  ;;  %v2618_v12 = vunpack.c.l.s8.bf16 %v874_v9  ;;  %v2634_v20 = vunpack.c.h.s8.bf16 %v874_v9  ;;  %v919_v63 = vld [vmem:[#allocation8 + $0x1860] sm:$0xff]  ;;  %v936_v9 = vld [vmem:[#allocation8 + $0x18e8] sm:$0xff] }
 0x7b9   :  { %5389 = vmatpush1.bf16.msra.mxu0 %v2487_v14  ;;  %5717 = vmatpush1.bf16.msra.mxu1 %v2489_v15  ;;  %v873_v14 = vld [vmem:[#allocation8 + $0x16f0] sm:$0xff]  ;;  %v2615_v15 = vunpack.c.l.s8.bf16 %v871_v13 }
 0x7ba   :  { %5390 = vmatprep.subr.bf16.mxu0 %v2504_v30  ;;  %5718 = vmatprep.subr.bf16.mxu1 %v2506_v19  ;;  %v2617_v30 = vunpack.c.l.s8.bf16 %v873_v14  ;;  %v2632_v19 = vunpack.c.h.s8.bf16 %v872_v8 }
 0x7bd   :  { %5391 = vmatpush1.bf16.msra.mxu0 %v2503_v53  ;;  %5719 = vmatpush1.bf16.msra.mxu1 %v2505_v35  ;;  %v890_v53 = vld [vmem:[#allocation8 + $0x1778] sm:$0xff]  ;;  %v2631_v35 = vunpack.c.h.s8.bf16 %v871_v13 }
 0x7be   :  { %5392 = vmatprep.subr.bf16.mxu0 %v2520_v29  ;;  %5720 = vmatprep.subr.bf16.mxu1 %v2522_v32  ;;  %v2633_v29 = vunpack.c.h.s8.bf16 %v873_v14  ;;  %v2648_v32 = vunpack.c.l.s8.bf16 %v888_v22  ;;  %v2650_v33 = vunpack.c.l.s8.bf16 %v890_v53  ;;  %v2666_v38 = vunpack.c.h.s8.bf16 %v890_v53  ;;  %v935_v14 = vld [vmem:[#allocation8 + $0x18e0] sm:$0xff]  ;;  %v954_v53 = vld [vmem:[#allocation8 + $0x1978] sm:$0xff] }
 0x7c1   :  { %5393 = vmatpush1.bf16.msra.mxu0 %v2519_v34  ;;  %5721 = vmatpush1.bf16.msra.mxu1 %v2521_v43  ;;  %v889_v34 = vld [vmem:[#allocation8 + $0x1770] sm:$0xff]  ;;  %v2647_v43 = vunpack.c.l.s8.bf16 %v887_v39 }
 0x7c2   :  { %5394 = vmatprep.subr.bf16.mxu0 %v2536_v36  ;;  %5722 = vmatprep.subr.bf16.mxu1 %v2538_v37  ;;  %v2649_v36 = vunpack.c.l.s8.bf16 %v889_v34  ;;  %v2664_v37 = vunpack.c.h.s8.bf16 %v888_v22  ;;  %v952_v22 = vld [vmem:[#allocation8 + $0x1968] sm:$0xff] }
 0x7c5   :  { %5395 = vmatpush1.bf16.msra.mxu0 %v2535_v41  ;;  %5723 = vmatpush1.bf16.msra.mxu1 %v2537_v48  ;;  %v906_v41 = vld [vmem:[#allocation8 + $0x17f8] sm:$0xff]  ;;  %v2663_v48 = vunpack.c.h.s8.bf16 %v887_v39  ;;  %v951_v39 = vld [vmem:[#allocation8 + $0x1960] sm:$0xff] }
 0x7c6   :  { %5396 = vmatprep.subr.bf16.mxu0 %v2552_v49  ;;  %5724 = vmatprep.subr.bf16.mxu1 %v2554_v51  ;;  %v2665_v49 = vunpack.c.h.s8.bf16 %v889_v34  ;;  %v2680_v51 = vunpack.c.l.s8.bf16 %v904_v40  ;;  %v2682_v50 = vunpack.c.l.s8.bf16 %v906_v41  ;;  %v2698_v57 = vunpack.c.h.s8.bf16 %v906_v41 }
 0x7c7   :  { %v2775_v34 = vunpack.c.l.s8.bf16 %v951_v39  ;;  %v2791_v41 = vunpack.c.h.s8.bf16 %v951_v39  ;;  %v1017_v39 = vld [vmem:[#allocation8 + $0x1b70] sm:$0xff] }
 0x7c9   :  { %5397 = vmatpush1.bf16.msra.mxu0 %v2551_v52  ;;  %5725 = vmatpush1.bf16.msra.mxu1 %v2553_v54  ;;  %v905_v52 = vld [vmem:[#allocation8 + $0x17f0] sm:$0xff]  ;;  %v2679_v54 = vunpack.c.l.s8.bf16 %v903_v18 }
 0x7ca   :  { %5398 = vmatprep.subr.bf16.mxu0 %v2568_v55  ;;  %5726 = vmatprep.subr.bf16.mxu1 %v2570_v56  ;;  %v2681_v55 = vunpack.c.l.s8.bf16 %v905_v52  ;;  %v2696_v56 = vunpack.c.h.s8.bf16 %v904_v40  ;;  %v970_v40 = vld [vmem:[#allocation8 + $0x19f8] sm:$0xff] }
 0x7cd   :  { %5399 = vmatpush1.bf16.msra.mxu0 %v2567_v58  ;;  %5727 = vmatpush1.bf16.msra.mxu1 %v2569_v59  ;;  %v922_v58 = vld [vmem:[#allocation8 + $0x1878] sm:$0xff]  ;;  %v2695_v59 = vunpack.c.h.s8.bf16 %v903_v18  ;;  %v969_v18 = vld [vmem:[#allocation8 + $0x19f0] sm:$0xff] }
 0x7ce   :  { %5400 = vmatprep.subr.bf16.mxu0 %v2584_v60  ;;  %5728 = vmatprep.subr.bf16.mxu1 %v2586_v25  ;;  %v2697_v60 = vunpack.c.h.s8.bf16 %v905_v52  ;;  %v2712_v25 = vunpack.c.l.s8.bf16 %v920_v62  ;;  %v2714_v61 = vunpack.c.l.s8.bf16 %v922_v58  ;;  %v2730_v8 = vunpack.c.h.s8.bf16 %v922_v58 }
 0x7d1   :  { %5401 = vmatpush1.bf16.msra.mxu0 %v2583_v0  ;;  %5729 = vmatpush1.bf16.msra.mxu1 %v2585_v1  ;;  %v921_v0 = vld [vmem:[#allocation8 + $0x1870] sm:$0xff]  ;;  %v2711_v1 = vunpack.c.l.s8.bf16 %v919_v63 }
 0x7d2   :  { %5402 = vmatprep.subr.bf16.mxu0 %v2600_v5  ;;  %5730 = vmatprep.subr.bf16.mxu1 %v2602_v2  ;;  %v2713_v5 = vunpack.c.l.s8.bf16 %v921_v0  ;;  %v2728_v2 = vunpack.c.h.s8.bf16 %v920_v62  ;;  %v986_v62 = vld [vmem:[#allocation8 + $0x1a78] sm:$0xff] }
 0x7d5   :  { %5403 = vmatpush1.bf16.msra.mxu0 %v2599_v10  ;;  %5731 = vmatpush1.bf16.msra.mxu1 %v2601_v45  ;;  %v938_v10 = vld [vmem:[#allocation8 + $0x18f8] sm:$0xff]  ;;  %v2727_v45 = vunpack.c.h.s8.bf16 %v919_v63  ;;  %v985_v63 = vld [vmem:[#allocation8 + $0x1a70] sm:$0xff] }
 0x7d6   :  { %5404 = vmatprep.subr.bf16.mxu0 %v2616_v11  ;;  %5732 = vmatprep.subr.bf16.mxu1 %v2618_v12  ;;  %v2729_v11 = vunpack.c.h.s8.bf16 %v921_v0  ;;  %v2744_v12 = vunpack.c.l.s8.bf16 %v936_v9  ;;  %v2746_v13 = vunpack.c.l.s8.bf16 %v938_v10 }
 0x7d9   :  { %5405 = vmatpush1.bf16.msra.mxu0 %v2615_v15  ;;  %5733 = vmatpush1.bf16.msra.mxu1 %v2617_v30  ;;  %v937_v15 = vld [vmem:[#allocation8 + $0x18f0] sm:$0xff]  ;;  %v2743_v30 = vunpack.c.l.s8.bf16 %v935_v14 }
 0x7da   :  { %5406 = vmatprep.subr.bf16.mxu0 %v2632_v19  ;;  %5734 = vmatprep.subr.bf16.mxu1 %v2634_v20  ;;  %v2745_v19 = vunpack.c.l.s8.bf16 %v937_v15  ;;  %v2762_v20 = vunpack.c.h.s8.bf16 %v938_v10 }
 0x7dd   :  { %5407 = vmatpush1.bf16.msra.mxu0 %v2631_v35  ;;  %5735 = vmatpush1.bf16.msra.mxu1 %v2633_v29  ;;  %v2759_v35 = vunpack.c.h.s8.bf16 %v935_v14  ;;  %v2761_v29 = vunpack.c.h.s8.bf16 %v937_v15  ;;  %v1001_v14 = vld [vmem:[#allocation8 + $0x1af0] sm:$0xff] }
 0x7de   :  { %5408 = vmatprep.subr.bf16.mxu0 %v2648_v32  ;;  %5736 = vmatprep.subr.bf16.mxu1 %v2650_v33  ;;  %v2776_v32 = vunpack.c.l.s8.bf16 %v952_v22  ;;  %v2778_v33 = vunpack.c.l.s8.bf16 %v954_v53 }
 0x7e1   :  { %5409 = vmatpush1.bf16.msra.mxu0 %v2647_v43  ;;  %5737 = vmatpush1.bf16.msra.mxu1 %v2649_v36  ;;  %v2792_v36 = vunpack.c.h.s8.bf16 %v952_v22  ;;  %v1018_v22 = vld [vmem:[#allocation8 + $0x1b78] sm:$0xff] }
 0x7e2   :  { %5410 = vmatprep.subr.bf16.mxu0 %v2664_v37  ;;  %5738 = vmatprep.subr.bf16.mxu1 %v2666_v38  ;;  %v2794_v37 = vunpack.c.h.s8.bf16 %v954_v53  ;;  %v968_v38 = vld [vmem:[#allocation8 + $0x19e8] sm:$0xff] }
 0x7e5   :  { %5411 = vmatpush1.bf16.msra.mxu0 %v2663_v48  ;;  %5739 = vmatpush1.bf16.msra.mxu1 %v2665_v49  ;;  %v2808_v49 = vunpack.c.l.s8.bf16 %v968_v38 }
 0x7e6   :  { %5412 = vmatprep.subr.bf16.mxu0 %v2680_v51  ;;  %5740 = vmatprep.subr.bf16.mxu1 %v2682_v50  ;;  %v2810_v51 = vunpack.c.l.s8.bf16 %v970_v40  ;;  %v967_v50 = vld [vmem:[#allocation8 + $0x19e0] sm:$0xff] }
 0x7e7   :  { %v2807_v52 = vunpack.c.l.s8.bf16 %v967_v50  ;;  %v2823_v58 = vunpack.c.h.s8.bf16 %v967_v50  ;;  %v1033_v50 = vld [vmem:[#allocation8 + $0x1bf0] sm:$0xff] }
 0x7e9   :  { %5413 = vmatpush1.bf16.msra.mxu0 %v2679_v54  ;;  %5741 = vmatpush1.bf16.msra.mxu1 %v2681_v55  ;;  %v2809_v54 = vunpack.c.l.s8.bf16 %v969_v18  ;;  %v2824_v55 = vunpack.c.h.s8.bf16 %v968_v38  ;;  %v1034_v38 = vld [vmem:[#allocation8 + $0x1bf8] sm:$0xff] }
 0x7ea   :  { %5414 = vmatprep.subr.bf16.mxu0 %v2696_v56  ;;  %5742 = vmatprep.subr.bf16.mxu1 %v2698_v57  ;;  %v2826_v56 = vunpack.c.h.s8.bf16 %v970_v40  ;;  %v984_v57 = vld [vmem:[#allocation8 + $0x1a68] sm:$0xff] }
 0x7ed   :  { %5415 = vmatpush1.bf16.msra.mxu0 %v2695_v59  ;;  %5743 = vmatpush1.bf16.msra.mxu1 %v2697_v60  ;;  %v2825_v59 = vunpack.c.h.s8.bf16 %v969_v18  ;;  %v2840_v60 = vunpack.c.l.s8.bf16 %v984_v57 }
 0x7ee   :  { %5425 = vmatprep.subr.bf16.mxu0 %v2712_v25  ;;  %5753 = vmatprep.subr.bf16.mxu1 %v2714_v61  ;;  %v2842_v25 = vunpack.c.l.s8.bf16 %v986_v62  ;;  %v983_v61 = vld [vmem:[#allocation8 + $0x1a60] sm:$0xff] }
 0x7ef   :  { %v2839_v0 = vunpack.c.l.s8.bf16 %v983_v61  ;;  %v2855_v10 = vunpack.c.h.s8.bf16 %v983_v61  ;;  %v1049_v61 = vld [vmem:[#allocation8 + $0x1c70] sm:$0xff] }
 0x7f0   :  { %5417 = vmatmul.mubr.bf16.vlgmr.msra.gmra.mrb[12].mxu0 %v12964_v21  ;;  %5745 = vmatmul.mubr.bf16.vlgmr.msra.gmra.mrb[12].mxu1 %v12964_v21  ;;  %v2760_v21 = vunpack.c.h.s8.bf16 %v936_v9  ;;  %v1002_v9 = vld [vmem:[#allocation8 + $0x1af8] sm:$0xff] }
 0x7f1   :  { %5426 = vmatpush1.bf16.msra.mxu0 %v2711_v1  ;;  %5754 = vmatpush1.bf16.msra.mxu1 %v2713_v5  ;;  %v2841_v1 = vunpack.c.l.s8.bf16 %v985_v63  ;;  %v2856_v5 = vunpack.c.h.s8.bf16 %v984_v57  ;;  %v1050_v57 = vld [vmem:[#allocation8 + $0x1c78] sm:$0xff] }
 0x7f2   :  { %5427 = vmatprep.subr.bf16.mxu0 %v2728_v2  ;;  %5755 = vmatprep.subr.bf16.mxu1 %v2730_v8  ;;  %v2858_v2 = vunpack.c.h.s8.bf16 %v986_v62  ;;  %v1000_v8 = vld [vmem:[#allocation8 + $0x1ae8] sm:$0xff] }
 0x7f3   :  { %5457 = vmatprep.mubr.bf16.mxu0 %v12966_v31  ;;  %5785 = vmatprep.mubr.bf16.mxu1 %v12966_v31  ;;  %v953_v31 = vld [vmem:[#allocation8 + $0x1970] sm:$0xff] }
 0x7f4   :  { %v2777_v43 = vunpack.c.l.s8.bf16 %v953_v31  ;;  %v2793_v48 = vunpack.c.h.s8.bf16 %v953_v31 }
 0x7f5   :  { %5428 = vmatpush1.bf16.msra.mxu0 %v2727_v45  ;;  %5756 = vmatpush1.bf16.msra.mxu1 %v2729_v11  ;;  %v2857_v45 = vunpack.c.h.s8.bf16 %v985_v63  ;;  %v2872_v11 = vunpack.c.l.s8.bf16 %v1000_v8 }
 0x7f6   :  { %5429 = vmatprep.subr.bf16.mxu0 %v2744_v12  ;;  %5757 = vmatprep.subr.bf16.mxu1 %v2746_v13  ;;  %v2874_v12 = vunpack.c.l.s8.bf16 %v1002_v9  ;;  %v999_v13 = vld [vmem:[#allocation8 + $0x1ae0] sm:$0xff] }
 0x7f7   :  { %v2871_v15 = vunpack.c.l.s8.bf16 %v999_v13  ;;  %v2887_v53 = vunpack.c.h.s8.bf16 %v999_v13  ;;  %v1065_v13 = vld [vmem:[#allocation8 + $0x1cf0] sm:$0xff] }
 0x7f9   :  { %5430 = vmatpush1.bf16.msra.mxu0 %v2743_v30  ;;  %5758 = vmatpush1.bf16.msra.mxu1 %v2745_v19  ;;  %v2873_v30 = vunpack.c.l.s8.bf16 %v1001_v14  ;;  %v2888_v19 = vunpack.c.h.s8.bf16 %v1000_v8  ;;  %v1066_v8 = vld [vmem:[#allocation8 + $0x1cf8] sm:$0xff] }
 0x7fa   :  { %5431 = vmatprep.subr.bf16.mxu0 %v2760_v21  ;;  %5759 = vmatprep.subr.bf16.mxu1 %v2762_v20  ;;  %v2890_v21 = vunpack.c.h.s8.bf16 %v1002_v9  ;;  %v1016_v20 = vld [vmem:[#allocation8 + $0x1b68] sm:$0xff] }
 0x7fd   :  { %5432 = vmatpush1.bf16.msra.mxu0 %v2759_v35  ;;  %5760 = vmatpush1.bf16.msra.mxu1 %v2761_v29  ;;  %v2889_v35 = vunpack.c.h.s8.bf16 %v1001_v14  ;;  %v2904_v29 = vunpack.c.l.s8.bf16 %v1016_v20 }
 0x7fe   :  { %5433 = vmatprep.subr.bf16.mxu0 %v2776_v32  ;;  %5761 = vmatprep.subr.bf16.mxu1 %v2778_v33  ;;  %v2906_v32 = vunpack.c.l.s8.bf16 %v1018_v22  ;;  %v1015_v33 = vld [vmem:[#allocation8 + $0x1b60] sm:$0xff] }
 0x7ff   :  { %v2903_v31 = vunpack.c.l.s8.bf16 %v1015_v33  ;;  %v2919_v40 = vunpack.c.h.s8.bf16 %v1015_v33 }
 0x801   :  { %5434 = vmatpush1.bf16.msra.mxu0 %v2775_v34  ;;  %5762 = vmatpush1.bf16.msra.mxu1 %v2777_v43  ;;  %v2905_v34 = vunpack.c.l.s8.bf16 %v1017_v39  ;;  %v2920_v43 = vunpack.c.h.s8.bf16 %v1016_v20 }
 0x802   :  { %5435 = vmatprep.subr.bf16.mxu0 %v2792_v36  ;;  %5763 = vmatprep.subr.bf16.mxu1 %v2794_v37  ;;  %v2922_v36 = vunpack.c.h.s8.bf16 %v1018_v22  ;;  %v1032_v37 = vld [vmem:[#allocation8 + $0x1be8] sm:$0xff]  ;;  %v3017_v22 = vunpack.c.h.s8.bf16 %v1065_v13 }
 0x805   :  { %5436 = vmatpush1.bf16.msra.mxu0 %v2791_v41  ;;  %5764 = vmatpush1.bf16.msra.mxu1 %v2793_v48  ;;  %v2921_v41 = vunpack.c.h.s8.bf16 %v1017_v39  ;;  %v2936_v48 = vunpack.c.l.s8.bf16 %v1032_v37 }
 0x806   :  { %5437 = vmatprep.subr.bf16.mxu0 %v2808_v49  ;;  %5765 = vmatprep.subr.bf16.mxu1 %v2810_v51  ;;  %v2938_v49 = vunpack.c.l.s8.bf16 %v1034_v38  ;;  %v1031_v51 = vld [vmem:[#allocation8 + $0x1be0] sm:$0xff] }
 0x807   :  { %v2935_v18 = vunpack.c.l.s8.bf16 %v1031_v51  ;;  %v2951_v62 = vunpack.c.h.s8.bf16 %v1031_v51 }
 0x809   :  { %5438 = vmatpush1.bf16.msra.mxu0 %v2807_v52  ;;  %5766 = vmatpush1.bf16.msra.mxu1 %v2809_v54  ;;  %v2937_v52 = vunpack.c.l.s8.bf16 %v1033_v50  ;;  %v2952_v54 = vunpack.c.h.s8.bf16 %v1032_v37 }
 0x80a   :  { %5439 = vmatprep.subr.bf16.mxu0 %v2824_v55  ;;  %5767 = vmatprep.subr.bf16.mxu1 %v2826_v56  ;;  %v2954_v55 = vunpack.c.h.s8.bf16 %v1034_v38  ;;  %v1048_v56 = vld [vmem:[#allocation8 + $0x1c68] sm:$0xff] }
 0x80d   :  { %5440 = vmatpush1.bf16.msra.mxu0 %v2823_v58  ;;  %5768 = vmatpush1.bf16.msra.mxu1 %v2825_v59  ;;  %v2953_v58 = vunpack.c.h.s8.bf16 %v1033_v50  ;;  %v2968_v59 = vunpack.c.l.s8.bf16 %v1048_v56 }
 0x80e   :  { %5441 = vmatprep.subr.bf16.mxu0 %v2840_v60  ;;  %5769 = vmatprep.subr.bf16.mxu1 %v2842_v25  ;;  %v2970_v60 = vunpack.c.l.s8.bf16 %v1050_v57  ;;  %v1047_v25 = vld [vmem:[#allocation8 + $0x1c60] sm:$0xff] }
 0x80f   :  { %v2967_v63 = vunpack.c.l.s8.bf16 %v1047_v25  ;;  %v2983_v9 = vunpack.c.h.s8.bf16 %v1047_v25 }
 0x811   :  { %5442 = vmatpush1.bf16.msra.mxu0 %v2839_v0  ;;  %5770 = vmatpush1.bf16.msra.mxu1 %v2841_v1  ;;  %v2969_v0 = vunpack.c.l.s8.bf16 %v1049_v61  ;;  %v2984_v1 = vunpack.c.h.s8.bf16 %v1048_v56 }
 0x812   :  { %5443 = vmatprep.subr.bf16.mxu0 %v2856_v5  ;;  %5771 = vmatprep.subr.bf16.mxu1 %v2858_v2  ;;  %v2986_v5 = vunpack.c.h.s8.bf16 %v1050_v57  ;;  %v1064_v2 = vld [vmem:[#allocation8 + $0x1ce8] sm:$0xff] }
 0x815   :  { %5444 = vmatpush1.bf16.msra.mxu0 %v2855_v10  ;;  %5772 = vmatpush1.bf16.msra.mxu1 %v2857_v45  ;;  %v2985_v10 = vunpack.c.h.s8.bf16 %v1049_v61  ;;  %v3000_v45 = vunpack.c.l.s8.bf16 %v1064_v2 }
 0x816   :  { %5445 = vmatprep.subr.bf16.mxu0 %v2872_v11  ;;  %5773 = vmatprep.subr.bf16.mxu1 %v2874_v12  ;;  %v3002_v11 = vunpack.c.l.s8.bf16 %v1066_v8  ;;  %v1063_v12 = vld [vmem:[#allocation8 + $0x1ce0] sm:$0xff] }
 0x817   :  { %v2999_v14 = vunpack.c.l.s8.bf16 %v1063_v12  ;;  %v3015_v20 = vunpack.c.h.s8.bf16 %v1063_v12 }
 0x819   :  { %5446 = vmatpush1.bf16.msra.mxu0 %v2871_v15  ;;  %5774 = vmatpush1.bf16.msra.mxu1 %v2873_v30  ;;  %v3001_v15 = vunpack.c.l.s8.bf16 %v1065_v13  ;;  %v3018_v30 = vunpack.c.h.s8.bf16 %v1066_v8 }
 0x81a   :  { %5447 = vmatprep.subr.bf16.mxu0 %v2888_v19  ;;  %5775 = vmatprep.subr.bf16.mxu1 %v2890_v21  ;;  %v1080_v19 = vld [vmem:[#allocation8 + $0x1d68] sm:$0xff]  ;;  %v1082_v21 = vld [vmem:[#allocation8 + $0x1d78] sm:$0xff] }
 0x81b   :  { %v3048_v39 = vunpack.c.h.s8.bf16 %v1080_v19 }
 0x81d   :  { %5448 = vmatpush1.bf16.msra.mxu0 %v2887_v53  ;;  %5776 = vmatpush1.bf16.msra.mxu1 %v2889_v35  ;;  %v3032_v53 = vunpack.c.l.s8.bf16 %v1080_v19  ;;  %v3034_v35 = vunpack.c.l.s8.bf16 %v1082_v21  ;;  %v1146_v19 = vld [vmem:[#allocation8 + $0x1f78] sm:$0xff] }
 0x81e   :  { %5449 = vmatprep.subr.bf16.mxu0 %v2904_v29  ;;  %5777 = vmatprep.subr.bf16.mxu1 %v2906_v32  ;;  %v1079_v29 = vld [vmem:[#allocation8 + $0x1d60] sm:$0xff] }
 0x81f   :  { %v3031_v32 = vunpack.c.l.s8.bf16 %v1079_v29 }
 0x821   :  { %5450 = vmatpush1.bf16.msra.mxu0 %v2903_v31  ;;  %5778 = vmatpush1.bf16.msra.mxu1 %v2905_v34  ;;  %v3050_v31 = vunpack.c.h.s8.bf16 %v1082_v21  ;;  %v1096_v34 = vld [vmem:[#allocation8 + $0x1de8] sm:$0xff] }
 0x822   :  { %5451 = vmatprep.subr.bf16.mxu0 %v2920_v43  ;;  %5779 = vmatprep.subr.bf16.mxu1 %v2922_v36  ;;  %v1098_v43 = vld [vmem:[#allocation8 + $0x1df8] sm:$0xff]  ;;  %v3047_v36 = vunpack.c.h.s8.bf16 %v1079_v29  ;;  %v3064_v38 = vunpack.c.l.s8.bf16 %v1096_v34  ;;  %v3080_v50 = vunpack.c.h.s8.bf16 %v1096_v34  ;;  %v3162_v29 = vunpack.c.l.s8.bf16 %v1146_v19 }
 0x823   :  { %v5836_v21 = vld [vmem:[#allocation12 + $0x5] ss:$8 sm:$0xf]  ;;  %v5942_v34 = vld [vmem:[#allocation12] ss:$8 sm:$0xf0] }
 0x825   :  { %5452 = vmatpush1.bf16.msra.mxu0 %v2919_v40  ;;  %5780 = vmatpush1.bf16.msra.mxu1 %v2921_v41  ;;  %v3066_v40 = vunpack.c.l.s8.bf16 %v1098_v43  ;;  %v1095_v41 = vld [vmem:[#allocation8 + $0x1de0] sm:$0xff] }
 0x826   :  { %5453 = vmatprep.subr.bf16.mxu0 %v2936_v48  ;;  %5781 = vmatprep.subr.bf16.mxu1 %v2938_v49  ;;  %v1097_v48 = vld [vmem:[#allocation8 + $0x1df0] sm:$0xff]  ;;  %v3063_v49 = vunpack.c.l.s8.bf16 %v1095_v41 }
 0x827   :  { %v3065_v51 = vunpack.c.l.s8.bf16 %v1097_v48  ;;  %v3081_v56 = vunpack.c.h.s8.bf16 %v1097_v48  ;;  %v1160_v48 = vld [vmem:[#allocation8 + $0x1fe8] sm:$0xff] }
 0x829   :  { %5454 = vmatpush1.bf16.msra.mxu0 %v2935_v18  ;;  %5782 = vmatpush1.bf16.msra.mxu1 %v2937_v52  ;;  %v3082_v18 = vunpack.c.h.s8.bf16 %v1098_v43  ;;  %v1112_v52 = vld [vmem:[#allocation8 + $0x1e68] sm:$0xff] }
 0x82a   :  { %5455 = vmatprep.subr.bf16.mxu0 %v2952_v54  ;;  %5783 = vmatprep.subr.bf16.mxu1 %v2954_v55  ;;  %v1114_v54 = vld [vmem:[#allocation8 + $0x1e78] sm:$0xff]  ;;  %v3079_v55 = vunpack.c.h.s8.bf16 %v1095_v41  ;;  %v3096_v57 = vunpack.c.l.s8.bf16 %v1112_v52  ;;  %v3112_v61 = vunpack.c.h.s8.bf16 %v1112_v52 }
 0x82d   :  { %5456 = vmatpush1.bf16.msra.mxu0 %v2951_v62  ;;  %5784 = vmatpush1.bf16.msra.mxu1 %v2953_v58  ;;  %v3098_v62 = vunpack.c.l.s8.bf16 %v1114_v54  ;;  %v1111_v58 = vld [vmem:[#allocation8 + $0x1e60] sm:$0xff] }
 0x82e   :  { %5466 = vmatprep.subr.bf16.mxu0 %v2968_v59  ;;  %5794 = vmatprep.subr.bf16.mxu1 %v2970_v60  ;;  %v1113_v59 = vld [vmem:[#allocation8 + $0x1e70] sm:$0xff]  ;;  %v3095_v60 = vunpack.c.l.s8.bf16 %v1111_v58 }
 0x82f   :  { %v3097_v25 = vunpack.c.l.s8.bf16 %v1113_v59 }
 0x830   :  { %5458 = vmatmul.mubr.bf16.vlgmr.msra.gmra.mrb[12].mxu0 %v12972_v16  ;;  %5786 = vmatmul.mubr.bf16.vlgmr.msra.gmra.mrb[12].mxu1 %v12972_v16  ;;  %v3016_v16 = vunpack.c.h.s8.bf16 %v1064_v2  ;;  %v3113_v2 = vunpack.c.h.s8.bf16 %v1113_v59  ;;  %v3208_v59 = vunpack.c.h.s8.bf16 %v1160_v48 }
 0x831   :  { %5467 = vmatpush1.bf16.msra.mxu0 %v2967_v63  ;;  %5795 = vmatpush1.bf16.msra.mxu1 %v2969_v0  ;;  %v3114_v63 = vunpack.c.h.s8.bf16 %v1114_v54  ;;  %v1128_v0 = vld [vmem:[#allocation8 + $0x1ee8] sm:$0xff]  ;;  %v1159_v54 = vld [vmem:[#allocation8 + $0x1fe0] sm:$0xff] }
 0x832   :  { %5468 = vmatprep.subr.bf16.mxu0 %v2984_v1  ;;  %5796 = vmatprep.subr.bf16.mxu1 %v2986_v5  ;;  %v1130_v1 = vld [vmem:[#allocation8 + $0x1ef8] sm:$0xff]  ;;  %v3111_v5 = vunpack.c.h.s8.bf16 %v1111_v58  ;;  %v3128_v8 = vunpack.c.l.s8.bf16 %v1128_v0 }
 0x833   :  { %5498 = vmatprep.mubr.bf16.mxu0 %v12974_v27  ;;  %5826 = vmatprep.mubr.bf16.mxu1 %v12974_v27  ;;  %v1081_v27 = vld [vmem:[#allocation8 + $0x1d70] sm:$0xff] }
 0x834   :  { %v3033_v33 = vunpack.c.l.s8.bf16 %v1081_v27  ;;  %v3049_v37 = vunpack.c.h.s8.bf16 %v1081_v27  ;;  %v1143_v27 = vld [vmem:[#allocation8 + $0x1f60] sm:$0xff] }
 0x835   :  { %5469 = vmatpush1.bf16.msra.mxu0 %v2983_v9  ;;  %5797 = vmatpush1.bf16.msra.mxu1 %v2985_v10  ;;  %v3130_v9 = vunpack.c.l.s8.bf16 %v1130_v1  ;;  %v1127_v10 = vld [vmem:[#allocation8 + $0x1ee0] sm:$0xff]  ;;  %v3159_v43 = vunpack.c.l.s8.bf16 %v1143_v27 }
 0x836   :  { %5470 = vmatprep.subr.bf16.mxu0 %v3000_v45  ;;  %5798 = vmatprep.subr.bf16.mxu1 %v3002_v11  ;;  %v1129_v45 = vld [vmem:[#allocation8 + $0x1ef0] sm:$0xff]  ;;  %v5845_v11 = vlaneseq  ;;  %v3127_v12 = vunpack.c.l.s8.bf16 %v1127_v10 }
 0x837   :  { %v3129_v13 = vunpack.c.l.s8.bf16 %v1129_v45 }
 0x839   :  { %5471 = vmatpush1.bf16.msra.mxu0 %v2999_v14  ;;  %5799 = vmatpush1.bf16.msra.mxu1 %v3001_v15  ;;  %v3144_v14 = vunpack.c.h.s8.bf16 %v1128_v0  ;;  %v3146_v15 = vunpack.c.h.s8.bf16 %v1130_v1  ;;  %v11723_v0 = vld [vmem:[#allocation9 + $0x4] ss:$16 sps:$4 sm:$0xff]  }
 0x83a   :  { %5472 = vmatprep.subr.bf16.mxu0 %v3016_v16  ;;  %5800 = vmatprep.subr.bf16.mxu1 %v3018_v30  ;;  %v13102_v16 = vshrl.u32 %v5845_v11, 7  ;;  %v1144_v30 = vld [vmem:[#allocation8 + $0x1f68] sm:$0xff] }
 0x83b   :  { %v11730_v11 = vld [vmem:[#allocation9 + $0x28] ss:$16 sps:$4 sm:$0xff]  }
 0x83d   :  { %5473 = vmatpush1.bf16.msra.mxu0 %v3015_v20  ;;  %5801 = vmatpush1.bf16.msra.mxu1 %v3017_v22  ;;  %v5837_v20 = vld [vmem:[#allocation12 + $0x5] ss:$8 sm:$0xf0]  ;;  %v3143_v22 = vunpack.c.h.s8.bf16 %v1127_v10 }
 0x83e   :  { %5474 = vmatprep.subr.bf16.mxu0 %v3032_v53  ;;  %5802 = vmatprep.subr.bf16.mxu1 %v3034_v35  ;;  %v3145_v53 = vunpack.c.h.s8.bf16 %v1129_v45  ;;  %v3160_v35 = vunpack.c.l.s8.bf16 %v1144_v30  ;;  %v11732_v10 = vld [vmem:[#allocation9 + $0x2c] ss:$16 sps:$4 sm:$0xff]   ;;  %v11727_v45 = vld [vmem:[#allocation9 + $0x20] ss:$16 sps:$4 sm:$0xff]  }
 0x841   :  { %5475 = vmatpush1.bf16.msra.mxu0 %v3031_v32  ;;  %5803 = vmatpush1.bf16.msra.mxu1 %v3033_v33  ;;  %v1145_v32 = vld [vmem:[#allocation8 + $0x1f70] sm:$0xff]  ;;  %v13104_v33 = vor.u32 %v5837_v20, %v5836_v21  ;;  %v11742_v21 = vld [vmem:[#allocation9 + $0x68] ss:$16 sps:$4 sm:$0xff]  }
 0x842   :  { %5476 = vmatprep.subr.bf16.mxu0 %v3048_v39  ;;  %5804 = vmatprep.subr.bf16.mxu1 %v3050_v31  ;;  %v13107_v39 = vsub.s32 1, %v13102_v16  ;;  %v5941_v31 = vld [vmem:[#allocation12] ss:$8 sm:$0xf]  ;;  %v11747_v20 = vld [vmem:[#allocation9 + $0x84] ss:$16 sps:$4 sm:$0xff]  }
 0x844   :  { %v5852_v41 = vrot.slane %v13104_v33, %v13107_v39 }
 0x845   :  { %5477 = vmatpush1.bf16.msra.mxu0 %v3047_v36  ;;  %5805 = vmatpush1.bf16.msra.mxu1 %v3049_v37  ;;  %v3161_v36 = vunpack.c.l.s8.bf16 %v1145_v32  ;;  %v3176_v37 = vunpack.c.h.s8.bf16 %v1144_v30  ;;  %v11741_v30 = vld [vmem:[#allocation9 + $0x64] ss:$16 sps:$4 sm:$0xff]  }
 0x846   :  { %5478 = vmatprep.subr.bf16.mxu0 %v3064_v38  ;;  %5806 = vmatprep.subr.bf16.mxu1 %v3066_v40  ;;  %v3178_v38 = vunpack.c.h.s8.bf16 %v1146_v19  ;;  %v13109_v40 = vor.u32 %v5942_v34, %v5941_v31  ;;  %v11744_v19 = vld [vmem:[#allocation9 + $0x6c] ss:$16 sps:$4 sm:$0xff]   ;;  %v11754_v31 = vld [vmem:[#allocation9 + $0xa8] ss:$16 sps:$4 sm:$0xff]   ;;  %v11759_v34 = vld [vmem:[#allocation9 + $0xc4] ss:$16 sps:$4 sm:$0xff]  }
 0x849   :  { %5479 = vmatpush1.bf16.msra.mxu0 %v3063_v49  ;;  %5807 = vmatpush1.bf16.msra.mxu1 %v3065_v51  ;;  %v1162_v49 = vld [vmem:[#allocation8 + $0x1ff8] sm:$0xff]  ;;  %v3175_v51 = vunpack.c.h.s8.bf16 %v1143_v27 }
 0x84a   :  { %5480 = vmatprep.subr.bf16.mxu0 %v3080_v50  ;;  %5808 = vmatprep.subr.bf16.mxu1 %v3082_v18  ;;  %v3177_v50 = vunpack.c.h.s8.bf16 %v1145_v32  ;;  %v3192_v18 = vunpack.c.l.s8.bf16 %v1160_v48  ;;  %v3194_v52 = vunpack.c.l.s8.bf16 %v1162_v49  ;;  %v11756_v27 = vld [vmem:[#allocation9 + $0xac] ss:$16 sps:$4 sm:$0xff]   ;;  %v11751_v32 = vld [vmem:[#allocation9 + $0xa0] ss:$16 sps:$4 sm:$0xff]  }
 0x84b   :  { %v11763_v48 = vld [vmem:[#allocation9 + $0xe0] ss:$16 sps:$4 sm:$0xff]  }
 0x84d   :  { %5481 = vmatpush1.bf16.msra.mxu0 %v3079_v55  ;;  %5809 = vmatpush1.bf16.msra.mxu1 %v3081_v56  ;;  %v1161_v55 = vld [vmem:[#allocation8 + $0x1ff0] sm:$0xff]  ;;  %v5926_v56 = vmul.f32 %v5852_v41, %v13002_v6  ;;  %v11726_v6 = vld [vmem:[#allocation9 + $0xc] ss:$16 sps:$4 sm:$0xff]  }
 0x84e   :  { %5482 = vmatprep.subr.bf16.mxu0 %v3096_v57  ;;  %5810 = vmatprep.subr.bf16.mxu1 %v3098_v62  ;;  %v5957_v57 = vrot.slane %v13109_v40, %v13107_v39  ;;  %v3191_v62 = vunpack.c.l.s8.bf16 %v1159_v54  ;;  %v3193_v58 = vunpack.c.l.s8.bf16 %v1161_v55  ;;  %v11768_v41 = vld [vmem:[#allocation9 + $0xec] ss:$16 sps:$4 sm:$0xff]  }
 0x851   :  { %5483 = vmatpush1.bf16.msra.mxu0 %v3095_v60  ;;  %5811 = vmatpush1.bf16.msra.mxu1 %v3097_v25  ;;  %v3210_v60 = vunpack.c.h.s8.bf16 %v1162_v49  ;;  %v6031_v25 = vadd.f32 %v5957_v57, %v5926_v56  ;;  %v11766_v49 = vld [vmem:[#allocation9 + $0xe8] ss:$16 sps:$4 sm:$0xff]   ;;  %v11775_v56 = vld [vmem:[#allocation9 + $0x120] ss:$16 sps:$4 sm:$0xff]  }
 0x852   :  { %5484 = vmatprep.subr.bf16.mxu0 %v3112_v61  ;;  %5812 = vmatprep.subr.bf16.mxu1 %v3114_v63  ;;  %v3207_v61 = vunpack.c.h.s8.bf16 %v1159_v54  ;;  %v3209_v63 = vunpack.c.h.s8.bf16 %v1161_v55  ;;  %v11777_v54 = vld [vmem:[#allocation9 + $0x124] ss:$16 sps:$4 sm:$0xff]   ;;  %v11780_v55 = vld [vmem:[#allocation9 + $0x12c] ss:$16 sps:$4 sm:$0xff]   ;;  %v11778_v57 = vld [vmem:[#allocation9 + $0x128] ss:$16 sps:$4 sm:$0xff]  }
 0x853   :  { %v6047_v1 = vmax.f32 %v6031_v25, 0.0  ;;  %v11789_v25 = vld [vmem:[#allocation9 + $0x164] ss:$16 sps:$4 sm:$0xff]  }
 0x855   :  { %5485 = vmatpush1.bf16.msra.mxu0 %v3111_v5  ;;  %5813 = vmatpush1.bf16.msra.mxu1 %v3113_v2  ;;  %v11721_v5 = vld [vmem:[#allocation9] ss:$16 sps:$4 sm:$0xff]   ;;  %v11724_v2 = vld [vmem:[#allocation9 + $0x8] ss:$16 sps:$4 sm:$0xff]  }
 0x856   :  { %5486 = vmatprep.subr.bf16.mxu0 %v3128_v8  ;;  %5814 = vmatprep.subr.bf16.mxu1 %v3130_v9  ;;  %v6063_v8 = vpack.c.bf16 %v6047_v1, %v6047_v1  ;;  %v11729_v9 = vld [vmem:[#allocation9 + $0x24] ss:$16 sps:$4 sm:$0xff]  }
 0x857   :  { %v11795_v1 = vld [vmem:[#allocation9 + $0x184] ss:$16 sps:$4 sm:$0xff]  }
 0x859   :  { %5487 = vmatpush1.bf16.msra.mxu0 %v3127_v12  ;;  %5815 = vmatpush1.bf16.msra.mxu1 %v3129_v13  ;;  %v11735_v12 = vld [vmem:[#allocation9 + $0x44] ss:$16 sps:$4 sm:$0xff]   ;;  %v11738_v13 = vld [vmem:[#allocation9 + $0x4c] ss:$16 sps:$4 sm:$0xff]  }
 0x85a   :  { %5488 = vmatprep.subr.bf16.mxu0 %v3144_v14  ;;  %5816 = vmatprep.subr.bf16.mxu1 %v3146_v15  ;;  %v11733_v14 = vld [vmem:[#allocation9 + $0x40] ss:$16 sps:$4 sm:$0xff]   ;;  %v11736_v15 = vld [vmem:[#allocation9 + $0x48] ss:$16 sps:$4 sm:$0xff]  }
 0x85d   :  { %5489 = vmatpush1.bf16.msra.mxu0 %v3143_v22  ;;  %5817 = vmatpush1.bf16.msra.mxu1 %v3145_v53  ;;  %v11750_v22 = vld [vmem:[#allocation9 + $0x8c] ss:$16 sps:$4 sm:$0xff]   ;;  %v11745_v53 = vld [vmem:[#allocation9 + $0x80] ss:$16 sps:$4 sm:$0xff]  }
 0x85e   :  { %5490 = vmatprep.subr.bf16.mxu0 %v3160_v35  ;;  %5818 = vmatprep.subr.bf16.mxu1 %v3162_v29  ;;  %v11748_v35 = vld [vmem:[#allocation9 + $0x88] ss:$16 sps:$4 sm:$0xff]   ;;  %v11753_v29 = vld [vmem:[#allocation9 + $0xa4] ss:$16 sps:$4 sm:$0xff]  }
 0x861   :  { %5491 = vmatpush1.bf16.msra.mxu0 %v3159_v43  ;;  %5819 = vmatpush1.bf16.msra.mxu1 %v3161_v36  ;;  %v11762_v43 = vld [vmem:[#allocation9 + $0xcc] ss:$16 sps:$4 sm:$0xff]   ;;  %v11757_v36 = vld [vmem:[#allocation9 + $0xc0] ss:$16 sps:$4 sm:$0xff]  }
 0x862   :  { %5492 = vmatprep.subr.bf16.mxu0 %v3176_v37  ;;  %5820 = vmatprep.subr.bf16.mxu1 %v3178_v38  ;;  %v11760_v37 = vld [vmem:[#allocation9 + $0xc8] ss:$16 sps:$4 sm:$0xff]   ;;  %v11765_v38 = vld [vmem:[#allocation9 + $0xe4] ss:$16 sps:$4 sm:$0xff]  }
 0x865   :  { %5493 = vmatpush1.bf16.msra.mxu0 %v3175_v51  ;;  %5821 = vmatpush1.bf16.msra.mxu1 %v3177_v50  ;;  %v11771_v51 = vld [vmem:[#allocation9 + $0x104] ss:$16 sps:$4 sm:$0xff]   ;;  %v11774_v50 = vld [vmem:[#allocation9 + $0x10c] ss:$16 sps:$4 sm:$0xff]  }
 0x866   :  { %5494 = vmatprep.subr.bf16.mxu0 %v3192_v18  ;;  %5822 = vmatprep.subr.bf16.mxu1 %v3194_v52  ;;  %v11769_v18 = vld [vmem:[#allocation9 + $0x100] ss:$16 sps:$4 sm:$0xff]   ;;  %v11772_v52 = vld [vmem:[#allocation9 + $0x108] ss:$16 sps:$4 sm:$0xff]  }
 0x869   :  { %5495 = vmatpush1.bf16.msra.mxu0 %v3191_v62  ;;  %5823 = vmatpush1.bf16.msra.mxu1 %v3193_v58  ;;  %v11783_v62 = vld [vmem:[#allocation9 + $0x144] ss:$16 sps:$4 sm:$0xff]   ;;  %v11786_v58 = vld [vmem:[#allocation9 + $0x14c] ss:$16 sps:$4 sm:$0xff]  }
 0x86a   :  { %5496 = vmatprep.subr.bf16.mxu0 %v3208_v59  ;;  %5824 = vmatprep.subr.bf16.mxu1 %v3210_v60  ;;  %v11781_v59 = vld [vmem:[#allocation9 + $0x140] ss:$16 sps:$4 sm:$0xff]   ;;  %v11784_v60 = vld [vmem:[#allocation9 + $0x148] ss:$16 sps:$4 sm:$0xff]  }
 0x86d   :  { %5497 = vmatpush1.bf16.msra.mxu0 %v3207_v61  ;;  %5825 = vmatpush1.bf16.msra.mxu1 %v3209_v63  ;;  %v11792_v61 = vld [vmem:[#allocation9 + $0x16c] ss:$16 sps:$4 sm:$0xff]   ;;  %v11787_v63 = vld [vmem:[#allocation9 + $0x160] ss:$16 sps:$4 sm:$0xff]  }
 0x86e   :  { %9173 = vmatprep.subr.bf16.mxu0 %v11723_v0  ;;  %9501 = vmatprep.subr.bf16.mxu1 %v11726_v6  ;;  %v13119_v0 = vsub.s32 0, %v13102_v16  ;;  %v11790_v6 = vld [vmem:[#allocation9 + $0x168] ss:$16 sps:$4 sm:$0xff]  }
 0x870   :  { %5499 = vmatmul.mubr.bf16.vlgmr.msra.gmra.mrb[12].mxu0 %v12980_v17  ;;  %5827 = vmatmul.mubr.bf16.vlgmr.msra.gmra.mrb[12].mxu1 %v12980_v17  ;;  %v11739_v17 = vld [vmem:[#allocation9 + $0x60] ss:$16 sps:$4 sm:$0xff]  }
 0x871   :  { %9174 = vmatpush1.bf16.msra.mxu0 %v11721_v5  ;;  %9205 = vmatprep.mubr.bf16.mxu0 %v6063_v8  ;;  %v11798_v5 = vld [vmem:[#allocation9 + $0x18c] ss:$16 sps:$4 sm:$0xff]  }
 0x872   :  { %9502 = vmatpush1.bf16.msra.mxu1 %v11724_v2  ;;  %9533 = vmatprep.mubr.bf16.mxu1 %v6063_v8  ;;  %v13122_v2 = vsub.s32 3, %v13102_v16  ;;  %v11793_v8 = vld [vmem:[#allocation9 + $0x180] ss:$16 sps:$4 sm:$0xff]  }
 0x873   :  { %9175 = vmatprep.subr.bf16.mxu0 %v11729_v9  ;;  %9503 = vmatprep.subr.bf16.mxu1 %v11732_v10  ;;  %v5848_v9 = vrot.slane %v13104_v33, %v13119_v0  ;;  %v11796_v10 = vld [vmem:[#allocation9 + $0x188] ss:$16 sps:$4 sm:$0xff]  }
 0x875   :  { %9176 = vmatpush1.bf16.msra.mxu0 %v11727_v45  ;;  %v11801_v45 = vld [vmem:[#allocation9 + $0x1a4] ss:$16 sps:$4 sm:$0xff]  }
 0x876   :  { %9504 = vmatpush1.bf16.msra.mxu1 %v11730_v11  ;;  %9177 = vmatprep.subr.bf16.mxu0 %v11735_v12  ;;  %v11804_v11 = vld [vmem:[#allocation9 + $0x1ac] ss:$16 sps:$4 sm:$0xff]   ;;  %v5860_v12 = vrot.slane %v13104_v33, %v13122_v2 }
 0x877   :  { %9505 = vmatprep.subr.bf16.mxu1 %v11738_v13  ;;  %v11799_v13 = vld [vmem:[#allocation9 + $0x1a0] ss:$16 sps:$4 sm:$0xff]  }
 0x879   :  { %9178 = vmatpush1.bf16.msra.mxu0 %v11733_v14  ;;  %v5925_v14 = vmul.f32 %v5848_v9, %v12998_v3  ;;  %v11808_v3 = vld [vmem:[#allocation9 + $0x1c8] ss:$16 sps:$4 sm:$0xff]   ;;  %v11855_v9 = vld [vmem:[#allocation9 + $0x2c4] ss:$16 sps:$4 sm:$0xff]  }
 0x87a   :  { %9506 = vmatpush1.bf16.msra.mxu1 %v11736_v15  ;;  %9179 = vmatprep.subr.bf16.mxu0 %v11741_v30  ;;  %v5953_v15 = vrot.slane %v13109_v40, %v13119_v0  ;;  %v11802_v30 = vld [vmem:[#allocation9 + $0x1a8] ss:$16 sps:$4 sm:$0xff]  }
 0x87b   :  { %9507 = vmatprep.subr.bf16.mxu1 %v11744_v19  ;;  %v11807_v19 = vld [vmem:[#allocation9 + $0x1c4] ss:$16 sps:$4 sm:$0xff]  }
 0x87d   :  { %9180 = vmatpush1.bf16.msra.mxu0 %v11739_v17  ;;  %v11810_v17 = vld [vmem:[#allocation9 + $0x1cc] ss:$16 sps:$4 sm:$0xff]  }
 0x87e   :  { %9508 = vmatpush1.bf16.msra.mxu1 %v11742_v21  ;;  %9181 = vmatprep.subr.bf16.mxu0 %v11747_v20  ;;  %v5928_v21 = vmul.f32 %v5860_v12, %v13004_v7  ;;  %v5965_v20 = vrot.slane %v13109_v40, %v13122_v2  ;;  %v11819_v7 = vld [vmem:[#allocation9 + $0x204] ss:$16 sps:$4 sm:$0xff]  }
 0x87f   :  { %9509 = vmatprep.subr.bf16.mxu1 %v11750_v22  ;;  %v11805_v22 = vld [vmem:[#allocation9 + $0x1c0] ss:$16 sps:$4 sm:$0xff]   ;;  %v11861_v12 = vld [vmem:[#allocation9 + $0x2e4] ss:$16 sps:$4 sm:$0xff]  }
 0x881   :  { %9182 = vmatpush1.bf16.msra.mxu0 %v11745_v53  ;;  %v6030_v53 = vadd.f32 %v5953_v15, %v5925_v14  ;;  %v11859_v14 = vld [vmem:[#allocation9 + $0x2e0] ss:$16 sps:$4 sm:$0xff]   ;;  %v11862_v15 = vld [vmem:[#allocation9 + $0x2e8] ss:$16 sps:$4 sm:$0xff]  }
 0x882   :  { %9510 = vmatpush1.bf16.msra.mxu1 %v11748_v35  ;;  %9183 = vmatprep.subr.bf16.mxu0 %v11753_v29  ;;  %v11813_v35 = vld [vmem:[#allocation9 + $0x1e4] ss:$16 sps:$4 sm:$0xff]   ;;  %v11816_v29 = vld [vmem:[#allocation9 + $0x1ec] ss:$16 sps:$4 sm:$0xff]  }
 0x883   :  { %9511 = vmatprep.subr.bf16.mxu1 %v11756_v27  ;;  %v6033_v27 = vadd.f32 %v5965_v20, %v5928_v21  ;;  %v11868_v21 = vld [vmem:[#allocation9 + $0x308] ss:$16 sps:$4 sm:$0xff]   ;;  %v11873_v20 = vld [vmem:[#allocation9 + $0x324] ss:$16 sps:$4 sm:$0xff]  }
 0x885   :  { %9184 = vmatpush1.bf16.msra.mxu0 %v11751_v32  ;;  %v11811_v32 = vld [vmem:[#allocation9 + $0x1e0] ss:$16 sps:$4 sm:$0xff]  }
 0x886   :  { %9512 = vmatpush1.bf16.msra.mxu1 %v11754_v31  ;;  %9185 = vmatprep.subr.bf16.mxu0 %v11759_v34  ;;  %v6046_v31 = vmax.f32 %v6030_v53, 0.0  ;;  %v11814_v34 = vld [vmem:[#allocation9 + $0x1e8] ss:$16 sps:$4 sm:$0xff]   ;;  %v11871_v53 = vld [vmem:[#allocation9 + $0x320] ss:$16 sps:$4 sm:$0xff]  }
 0x887   :  { %9513 = vmatprep.subr.bf16.mxu1 %v11762_v43  ;;  %v11822_v43 = vld [vmem:[#allocation9 + $0x20c] ss:$16 sps:$4 sm:$0xff]  }
 0x889   :  { %9186 = vmatpush1.bf16.msra.mxu0 %v11757_v36  ;;  %v6049_v36 = vmax.f32 %v6033_v27, 0.0  ;;  %v11877_v27 = vld [vmem:[#allocation9 + $0x340] ss:$16 sps:$4 sm:$0xff]  }
 0x88a   :  { %9514 = vmatpush1.bf16.msra.mxu1 %v11760_v37  ;;  %9187 = vmatprep.subr.bf16.mxu0 %v11765_v38  ;;  %v11817_v37 = vld [vmem:[#allocation9 + $0x200] ss:$16 sps:$4 sm:$0xff]   ;;  %v6062_v38 = vpack.c.bf16 %v6046_v31, %v6046_v31  ;;  %v11885_v31 = vld [vmem:[#allocation9 + $0x364] ss:$16 sps:$4 sm:$0xff]  }
 0x88b   :  { %9515 = vmatprep.subr.bf16.mxu1 %v11768_v41  ;;  %v11820_v41 = vld [vmem:[#allocation9 + $0x208] ss:$16 sps:$4 sm:$0xff]  }
 0x88d   :  { %9188 = vmatpush1.bf16.msra.mxu0 %v11763_v48  ;;  %v11825_v48 = vld [vmem:[#allocation9 + $0x224] ss:$16 sps:$4 sm:$0xff]  }
 0x88e   :  { %9516 = vmatpush1.bf16.msra.mxu1 %v11766_v49  ;;  %9189 = vmatprep.subr.bf16.mxu0 %v11771_v51  ;;  %v6065_v49 = vpack.c.bf16 %v6049_v36, %v6049_v36  ;;  %v11828_v51 = vld [vmem:[#allocation9 + $0x22c] ss:$16 sps:$4 sm:$0xff]   ;;  %v11886_v36 = vld [vmem:[#allocation9 + $0x368] ss:$16 sps:$4 sm:$0xff]  }
 0x88f   :  { %9517 = vmatprep.subr.bf16.mxu1 %v11774_v50  ;;  %v11823_v50 = vld [vmem:[#allocation9 + $0x220] ss:$16 sps:$4 sm:$0xff]  }
 0x891   :  { %9190 = vmatpush1.bf16.msra.mxu0 %v11769_v18  ;;  %v11826_v18 = vld [vmem:[#allocation9 + $0x228] ss:$16 sps:$4 sm:$0xff]  }
 0x892   :  { %9518 = vmatpush1.bf16.msra.mxu1 %v11772_v52  ;;  %9191 = vmatprep.subr.bf16.mxu0 %v11777_v54  ;;  %v11831_v52 = vld [vmem:[#allocation9 + $0x244] ss:$16 sps:$4 sm:$0xff]   ;;  %v11834_v54 = vld [vmem:[#allocation9 + $0x24c] ss:$16 sps:$4 sm:$0xff]  }
 0x893   :  { %9519 = vmatprep.subr.bf16.mxu1 %v11780_v55  ;;  %v11829_v55 = vld [vmem:[#allocation9 + $0x240] ss:$16 sps:$4 sm:$0xff]  }
 0x895   :  { %9192 = vmatpush1.bf16.msra.mxu0 %v11775_v56  ;;  %v11832_v56 = vld [vmem:[#allocation9 + $0x248] ss:$16 sps:$4 sm:$0xff]  }
 0x896   :  { %9520 = vmatpush1.bf16.msra.mxu1 %v11778_v57  ;;  %9193 = vmatprep.subr.bf16.mxu0 %v11783_v62  ;;  %v11837_v57 = vld [vmem:[#allocation9 + $0x264] ss:$16 sps:$4 sm:$0xff]   ;;  %v11840_v62 = vld [vmem:[#allocation9 + $0x26c] ss:$16 sps:$4 sm:$0xff]  }
 0x897   :  { %9521 = vmatprep.subr.bf16.mxu1 %v11786_v58  ;;  %v11835_v58 = vld [vmem:[#allocation9 + $0x260] ss:$16 sps:$4 sm:$0xff]  }
 0x899   :  { %9194 = vmatpush1.bf16.msra.mxu0 %v11781_v59  ;;  %v11838_v59 = vld [vmem:[#allocation9 + $0x268] ss:$16 sps:$4 sm:$0xff]  }
 0x89a   :  { %9522 = vmatpush1.bf16.msra.mxu1 %v11784_v60  ;;  %9195 = vmatprep.subr.bf16.mxu0 %v11789_v25  ;;  %v11843_v60 = vld [vmem:[#allocation9 + $0x284] ss:$16 sps:$4 sm:$0xff]   ;;  %v11846_v25 = vld [vmem:[#allocation9 + $0x28c] ss:$16 sps:$4 sm:$0xff]  }
 0x89b   :  { %9523 = vmatprep.subr.bf16.mxu1 %v11792_v61  ;;  %v11841_v61 = vld [vmem:[#allocation9 + $0x280] ss:$16 sps:$4 sm:$0xff]  }
 0x89d   :  { %9196 = vmatpush1.bf16.msra.mxu0 %v11787_v63  ;;  %v11844_v63 = vld [vmem:[#allocation9 + $0x288] ss:$16 sps:$4 sm:$0xff]  }
 0x89e   :  { %9524 = vmatpush1.bf16.msra.mxu1 %v11790_v6  ;;  %9197 = vmatprep.subr.bf16.mxu0 %v11795_v1  ;;  %v11849_v6 = vld [vmem:[#allocation9 + $0x2a4] ss:$16 sps:$4 sm:$0xff]   ;;  %v11852_v1 = vld [vmem:[#allocation9 + $0x2ac] ss:$16 sps:$4 sm:$0xff]  }
 0x89f   :  { %9525 = vmatprep.subr.bf16.mxu1 %v11798_v5  ;;  %v11847_v5 = vld [vmem:[#allocation9 + $0x2a0] ss:$16 sps:$4 sm:$0xff]  }
 0x8a1   :  { %9198 = vmatpush1.bf16.msra.mxu0 %v11793_v8  ;;  %v11850_v8 = vld [vmem:[#allocation9 + $0x2a8] ss:$16 sps:$4 sm:$0xff]  }
 0x8a2   :  { %9526 = vmatpush1.bf16.msra.mxu1 %v11796_v10  ;;  %9199 = vmatprep.subr.bf16.mxu0 %v11801_v45  ;;  %v11858_v10 = vld [vmem:[#allocation9 + $0x2cc] ss:$16 sps:$4 sm:$0xff]   ;;  %v11853_v45 = vld [vmem:[#allocation9 + $0x2c0] ss:$16 sps:$4 sm:$0xff]  }
 0x8a3   :  { %9527 = vmatprep.subr.bf16.mxu1 %v11804_v11  ;;  %v11856_v11 = vld [vmem:[#allocation9 + $0x2c8] ss:$16 sps:$4 sm:$0xff]  }
 0x8a5   :  { %9200 = vmatpush1.bf16.msra.mxu0 %v11799_v13  ;;  %v11864_v13 = vld [vmem:[#allocation9 + $0x2ec] ss:$16 sps:$4 sm:$0xff]  }
 0x8a6   :  { %9528 = vmatpush1.bf16.msra.mxu1 %v11802_v30  ;;  %9201 = vmatprep.subr.bf16.mxu0 %v11807_v19  ;;  %v11867_v30 = vld [vmem:[#allocation9 + $0x304] ss:$16 sps:$4 sm:$0xff]   ;;  %v11870_v19 = vld [vmem:[#allocation9 + $0x30c] ss:$16 sps:$4 sm:$0xff]  }
 0x8a7   :  { %9529 = vmatprep.subr.bf16.mxu1 %v11810_v17  ;;  %v11865_v17 = vld [vmem:[#allocation9 + $0x300] ss:$16 sps:$4 sm:$0xff]  }
 0x8a9   :  { %9202 = vmatpush1.bf16.msra.mxu0 %v11805_v22  ;;  %v11876_v22 = vld [vmem:[#allocation9 + $0x32c] ss:$16 sps:$4 sm:$0xff]  }
 0x8aa   :  { %9530 = vmatpush1.bf16.msra.mxu1 %v11808_v3  ;;  %9203 = vmatprep.subr.bf16.mxu0 %v11813_v35  ;;  %v11874_v3 = vld [vmem:[#allocation9 + $0x328] ss:$16 sps:$4 sm:$0xff]   ;;  %v11879_v35 = vld [vmem:[#allocation9 + $0x344] ss:$16 sps:$4 sm:$0xff]  }
 0x8ab   :  { %9531 = vmatprep.subr.bf16.mxu1 %v11816_v29  ;;  %v11882_v29 = vld [vmem:[#allocation9 + $0x34c] ss:$16 sps:$4 sm:$0xff]  }
 0x8ad   :  { %9204 = vmatpush1.bf16.msra.mxu0 %v11811_v32  ;;  %v11880_v32 = vld [vmem:[#allocation9 + $0x348] ss:$16 sps:$4 sm:$0xff]  }
 0x8ae   :  { %9532 = vmatpush1.bf16.msra.mxu1 %v11814_v34  ;;  %9214 = vmatprep.subr.bf16.mxu0 %v11819_v7  ;;  %v11888_v34 = vld [vmem:[#allocation9 + $0x36c] ss:$16 sps:$4 sm:$0xff]   ;;  %v11883_v7 = vld [vmem:[#allocation9 + $0x360] ss:$16 sps:$4 sm:$0xff]  }
 0x8af   :  { %9542 = vmatprep.subr.bf16.mxu1 %v11822_v43  ;;  %v13135_v43 = vsub.s32 2, %v13102_v16 }
 0x8b0   :  { %9206 = vmatmul.mubr.bf16.vlgmr.msra.gmra.mrb[16].mxu0 %v6062_v38 }
 0x8b1   :  { %9534 = vmatmul.mubr.bf16.vlgmr.msra.gmra.mrb[16].mxu1 %v6062_v38  ;;  %9215 = vmatpush1.bf16.msra.mxu0 %v11817_v37  ;;  %v11891_v37 = vld [vmem:[#allocation9 + $0x384] ss:$16 sps:$4 sm:$0xff]   ;;  %v11894_v38 = vld [vmem:[#allocation9 + $0x38c] ss:$16 sps:$4 sm:$0xff]  }
 0x8b2   :  { %9246 = vmatprep.mubr.bf16.mxu0 %v6065_v49  ;;  %9543 = vmatpush1.bf16.msra.mxu1 %v11820_v41  ;;  %v13138_v41 = vsub.s32 5, %v13102_v16 }
 0x8b3   :  { %9574 = vmatprep.mubr.bf16.mxu1 %v6065_v49  ;;  %9216 = vmatprep.subr.bf16.mxu0 %v11825_v48  ;;  %v11889_v48 = vld [vmem:[#allocation9 + $0x380] ss:$16 sps:$4 sm:$0xff]   ;;  %v5856_v49 = vrot.slane %v13104_v33, %v13135_v43 }
 0x8b4   :  { %9544 = vmatprep.subr.bf16.mxu1 %v11828_v51  ;;  %v11892_v51 = vld [vmem:[#allocation9 + $0x388] ss:$16 sps:$4 sm:$0xff]  }
 0x8b5   :  { %9217 = vmatpush1.bf16.msra.mxu0 %v11823_v50  ;;  %v11897_v50 = vld [vmem:[#allocation9 + $0x3a4] ss:$16 sps:$4 sm:$0xff]  }
 0x8b6   :  { %9545 = vmatpush1.bf16.msra.mxu1 %v11826_v18  ;;  %9218 = vmatprep.subr.bf16.mxu0 %v11831_v52  ;;  %v11900_v18 = vld [vmem:[#allocation9 + $0x3ac] ss:$16 sps:$4 sm:$0xff]   ;;  %v5868_v52 = vrot.slane %v13104_v33, %v13138_v41 }
 0x8b7   :  { %9546 = vmatprep.subr.bf16.mxu1 %v11834_v54  ;;  %v11895_v54 = vld [vmem:[#allocation9 + $0x3a0] ss:$16 sps:$4 sm:$0xff]  }
 0x8b9   :  { %9219 = vmatpush1.bf16.msra.mxu0 %v11829_v55  ;;  %v5927_v55 = vmul.f32 %v5856_v49, %v13000_v4  ;;  %v11904_v4 = vld [vmem:[#allocation9 + $0x3c8] ss:$16 sps:$4 sm:$0xff]   ;;  %v11951_v49 = vld [vmem:[#allocation9 + $0x4c4] ss:$16 sps:$4 sm:$0xff]  }
 0x8ba   :  { %9547 = vmatpush1.bf16.msra.mxu1 %v11832_v56  ;;  %9220 = vmatprep.subr.bf16.mxu0 %v11837_v57  ;;  %v5961_v56 = vrot.slane %v13109_v40, %v13135_v43  ;;  %v11898_v57 = vld [vmem:[#allocation9 + $0x3a8] ss:$16 sps:$4 sm:$0xff]  }
 0x8bb   :  { %9548 = vmatprep.subr.bf16.mxu1 %v11840_v62  ;;  %v11903_v62 = vld [vmem:[#allocation9 + $0x3c4] ss:$16 sps:$4 sm:$0xff]  }
 0x8bd   :  { %9221 = vmatpush1.bf16.msra.mxu0 %v11835_v58  ;;  %v11906_v58 = vld [vmem:[#allocation9 + $0x3cc] ss:$16 sps:$4 sm:$0xff]  }
 0x8be   :  { %9549 = vmatpush1.bf16.msra.mxu1 %v11838_v59  ;;  %9222 = vmatprep.subr.bf16.mxu0 %v11843_v60  ;;  %v5930_v59 = vmul.f32 %v5868_v52, %v13042_v46  ;;  %v5973_v60 = vrot.slane %v13109_v40, %v13138_v41  ;;  %v11915_v46 = vld [vmem:[#allocation9 + $0x404] ss:$16 sps:$4 sm:$0xff]  }
 0x8bf   :  { %9550 = vmatprep.subr.bf16.mxu1 %v11846_v25  ;;  %v11901_v25 = vld [vmem:[#allocation9 + $0x3c0] ss:$16 sps:$4 sm:$0xff]   ;;  %v11957_v52 = vld [vmem:[#allocation9 + $0x4e4] ss:$16 sps:$4 sm:$0xff]  }
 0x8c1   :  { %9223 = vmatpush1.bf16.msra.mxu0 %v11841_v61  ;;  %v6032_v61 = vadd.f32 %v5961_v56, %v5927_v55  ;;  %v11955_v55 = vld [vmem:[#allocation9 + $0x4e0] ss:$16 sps:$4 sm:$0xff]   ;;  %v11958_v56 = vld [vmem:[#allocation9 + $0x4e8] ss:$16 sps:$4 sm:$0xff]  }
 0x8c2   :  { %9551 = vmatpush1.bf16.msra.mxu1 %v11844_v63  ;;  %9224 = vmatprep.subr.bf16.mxu0 %v11849_v6  ;;  %v11909_v63 = vld [vmem:[#allocation9 + $0x3e4] ss:$16 sps:$4 sm:$0xff]   ;;  %v11912_v6 = vld [vmem:[#allocation9 + $0x3ec] ss:$16 sps:$4 sm:$0xff]  }
 0x8c3   :  { %9552 = vmatprep.subr.bf16.mxu1 %v11852_v1  ;;  %v6035_v1 = vadd.f32 %v5973_v60, %v5930_v59  ;;  %v11964_v59 = vld [vmem:[#allocation9 + $0x508] ss:$16 sps:$4 sm:$0xff]   ;;  %v11969_v60 = vld [vmem:[#allocation9 + $0x524] ss:$16 sps:$4 sm:$0xff]  }
 0x8c5   :  { %9225 = vmatpush1.bf16.msra.mxu0 %v11847_v5  ;;  %v11907_v5 = vld [vmem:[#allocation9 + $0x3e0] ss:$16 sps:$4 sm:$0xff]  }
 0x8c6   :  { %9553 = vmatpush1.bf16.msra.mxu1 %v11850_v8  ;;  %9226 = vmatprep.subr.bf16.mxu0 %v11855_v9  ;;  %v6048_v8 = vmax.f32 %v6032_v61, 0.0  ;;  %v11910_v9 = vld [vmem:[#allocation9 + $0x3e8] ss:$16 sps:$4 sm:$0xff]   ;;  %v11967_v61 = vld [vmem:[#allocation9 + $0x520] ss:$16 sps:$4 sm:$0xff]  }
 0x8c7   :  { %9554 = vmatprep.subr.bf16.mxu1 %v11858_v10  ;;  %v11918_v10 = vld [vmem:[#allocation9 + $0x40c] ss:$16 sps:$4 sm:$0xff]  }
 0x8c9   :  { %9227 = vmatpush1.bf16.msra.mxu0 %v11853_v45  ;;  %v6051_v45 = vmax.f32 %v6035_v1, 0.0  ;;  %v11973_v1 = vld [vmem:[#allocation9 + $0x540] ss:$16 sps:$4 sm:$0xff]  }
 0x8ca   :  { %9555 = vmatpush1.bf16.msra.mxu1 %v11856_v11  ;;  %9228 = vmatprep.subr.bf16.mxu0 %v11861_v12  ;;  %v11913_v11 = vld [vmem:[#allocation9 + $0x400] ss:$16 sps:$4 sm:$0xff]   ;;  %v6064_v12 = vpack.c.bf16 %v6048_v8, %v6048_v8  ;;  %v11981_v8 = vld [vmem:[#allocation9 + $0x564] ss:$16 sps:$4 sm:$0xff]  }
 0x8cb   :  { %9556 = vmatprep.subr.bf16.mxu1 %v11864_v13  ;;  %v11916_v13 = vld [vmem:[#allocation9 + $0x408] ss:$16 sps:$4 sm:$0xff]  }
 0x8cd   :  { %9229 = vmatpush1.bf16.msra.mxu0 %v11859_v14  ;;  %v11921_v14 = vld [vmem:[#allocation9 + $0x424] ss:$16 sps:$4 sm:$0xff]  }
 0x8ce   :  { %9557 = vmatpush1.bf16.msra.mxu1 %v11862_v15  ;;  %9230 = vmatprep.subr.bf16.mxu0 %v11867_v30  ;;  %v6067_v15 = vpack.c.bf16 %v6051_v45, %v6051_v45  ;;  %v11924_v30 = vld [vmem:[#allocation9 + $0x42c] ss:$16 sps:$4 sm:$0xff]   ;;  %v11982_v45 = vld [vmem:[#allocation9 + $0x568] ss:$16 sps:$4 sm:$0xff]  }
 0x8cf   :  { %9558 = vmatprep.subr.bf16.mxu1 %v11870_v19  ;;  %v11919_v19 = vld [vmem:[#allocation9 + $0x420] ss:$16 sps:$4 sm:$0xff]  }
 0x8d1   :  { %9231 = vmatpush1.bf16.msra.mxu0 %v11865_v17  ;;  %v11922_v17 = vld [vmem:[#allocation9 + $0x428] ss:$16 sps:$4 sm:$0xff]  }
 0x8d2   :  { %9559 = vmatpush1.bf16.msra.mxu1 %v11868_v21  ;;  %9232 = vmatprep.subr.bf16.mxu0 %v11873_v20  ;;  %v11927_v21 = vld [vmem:[#allocation9 + $0x444] ss:$16 sps:$4 sm:$0xff]   ;;  %v11930_v20 = vld [vmem:[#allocation9 + $0x44c] ss:$16 sps:$4 sm:$0xff]  }
 0x8d3   :  { %9560 = vmatprep.subr.bf16.mxu1 %v11876_v22  ;;  %v11925_v22 = vld [vmem:[#allocation9 + $0x440] ss:$16 sps:$4 sm:$0xff]  }
 0x8d5   :  { %9233 = vmatpush1.bf16.msra.mxu0 %v11871_v53  ;;  %v11928_v53 = vld [vmem:[#allocation9 + $0x448] ss:$16 sps:$4 sm:$0xff]  }
 0x8d6   :  { %9561 = vmatpush1.bf16.msra.mxu1 %v11874_v3  ;;  %9234 = vmatprep.subr.bf16.mxu0 %v11879_v35  ;;  %v11933_v3 = vld [vmem:[#allocation9 + $0x464] ss:$16 sps:$4 sm:$0xff]   ;;  %v11936_v35 = vld [vmem:[#allocation9 + $0x46c] ss:$16 sps:$4 sm:$0xff]  }
 0x8d7   :  { %9562 = vmatprep.subr.bf16.mxu1 %v11882_v29  ;;  %v11931_v29 = vld [vmem:[#allocation9 + $0x460] ss:$16 sps:$4 sm:$0xff]  }
 0x8d9   :  { %9235 = vmatpush1.bf16.msra.mxu0 %v11877_v27  ;;  %v11934_v27 = vld [vmem:[#allocation9 + $0x468] ss:$16 sps:$4 sm:$0xff]  }
 0x8da   :  { %9563 = vmatpush1.bf16.msra.mxu1 %v11880_v32  ;;  %9236 = vmatprep.subr.bf16.mxu0 %v11885_v31  ;;  %v11939_v32 = vld [vmem:[#allocation9 + $0x484] ss:$16 sps:$4 sm:$0xff]   ;;  %v11942_v31 = vld [vmem:[#allocation9 + $0x48c] ss:$16 sps:$4 sm:$0xff]  }
 0x8db   :  { %9564 = vmatprep.subr.bf16.mxu1 %v11888_v34  ;;  %v11937_v34 = vld [vmem:[#allocation9 + $0x480] ss:$16 sps:$4 sm:$0xff]  }
 0x8dd   :  { %9237 = vmatpush1.bf16.msra.mxu0 %v11883_v7  ;;  %v11940_v7 = vld [vmem:[#allocation9 + $0x488] ss:$16 sps:$4 sm:$0xff]  }
 0x8de   :  { %9565 = vmatpush1.bf16.msra.mxu1 %v11886_v36  ;;  %9238 = vmatprep.subr.bf16.mxu0 %v11891_v37  ;;  %v11945_v36 = vld [vmem:[#allocation9 + $0x4a4] ss:$16 sps:$4 sm:$0xff]   ;;  %v11948_v37 = vld [vmem:[#allocation9 + $0x4ac] ss:$16 sps:$4 sm:$0xff]  }
 0x8df   :  { %9566 = vmatprep.subr.bf16.mxu1 %v11894_v38  ;;  %v11943_v38 = vld [vmem:[#allocation9 + $0x4a0] ss:$16 sps:$4 sm:$0xff]  }
 0x8e1   :  { %9239 = vmatpush1.bf16.msra.mxu0 %v11889_v48  ;;  %v11946_v48 = vld [vmem:[#allocation9 + $0x4a8] ss:$16 sps:$4 sm:$0xff]  }
 0x8e2   :  { %9567 = vmatpush1.bf16.msra.mxu1 %v11892_v51  ;;  %9240 = vmatprep.subr.bf16.mxu0 %v11897_v50  ;;  %v11954_v51 = vld [vmem:[#allocation9 + $0x4cc] ss:$16 sps:$4 sm:$0xff]   ;;  %v11949_v50 = vld [vmem:[#allocation9 + $0x4c0] ss:$16 sps:$4 sm:$0xff]  }
 0x8e3   :  { %9568 = vmatprep.subr.bf16.mxu1 %v11900_v18  ;;  %v11952_v18 = vld [vmem:[#allocation9 + $0x4c8] ss:$16 sps:$4 sm:$0xff]  }
 0x8e5   :  { %9241 = vmatpush1.bf16.msra.mxu0 %v11895_v54  ;;  %v11960_v54 = vld [vmem:[#allocation9 + $0x4ec] ss:$16 sps:$4 sm:$0xff]  }
 0x8e6   :  { %9569 = vmatpush1.bf16.msra.mxu1 %v11898_v57  ;;  %9242 = vmatprep.subr.bf16.mxu0 %v11903_v62  ;;  %v11963_v57 = vld [vmem:[#allocation9 + $0x504] ss:$16 sps:$4 sm:$0xff]   ;;  %v11966_v62 = vld [vmem:[#allocation9 + $0x50c] ss:$16 sps:$4 sm:$0xff]  }
 0x8e7   :  { %9570 = vmatprep.subr.bf16.mxu1 %v11906_v58  ;;  %v11961_v58 = vld [vmem:[#allocation9 + $0x500] ss:$16 sps:$4 sm:$0xff]  }
 0x8e9   :  { %9243 = vmatpush1.bf16.msra.mxu0 %v11901_v25  ;;  %v11972_v25 = vld [vmem:[#allocation9 + $0x52c] ss:$16 sps:$4 sm:$0xff]  }
 0x8ea   :  { %9571 = vmatpush1.bf16.msra.mxu1 %v11904_v4  ;;  %9244 = vmatprep.subr.bf16.mxu0 %v11909_v63  ;;  %v11970_v4 = vld [vmem:[#allocation9 + $0x528] ss:$16 sps:$4 sm:$0xff]   ;;  %v11975_v63 = vld [vmem:[#allocation9 + $0x544] ss:$16 sps:$4 sm:$0xff]  }
 0x8eb   :  { %9572 = vmatprep.subr.bf16.mxu1 %v11912_v6  ;;  %v11978_v6 = vld [vmem:[#allocation9 + $0x54c] ss:$16 sps:$4 sm:$0xff]  }
 0x8ed   :  { %9245 = vmatpush1.bf16.msra.mxu0 %v11907_v5  ;;  %v11976_v5 = vld [vmem:[#allocation9 + $0x548] ss:$16 sps:$4 sm:$0xff]  }
 0x8ee   :  { %9573 = vmatpush1.bf16.msra.mxu1 %v11910_v9  ;;  %9255 = vmatprep.subr.bf16.mxu0 %v11915_v46  ;;  %v11984_v9 = vld [vmem:[#allocation9 + $0x56c] ss:$16 sps:$4 sm:$0xff]   ;;  %v11979_v46 = vld [vmem:[#allocation9 + $0x560] ss:$16 sps:$4 sm:$0xff]  }
 0x8ef   :  { %9583 = vmatprep.subr.bf16.mxu1 %v11918_v10  ;;  %v13151_v10 = vsub.s32 4, %v13102_v16 }
 0x8f0   :  { %9247 = vmatmul.mubr.bf16.vlgmr.msra.gmra.mrb[16].mxu0 %v6064_v12 }
 0x8f1   :  { %9575 = vmatmul.mubr.bf16.vlgmr.msra.gmra.mrb[16].mxu1 %v6064_v12  ;;  %9256 = vmatpush1.bf16.msra.mxu0 %v11913_v11  ;;  %v11987_v11 = vld [vmem:[#allocation9 + $0x584] ss:$16 sps:$4 sm:$0xff]   ;;  %v11990_v12 = vld [vmem:[#allocation9 + $0x58c] ss:$16 sps:$4 sm:$0xff]  }
 0x8f2   :  { %9287 = vmatprep.mubr.bf16.mxu0 %v6067_v15  ;;  %9584 = vmatpush1.bf16.msra.mxu1 %v11916_v13  ;;  %v13154_v13 = vsub.s32 7, %v13102_v16 }
 0x8f3   :  { %9615 = vmatprep.mubr.bf16.mxu1 %v6067_v15  ;;  %9257 = vmatprep.subr.bf16.mxu0 %v11921_v14  ;;  %v11985_v14 = vld [vmem:[#allocation9 + $0x580] ss:$16 sps:$4 sm:$0xff]   ;;  %v5864_v15 = vrot.slane %v13104_v33, %v13151_v10 }
 0x8f4   :  { %9585 = vmatprep.subr.bf16.mxu1 %v11924_v30  ;;  %v11988_v30 = vld [vmem:[#allocation9 + $0x588] ss:$16 sps:$4 sm:$0xff]  }
 0x8f5   :  { %9258 = vmatpush1.bf16.msra.mxu0 %v11919_v19  ;;  %v11993_v19 = vld [vmem:[#allocation9 + $0x5a4] ss:$16 sps:$4 sm:$0xff]  }
 0x8f6   :  { %9586 = vmatpush1.bf16.msra.mxu1 %v11922_v17  ;;  %9259 = vmatprep.subr.bf16.mxu0 %v11927_v21  ;;  %v11996_v17 = vld [vmem:[#allocation9 + $0x5ac] ss:$16 sps:$4 sm:$0xff]   ;;  %v5876_v21 = vrot.slane %v13104_v33, %v13154_v13 }
 0x8f7   :  { %9587 = vmatprep.subr.bf16.mxu1 %v11930_v20  ;;  %v11991_v20 = vld [vmem:[#allocation9 + $0x5a0] ss:$16 sps:$4 sm:$0xff]  }
 0x8f9   :  { %9260 = vmatpush1.bf16.msra.mxu0 %v11925_v22  ;;  %v5929_v22 = vmul.f32 %v5864_v15, %v13038_v42  ;;  %v12000_v42 = vld [vmem:[#allocation9 + $0x5c8] ss:$16 sps:$4 sm:$0xff]   ;;  %v12047_v15 = vld [vmem:[#allocation9 + $0x6c4] ss:$16 sps:$4 sm:$0xff]  }
 0x8fa   :  { %9588 = vmatpush1.bf16.msra.mxu1 %v11928_v53  ;;  %9261 = vmatprep.subr.bf16.mxu0 %v11933_v3  ;;  %v5969_v53 = vrot.slane %v13109_v40, %v13151_v10  ;;  %v11994_v3 = vld [vmem:[#allocation9 + $0x5a8] ss:$16 sps:$4 sm:$0xff]  }
 0x8fb   :  { %9589 = vmatprep.subr.bf16.mxu1 %v11936_v35  ;;  %v11999_v35 = vld [vmem:[#allocation9 + $0x5c4] ss:$16 sps:$4 sm:$0xff]  }
 0x8fd   :  { %9262 = vmatpush1.bf16.msra.mxu0 %v11931_v29  ;;  %v12002_v29 = vld [vmem:[#allocation9 + $0x5cc] ss:$16 sps:$4 sm:$0xff]  }
 0x8fe   :  { %9590 = vmatpush1.bf16.msra.mxu1 %v11934_v27  ;;  %9263 = vmatprep.subr.bf16.mxu0 %v11939_v32  ;;  %v5932_v27 = vmul.f32 %v5876_v21, %v13044_v47  ;;  %v5981_v32 = vrot.slane %v13109_v40, %v13154_v13  ;;  %v12011_v47 = vld [vmem:[#allocation9 + $0x604] ss:$16 sps:$4 sm:$0xff]  }
 0x8ff   :  { %9591 = vmatprep.subr.bf16.mxu1 %v11942_v31  ;;  %v11997_v31 = vld [vmem:[#allocation9 + $0x5c0] ss:$16 sps:$4 sm:$0xff]  }
 0x901   :  { %9264 = vmatpush1.bf16.msra.mxu0 %v11937_v34  ;;  %v6034_v34 = vadd.f32 %v5969_v53, %v5929_v22 }
 0x902   :  { %9592 = vmatpush1.bf16.msra.mxu1 %v11940_v7  ;;  %9265 = vmatprep.subr.bf16.mxu0 %v11945_v36  ;;  %v12005_v7 = vld [vmem:[#allocation9 + $0x5e4] ss:$16 sps:$4 sm:$0xff]   ;;  %v12008_v36 = vld [vmem:[#allocation9 + $0x5ec] ss:$16 sps:$4 sm:$0xff]  }
 0x903   :  { %9593 = vmatprep.subr.bf16.mxu1 %v11948_v37  ;;  %v6037_v37 = vadd.f32 %v5981_v32, %v5932_v27  ;;  %v12048_v27 = vld [vmem:[#allocation9 + $0x6c8] ss:$16 sps:$4 sm:$0xff]   ;;  %v12053_v32 = vld [vmem:[#allocation9 + $0x6e4] ss:$16 sps:$4 sm:$0xff]  }
 0x905   :  { %9266 = vmatpush1.bf16.msra.mxu0 %v11943_v38  ;;  %v12003_v38 = vld [vmem:[#allocation9 + $0x5e0] ss:$16 sps:$4 sm:$0xff]  }
 0x906   :  { %9594 = vmatpush1.bf16.msra.mxu1 %v11946_v48  ;;  %9267 = vmatprep.subr.bf16.mxu0 %v11951_v49  ;;  %v6050_v48 = vmax.f32 %v6034_v34, 0.0  ;;  %v12006_v49 = vld [vmem:[#allocation9 + $0x5e8] ss:$16 sps:$4 sm:$0xff]   ;;  %v12051_v34 = vld [vmem:[#allocation9 + $0x6e0] ss:$16 sps:$4 sm:$0xff]  }
 0x907   :  { %9595 = vmatprep.subr.bf16.mxu1 %v11954_v51  ;;  %v12014_v51 = vld [vmem:[#allocation9 + $0x60c] ss:$16 sps:$4 sm:$0xff]  }
 0x909   :  { %9268 = vmatpush1.bf16.msra.mxu0 %v11949_v50  ;;  %v6053_v50 = vmax.f32 %v6037_v37, 0.0  ;;  %v12057_v37 = vld [vmem:[#allocation9 + $0x700] ss:$16 sps:$4 sm:$0xff]  }
 0x90a   :  { %9596 = vmatpush1.bf16.msra.mxu1 %v11952_v18  ;;  %9269 = vmatprep.subr.bf16.mxu0 %v11957_v52  ;;  %v12009_v18 = vld [vmem:[#allocation9 + $0x600] ss:$16 sps:$4 sm:$0xff]   ;;  %v6066_v52 = vpack.c.bf16 %v6050_v48, %v6050_v48  ;;  %v12065_v48 = vld [vmem:[#allocation9 + $0x724] ss:$16 sps:$4 sm:$0xff]  }
 0x90b   :  { %9597 = vmatprep.subr.bf16.mxu1 %v11960_v54  ;;  %v12012_v54 = vld [vmem:[#allocation9 + $0x608] ss:$16 sps:$4 sm:$0xff]  }
 0x90d   :  { %9270 = vmatpush1.bf16.msra.mxu0 %v11955_v55  ;;  %v12017_v55 = vld [vmem:[#allocation9 + $0x624] ss:$16 sps:$4 sm:$0xff]  }
 0x90e   :  { %9598 = vmatpush1.bf16.msra.mxu1 %v11958_v56  ;;  %9271 = vmatprep.subr.bf16.mxu0 %v11963_v57  ;;  %v6069_v56 = vpack.c.bf16 %v6053_v50, %v6053_v50  ;;  %v12020_v57 = vld [vmem:[#allocation9 + $0x62c] ss:$16 sps:$4 sm:$0xff]   ;;  %v12071_v50 = vld [vmem:[#allocation9 + $0x744] ss:$16 sps:$4 sm:$0xff]  }
 0x90f   :  { %9599 = vmatprep.subr.bf16.mxu1 %v11966_v62  ;;  %v12015_v62 = vld [vmem:[#allocation9 + $0x620] ss:$16 sps:$4 sm:$0xff]  }
 0x911   :  { %9272 = vmatpush1.bf16.msra.mxu0 %v11961_v58  ;;  %v12018_v58 = vld [vmem:[#allocation9 + $0x628] ss:$16 sps:$4 sm:$0xff]  }
 0x912   :  { %9600 = vmatpush1.bf16.msra.mxu1 %v11964_v59  ;;  %9273 = vmatprep.subr.bf16.mxu0 %v11969_v60  ;;  %v12023_v59 = vld [vmem:[#allocation9 + $0x644] ss:$16 sps:$4 sm:$0xff]   ;;  %v12026_v60 = vld [vmem:[#allocation9 + $0x64c] ss:$16 sps:$4 sm:$0xff]  }
 0x913   :  { %9601 = vmatprep.subr.bf16.mxu1 %v11972_v25  ;;  %v12021_v25 = vld [vmem:[#allocation9 + $0x640] ss:$16 sps:$4 sm:$0xff]  }
 0x915   :  { %9274 = vmatpush1.bf16.msra.mxu0 %v11967_v61  ;;  %v12024_v61 = vld [vmem:[#allocation9 + $0x648] ss:$16 sps:$4 sm:$0xff]  }
 0x916   :  { %9602 = vmatpush1.bf16.msra.mxu1 %v11970_v4  ;;  %9275 = vmatprep.subr.bf16.mxu0 %v11975_v63  ;;  %v12029_v4 = vld [vmem:[#allocation9 + $0x664] ss:$16 sps:$4 sm:$0xff]   ;;  %v12032_v63 = vld [vmem:[#allocation9 + $0x66c] ss:$16 sps:$4 sm:$0xff]  }
 0x917   :  { %9603 = vmatprep.subr.bf16.mxu1 %v11978_v6  ;;  %v12027_v6 = vld [vmem:[#allocation9 + $0x660] ss:$16 sps:$4 sm:$0xff]  }
 0x919   :  { %9276 = vmatpush1.bf16.msra.mxu0 %v11973_v1  ;;  %v12030_v1 = vld [vmem:[#allocation9 + $0x668] ss:$16 sps:$4 sm:$0xff]  }
 0x91a   :  { %9604 = vmatpush1.bf16.msra.mxu1 %v11976_v5  ;;  %9277 = vmatprep.subr.bf16.mxu0 %v11981_v8  ;;  %v12035_v5 = vld [vmem:[#allocation9 + $0x684] ss:$16 sps:$4 sm:$0xff]   ;;  %v12038_v8 = vld [vmem:[#allocation9 + $0x68c] ss:$16 sps:$4 sm:$0xff]  }
 0x91b   :  { %9605 = vmatprep.subr.bf16.mxu1 %v11984_v9  ;;  %v12033_v9 = vld [vmem:[#allocation9 + $0x680] ss:$16 sps:$4 sm:$0xff]  }
 0x91d   :  { %9278 = vmatpush1.bf16.msra.mxu0 %v11979_v46  ;;  %v12036_v46 = vld [vmem:[#allocation9 + $0x688] ss:$16 sps:$4 sm:$0xff]  }
 0x91e   :  { %9606 = vmatpush1.bf16.msra.mxu1 %v11982_v45  ;;  %9279 = vmatprep.subr.bf16.mxu0 %v11987_v11  ;;  %v12041_v45 = vld [vmem:[#allocation9 + $0x6a4] ss:$16 sps:$4 sm:$0xff]   ;;  %v12044_v11 = vld [vmem:[#allocation9 + $0x6ac] ss:$16 sps:$4 sm:$0xff]  }
 0x91f   :  { %9607 = vmatprep.subr.bf16.mxu1 %v11990_v12  ;;  %v12039_v12 = vld [vmem:[#allocation9 + $0x6a0] ss:$16 sps:$4 sm:$0xff]  }
 0x921   :  { %9280 = vmatpush1.bf16.msra.mxu0 %v11985_v14  ;;  %v12042_v14 = vld [vmem:[#allocation9 + $0x6a8] ss:$16 sps:$4 sm:$0xff]  }
 0x922   :  { %9608 = vmatpush1.bf16.msra.mxu1 %v11988_v30  ;;  %9281 = vmatprep.subr.bf16.mxu0 %v11993_v19 }
 0x923   :  { %9609 = vmatprep.subr.bf16.mxu1 %v11996_v17  ;;  %v12050_v17 = vld [vmem:[#allocation9 + $0x6cc] ss:$16 sps:$4 sm:$0xff]  }
 0x925   :  { %9282 = vmatpush1.bf16.msra.mxu0 %v11991_v20 }
 0x926   :  { %9610 = vmatpush1.bf16.msra.mxu1 %v11994_v3  ;;  %9283 = vmatprep.subr.bf16.mxu0 %v11999_v35  ;;  %v12045_v3 = vld [vmem:[#allocation9 + $0x6c0] ss:$16 sps:$4 sm:$0xff]  }
 0x927   :  { %9611 = vmatprep.subr.bf16.mxu1 %v12002_v29 }
 0x929   :  { %9284 = vmatpush1.bf16.msra.mxu0 %v11997_v31  ;;  %v12056_v31 = vld [vmem:[#allocation9 + $0x6ec] ss:$16 sps:$4 sm:$0xff]  }
 0x92a   :  { %9612 = vmatpush1.bf16.msra.mxu1 %v12000_v42  ;;  %9285 = vmatprep.subr.bf16.mxu0 %v12005_v7  ;;  %v12054_v42 = vld [vmem:[#allocation9 + $0x6e8] ss:$16 sps:$4 sm:$0xff]   ;;  %v12059_v7 = vld [vmem:[#allocation9 + $0x704] ss:$16 sps:$4 sm:$0xff]  }
 0x92b   :  { %9613 = vmatprep.subr.bf16.mxu1 %v12008_v36  ;;  %v12062_v36 = vld [vmem:[#allocation9 + $0x70c] ss:$16 sps:$4 sm:$0xff]  }
 0x92d   :  { %9286 = vmatpush1.bf16.msra.mxu0 %v12003_v38  ;;  %v12060_v38 = vld [vmem:[#allocation9 + $0x708] ss:$16 sps:$4 sm:$0xff]  }
 0x92e   :  { %9614 = vmatpush1.bf16.msra.mxu1 %v12006_v49  ;;  %9296 = vmatprep.subr.bf16.mxu0 %v12011_v47  ;;  %v12068_v49 = vld [vmem:[#allocation9 + $0x72c] ss:$16 sps:$4 sm:$0xff]   ;;  %v12063_v47 = vld [vmem:[#allocation9 + $0x720] ss:$16 sps:$4 sm:$0xff]  }
 0x92f   :  { %9624 = vmatprep.subr.bf16.mxu1 %v12014_v51  ;;  %v12066_v51 = vld [vmem:[#allocation9 + $0x728] ss:$16 sps:$4 sm:$0xff]  }
 0x930   :  { %9288 = vmatmul.mubr.bf16.vlgmr.msra.gmra.mrb[16].mxu0 %v6066_v52 }
 0x931   :  { %9616 = vmatmul.mubr.bf16.vlgmr.msra.gmra.mrb[16].mxu1 %v6066_v52  ;;  %9297 = vmatpush1.bf16.msra.mxu0 %v12009_v18  ;;  %v12074_v18 = vld [vmem:[#allocation9 + $0x74c] ss:$16 sps:$4 sm:$0xff]   ;;  %v12069_v52 = vld [vmem:[#allocation9 + $0x740] ss:$16 sps:$4 sm:$0xff]  }
 0x932   :  { %9328 = vmatprep.mubr.bf16.mxu0 %v6069_v56  ;;  %9625 = vmatpush1.bf16.msra.mxu1 %v12012_v54  ;;  %v12072_v54 = vld [vmem:[#allocation9 + $0x748] ss:$16 sps:$4 sm:$0xff]  }
 0x933   :  { %9656 = vmatprep.mubr.bf16.mxu1 %v6069_v56  ;;  %9298 = vmatprep.subr.bf16.mxu0 %v12017_v55  ;;  %v12077_v55 = vld [vmem:[#allocation9 + $0x764] ss:$16 sps:$4 sm:$0xff]   ;;  %v12080_v56 = vld [vmem:[#allocation9 + $0x76c] ss:$16 sps:$4 sm:$0xff]  }
 0x934   :  { %9626 = vmatprep.subr.bf16.mxu1 %v12020_v57  ;;  %v5840_v57 = vld [vmem:[#allocation12 + $0x45] ss:$8 sm:$0xf] }
 0x935   :  { %9299 = vmatpush1.bf16.msra.mxu0 %v12015_v62  ;;  %v5841_v62 = vld [vmem:[#allocation12 + $0x45] ss:$8 sm:$0xf0] }
 0x936   :  { %9627 = vmatpush1.bf16.msra.mxu1 %v12018_v58  ;;  %9300 = vmatprep.subr.bf16.mxu0 %v12023_v59  ;;  %v12075_v58 = vld [vmem:[#allocation9 + $0x760] ss:$16 sps:$4 sm:$0xff]   ;;  %v13175_v59 = vsub.s32 6, %v13102_v16  ;;  %v12089_v16 = vld [vmem:[#allocation9 + $0x7a4] ss:$16 sps:$4 sm:$0xff]  }
 0x937   :  { %9628 = vmatprep.subr.bf16.mxu1 %v12026_v60  ;;  %v12078_v60 = vld [vmem:[#allocation9 + $0x768] ss:$16 sps:$4 sm:$0xff]  }
 0x939   :  { %9301 = vmatpush1.bf16.msra.mxu0 %v12021_v25  ;;  %v12083_v25 = vld [vmem:[#allocation9 + $0x784] ss:$16 sps:$4 sm:$0xff]  }
 0x93a   :  { %9629 = vmatpush1.bf16.msra.mxu1 %v12024_v61  ;;  %9302 = vmatprep.subr.bf16.mxu0 %v12029_v4  ;;  %v12086_v61 = vld [vmem:[#allocation9 + $0x78c] ss:$16 sps:$4 sm:$0xff]   ;;  %v13177_v4 = vor.u32 %v5841_v62, %v5840_v57  ;;  %v12123_v62 = vld [vmem:[#allocation9 + $0x860] ss:$16 sps:$4 sm:$0xff]  }
 0x93b   :  { %9630 = vmatprep.subr.bf16.mxu1 %v12032_v63  ;;  %v5945_v63 = vld [vmem:[#allocation12 + $0x40] ss:$8 sm:$0xf]  ;;  %v12128_v57 = vld [vmem:[#allocation9 + $0x86c] ss:$16 sps:$4 sm:$0xff]  }
 0x93d   :  { %9303 = vmatpush1.bf16.msra.mxu0 %v12027_v6  ;;  %v5946_v6 = vld [vmem:[#allocation12 + $0x40] ss:$8 sm:$0xf0] }
 0x93e   :  { %9631 = vmatpush1.bf16.msra.mxu1 %v12030_v1  ;;  %9304 = vmatprep.subr.bf16.mxu0 %v12035_v5  ;;  %v12081_v1 = vld [vmem:[#allocation9 + $0x780] ss:$16 sps:$4 sm:$0xff]   ;;  %v5872_v5 = vrot.slane %v13104_v33, %v13175_v59  ;;  %v12090_v33 = vld [vmem:[#allocation9 + $0x7a8] ss:$16 sps:$4 sm:$0xff]  }
 0x93f   :  { %9632 = vmatprep.subr.bf16.mxu1 %v12038_v8  ;;  %v12084_v8 = vld [vmem:[#allocation9 + $0x788] ss:$16 sps:$4 sm:$0xff]  }
 0x941   :  { %9305 = vmatpush1.bf16.msra.mxu0 %v12033_v9  ;;  %v12092_v9 = vld [vmem:[#allocation9 + $0x7ac] ss:$16 sps:$4 sm:$0xff]  }
 0x942   :  { %9633 = vmatpush1.bf16.msra.mxu1 %v12036_v46  ;;  %9306 = vmatprep.subr.bf16.mxu0 %v12041_v45  ;;  %v13181_v46 = vor.u32 %v5946_v6, %v5945_v63  ;;  %v5884_v45 = vrot.slane %v13177_v4, %v13107_v39  ;;  %v12132_v63 = vld [vmem:[#allocation9 + $0x888] ss:$16 sps:$4 sm:$0xff]   ;;  %v12137_v6 = vld [vmem:[#allocation9 + $0x8a4] ss:$16 sps:$4 sm:$0xff]  }
 0x943   :  { %v13166_v30 = vpop.f32.mrb[12].mxu0  ;;  %v13168_v19 = vpop.f32.mrb[12].mxu1  ;;  %9634 = vmatprep.subr.bf16.mxu1 %v12044_v11  ;;  %v12087_v11 = vld [vmem:[#allocation9 + $0x7a0] ss:$16 sps:$4 sm:$0xff]  }
 0x944   :  { %v13170_v21 = vpop.f32.mrb[13].mxu0  ;;  %v13172_v20 = vpop.f32.mrb[13].mxu1 }
 0x945   :  { %v5504_v22 = vpop.f32.mrb[14].mxu0  ;;  %v5832_v53 = vpop.f32.mrb[14].mxu1  ;;  %9307 = vmatpush1.bf16.msra.mxu0 %v12039_v12  ;;  %v5931_v12 = vmul.f32 %v5872_v5, %v13040_v44  ;;  %v12096_v44 = vld [vmem:[#allocation9 + $0x7c8] ss:$16 sps:$4 sm:$0xff]   ;;  %v12135_v5 = vld [vmem:[#allocation9 + $0x8a0] ss:$16 sps:$4 sm:$0xff]  }
 0x946   :  { %9635 = vmatpush1.bf16.msra.mxu1 %v12042_v14  ;;  %v5505_v35 = vpop.f32.mrb[15].mxu0  ;;  %v5833_v29 = vpop.f32.mrb[15].mxu1  ;;  %9308 = vmatprep.subr.bf16.mxu0 %v12047_v15  ;;  %v5977_v14 = vrot.slane %v13109_v40, %v13175_v59  ;;  %v12095_v15 = vld [vmem:[#allocation9 + $0x7c4] ss:$16 sps:$4 sm:$0xff]   ;;  %v5934_v22 = vmul.f32 %v5884_v45, %v13082_v26  ;;  %v5989_v53 = vrot.slane %v13181_v46, %v13107_v39  ;;  %v12104_v40 = vld [vmem:[#allocation9 + $0x7ec] ss:$16 sps:$4 sm:$0xff]  }
 0x947   :  { %9636 = vmatprep.subr.bf16.mxu1 %v12050_v17  ;;  %v12098_v17 = vld [vmem:[#allocation9 + $0x7cc] ss:$16 sps:$4 sm:$0xff]   ;;  %v12101_v29 = vld [vmem:[#allocation9 + $0x7e4] ss:$16 sps:$4 sm:$0xff]   ;;  %v12141_v45 = vld [vmem:[#allocation9 + $0x8c0] ss:$16 sps:$4 sm:$0xff]  }
 0x948   :  { %v6036_v35 = vadd.f32 %v5977_v14, %v5931_v12  ;;  %v12107_v26 = vld [vmem:[#allocation9 + $0x804] ss:$16 sps:$4 sm:$0xff]   ;;  %v12152_v14 = vld [vmem:[#allocation9 + $0x8ec] ss:$16 sps:$4 sm:$0xff]  }
 0x949   :  { %9309 = vmatpush1.bf16.msra.mxu0 %v12045_v3  ;;  %v12093_v3 = vld [vmem:[#allocation9 + $0x7c0] ss:$16 sps:$4 sm:$0xff]   ;;  %v12149_v12 = vld [vmem:[#allocation9 + $0x8e4] ss:$16 sps:$4 sm:$0xff]  }
 0x94a   :  { %9637 = vmatpush1.bf16.msra.mxu1 %v12048_v27  ;;  %9310 = vmatprep.subr.bf16.mxu0 %v12053_v32  ;;  %v6039_v27 = vadd.f32 %v5989_v53, %v5934_v22  ;;  %v12099_v32 = vld [vmem:[#allocation9 + $0x7e0] ss:$16 sps:$4 sm:$0xff]   ;;  %v12158_v22 = vld [vmem:[#allocation9 + $0x90c] ss:$16 sps:$4 sm:$0xff]  }
 0x94b   :  { %9638 = vmatprep.subr.bf16.mxu1 %v12056_v31  ;;  %v6052_v31 = vmax.f32 %v6036_v35, 0.0  ;;  %v12153_v53 = vld [vmem:[#allocation9 + $0x900] ss:$16 sps:$4 sm:$0xff]   ;;  %v12161_v35 = vld [vmem:[#allocation9 + $0x924] ss:$16 sps:$4 sm:$0xff]  }
 0x94d   :  { %9311 = vmatpush1.bf16.msra.mxu0 %v12051_v34  ;;  %v12102_v34 = vld [vmem:[#allocation9 + $0x7e8] ss:$16 sps:$4 sm:$0xff]  }
 0x94e   :  { %9639 = vmatpush1.bf16.msra.mxu1 %v12054_v42  ;;  %9312 = vmatprep.subr.bf16.mxu0 %v12059_v7  ;;  %v12110_v42 = vld [vmem:[#allocation9 + $0x80c] ss:$16 sps:$4 sm:$0xff]   ;;  %v6055_v7 = vmax.f32 %v6039_v27, 0.0  ;;  %v12167_v27 = vld [vmem:[#allocation9 + $0x944] ss:$16 sps:$4 sm:$0xff]  }
 0x94f   :  { %9640 = vmatprep.subr.bf16.mxu1 %v12062_v36  ;;  %v12105_v36 = vld [vmem:[#allocation9 + $0x800] ss:$16 sps:$4 sm:$0xff]  }
 0x951   :  { %9313 = vmatpush1.bf16.msra.mxu0 %v12057_v37  ;;  %v6068_v37 = vpack.c.bf16 %v6052_v31, %v6052_v31  ;;  %v12165_v31 = vld [vmem:[#allocation9 + $0x940] ss:$16 sps:$4 sm:$0xff]  }
 0x952   :  { %9641 = vmatpush1.bf16.msra.mxu1 %v12060_v38  ;;  %9314 = vmatprep.subr.bf16.mxu0 %v12065_v48  ;;  %v12108_v38 = vld [vmem:[#allocation9 + $0x808] ss:$16 sps:$4 sm:$0xff]   ;;  %v12113_v48 = vld [vmem:[#allocation9 + $0x824] ss:$16 sps:$4 sm:$0xff]  }
 0x953   :  { %9642 = vmatprep.subr.bf16.mxu1 %v12068_v49  ;;  %v6071_v49 = vpack.c.bf16 %v6055_v7, %v6055_v7  ;;  %v12171_v7 = vld [vmem:[#allocation9 + $0x960] ss:$16 sps:$4 sm:$0xff]  }
 0x955   :  { %9315 = vmatpush1.bf16.msra.mxu0 %v12063_v47  ;;  %v12116_v47 = vld [vmem:[#allocation9 + $0x82c] ss:$16 sps:$4 sm:$0xff]  }
 0x956   :  { %9643 = vmatpush1.bf16.msra.mxu1 %v12066_v51  ;;  %9316 = vmatprep.subr.bf16.mxu0 %v12071_v50  ;;  %v12111_v51 = vld [vmem:[#allocation9 + $0x820] ss:$16 sps:$4 sm:$0xff]   ;;  %v12114_v50 = vld [vmem:[#allocation9 + $0x828] ss:$16 sps:$4 sm:$0xff]  }
 0x957   :  { %9644 = vmatprep.subr.bf16.mxu1 %v12074_v18  ;;  %v12119_v18 = vld [vmem:[#allocation9 + $0x844] ss:$16 sps:$4 sm:$0xff]  }
 0x959   :  { %9317 = vmatpush1.bf16.msra.mxu0 %v12069_v52  ;;  %v12122_v52 = vld [vmem:[#allocation9 + $0x84c] ss:$16 sps:$4 sm:$0xff]  }
 0x95a   :  { %9645 = vmatpush1.bf16.msra.mxu1 %v12072_v54  ;;  %9318 = vmatprep.subr.bf16.mxu0 %v12077_v55  ;;  %v12117_v54 = vld [vmem:[#allocation9 + $0x840] ss:$16 sps:$4 sm:$0xff]   ;;  %v12120_v55 = vld [vmem:[#allocation9 + $0x848] ss:$16 sps:$4 sm:$0xff]  }
 0x95b   :  { %9646 = vmatprep.subr.bf16.mxu1 %v12080_v56  ;;  %v12125_v56 = vld [vmem:[#allocation9 + $0x864] ss:$16 sps:$4 sm:$0xff]  }
 0x95d   :  { %9319 = vmatpush1.bf16.msra.mxu0 %v12075_v58  ;;  %v12126_v58 = vld [vmem:[#allocation9 + $0x868] ss:$16 sps:$4 sm:$0xff]  }
 0x95e   :  { %9647 = vmatpush1.bf16.msra.mxu1 %v12078_v60  ;;  %9320 = vmatprep.subr.bf16.mxu0 %v12083_v25  ;;  %v12131_v60 = vld [vmem:[#allocation9 + $0x884] ss:$16 sps:$4 sm:$0xff]   ;;  %v12134_v25 = vld [vmem:[#allocation9 + $0x88c] ss:$16 sps:$4 sm:$0xff]  }
 0x95f   :  { %9648 = vmatprep.subr.bf16.mxu1 %v12086_v61  ;;  %v12129_v61 = vld [vmem:[#allocation9 + $0x880] ss:$16 sps:$4 sm:$0xff]  }
 0x961   :  { %9321 = vmatpush1.bf16.msra.mxu0 %v12081_v1  ;;  %v12140_v1 = vld [vmem:[#allocation9 + $0x8ac] ss:$16 sps:$4 sm:$0xff]  }
 0x962   :  { %9649 = vmatpush1.bf16.msra.mxu1 %v12084_v8  ;;  %9322 = vmatprep.subr.bf16.mxu0 %v12089_v16  ;;  %v12138_v8 = vld [vmem:[#allocation9 + $0x8a8] ss:$16 sps:$4 sm:$0xff]   ;;  %v12143_v16 = vld [vmem:[#allocation9 + $0x8c4] ss:$16 sps:$4 sm:$0xff]  }
 0x963   :  { %9650 = vmatprep.subr.bf16.mxu1 %v12092_v9  ;;  %v12146_v9 = vld [vmem:[#allocation9 + $0x8cc] ss:$16 sps:$4 sm:$0xff]  }
 0x965   :  { %9323 = vmatpush1.bf16.msra.mxu0 %v12087_v11  ;;  %v12144_v11 = vld [vmem:[#allocation9 + $0x8c8] ss:$16 sps:$4 sm:$0xff]  }
 0x966   :  { %9651 = vmatpush1.bf16.msra.mxu1 %v12090_v33  ;;  %9324 = vmatprep.subr.bf16.mxu0 %v12095_v15  ;;  %v12147_v33 = vld [vmem:[#allocation9 + $0x8e0] ss:$16 sps:$4 sm:$0xff]   ;;  %v12150_v15 = vld [vmem:[#allocation9 + $0x8e8] ss:$16 sps:$4 sm:$0xff]  }
 0x967   :  { %9652 = vmatprep.subr.bf16.mxu1 %v12098_v17  ;;  %v12155_v17 = vld [vmem:[#allocation9 + $0x904] ss:$16 sps:$4 sm:$0xff]  }
 0x969   :  { %9325 = vmatpush1.bf16.msra.mxu0 %v12093_v3  ;;  %v12156_v3 = vld [vmem:[#allocation9 + $0x908] ss:$16 sps:$4 sm:$0xff]  }
 0x96a   :  { %9653 = vmatpush1.bf16.msra.mxu1 %v12096_v44  ;;  %9326 = vmatprep.subr.bf16.mxu0 %v12101_v29  ;;  %v12164_v44 = vld [vmem:[#allocation9 + $0x92c] ss:$16 sps:$4 sm:$0xff]   ;;  %v12159_v29 = vld [vmem:[#allocation9 + $0x920] ss:$16 sps:$4 sm:$0xff]  }
 0x96b   :  { %9654 = vmatprep.subr.bf16.mxu1 %v12104_v40  ;;  %v12162_v40 = vld [vmem:[#allocation9 + $0x928] ss:$16 sps:$4 sm:$0xff]  }
 0x96d   :  { %9327 = vmatpush1.bf16.msra.mxu0 %v12099_v32  ;;  %v12170_v32 = vld [vmem:[#allocation9 + $0x94c] ss:$16 sps:$4 sm:$0xff]  }
 0x96e   :  { %9655 = vmatpush1.bf16.msra.mxu1 %v12102_v34  ;;  %9337 = vmatprep.subr.bf16.mxu0 %v12107_v26  ;;  %v12168_v34 = vld [vmem:[#allocation9 + $0x948] ss:$16 sps:$4 sm:$0xff]   ;;  %v12173_v26 = vld [vmem:[#allocation9 + $0x964] ss:$16 sps:$4 sm:$0xff]  }
 0x96f   :  { %9665 = vmatprep.subr.bf16.mxu1 %v12110_v42  ;;  %v12176_v42 = vld [vmem:[#allocation9 + $0x96c] ss:$16 sps:$4 sm:$0xff]  }
 0x970   :  { %9329 = vmatmul.mubr.bf16.vlgmr.msra.gmra.mrb[16].mxu0 %v6068_v37 }
 0x971   :  { %9657 = vmatmul.mubr.bf16.vlgmr.msra.gmra.mrb[16].mxu1 %v6068_v37  ;;  %9338 = vmatpush1.bf16.msra.mxu0 %v12105_v36  ;;  %v12174_v36 = vld [vmem:[#allocation9 + $0x968] ss:$16 sps:$4 sm:$0xff]   ;;  %v12179_v37 = vld [vmem:[#allocation9 + $0x984] ss:$16 sps:$4 sm:$0xff]  }
 0x972   :  { %9369 = vmatprep.mubr.bf16.mxu0 %v6071_v49  ;;  %9666 = vmatpush1.bf16.msra.mxu1 %v12108_v38  ;;  %v12182_v38 = vld [vmem:[#allocation9 + $0x98c] ss:$16 sps:$4 sm:$0xff]  }
 0x973   :  { %9697 = vmatprep.mubr.bf16.mxu1 %v6071_v49  ;;  %9339 = vmatprep.subr.bf16.mxu0 %v12113_v48  ;;  %v12177_v48 = vld [vmem:[#allocation9 + $0x980] ss:$16 sps:$4 sm:$0xff]   ;;  %v5880_v49 = vrot.slane %v13177_v4, %v13119_v0 }
 0x974   :  { %9667 = vmatprep.subr.bf16.mxu1 %v12116_v47  ;;  %v12180_v47 = vld [vmem:[#allocation9 + $0x988] ss:$16 sps:$4 sm:$0xff]  }
 0x975   :  { %9340 = vmatpush1.bf16.msra.mxu0 %v12111_v51  ;;  %v12185_v51 = vld [vmem:[#allocation9 + $0x9a4] ss:$16 sps:$4 sm:$0xff]  }
 0x976   :  { %9668 = vmatpush1.bf16.msra.mxu1 %v12114_v50  ;;  %9341 = vmatprep.subr.bf16.mxu0 %v12119_v18  ;;  %v12188_v50 = vld [vmem:[#allocation9 + $0x9ac] ss:$16 sps:$4 sm:$0xff]   ;;  %v5892_v18 = vrot.slane %v13177_v4, %v13122_v2 }
 0x977   :  { %9669 = vmatprep.subr.bf16.mxu1 %v12122_v52  ;;  %v12183_v52 = vld [vmem:[#allocation9 + $0x9a0] ss:$16 sps:$4 sm:$0xff]  }
 0x979   :  { %9342 = vmatpush1.bf16.msra.mxu0 %v12117_v54  ;;  %v5933_v54 = vmul.f32 %v5880_v49, %v13078_v23  ;;  %v12192_v23 = vld [vmem:[#allocation9 + $0x9c8] ss:$16 sps:$4 sm:$0xff]   ;;  %v12239_v49 = vld [vmem:[#allocation9 + $0xac4] ss:$16 sps:$4 sm:$0xff]  }
 0x97a   :  { %9670 = vmatpush1.bf16.msra.mxu1 %v12120_v55  ;;  %9343 = vmatprep.subr.bf16.mxu0 %v12125_v56  ;;  %v5985_v55 = vrot.slane %v13181_v46, %v13119_v0  ;;  %v12186_v56 = vld [vmem:[#allocation9 + $0x9a8] ss:$16 sps:$4 sm:$0xff]  }
 0x97b   :  { %9671 = vmatprep.subr.bf16.mxu1 %v12128_v57  ;;  %v12191_v57 = vld [vmem:[#allocation9 + $0x9c4] ss:$16 sps:$4 sm:$0xff]  }
 0x97d   :  { %9344 = vmatpush1.bf16.msra.mxu0 %v12123_v62  ;;  %v12194_v62 = vld [vmem:[#allocation9 + $0x9cc] ss:$16 sps:$4 sm:$0xff]  }
 0x97e   :  { %9672 = vmatpush1.bf16.msra.mxu1 %v12126_v58  ;;  %9345 = vmatprep.subr.bf16.mxu0 %v12131_v60  ;;  %v5936_v58 = vmul.f32 %v5892_v18, %v13084_v28  ;;  %v5997_v60 = vrot.slane %v13181_v46, %v13122_v2  ;;  %v12203_v28 = vld [vmem:[#allocation9 + $0xa04] ss:$16 sps:$4 sm:$0xff]  }
 0x97f   :  { %9673 = vmatprep.subr.bf16.mxu1 %v12134_v25  ;;  %v12189_v25 = vld [vmem:[#allocation9 + $0x9c0] ss:$16 sps:$4 sm:$0xff]   ;;  %v12245_v18 = vld [vmem:[#allocation9 + $0xae4] ss:$16 sps:$4 sm:$0xff]  }
 0x981   :  { %9346 = vmatpush1.bf16.msra.mxu0 %v12129_v61  ;;  %v6038_v61 = vadd.f32 %v5985_v55, %v5933_v54  ;;  %v12243_v54 = vld [vmem:[#allocation9 + $0xae0] ss:$16 sps:$4 sm:$0xff]   ;;  %v12246_v55 = vld [vmem:[#allocation9 + $0xae8] ss:$16 sps:$4 sm:$0xff]  }
 0x982   :  { %9674 = vmatpush1.bf16.msra.mxu1 %v12132_v63  ;;  %9347 = vmatprep.subr.bf16.mxu0 %v12137_v6  ;;  %v12197_v63 = vld [vmem:[#allocation9 + $0x9e4] ss:$16 sps:$4 sm:$0xff]   ;;  %v12200_v6 = vld [vmem:[#allocation9 + $0x9ec] ss:$16 sps:$4 sm:$0xff]  }
 0x983   :  { %9675 = vmatprep.subr.bf16.mxu1 %v12140_v1  ;;  %v6041_v1 = vadd.f32 %v5997_v60, %v5936_v58  ;;  %v12252_v58 = vld [vmem:[#allocation9 + $0xb08] ss:$16 sps:$4 sm:$0xff]   ;;  %v12257_v60 = vld [vmem:[#allocation9 + $0xb24] ss:$16 sps:$4 sm:$0xff]  }
 0x985   :  { %9348 = vmatpush1.bf16.msra.mxu0 %v12135_v5  ;;  %v12195_v5 = vld [vmem:[#allocation9 + $0x9e0] ss:$16 sps:$4 sm:$0xff]  }
 0x986   :  { %9676 = vmatpush1.bf16.msra.mxu1 %v12138_v8  ;;  %9349 = vmatprep.subr.bf16.mxu0 %v12143_v16  ;;  %v6054_v8 = vmax.f32 %v6038_v61, 0.0  ;;  %v12198_v16 = vld [vmem:[#allocation9 + $0x9e8] ss:$16 sps:$4 sm:$0xff]   ;;  %v12255_v61 = vld [vmem:[#allocation9 + $0xb20] ss:$16 sps:$4 sm:$0xff]  }
 0x987   :  { %9677 = vmatprep.subr.bf16.mxu1 %v12146_v9  ;;  %v12206_v9 = vld [vmem:[#allocation9 + $0xa0c] ss:$16 sps:$4 sm:$0xff]  }
 0x989   :  { %9350 = vmatpush1.bf16.msra.mxu0 %v12141_v45  ;;  %v6057_v45 = vmax.f32 %v6041_v1, 0.0  ;;  %v12261_v1 = vld [vmem:[#allocation9 + $0xb40] ss:$16 sps:$4 sm:$0xff]  }
 0x98a   :  { %9678 = vmatpush1.bf16.msra.mxu1 %v12144_v11  ;;  %9351 = vmatprep.subr.bf16.mxu0 %v12149_v12  ;;  %v12201_v11 = vld [vmem:[#allocation9 + $0xa00] ss:$16 sps:$4 sm:$0xff]   ;;  %v6070_v12 = vpack.c.bf16 %v6054_v8, %v6054_v8  ;;  %v12269_v8 = vld [vmem:[#allocation9 + $0xb64] ss:$16 sps:$4 sm:$0xff]  }
 0x98b   :  { %9679 = vmatprep.subr.bf16.mxu1 %v12152_v14  ;;  %v12204_v14 = vld [vmem:[#allocation9 + $0xa08] ss:$16 sps:$4 sm:$0xff]  }
 0x98d   :  { %9352 = vmatpush1.bf16.msra.mxu0 %v12147_v33  ;;  %v12209_v33 = vld [vmem:[#allocation9 + $0xa24] ss:$16 sps:$4 sm:$0xff]  }
 0x98e   :  { %9680 = vmatpush1.bf16.msra.mxu1 %v12150_v15  ;;  %9353 = vmatprep.subr.bf16.mxu0 %v12155_v17  ;;  %v6073_v15 = vpack.c.bf16 %v6057_v45, %v6057_v45  ;;  %v12212_v17 = vld [vmem:[#allocation9 + $0xa2c] ss:$16 sps:$4 sm:$0xff]   ;;  %v12275_v45 = vld [vmem:[#allocation9 + $0xb84] ss:$16 sps:$4 sm:$0xff]  }
 0x98f   :  { %9681 = vmatprep.subr.bf16.mxu1 %v12158_v22  ;;  %v12207_v22 = vld [vmem:[#allocation9 + $0xa20] ss:$16 sps:$4 sm:$0xff]  }
 0x991   :  { %9354 = vmatpush1.bf16.msra.mxu0 %v12153_v53  ;;  %v12210_v53 = vld [vmem:[#allocation9 + $0xa28] ss:$16 sps:$4 sm:$0xff]  }
 0x992   :  { %9682 = vmatpush1.bf16.msra.mxu1 %v12156_v3  ;;  %9355 = vmatprep.subr.bf16.mxu0 %v12161_v35  ;;  %v12215_v3 = vld [vmem:[#allocation9 + $0xa44] ss:$16 sps:$4 sm:$0xff]   ;;  %v12218_v35 = vld [vmem:[#allocation9 + $0xa4c] ss:$16 sps:$4 sm:$0xff]  }
 0x993   :  { %9683 = vmatprep.subr.bf16.mxu1 %v12164_v44  ;;  %v12213_v44 = vld [vmem:[#allocation9 + $0xa40] ss:$16 sps:$4 sm:$0xff]  }
 0x995   :  { %9356 = vmatpush1.bf16.msra.mxu0 %v12159_v29  ;;  %v12216_v29 = vld [vmem:[#allocation9 + $0xa48] ss:$16 sps:$4 sm:$0xff]  }
 0x996   :  { %9684 = vmatpush1.bf16.msra.mxu1 %v12162_v40  ;;  %9357 = vmatprep.subr.bf16.mxu0 %v12167_v27  ;;  %v12221_v40 = vld [vmem:[#allocation9 + $0xa64] ss:$16 sps:$4 sm:$0xff]   ;;  %v12224_v27 = vld [vmem:[#allocation9 + $0xa6c] ss:$16 sps:$4 sm:$0xff]  }
 0x997   :  { %9685 = vmatprep.subr.bf16.mxu1 %v12170_v32  ;;  %v12219_v32 = vld [vmem:[#allocation9 + $0xa60] ss:$16 sps:$4 sm:$0xff]  }
 0x999   :  { %9358 = vmatpush1.bf16.msra.mxu0 %v12165_v31  ;;  %v12222_v31 = vld [vmem:[#allocation9 + $0xa68] ss:$16 sps:$4 sm:$0xff]  }
 0x99a   :  { %9686 = vmatpush1.bf16.msra.mxu1 %v12168_v34  ;;  %9359 = vmatprep.subr.bf16.mxu0 %v12173_v26  ;;  %v12227_v34 = vld [vmem:[#allocation9 + $0xa84] ss:$16 sps:$4 sm:$0xff]   ;;  %v12230_v26 = vld [vmem:[#allocation9 + $0xa8c] ss:$16 sps:$4 sm:$0xff]  }
 0x99b   :  { %9687 = vmatprep.subr.bf16.mxu1 %v12176_v42  ;;  %v12225_v42 = vld [vmem:[#allocation9 + $0xa80] ss:$16 sps:$4 sm:$0xff]  }
 0x99d   :  { %9360 = vmatpush1.bf16.msra.mxu0 %v12171_v7  ;;  %v12228_v7 = vld [vmem:[#allocation9 + $0xa88] ss:$16 sps:$4 sm:$0xff]  }
 0x99e   :  { %9688 = vmatpush1.bf16.msra.mxu1 %v12174_v36  ;;  %9361 = vmatprep.subr.bf16.mxu0 %v12179_v37  ;;  %v12233_v36 = vld [vmem:[#allocation9 + $0xaa4] ss:$16 sps:$4 sm:$0xff]   ;;  %v12236_v37 = vld [vmem:[#allocation9 + $0xaac] ss:$16 sps:$4 sm:$0xff]  }
 0x99f   :  { %9689 = vmatprep.subr.bf16.mxu1 %v12182_v38  ;;  %v12231_v38 = vld [vmem:[#allocation9 + $0xaa0] ss:$16 sps:$4 sm:$0xff]  }
 0x9a1   :  { %9362 = vmatpush1.bf16.msra.mxu0 %v12177_v48  ;;  %v12234_v48 = vld [vmem:[#allocation9 + $0xaa8] ss:$16 sps:$4 sm:$0xff]  }
 0x9a2   :  { %9690 = vmatpush1.bf16.msra.mxu1 %v12180_v47  ;;  %9363 = vmatprep.subr.bf16.mxu0 %v12185_v51  ;;  %v12242_v47 = vld [vmem:[#allocation9 + $0xacc] ss:$16 sps:$4 sm:$0xff]   ;;  %v12237_v51 = vld [vmem:[#allocation9 + $0xac0] ss:$16 sps:$4 sm:$0xff]  }
 0x9a3   :  { %9691 = vmatprep.subr.bf16.mxu1 %v12188_v50  ;;  %v12240_v50 = vld [vmem:[#allocation9 + $0xac8] ss:$16 sps:$4 sm:$0xff]  }
 0x9a5   :  { %9364 = vmatpush1.bf16.msra.mxu0 %v12183_v52  ;;  %v12248_v52 = vld [vmem:[#allocation9 + $0xaec] ss:$16 sps:$4 sm:$0xff]  }
 0x9a6   :  { %9692 = vmatpush1.bf16.msra.mxu1 %v12186_v56  ;;  %9365 = vmatprep.subr.bf16.mxu0 %v12191_v57  ;;  %v12251_v56 = vld [vmem:[#allocation9 + $0xb04] ss:$16 sps:$4 sm:$0xff]   ;;  %v12254_v57 = vld [vmem:[#allocation9 + $0xb0c] ss:$16 sps:$4 sm:$0xff]  }
 0x9a7   :  { %9693 = vmatprep.subr.bf16.mxu1 %v12194_v62  ;;  %v12249_v62 = vld [vmem:[#allocation9 + $0xb00] ss:$16 sps:$4 sm:$0xff]  }
 0x9a9   :  { %9366 = vmatpush1.bf16.msra.mxu0 %v12189_v25  ;;  %v12260_v25 = vld [vmem:[#allocation9 + $0xb2c] ss:$16 sps:$4 sm:$0xff]  }
 0x9aa   :  { %9694 = vmatpush1.bf16.msra.mxu1 %v12192_v23  ;;  %9367 = vmatprep.subr.bf16.mxu0 %v12197_v63  ;;  %v12258_v23 = vld [vmem:[#allocation9 + $0xb28] ss:$16 sps:$4 sm:$0xff]   ;;  %v12263_v63 = vld [vmem:[#allocation9 + $0xb44] ss:$16 sps:$4 sm:$0xff]  }
 0x9ab   :  { %9695 = vmatprep.subr.bf16.mxu1 %v12200_v6  ;;  %v12266_v6 = vld [vmem:[#allocation9 + $0xb4c] ss:$16 sps:$4 sm:$0xff]  }
 0x9ad   :  { %9368 = vmatpush1.bf16.msra.mxu0 %v12195_v5  ;;  %v12264_v5 = vld [vmem:[#allocation9 + $0xb48] ss:$16 sps:$4 sm:$0xff]  }
 0x9ae   :  { %9696 = vmatpush1.bf16.msra.mxu1 %v12198_v16  ;;  %9378 = vmatprep.subr.bf16.mxu0 %v12203_v28  ;;  %v12272_v16 = vld [vmem:[#allocation9 + $0xb6c] ss:$16 sps:$4 sm:$0xff]   ;;  %v12267_v28 = vld [vmem:[#allocation9 + $0xb60] ss:$16 sps:$4 sm:$0xff]  }
 0x9af   :  { %9706 = vmatprep.subr.bf16.mxu1 %v12206_v9  ;;  %v12270_v9 = vld [vmem:[#allocation9 + $0xb68] ss:$16 sps:$4 sm:$0xff]  }
 0x9b0   :  { %9370 = vmatmul.mubr.bf16.vlgmr.msra.gmra.mrb[16].mxu0 %v6070_v12 }
 0x9b1   :  { %9698 = vmatmul.mubr.bf16.vlgmr.msra.gmra.mrb[16].mxu1 %v6070_v12  ;;  %9379 = vmatpush1.bf16.msra.mxu0 %v12201_v11  ;;  %v12278_v11 = vld [vmem:[#allocation9 + $0xb8c] ss:$16 sps:$4 sm:$0xff]   ;;  %v12273_v12 = vld [vmem:[#allocation9 + $0xb80] ss:$16 sps:$4 sm:$0xff]  }
 0x9b2   :  { %9410 = vmatprep.mubr.bf16.mxu0 %v6073_v15  ;;  %9707 = vmatpush1.bf16.msra.mxu1 %v12204_v14  ;;  %v5888_v14 = vrot.slane %v13177_v4, %v13135_v43 }
 0x9b3   :  { %9738 = vmatprep.mubr.bf16.mxu1 %v6073_v15  ;;  %9380 = vmatprep.subr.bf16.mxu0 %v12209_v33  ;;  %v12276_v33 = vld [vmem:[#allocation9 + $0xb88] ss:$16 sps:$4 sm:$0xff]   ;;  %v12281_v15 = vld [vmem:[#allocation9 + $0xba4] ss:$16 sps:$4 sm:$0xff]  }
 0x9b4   :  { %9708 = vmatprep.subr.bf16.mxu1 %v12212_v17  ;;  %v12284_v17 = vld [vmem:[#allocation9 + $0xbac] ss:$16 sps:$4 sm:$0xff]  }
 0x9b5   :  { %9381 = vmatpush1.bf16.msra.mxu0 %v12207_v22  ;;  %v5900_v22 = vrot.slane %v13177_v4, %v13138_v41 }
 0x9b6   :  { %9709 = vmatpush1.bf16.msra.mxu1 %v12210_v53  ;;  %9382 = vmatprep.subr.bf16.mxu0 %v12215_v3  ;;  %v12279_v53 = vld [vmem:[#allocation9 + $0xba0] ss:$16 sps:$4 sm:$0xff]   ;;  %v5935_v3 = vmul.f32 %v5888_v14, %v13080_v24  ;;  %v12288_v24 = vld [vmem:[#allocation9 + $0xbc8] ss:$16 sps:$4 sm:$0xff]  }
 0x9b7   :  { %9710 = vmatprep.subr.bf16.mxu1 %v12218_v35  ;;  %v5993_v35 = vrot.slane %v13181_v46, %v13135_v43  ;;  %v12336_v14 = vld [vmem:[#allocation9 + $0xcc8] ss:$16 sps:$4 sm:$0xff]  }
 0x9b9   :  { %9383 = vmatpush1.bf16.msra.mxu0 %v12213_v44  ;;  %v12282_v44 = vld [vmem:[#allocation9 + $0xba8] ss:$16 sps:$4 sm:$0xff]  }
 0x9ba   :  { %9711 = vmatpush1.bf16.msra.mxu1 %v12216_v29  ;;  %9384 = vmatprep.subr.bf16.mxu0 %v12221_v40  ;;  %v12287_v29 = vld [vmem:[#allocation9 + $0xbc4] ss:$16 sps:$4 sm:$0xff]   ;;  %v12290_v40 = vld [vmem:[#allocation9 + $0xbcc] ss:$16 sps:$4 sm:$0xff]  }
 0x9bb   :  { %9712 = vmatprep.subr.bf16.mxu1 %v12224_v27  ;;  %v5938_v27 = vmul.f32 %v5900_v22, %v13170_v21  ;;  %v12299_v21 = vld [vmem:[#allocation9 + $0xc04] ss:$16 sps:$4 sm:$0xff]   ;;  %v12342_v22 = vld [vmem:[#allocation9 + $0xce8] ss:$16 sps:$4 sm:$0xff]  }
 0x9bd   :  { %9385 = vmatpush1.bf16.msra.mxu0 %v12219_v32  ;;  %v6005_v32 = vrot.slane %v13181_v46, %v13138_v41 }
 0x9be   :  { %9713 = vmatpush1.bf16.msra.mxu1 %v12222_v31  ;;  %9386 = vmatprep.subr.bf16.mxu0 %v12227_v34  ;;  %v12285_v31 = vld [vmem:[#allocation9 + $0xbc0] ss:$16 sps:$4 sm:$0xff]   ;;  %v6040_v34 = vadd.f32 %v5993_v35, %v5935_v3  ;;  %v12350_v3 = vld [vmem:[#allocation9 + $0xd0c] ss:$16 sps:$4 sm:$0xff]  }
 0x9bf   :  { %9714 = vmatprep.subr.bf16.mxu1 %v12230_v26  ;;  %v12293_v26 = vld [vmem:[#allocation9 + $0xbe4] ss:$16 sps:$4 sm:$0xff]   ;;  %v12345_v35 = vld [vmem:[#allocation9 + $0xd00] ss:$16 sps:$4 sm:$0xff]  }
 0x9c1   :  { %9387 = vmatpush1.bf16.msra.mxu0 %v12225_v42  ;;  %v12296_v42 = vld [vmem:[#allocation9 + $0xbec] ss:$16 sps:$4 sm:$0xff]  }
 0x9c2   :  { %9715 = vmatpush1.bf16.msra.mxu1 %v12228_v7  ;;  %9388 = vmatprep.subr.bf16.mxu0 %v12233_v36  ;;  %v6043_v7 = vadd.f32 %v6005_v32, %v5938_v27  ;;  %v12291_v36 = vld [vmem:[#allocation9 + $0xbe0] ss:$16 sps:$4 sm:$0xff]   ;;  %v12354_v32 = vld [vmem:[#allocation9 + $0xd28] ss:$16 sps:$4 sm:$0xff]  }
 0x9c3   :  { %9716 = vmatprep.subr.bf16.mxu1 %v12236_v37  ;;  %v6056_v37 = vmax.f32 %v6040_v34, 0.0  ;;  %v12351_v27 = vld [vmem:[#allocation9 + $0xd20] ss:$16 sps:$4 sm:$0xff]   ;;  %v12362_v34 = vld [vmem:[#allocation9 + $0xd4c] ss:$16 sps:$4 sm:$0xff]  }
 0x9c4   :  { %v6059_v41 = vmax.f32 %v6043_v7, 0.0  ;;  %v12368_v7 = vld [vmem:[#allocation9 + $0xd6c] ss:$16 sps:$4 sm:$0xff]  }
 0x9c5   :  { %9389 = vmatpush1.bf16.msra.mxu0 %v12231_v38  ;;  %v12294_v38 = vld [vmem:[#allocation9 + $0xbe8] ss:$16 sps:$4 sm:$0xff]  }
 0x9c6   :  { %9717 = vmatpush1.bf16.msra.mxu1 %v12234_v48  ;;  %9390 = vmatprep.subr.bf16.mxu0 %v12239_v49  ;;  %v12302_v48 = vld [vmem:[#allocation9 + $0xc0c] ss:$16 sps:$4 sm:$0xff]   ;;  %v12297_v49 = vld [vmem:[#allocation9 + $0xc00] ss:$16 sps:$4 sm:$0xff]  }
 0x9c7   :  { %9718 = vmatprep.subr.bf16.mxu1 %v12242_v47  ;;  %v6072_v47 = vpack.c.bf16 %v6056_v37, %v6056_v37  ;;  %v12366_v37 = vld [vmem:[#allocation9 + $0xd68] ss:$16 sps:$4 sm:$0xff]  }
 0x9c9   :  { %9391 = vmatpush1.bf16.msra.mxu0 %v12237_v51  ;;  %v12300_v51 = vld [vmem:[#allocation9 + $0xc08] ss:$16 sps:$4 sm:$0xff]  }
 0x9ca   :  { %9719 = vmatpush1.bf16.msra.mxu1 %v12240_v50  ;;  %9392 = vmatprep.subr.bf16.mxu0 %v12245_v18  ;;  %v12305_v50 = vld [vmem:[#allocation9 + $0xc24] ss:$16 sps:$4 sm:$0xff]   ;;  %v6075_v18 = vpack.c.bf16 %v6059_v41, %v6059_v41  ;;  %v5896_v41 = vrot.slane %v13177_v4, %v13151_v10 }
 0x9cb   :  { %9720 = vmatprep.subr.bf16.mxu1 %v12248_v52  ;;  %v12308_v52 = vld [vmem:[#allocation9 + $0xc2c] ss:$16 sps:$4 sm:$0xff]  }
 0x9cd   :  { %9393 = vmatpush1.bf16.msra.mxu0 %v12243_v54  ;;  %v12303_v54 = vld [vmem:[#allocation9 + $0xc20] ss:$16 sps:$4 sm:$0xff]  }
 0x9ce   :  { %9721 = vmatpush1.bf16.msra.mxu1 %v12246_v55  ;;  %9394 = vmatprep.subr.bf16.mxu0 %v12251_v56  ;;  %v12306_v55 = vld [vmem:[#allocation9 + $0xc28] ss:$16 sps:$4 sm:$0xff]   ;;  %v12311_v56 = vld [vmem:[#allocation9 + $0xc44] ss:$16 sps:$4 sm:$0xff]  }
 0x9cf   :  { %9722 = vmatprep.subr.bf16.mxu1 %v12254_v57  ;;  %v12314_v57 = vld [vmem:[#allocation9 + $0xc4c] ss:$16 sps:$4 sm:$0xff]  }
 0x9d1   :  { %9395 = vmatpush1.bf16.msra.mxu0 %v12249_v62  ;;  %v12309_v62 = vld [vmem:[#allocation9 + $0xc40] ss:$16 sps:$4 sm:$0xff]  }
 0x9d2   :  { %9723 = vmatpush1.bf16.msra.mxu1 %v12252_v58  ;;  %9396 = vmatprep.subr.bf16.mxu0 %v12257_v60  ;;  %v12312_v58 = vld [vmem:[#allocation9 + $0xc48] ss:$16 sps:$4 sm:$0xff]   ;;  %v12317_v60 = vld [vmem:[#allocation9 + $0xc64] ss:$16 sps:$4 sm:$0xff]  }
 0x9d3   :  { %9724 = vmatprep.subr.bf16.mxu1 %v12260_v25  ;;  %v12320_v25 = vld [vmem:[#allocation9 + $0xc6c] ss:$16 sps:$4 sm:$0xff]  }
 0x9d5   :  { %9397 = vmatpush1.bf16.msra.mxu0 %v12255_v61  ;;  %v12315_v61 = vld [vmem:[#allocation9 + $0xc60] ss:$16 sps:$4 sm:$0xff]  }
 0x9d6   :  { %9725 = vmatpush1.bf16.msra.mxu1 %v12258_v23  ;;  %9398 = vmatprep.subr.bf16.mxu0 %v12263_v63  ;;  %v12318_v23 = vld [vmem:[#allocation9 + $0xc68] ss:$16 sps:$4 sm:$0xff]   ;;  %v12323_v63 = vld [vmem:[#allocation9 + $0xc84] ss:$16 sps:$4 sm:$0xff]  }
 0x9d7   :  { %9726 = vmatprep.subr.bf16.mxu1 %v12266_v6  ;;  %v12326_v6 = vld [vmem:[#allocation9 + $0xc8c] ss:$16 sps:$4 sm:$0xff]  }
 0x9d9   :  { %9399 = vmatpush1.bf16.msra.mxu0 %v12261_v1  ;;  %v12321_v1 = vld [vmem:[#allocation9 + $0xc80] ss:$16 sps:$4 sm:$0xff]  }
 0x9da   :  { %9727 = vmatpush1.bf16.msra.mxu1 %v12264_v5  ;;  %9400 = vmatprep.subr.bf16.mxu0 %v12269_v8  ;;  %v12324_v5 = vld [vmem:[#allocation9 + $0xc88] ss:$16 sps:$4 sm:$0xff]   ;;  %v12329_v8 = vld [vmem:[#allocation9 + $0xca4] ss:$16 sps:$4 sm:$0xff]  }
 0x9db   :  { %9728 = vmatprep.subr.bf16.mxu1 %v12272_v16  ;;  %v12332_v16 = vld [vmem:[#allocation9 + $0xcac] ss:$16 sps:$4 sm:$0xff]  }
 0x9dd   :  { %9401 = vmatpush1.bf16.msra.mxu0 %v12267_v28  ;;  %v12327_v28 = vld [vmem:[#allocation9 + $0xca0] ss:$16 sps:$4 sm:$0xff]  }
 0x9de   :  { %9729 = vmatpush1.bf16.msra.mxu1 %v12270_v9  ;;  %9402 = vmatprep.subr.bf16.mxu0 %v12275_v45  ;;  %v12330_v9 = vld [vmem:[#allocation9 + $0xca8] ss:$16 sps:$4 sm:$0xff]   ;;  %v12335_v45 = vld [vmem:[#allocation9 + $0xcc4] ss:$16 sps:$4 sm:$0xff]  }
 0x9df   :  { %9730 = vmatprep.subr.bf16.mxu1 %v12278_v11  ;;  %v12338_v11 = vld [vmem:[#allocation9 + $0xccc] ss:$16 sps:$4 sm:$0xff]  }
 0x9e1   :  { %9403 = vmatpush1.bf16.msra.mxu0 %v12273_v12  ;;  %v12333_v12 = vld [vmem:[#allocation9 + $0xcc0] ss:$16 sps:$4 sm:$0xff]  }
 0x9e2   :  { %9731 = vmatpush1.bf16.msra.mxu1 %v12276_v33  ;;  %9404 = vmatprep.subr.bf16.mxu0 %v12281_v15  ;;  %v12341_v33 = vld [vmem:[#allocation9 + $0xce4] ss:$16 sps:$4 sm:$0xff]   ;;  %v12344_v15 = vld [vmem:[#allocation9 + $0xcec] ss:$16 sps:$4 sm:$0xff]  }
 0x9e3   :  { %9732 = vmatprep.subr.bf16.mxu1 %v12284_v17  ;;  %v12339_v17 = vld [vmem:[#allocation9 + $0xce0] ss:$16 sps:$4 sm:$0xff]  }
 0x9e5   :  { %9405 = vmatpush1.bf16.msra.mxu0 %v12279_v53  ;;  %v12347_v53 = vld [vmem:[#allocation9 + $0xd04] ss:$16 sps:$4 sm:$0xff]  }
 0x9e6   :  { %9733 = vmatpush1.bf16.msra.mxu1 %v12282_v44  ;;  %9406 = vmatprep.subr.bf16.mxu0 %v12287_v29  ;;  %v12348_v44 = vld [vmem:[#allocation9 + $0xd08] ss:$16 sps:$4 sm:$0xff]   ;;  %v12353_v29 = vld [vmem:[#allocation9 + $0xd24] ss:$16 sps:$4 sm:$0xff]  }
 0x9e7   :  { %9734 = vmatprep.subr.bf16.mxu1 %v12290_v40  ;;  %v12356_v40 = vld [vmem:[#allocation9 + $0xd2c] ss:$16 sps:$4 sm:$0xff]  }
 0x9e9   :  { %9407 = vmatpush1.bf16.msra.mxu0 %v12285_v31  ;;  %v12359_v31 = vld [vmem:[#allocation9 + $0xd44] ss:$16 sps:$4 sm:$0xff]  }
 0x9ea   :  { %9735 = vmatpush1.bf16.msra.mxu1 %v12288_v24  ;;  %9408 = vmatprep.subr.bf16.mxu0 %v12293_v26  ;;  %v12357_v24 = vld [vmem:[#allocation9 + $0xd40] ss:$16 sps:$4 sm:$0xff]   ;;  %v12360_v26 = vld [vmem:[#allocation9 + $0xd48] ss:$16 sps:$4 sm:$0xff]  }
 0x9eb   :  { %9736 = vmatprep.subr.bf16.mxu1 %v12296_v42  ;;  %v12365_v42 = vld [vmem:[#allocation9 + $0xd64] ss:$16 sps:$4 sm:$0xff]  }
 0x9ed   :  { %9409 = vmatpush1.bf16.msra.mxu0 %v12291_v36  ;;  %v12363_v36 = vld [vmem:[#allocation9 + $0xd60] ss:$16 sps:$4 sm:$0xff]  }
 0x9ee   :  { %9737 = vmatpush1.bf16.msra.mxu1 %v12294_v38  ;;  %9419 = vmatprep.subr.bf16.mxu0 %v12299_v21  ;;  %v12371_v38 = vld [vmem:[#allocation9 + $0xd84] ss:$16 sps:$4 sm:$0xff]   ;;  %v12374_v21 = vld [vmem:[#allocation9 + $0xd8c] ss:$16 sps:$4 sm:$0xff]  }
 0x9ef   :  { %9747 = vmatprep.subr.bf16.mxu1 %v12302_v48  ;;  %v12369_v48 = vld [vmem:[#allocation9 + $0xd80] ss:$16 sps:$4 sm:$0xff]  }
 0x9f0   :  { %9411 = vmatmul.mubr.bf16.vlgmr.msra.gmra.mrb[16].mxu0 %v6072_v47 }
 0x9f1   :  { %9739 = vmatmul.mubr.bf16.vlgmr.msra.gmra.mrb[16].mxu1 %v6072_v47  ;;  %9420 = vmatpush1.bf16.msra.mxu0 %v12297_v49  ;;  %v12372_v49 = vld [vmem:[#allocation9 + $0xd88] ss:$16 sps:$4 sm:$0xff]   ;;  %v12377_v47 = vld [vmem:[#allocation9 + $0xda4] ss:$16 sps:$4 sm:$0xff]  }
 0x9f2   :  { %9451 = vmatprep.mubr.bf16.mxu0 %v6075_v18  ;;  %9748 = vmatpush1.bf16.msra.mxu1 %v12300_v51  ;;  %v12380_v51 = vld [vmem:[#allocation9 + $0xdac] ss:$16 sps:$4 sm:$0xff]  }
 0x9f3   :  { %9779 = vmatprep.mubr.bf16.mxu1 %v6075_v18  ;;  %9421 = vmatprep.subr.bf16.mxu0 %v12305_v50  ;;  %v5908_v50 = vrot.slane %v13177_v4, %v13154_v13  ;;  %v12375_v18 = vld [vmem:[#allocation9 + $0xda0] ss:$16 sps:$4 sm:$0xff]  }
 0x9f4   :  { %9749 = vmatprep.subr.bf16.mxu1 %v12308_v52  ;;  %v5937_v52 = vmul.f32 %v5896_v41, %v13166_v30  ;;  %v12384_v30 = vld [vmem:[#allocation9 + $0xdc8] ss:$16 sps:$4 sm:$0xff]  }
 0x9f5   :  { %9422 = vmatpush1.bf16.msra.mxu0 %v12303_v54  ;;  %v6001_v54 = vrot.slane %v13181_v46, %v13151_v10  ;;  %v12392_v10 = vld [vmem:[#allocation9 + $0xdec] ss:$16 sps:$4 sm:$0xff]   ;;  %v12438_v41 = vld [vmem:[#allocation9 + $0xee8] ss:$16 sps:$4 sm:$0xff]  }
 0x9f6   :  { %9750 = vmatpush1.bf16.msra.mxu1 %v12306_v55  ;;  %9423 = vmatprep.subr.bf16.mxu0 %v12311_v56  ;;  %v12378_v55 = vld [vmem:[#allocation9 + $0xda8] ss:$16 sps:$4 sm:$0xff]   ;;  %v12383_v56 = vld [vmem:[#allocation9 + $0xdc4] ss:$16 sps:$4 sm:$0xff]  }
 0x9f7   :  { %9751 = vmatprep.subr.bf16.mxu1 %v12314_v57  ;;  %v12386_v57 = vld [vmem:[#allocation9 + $0xdcc] ss:$16 sps:$4 sm:$0xff]  }
 0x9f9   :  { %9424 = vmatpush1.bf16.msra.mxu0 %v12309_v62  ;;  %v5940_v62 = vmul.f32 %v5908_v50, %v13172_v20  ;;  %v12395_v20 = vld [vmem:[#allocation9 + $0xe04] ss:$16 sps:$4 sm:$0xff]   ;;  %v12444_v50 = vld [vmem:[#allocation9 + $0xf08] ss:$16 sps:$4 sm:$0xff]  }
 0x9fa   :  { %9752 = vmatpush1.bf16.msra.mxu1 %v12312_v58  ;;  %9425 = vmatprep.subr.bf16.mxu0 %v12317_v60  ;;  %v6013_v58 = vrot.slane %v13181_v46, %v13154_v13  ;;  %v12381_v60 = vld [vmem:[#allocation9 + $0xdc0] ss:$16 sps:$4 sm:$0xff]  }
 0x9fb   :  { %9753 = vmatprep.subr.bf16.mxu1 %v12320_v25  ;;  %v6042_v25 = vadd.f32 %v6001_v54, %v5937_v52  ;;  %v12452_v52 = vld [vmem:[#allocation9 + $0xf2c] ss:$16 sps:$4 sm:$0xff]   ;;  %v12447_v54 = vld [vmem:[#allocation9 + $0xf20] ss:$16 sps:$4 sm:$0xff]  }
 0x9fd   :  { %9426 = vmatpush1.bf16.msra.mxu0 %v12315_v61  ;;  %v12389_v61 = vld [vmem:[#allocation9 + $0xde4] ss:$16 sps:$4 sm:$0xff]  }
 0x9fe   :  { %9754 = vmatpush1.bf16.msra.mxu1 %v12318_v23  ;;  %9427 = vmatprep.subr.bf16.mxu0 %v12323_v63  ;;  %v6045_v23 = vadd.f32 %v6013_v58, %v5940_v62  ;;  %v12387_v63 = vld [vmem:[#allocation9 + $0xde0] ss:$16 sps:$4 sm:$0xff]   ;;  %v12456_v58 = vld [vmem:[#allocation9 + $0xf48] ss:$16 sps:$4 sm:$0xff]  }
 0x9ff   :  { %9755 = vmatprep.subr.bf16.mxu1 %v12326_v6  ;;  %v6058_v6 = vmax.f32 %v6042_v25, 0.0  ;;  %v12453_v62 = vld [vmem:[#allocation9 + $0xf40] ss:$16 sps:$4 sm:$0xff]   ;;  %v12464_v25 = vld [vmem:[#allocation9 + $0xf6c] ss:$16 sps:$4 sm:$0xff]  }
 0xa00   :  { %v6061_v13 = vmax.f32 %v6045_v23, 0.0  ;;  %v12470_v23 = vld [vmem:[#allocation9 + $0xf8c] ss:$16 sps:$4 sm:$0xff]  }
 0xa01   :  { %9428 = vmatpush1.bf16.msra.mxu0 %v12321_v1  ;;  %v12390_v1 = vld [vmem:[#allocation9 + $0xde8] ss:$16 sps:$4 sm:$0xff]  }
 0xa02   :  { %9756 = vmatpush1.bf16.msra.mxu1 %v12324_v5  ;;  %9429 = vmatprep.subr.bf16.mxu0 %v12329_v8  ;;  %v12398_v5 = vld [vmem:[#allocation9 + $0xe0c] ss:$16 sps:$4 sm:$0xff]   ;;  %v12393_v8 = vld [vmem:[#allocation9 + $0xe00] ss:$16 sps:$4 sm:$0xff]  }
 0xa03   :  { %9757 = vmatprep.subr.bf16.mxu1 %v12332_v16  ;;  %v6074_v16 = vpack.c.bf16 %v6058_v6, %v6058_v6  ;;  %v5904_v6 = vrot.slane %v13177_v4, %v13175_v59  ;;  %v12477_v4 = vld [vmem:[#allocation9 + $0xfc0] ss:$16 sps:$4 sm:$0xff]  }
 0xa05   :  { %9430 = vmatpush1.bf16.msra.mxu0 %v12327_v28  ;;  %v12396_v28 = vld [vmem:[#allocation9 + $0xe08] ss:$16 sps:$4 sm:$0xff]  }
 0xa06   :  { %9758 = vmatpush1.bf16.msra.mxu1 %v12330_v9  ;;  %9431 = vmatprep.subr.bf16.mxu0 %v12335_v45  ;;  %v12401_v9 = vld [vmem:[#allocation9 + $0xe24] ss:$16 sps:$4 sm:$0xff]   ;;  %v6077_v45 = vpack.c.bf16 %v6061_v13, %v6061_v13  ;;  %v12471_v13 = vld [vmem:[#allocation9 + $0xfa0] ss:$16 sps:$4 sm:$0xff]  }
 0xa07   :  { %9759 = vmatprep.subr.bf16.mxu1 %v12338_v11  ;;  %v12404_v11 = vld [vmem:[#allocation9 + $0xe2c] ss:$16 sps:$4 sm:$0xff]  }
 0xa09   :  { %9432 = vmatpush1.bf16.msra.mxu0 %v12333_v12  ;;  %v12399_v12 = vld [vmem:[#allocation9 + $0xe20] ss:$16 sps:$4 sm:$0xff]  }
 0xa0a   :  { %9760 = vmatpush1.bf16.msra.mxu1 %v12336_v14  ;;  %9433 = vmatprep.subr.bf16.mxu0 %v12341_v33  ;;  %v12402_v14 = vld [vmem:[#allocation9 + $0xe28] ss:$16 sps:$4 sm:$0xff]   ;;  %v12407_v33 = vld [vmem:[#allocation9 + $0xe44] ss:$16 sps:$4 sm:$0xff]  }
 0xa0b   :  { %9761 = vmatprep.subr.bf16.mxu1 %v12344_v15  ;;  %v12410_v15 = vld [vmem:[#allocation9 + $0xe4c] ss:$16 sps:$4 sm:$0xff]  }
 0xa0d   :  { %9434 = vmatpush1.bf16.msra.mxu0 %v12339_v17  ;;  %v12405_v17 = vld [vmem:[#allocation9 + $0xe40] ss:$16 sps:$4 sm:$0xff]  }
 0xa0e   :  { %9762 = vmatpush1.bf16.msra.mxu1 %v12342_v22  ;;  %9435 = vmatprep.subr.bf16.mxu0 %v12347_v53  ;;  %v12408_v22 = vld [vmem:[#allocation9 + $0xe48] ss:$16 sps:$4 sm:$0xff]   ;;  %v12413_v53 = vld [vmem:[#allocation9 + $0xe64] ss:$16 sps:$4 sm:$0xff]  }
 0xa0f   :  { %9763 = vmatprep.subr.bf16.mxu1 %v12350_v3  ;;  %v12416_v3 = vld [vmem:[#allocation9 + $0xe6c] ss:$16 sps:$4 sm:$0xff]  }
 0xa11   :  { %9436 = vmatpush1.bf16.msra.mxu0 %v12345_v35  ;;  %v12411_v35 = vld [vmem:[#allocation9 + $0xe60] ss:$16 sps:$4 sm:$0xff]  }
 0xa12   :  { %9764 = vmatpush1.bf16.msra.mxu1 %v12348_v44  ;;  %9437 = vmatprep.subr.bf16.mxu0 %v12353_v29  ;;  %v12414_v44 = vld [vmem:[#allocation9 + $0xe68] ss:$16 sps:$4 sm:$0xff]   ;;  %v12419_v29 = vld [vmem:[#allocation9 + $0xe84] ss:$16 sps:$4 sm:$0xff]  }
 0xa13   :  { %9765 = vmatprep.subr.bf16.mxu1 %v12356_v40  ;;  %v12422_v40 = vld [vmem:[#allocation9 + $0xe8c] ss:$16 sps:$4 sm:$0xff]  }
 0xa15   :  { %9438 = vmatpush1.bf16.msra.mxu0 %v12351_v27  ;;  %v12417_v27 = vld [vmem:[#allocation9 + $0xe80] ss:$16 sps:$4 sm:$0xff]  }
 0xa16   :  { %9766 = vmatpush1.bf16.msra.mxu1 %v12354_v32  ;;  %9439 = vmatprep.subr.bf16.mxu0 %v12359_v31  ;;  %v12420_v32 = vld [vmem:[#allocation9 + $0xe88] ss:$16 sps:$4 sm:$0xff]   ;;  %v12425_v31 = vld [vmem:[#allocation9 + $0xea4] ss:$16 sps:$4 sm:$0xff]  }
 0xa17   :  { %9767 = vmatprep.subr.bf16.mxu1 %v12362_v34  ;;  %v12428_v34 = vld [vmem:[#allocation9 + $0xeac] ss:$16 sps:$4 sm:$0xff]  }
 0xa19   :  { %9440 = vmatpush1.bf16.msra.mxu0 %v12357_v24  ;;  %v12423_v24 = vld [vmem:[#allocation9 + $0xea0] ss:$16 sps:$4 sm:$0xff]  }
 0xa1a   :  { %9768 = vmatpush1.bf16.msra.mxu1 %v12360_v26  ;;  %9441 = vmatprep.subr.bf16.mxu0 %v12365_v42  ;;  %v12426_v26 = vld [vmem:[#allocation9 + $0xea8] ss:$16 sps:$4 sm:$0xff]   ;;  %v12431_v42 = vld [vmem:[#allocation9 + $0xec4] ss:$16 sps:$4 sm:$0xff]  }
 0xa1b   :  { %9769 = vmatprep.subr.bf16.mxu1 %v12368_v7  ;;  %v12434_v7 = vld [vmem:[#allocation9 + $0xecc] ss:$16 sps:$4 sm:$0xff]  }
 0xa1d   :  { %9442 = vmatpush1.bf16.msra.mxu0 %v12363_v36  ;;  %v12429_v36 = vld [vmem:[#allocation9 + $0xec0] ss:$16 sps:$4 sm:$0xff]  }
 0xa1e   :  { %9770 = vmatpush1.bf16.msra.mxu1 %v12366_v37  ;;  %9443 = vmatprep.subr.bf16.mxu0 %v12371_v38  ;;  %v12432_v37 = vld [vmem:[#allocation9 + $0xec8] ss:$16 sps:$4 sm:$0xff]   ;;  %v12437_v38 = vld [vmem:[#allocation9 + $0xee4] ss:$16 sps:$4 sm:$0xff]  }
 0xa1f   :  { %9771 = vmatprep.subr.bf16.mxu1 %v12374_v21  ;;  %v12440_v21 = vld [vmem:[#allocation9 + $0xeec] ss:$16 sps:$4 sm:$0xff]  }
 0xa21   :  { %9444 = vmatpush1.bf16.msra.mxu0 %v12369_v48  ;;  %v12435_v48 = vld [vmem:[#allocation9 + $0xee0] ss:$16 sps:$4 sm:$0xff]  }
 0xa22   :  { %9772 = vmatpush1.bf16.msra.mxu1 %v12372_v49  ;;  %9445 = vmatprep.subr.bf16.mxu0 %v12377_v47  ;;  %v12443_v49 = vld [vmem:[#allocation9 + $0xf04] ss:$16 sps:$4 sm:$0xff]   ;;  %v12446_v47 = vld [vmem:[#allocation9 + $0xf0c] ss:$16 sps:$4 sm:$0xff]  }
 0xa23   :  { %9773 = vmatprep.subr.bf16.mxu1 %v12380_v51  ;;  %v12441_v51 = vld [vmem:[#allocation9 + $0xf00] ss:$16 sps:$4 sm:$0xff]  }
 0xa25   :  { %9446 = vmatpush1.bf16.msra.mxu0 %v12375_v18  ;;  %v12449_v18 = vld [vmem:[#allocation9 + $0xf24] ss:$16 sps:$4 sm:$0xff]  }
 0xa26   :  { %9774 = vmatpush1.bf16.msra.mxu1 %v12378_v55  ;;  %9447 = vmatprep.subr.bf16.mxu0 %v12383_v56  ;;  %v12450_v55 = vld [vmem:[#allocation9 + $0xf28] ss:$16 sps:$4 sm:$0xff]   ;;  %v12455_v56 = vld [vmem:[#allocation9 + $0xf44] ss:$16 sps:$4 sm:$0xff]  }
 0xa27   :  { %9775 = vmatprep.subr.bf16.mxu1 %v12386_v57  ;;  %v12458_v57 = vld [vmem:[#allocation9 + $0xf4c] ss:$16 sps:$4 sm:$0xff]  }
 0xa29   :  { %9448 = vmatpush1.bf16.msra.mxu0 %v12381_v60  ;;  %v12461_v60 = vld [vmem:[#allocation9 + $0xf64] ss:$16 sps:$4 sm:$0xff]  }
 0xa2a   :  { %9776 = vmatpush1.bf16.msra.mxu1 %v12384_v30  ;;  %9449 = vmatprep.subr.bf16.mxu0 %v12389_v61  ;;  %v12459_v30 = vld [vmem:[#allocation9 + $0xf60] ss:$16 sps:$4 sm:$0xff]   ;;  %v12462_v61 = vld [vmem:[#allocation9 + $0xf68] ss:$16 sps:$4 sm:$0xff]  }
 0xa2b   :  { %9777 = vmatprep.subr.bf16.mxu1 %v12392_v10  ;;  %v12467_v10 = vld [vmem:[#allocation9 + $0xf84] ss:$16 sps:$4 sm:$0xff]  }
 0xa2d   :  { %9450 = vmatpush1.bf16.msra.mxu0 %v12387_v63  ;;  %v12465_v63 = vld [vmem:[#allocation9 + $0xf80] ss:$16 sps:$4 sm:$0xff]  }
 0xa2e   :  { %9778 = vmatpush1.bf16.msra.mxu1 %v12390_v1  ;;  %9460 = vmatprep.subr.bf16.mxu0 %v12395_v20  ;;  %v12468_v1 = vld [vmem:[#allocation9 + $0xf88] ss:$16 sps:$4 sm:$0xff]   ;;  %v12473_v20 = vld [vmem:[#allocation9 + $0xfa4] ss:$16 sps:$4 sm:$0xff]  }
 0xa2f   :  { %9788 = vmatprep.subr.bf16.mxu1 %v12398_v5  ;;  %v12476_v5 = vld [vmem:[#allocation9 + $0xfac] ss:$16 sps:$4 sm:$0xff]  }
 0xa30   :  { %9452 = vmatmul.mubr.bf16.vlgmr.msra.gmra.mrb[16].mxu0 %v6074_v16 }
 0xa31   :  { %9780 = vmatmul.mubr.bf16.vlgmr.msra.gmra.mrb[16].mxu1 %v6074_v16  ;;  %9461 = vmatpush1.bf16.msra.mxu0 %v12393_v8  ;;  %v5939_v8 = vmul.f32 %v5904_v6, %v13168_v19  ;;  %v6009_v16 = vrot.slane %v13181_v46, %v13175_v59  ;;  %v12483_v19 = vld [vmem:[#allocation9 + $0xfe0] ss:$16 sps:$4 sm:$0xff]   ;;  %v12486_v59 = vld [vmem:[#allocation9 + $0xfe8] ss:$16 sps:$4 sm:$0xff]   ;;  %v12491_v46 = vld [vmem:[#allocation11 + $0x4] ss:$8 sps:$4 sm:$0xff]  }
 0xa32   :  { %9492 = vmatprep.mubr.bf16.mxu0 %v6077_v45  ;;  %9789 = vmatpush1.bf16.msra.mxu1 %v12396_v28  ;;  %v12474_v28 = vld [vmem:[#allocation9 + $0xfa8] ss:$16 sps:$4 sm:$0xff]  }
 0xa33   :  { %9820 = vmatprep.mubr.bf16.mxu1 %v6077_v45  ;;  %9462 = vmatprep.subr.bf16.mxu0 %v12401_v9  ;;  %v12479_v9 = vld [vmem:[#allocation9 + $0xfc4] ss:$16 sps:$4 sm:$0xff]   ;;  %v12482_v45 = vld [vmem:[#allocation9 + $0xfcc] ss:$16 sps:$4 sm:$0xff]   ;;  %v12564_v6 = vld [vmem:[#allocation11 + $0x360] ss:$8 sps:$4 sm:$0xff]  }
 0xa34   :  { %9790 = vmatprep.subr.bf16.mxu1 %v12404_v11  ;;  %v6044_v11 = vadd.f32 %v6009_v16, %v5939_v8  ;;  %v12594_v8 = vld [vmem:[#allocation11 + $0x390] ss:$8 sps:$4 sm:$0xff]   ;;  %v12595_v16 = vld [vmem:[#allocation11 + $0x3a0] ss:$8 sps:$4 sm:$0xff]  }
 0xa35   :  { %9463 = vmatpush1.bf16.msra.mxu0 %v12399_v12  ;;  %v12480_v12 = vld [vmem:[#allocation9 + $0xfc8] ss:$16 sps:$4 sm:$0xff]  }
 0xa36   :  { %9791 = vmatpush1.bf16.msra.mxu1 %v12402_v14  ;;  %9464 = vmatprep.subr.bf16.mxu0 %v12407_v33  ;;  %v12485_v14 = vld [vmem:[#allocation9 + $0xfe4] ss:$16 sps:$4 sm:$0xff]   ;;  %v12488_v33 = vld [vmem:[#allocation9 + $0xfec] ss:$16 sps:$4 sm:$0xff]  }
 0xa37   :  { %9792 = vmatprep.subr.bf16.mxu1 %v12410_v15  ;;  %v6060_v15 = vmax.f32 %v6044_v11, 0.0 }
 0xa39   :  { %9465 = vmatpush1.bf16.msra.mxu0 %v12405_v17  ;;  %v12489_v17 = vld [vmem:[#allocation11] ss:$8 sps:$4 sm:$0xff]  }
 0xa3a   :  { %9793 = vmatpush1.bf16.msra.mxu1 %v12408_v22  ;;  %9466 = vmatprep.subr.bf16.mxu0 %v12413_v53  ;;  %v6076_v22 = vpack.c.bf16 %v6060_v15, %v6060_v15  ;;  %v12494_v53 = vld [vmem:[#allocation11 + $0x14] ss:$8 sps:$4 sm:$0xff]  }
 0xa3b   :  { %9794 = vmatprep.subr.bf16.mxu1 %v12416_v3  ;;  %v12492_v3 = vld [vmem:[#allocation11 + $0x10] ss:$8 sps:$4 sm:$0xff]  }
 0xa3d   :  { %9467 = vmatpush1.bf16.msra.mxu0 %v12411_v35  ;;  %v12497_v35 = vld [vmem:[#allocation11 + $0x24] ss:$8 sps:$4 sm:$0xff]  }
 0xa3e   :  { %9795 = vmatpush1.bf16.msra.mxu1 %v12414_v44  ;;  %9468 = vmatprep.subr.bf16.mxu0 %v12419_v29  ;;  %v12495_v44 = vld [vmem:[#allocation11 + $0x20] ss:$8 sps:$4 sm:$0xff]   ;;  %v12500_v29 = vld [vmem:[#allocation11 + $0x34] ss:$8 sps:$4 sm:$0xff]  }
 0xa3f   :  { %9796 = vmatprep.subr.bf16.mxu1 %v12422_v40  ;;  %v12498_v40 = vld [vmem:[#allocation11 + $0x30] ss:$8 sps:$4 sm:$0xff]  }
 0xa41   :  { %9469 = vmatpush1.bf16.msra.mxu0 %v12417_v27  ;;  %v12503_v27 = vld [vmem:[#allocation11 + $0x44] ss:$8 sps:$4 sm:$0xff]  }
 0xa42   :  { %9797 = vmatpush1.bf16.msra.mxu1 %v12420_v32  ;;  %9470 = vmatprep.subr.bf16.mxu0 %v12425_v31  ;;  %v12501_v32 = vld [vmem:[#allocation11 + $0x40] ss:$8 sps:$4 sm:$0xff]   ;;  %v12506_v31 = vld [vmem:[#allocation11 + $0x54] ss:$8 sps:$4 sm:$0xff]  }
 0xa43   :  { %9798 = vmatprep.subr.bf16.mxu1 %v12428_v34  ;;  %v12504_v34 = vld [vmem:[#allocation11 + $0x50] ss:$8 sps:$4 sm:$0xff]  }
 0xa45   :  { %9471 = vmatpush1.bf16.msra.mxu0 %v12423_v24  ;;  %v12509_v24 = vld [vmem:[#allocation11 + $0x64] ss:$8 sps:$4 sm:$0xff]  }
 0xa46   :  { %9799 = vmatpush1.bf16.msra.mxu1 %v12426_v26  ;;  %9472 = vmatprep.subr.bf16.mxu0 %v12431_v42  ;;  %v12507_v26 = vld [vmem:[#allocation11 + $0x60] ss:$8 sps:$4 sm:$0xff]   ;;  %v12512_v42 = vld [vmem:[#allocation11 + $0x74] ss:$8 sps:$4 sm:$0xff]  }
 0xa47   :  { %9800 = vmatprep.subr.bf16.mxu1 %v12434_v7  ;;  %v12510_v7 = vld [vmem:[#allocation11 + $0x70] ss:$8 sps:$4 sm:$0xff]  }
 0xa49   :  { %9473 = vmatpush1.bf16.msra.mxu0 %v12429_v36  ;;  %v12515_v36 = vld [vmem:[#allocation11 + $0x84] ss:$8 sps:$4 sm:$0xff]  }
 0xa4a   :  { %9801 = vmatpush1.bf16.msra.mxu1 %v12432_v37  ;;  %9474 = vmatprep.subr.bf16.mxu0 %v12437_v38  ;;  %v12513_v37 = vld [vmem:[#allocation11 + $0x80] ss:$8 sps:$4 sm:$0xff]   ;;  %v12518_v38 = vld [vmem:[#allocation11 + $0x94] ss:$8 sps:$4 sm:$0xff]  }
 0xa4b   :  { %9802 = vmatprep.subr.bf16.mxu1 %v12440_v21  ;;  %v12516_v21 = vld [vmem:[#allocation11 + $0x90] ss:$8 sps:$4 sm:$0xff]  }
 0xa4d   :  { %9475 = vmatpush1.bf16.msra.mxu0 %v12435_v48  ;;  %v12521_v48 = vld [vmem:[#allocation11 + $0xa4] ss:$8 sps:$4 sm:$0xff]  }
 0xa4e   :  { %9803 = vmatpush1.bf16.msra.mxu1 %v12438_v41  ;;  %9476 = vmatprep.subr.bf16.mxu0 %v12443_v49  ;;  %v12519_v41 = vld [vmem:[#allocation11 + $0xa0] ss:$8 sps:$4 sm:$0xff]   ;;  %v12524_v49 = vld [vmem:[#allocation11 + $0xb4] ss:$8 sps:$4 sm:$0xff]  }
 0xa4f   :  { %9804 = vmatprep.subr.bf16.mxu1 %v12446_v47  ;;  %v12522_v47 = vld [vmem:[#allocation11 + $0xb0] ss:$8 sps:$4 sm:$0xff]  }
 0xa51   :  { %9477 = vmatpush1.bf16.msra.mxu0 %v12441_v51  ;;  %v12527_v51 = vld [vmem:[#allocation11 + $0xc4] ss:$8 sps:$4 sm:$0xff]  }
 0xa52   :  { %9805 = vmatpush1.bf16.msra.mxu1 %v12444_v50  ;;  %9478 = vmatprep.subr.bf16.mxu0 %v12449_v18  ;;  %v12525_v50 = vld [vmem:[#allocation11 + $0xc0] ss:$8 sps:$4 sm:$0xff]   ;;  %v12530_v18 = vld [vmem:[#allocation11 + $0xd4] ss:$8 sps:$4 sm:$0xff]  }
 0xa53   :  { %9806 = vmatprep.subr.bf16.mxu1 %v12452_v52  ;;  %v12528_v52 = vld [vmem:[#allocation11 + $0xd0] ss:$8 sps:$4 sm:$0xff]  }
 0xa55   :  { %9479 = vmatpush1.bf16.msra.mxu0 %v12447_v54  ;;  %v12533_v54 = vld [vmem:[#allocation11 + $0xe4] ss:$8 sps:$4 sm:$0xff]  }
 0xa56   :  { %9807 = vmatpush1.bf16.msra.mxu1 %v12450_v55  ;;  %9480 = vmatprep.subr.bf16.mxu0 %v12455_v56  ;;  %v12531_v55 = vld [vmem:[#allocation11 + $0xe0] ss:$8 sps:$4 sm:$0xff]   ;;  %v12536_v56 = vld [vmem:[#allocation11 + $0xf4] ss:$8 sps:$4 sm:$0xff]  }
 0xa57   :  { %9808 = vmatprep.subr.bf16.mxu1 %v12458_v57  ;;  %v12534_v57 = vld [vmem:[#allocation11 + $0xf0] ss:$8 sps:$4 sm:$0xff]  }
 0xa59   :  { %9481 = vmatpush1.bf16.msra.mxu0 %v12453_v62  ;;  %v12539_v62 = vld [vmem:[#allocation11 + $0x104] ss:$8 sps:$4 sm:$0xff]  }
 0xa5a   :  { %9809 = vmatpush1.bf16.msra.mxu1 %v12456_v58  ;;  %9482 = vmatprep.subr.bf16.mxu0 %v12461_v60  ;;  %v12796_v58 = vmov 0.0   ;;  %v12540_v60 = vld [vmem:[#allocation11 + $0x300] ss:$8 sps:$4 sm:$0xff]  }
 0xa5b   :  { %9810 = vmatprep.subr.bf16.mxu1 %v12464_v25  ;;  %133 = vst [vmem:[#allocation2] sm:$0xff] %v12796_v58  ;;  %v12544_v25 = vld [vmem:[#allocation11 + $0x310] ss:$8 sps:$4 sm:$0xff]  }
 0xa5d   :  { %9483 = vmatpush1.bf16.msra.mxu0 %v12459_v30  ;;  %v12548_v30 = vld [vmem:[#allocation11 + $0x320] ss:$8 sps:$4 sm:$0xff]  }
 0xa5e   :  { %9811 = vmatpush1.bf16.msra.mxu1 %v12462_v61  ;;  %9484 = vmatprep.subr.bf16.mxu0 %v12467_v10  ;;  %v12552_v61 = vld [vmem:[#allocation11 + $0x330] ss:$8 sps:$4 sm:$0xff]   ;;  %v12556_v10 = vld [vmem:[#allocation11 + $0x340] ss:$8 sps:$4 sm:$0xff]  }
 0xa5f   :  { %9812 = vmatprep.subr.bf16.mxu1 %v12470_v23  ;;  %v12560_v23 = vld [vmem:[#allocation11 + $0x350] ss:$8 sps:$4 sm:$0xff]  }
 0xa61   :  { %9485 = vmatpush1.bf16.msra.mxu0 %v12465_v63  ;;  %v134_v63 = vld [vmem:[#allocation6] sm:$0xff] }
 0xa62   :  { %9813 = vmatpush1.bf16.msra.mxu1 %v12468_v1  ;;  %9486 = vmatprep.subr.bf16.mxu0 %v12473_v20  ;;  %136 = vst.msk [vmem:[#allocation2] sm:$0xff] %vm135_vm0, %v134_v63  ;;  %v12568_v1 = vld [vmem:[#allocation11 + $0x370] ss:$8 sps:$4 sm:$0xff]  }
 0xa63   :  { %9814 = vmatprep.subr.bf16.mxu1 %v12476_v5  ;;  %v12584_v63 = vld [vmem:[#allocation11 + $0x1d0] ss:$8 sps:$4 sm:$0xff]  }
 0xa65   :  { %9487 = vmatpush1.bf16.msra.mxu0 %v12471_v13  ;;  %v12593_v13 = vld [vmem:[#allocation11 + $0x380] ss:$8 sps:$4 sm:$0xff]  }
 0xa66   :  { %9815 = vmatpush1.bf16.msra.mxu1 %v12474_v28  ;;  %9488 = vmatprep.subr.bf16.mxu0 %v12479_v9  ;;  %v12596_v28 = vld [vmem:[#allocation11 + $0x3b0] ss:$8 sps:$4 sm:$0xff]   ;;  %v12597_v9 = vld [vmem:[#allocation11 + $0x3c0] ss:$8 sps:$4 sm:$0xff]  }
 0xa67   :  { %9816 = vmatprep.subr.bf16.mxu1 %v12482_v45  ;;  %v12598_v45 = vld [vmem:[#allocation11 + $0x3d0] ss:$8 sps:$4 sm:$0xff]  }
 0xa69   :  { %9489 = vmatpush1.bf16.msra.mxu0 %v12477_v4  ;;  %v137_v20 = vld [vmem:[#allocation2] sm:$0xff] }
 0xa6a   :  { %9817 = vmatpush1.bf16.msra.mxu1 %v12480_v12  ;;  %9490 = vmatprep.subr.bf16.mxu0 %v12485_v14  ;;  %v138_v5 = vpack.c.bf16 %v137_v20, %v137_v20  ;;  %v13244_v4 = vld [vmem:[#allocation12 + $0x1] ss:$8 sm:$0xf] }
 0xa6b   :  { %9818 = vmatprep.subr.bf16.mxu1 %v12488_v33  ;;  %v6596_v11 = vrot.slane %v13244_v4, %v13119_v0  ;;  %v6600_v12 = vrot.slane %v13244_v4, %v13107_v39  ;;  %v6608_v14 = vrot.slane %v13244_v4, %v13122_v2  ;;  %v12601_v2 = vld [vmem:[#allocation11 + $0x280] ss:$8 sps:$4 sm:$0xff]  }
 0xa6c   :  { %v12587_v20 = vld [vmem:[#allocation11 + $0x1e0] ss:$8 sps:$4 sm:$0xff]  }
 0xa6d   :  { %9491 = vmatpush1.bf16.msra.mxu0 %v12483_v19 }
 0xa6e   :  { %9819 = vmatpush1.bf16.msra.mxu1 %v12486_v59  ;;  %10234 = vmatprep.subr.bf16.mxu0 %v12491_v46 }
 0xa6f   :  { %11377 = vmatprep.subr.bf16.mxu1 %v12796_v58 }
 0xa70   :  { %9493 = vmatmul.mubr.bf16.vlgmr.msra.gmra.mrb[16].mxu0 %v6076_v22 }
 0xa71   :  { %9821 = vmatmul.mubr.bf16.vlgmr.msra.gmra.mrb[16].mxu1 %v6076_v22  ;;  %10235 = vmatpush1.bf16.msra.mxu0 %v12489_v17 }
 0xa72   :  { %10236 = vmatprep.subr.bf16.mxu0 %v12494_v53  ;;  %11378 = vmatpush3.bf16.msra.mxu1 %v12540_v60  ;;  %v12599_v53 = vld [vmem:[#allocation11 + $0x3e0] ss:$8 sps:$4 sm:$0xff]  }
 0xa73   :  { %11379 = vmatprep.subr.bf16.mxu1 %v12796_v58  ;;  %11393 = vmatprep.mubr.msk.bf16.mxu1 %vm12797_vm1, %v12796_v58  ;;  %v12575_v60 = vld [vmem:[#allocation11 + $0x1a0] ss:$8 sps:$4 sm:$0xff]  }
 0xa75   :  { %10237 = vmatpush1.bf16.msra.mxu0 %v12492_v3 }
 0xa76   :  { %10238 = vmatprep.subr.bf16.mxu0 %v12497_v35  ;;  %11380 = vmatpush3.bf16.msra.mxu1 %v12544_v25  ;;  %v12580_v25 = vld [vmem:[#allocation11 + $0x1b4] ss:$8 sps:$4 sm:$0xff]  }
 0xa77   :  { %11381 = vmatprep.subr.bf16.mxu1 %v12796_v58 }
 0xa79   :  { %10239 = vmatpush1.bf16.msra.mxu0 %v12495_v44 }
 0xa7a   :  { %10240 = vmatprep.subr.bf16.mxu0 %v12500_v29  ;;  %11382 = vmatpush3.bf16.msra.mxu1 %v12548_v30  ;;  %v12578_v30 = vld [vmem:[#allocation11 + $0x1b0] ss:$8 sps:$4 sm:$0xff]  }
 0xa7b   :  { %11383 = vmatprep.subr.bf16.mxu1 %v12796_v58 }
 0xa7d   :  { %10241 = vmatpush1.bf16.msra.mxu0 %v12498_v40 }
 0xa7e   :  { %10242 = vmatprep.subr.bf16.mxu0 %v12503_v27  ;;  %11384 = vmatpush3.bf16.msra.mxu1 %v12552_v61  ;;  %v12583_v61 = vld [vmem:[#allocation11 + $0x1c4] ss:$8 sps:$4 sm:$0xff]  }
 0xa7f   :  { %11385 = vmatprep.subr.bf16.mxu1 %v12796_v58 }
 0xa81   :  { %10243 = vmatpush1.bf16.msra.mxu0 %v12501_v32  ;;  %v12600_v32 = vld [vmem:[#allocation11 + $0x3f0] ss:$8 sps:$4 sm:$0xff]  }
 0xa82   :  { %10244 = vmatprep.subr.bf16.mxu0 %v12506_v31  ;;  %11386 = vmatpush3.bf16.msra.mxu1 %v12556_v10  ;;  %v12581_v10 = vld [vmem:[#allocation11 + $0x1c0] ss:$8 sps:$4 sm:$0xff]  }
 0xa83   :  { %11387 = vmatprep.subr.bf16.mxu1 %v12796_v58 }
 0xa85   :  { %10245 = vmatpush1.bf16.msra.mxu0 %v12504_v34 }
 0xa86   :  { %10246 = vmatprep.subr.bf16.mxu0 %v12509_v24  ;;  %11388 = vmatpush3.bf16.msra.mxu1 %v12560_v23  ;;  %v12537_v24 = vld [vmem:[#allocation11 + $0x100] ss:$8 sps:$4 sm:$0xff]   ;;  %v12586_v23 = vld [vmem:[#allocation11 + $0x1d4] ss:$8 sps:$4 sm:$0xff]  }
 0xa87   :  { %11389 = vmatprep.subr.bf16.mxu1 %v12796_v58 }
 0xa89   :  { %10247 = vmatpush1.bf16.msra.mxu0 %v12507_v26 }
 0xa8a   :  { %10248 = vmatprep.subr.bf16.mxu0 %v12512_v42  ;;  %11390 = vmatpush3.bf16.msra.mxu1 %v12564_v6  ;;  %v12543_v42 = vld [vmem:[#allocation11 + $0x114] ss:$8 sps:$4 sm:$0xff]   ;;  %v6604_v6 = vrot.slane %v13244_v4, %v13135_v43 }
 0xa8b   :  { %11391 = vmatprep.subr.bf16.mxu1 %v12796_v58 }
 0xa8d   :  { %10249 = vmatpush1.bf16.msra.mxu0 %v12510_v7 }
 0xa8e   :  { %10250 = vmatprep.subr.bf16.mxu0 %v12515_v36  ;;  %11392 = vmatpush3.bf16.msra.mxu1 %v12568_v1  ;;  %v12541_v36 = vld [vmem:[#allocation11 + $0x110] ss:$8 sps:$4 sm:$0xff]   ;;  %v12589_v1 = vld [vmem:[#allocation11 + $0x1e4] ss:$8 sps:$4 sm:$0xff]  }
 0xa8f   :  { %11397 = vmatprep.subr.bf16.mxu1 %v12796_v58 }
 0xa91   :  { %10251 = vmatpush1.bf16.msra.mxu0 %v12513_v37  ;;  %11394 = vmatmul.mubr.bf16.vlgmr.msra.gmra.mrb[20].mxu1 %v138_v5  ;;  %v12547_v37 = vld [vmem:[#allocation11 + $0x124] ss:$8 sps:$4 sm:$0xff]  }
 0xa92   :  { %10252 = vmatprep.subr.bf16.mxu0 %v12518_v38  ;;  %11413 = vmatprep.mubr.msk.bf16.mxu1 %vm12797_vm1, %v12796_v58  ;;  %v12545_v38 = vld [vmem:[#allocation11 + $0x120] ss:$8 sps:$4 sm:$0xff]  }
 0xa93   :  { %11398 = vmatpush3.bf16.msra.mxu1 %v12593_v13  ;;  %v12592_v13 = vld [vmem:[#allocation11 + $0x1f4] ss:$8 sps:$4 sm:$0xff]  }
 0xa94   :  { %11399 = vmatprep.subr.bf16.mxu1 %v12796_v58 }
 0xa95   :  { %10253 = vmatpush1.bf16.msra.mxu0 %v12516_v21  ;;  %v12551_v21 = vld [vmem:[#allocation11 + $0x134] ss:$8 sps:$4 sm:$0xff]  }
 0xa96   :  { %10254 = vmatprep.subr.bf16.mxu0 %v12521_v48  ;;  %v12549_v48 = vld [vmem:[#allocation11 + $0x130] ss:$8 sps:$4 sm:$0xff]  }
 0xa97   :  { %11400 = vmatpush3.bf16.msra.mxu1 %v12594_v8  ;;  %v12590_v8 = vld [vmem:[#allocation11 + $0x1f0] ss:$8 sps:$4 sm:$0xff]  }
 0xa98   :  { %11401 = vmatprep.subr.bf16.mxu1 %v12796_v58 }
 0xa99   :  { %10255 = vmatpush1.bf16.msra.mxu0 %v12519_v41  ;;  %v12555_v41 = vld [vmem:[#allocation11 + $0x144] ss:$8 sps:$4 sm:$0xff]  }
 0xa9a   :  { %10256 = vmatprep.subr.bf16.mxu0 %v12524_v49  ;;  %v12553_v49 = vld [vmem:[#allocation11 + $0x140] ss:$8 sps:$4 sm:$0xff]  }
 0xa9b   :  { %11402 = vmatpush3.bf16.msra.mxu1 %v12595_v16 }
 0xa9c   :  { %11403 = vmatprep.subr.bf16.mxu1 %v12796_v58 }
 0xa9d   :  { %10257 = vmatpush1.bf16.msra.mxu0 %v12522_v47  ;;  %v12559_v47 = vld [vmem:[#allocation11 + $0x154] ss:$8 sps:$4 sm:$0xff]  }
 0xa9e   :  { %10258 = vmatprep.subr.bf16.mxu0 %v12527_v51  ;;  %v12557_v51 = vld [vmem:[#allocation11 + $0x150] ss:$8 sps:$4 sm:$0xff]  }
 0xa9f   :  { %11404 = vmatpush3.bf16.msra.mxu1 %v12596_v28 }
 0xaa0   :  { %11405 = vmatprep.subr.bf16.mxu1 %v12796_v58 }
 0xaa1   :  { %10259 = vmatpush1.bf16.msra.mxu0 %v12525_v50  ;;  %v12563_v50 = vld [vmem:[#allocation11 + $0x164] ss:$8 sps:$4 sm:$0xff]  }
 0xaa2   :  { %10260 = vmatprep.subr.bf16.mxu0 %v12530_v18  ;;  %v12561_v18 = vld [vmem:[#allocation11 + $0x160] ss:$8 sps:$4 sm:$0xff]  }
 0xaa3   :  { %11406 = vmatpush3.bf16.msra.mxu1 %v12597_v9  ;;  %v10368_v9 = vld [vmem:[#allocation12 + $0x3] ss:$0 sm:$0xff] }
 0xaa4   :  { %11407 = vmatprep.subr.bf16.mxu1 %v12796_v58 }
 0xaa5   :  { %10261 = vmatpush1.bf16.msra.mxu0 %v12528_v52  ;;  %v12567_v52 = vld [vmem:[#allocation11 + $0x174] ss:$8 sps:$4 sm:$0xff]  }
 0xaa6   :  { %10262 = vmatprep.subr.bf16.mxu0 %v12533_v54  ;;  %v12565_v54 = vld [vmem:[#allocation11 + $0x170] ss:$8 sps:$4 sm:$0xff]  }
 0xaa7   :  { %11408 = vmatpush3.bf16.msra.mxu1 %v12598_v45 }
 0xaa8   :  { %11409 = vmatprep.subr.bf16.mxu1 %v12796_v58 }
 0xaa9   :  { %10263 = vmatpush1.bf16.msra.mxu0 %v12531_v55  ;;  %v12571_v55 = vld [vmem:[#allocation11 + $0x184] ss:$8 sps:$4 sm:$0xff]  }
 0xaaa   :  { %10264 = vmatprep.subr.bf16.mxu0 %v12536_v56  ;;  %v12569_v56 = vld [vmem:[#allocation11 + $0x180] ss:$8 sps:$4 sm:$0xff]  }
 0xaab   :  { %11410 = vmatpush3.bf16.msra.mxu1 %v12599_v53  ;;  %v12608_v53 = vld [vmem:[#allocation11 + $0x230] ss:$8 sps:$4 sm:$0xff]  }
 0xaac   :  { %11411 = vmatprep.subr.bf16.mxu1 %v12796_v58  ;;  %v12577_v58 = vld [vmem:[#allocation11 + $0x1a4] ss:$8 sps:$4 sm:$0xff]  }
 0xaad   :  { %10265 = vmatpush1.bf16.msra.mxu0 %v12534_v57  ;;  %v12574_v57 = vld [vmem:[#allocation11 + $0x194] ss:$8 sps:$4 sm:$0xff]  }
 0xaae   :  { %10275 = vmatprep.subr.bf16.mxu0 %v12539_v62  ;;  %v12572_v62 = vld [vmem:[#allocation11 + $0x190] ss:$8 sps:$4 sm:$0xff]  }
 0xaaf   :  { %11412 = vmatpush3.bf16.msra.mxu1 %v12600_v32  ;;  %v12615_v32 = vld [vmem:[#allocation11 + $0x2f0] ss:$8 sps:$4 sm:$0xff]  }
 0xab0   :  { %11355 = vmatprep.subr.bf16.mxu1 %v12601_v2  ;;  %v9902_v2 = vld [vmem:[#allocation12 + $0x2] ss:$8 sm:$0x3] }
 0xb43   :  { %v9494_v33 = vpop.f32.mrb[16].mxu0 }
 0xb44   :  { %v11417_v19 = vadd.f32 %v9494_v33, %v6596_v11  ;;  %v13252_v15 = vpop.f32.mrb[16].mxu1  ;;  %v9496_v59 = vpop.f32.mrb[17].mxu0  ;;  %v12602_v33 = vld [vmem:[#allocation11 + $0x200] ss:$8 sps:$4 sm:$0xff]  }
 0xb45   :  { %v11418_v46 = vadd.f32 %v9496_v59, %v6600_v12  ;;  %v9824_v17 = vpop.f32.mrb[17].mxu1  ;;  %v9498_v22 = vpop.f32.mrb[18].mxu0  ;;  %v11419_v5 = vadd.f32 %v13252_v15, %v6604_v6  ;;  %v12603_v59 = vld [vmem:[#allocation11 + $0x290] ss:$8 sps:$4 sm:$0xff]  }
 0xb46   :  { %v9829_v3 = vmax.f32 %v11417_v19, 0.0  ;;  %v11420_v35 = vadd.f32 %v9824_v17, %v6608_v14  ;;  %v9826_v44 = vpop.f32.mrb[18].mxu1  ;;  %v9499_v29 = vpop.f32.mrb[19].mxu0  ;;  %v12604_v15 = vld [vmem:[#allocation11 + $0x210] ss:$8 sps:$4 sm:$0xff]  }
 0xb47   :  { %v9830_v40 = vmax.f32 %v11418_v46, 0.0  ;;  %v9827_v27 = vpop.f32.mrb[19].mxu1  ;;  %v9831_v16 = vmax.f32 %v11419_v5, 0.0  ;;  %v12605_v46 = vld [vmem:[#allocation11 + $0x2a0] ss:$8 sps:$4 sm:$0xff]  }
 0xb48   :  { %v9832_v31 = vmax.f32 %v11420_v35, 0.0  ;;  %v9833_v26 = vpack.c.bf16 %v9829_v3, %v9829_v3  ;;  %v12606_v17 = vld [vmem:[#allocation11 + $0x220] ss:$8 sps:$4 sm:$0xff]   ;;  %v12607_v22 = vld [vmem:[#allocation11 + $0x2b0] ss:$8 sps:$4 sm:$0xff]  }
 0xb49   :  { %v9834_v34 = vpack.c.bf16 %v9830_v40, %v9830_v40  ;;  %v9835_v28 = vpack.c.bf16 %v9831_v16, %v9831_v16  ;;  %v12609_v3 = vld [vmem:[#allocation11 + $0x2c0] ss:$8 sps:$4 sm:$0xff]   ;;  %v12611_v44 = vld [vmem:[#allocation11 + $0x2d0] ss:$8 sps:$4 sm:$0xff]  }
 0xb4a   :  { %v9836_v7 = vpack.c.bf16 %v9832_v31, %v9832_v31  ;;  %v12610_v35 = vld [vmem:[#allocation11 + $0x240] ss:$8 sps:$4 sm:$0xff]   ;;  %v12612_v29 = vld [vmem:[#allocation11 + $0x250] ss:$8 sps:$4 sm:$0xff]  }
 0xb4b   :  { %10266 = vmatprep.mubr.bf16.mxu0 %v9834_v34  ;;  %v12613_v40 = vld [vmem:[#allocation11 + $0x2e0] ss:$8 sps:$4 sm:$0xff]   ;;  %v12616_v31 = vld [vmem:[#allocation11 + $0x270] ss:$8 sps:$4 sm:$0xff]   ;;  %v9907_v34 = vrot.slane %v9902_v2, %v13119_v0 }
 0xb4c   :  { %10267 = vmatmul.mubr.bf16.vlgmr.msra.gmra.mrb[20].mxu0 %v9833_v26  ;;  %v12614_v27 = vld [vmem:[#allocation11 + $0x260] ss:$8 sps:$4 sm:$0xff]  }
 0xb4d   :  { %10276 = vmatpush1.bf16.msra.mxu0 %v12537_v24  ;;  %10307 = vmatprep.mubr.bf16.mxu0 %v9836_v7  ;;  %v9911_v24 = vrot.slane %v9902_v2, %v13107_v39 }
 0xb4e   :  { %10277 = vmatprep.subr.bf16.mxu0 %v12543_v42 }
 0xb51   :  { %10278 = vmatpush1.bf16.msra.mxu0 %v12541_v36 }
 0xb52   :  { %10279 = vmatprep.subr.bf16.mxu0 %v12547_v37 }
 0xb55   :  { %10280 = vmatpush1.bf16.msra.mxu0 %v12545_v38 }
 0xb56   :  { %10281 = vmatprep.subr.bf16.mxu0 %v12551_v21 }
 0xb59   :  { %10282 = vmatpush1.bf16.msra.mxu0 %v12549_v48 }
 0xb5a   :  { %10283 = vmatprep.subr.bf16.mxu0 %v12555_v41 }
 0xb5d   :  { %10284 = vmatpush1.bf16.msra.mxu0 %v12553_v49 }
 0xb5e   :  { %10285 = vmatprep.subr.bf16.mxu0 %v12559_v47 }
 0xb61   :  { %10286 = vmatpush1.bf16.msra.mxu0 %v12557_v51 }
 0xb62   :  { %10287 = vmatprep.subr.bf16.mxu0 %v12563_v50 }
 0xb64   :  { %v10451_v45 = vpop.f32.mrb[20].mxu1 }
 0xb65   :  { %10288 = vmatpush1.bf16.msra.mxu0 %v12561_v18  ;;  %v10452_v11 = vadd.f32 %v10451_v45, %v10368_v9  ;;  %v11395_v12 = vpop.f32.mrb[21].mxu1 }
 0xb66   :  { %10289 = vmatprep.subr.bf16.mxu0 %v12567_v52  ;;  %v10454_v43 = vpop.f32.mrb[22].mxu1 }
 0xb67   :  { %v10457_v4 = vmax.f32 %v10452_v11, 0.0  ;;  %v11396_v14 = vpop.f32.mrb[23].mxu1 }
 0xb69   :  { %10290 = vmatpush1.bf16.msra.mxu0 %v12565_v54  ;;  %v10458_v19 = vpack.c.bf16 %v10457_v4, %v10457_v4 }
 0xb6a   :  { %10291 = vmatprep.subr.bf16.mxu0 %v12571_v55  ;;  %v10699_v55 = vld [vmem:[#allocation12 + $0x4] ss:$0 sm:$0xff] }
 0xb6b   :  { %11414 = vmatmul.mubr.bf16.vlgmr.msra.gmra.mrb[24].mxu1 %v10458_v19 }
 0xb6c   :  { %11356 = vmatpush3.bf16.msra.mxu1 %v12602_v33 }
 0xb6d   :  { %10292 = vmatpush1.bf16.msra.mxu0 %v12569_v56  ;;  %11357 = vmatprep.subr.bf16.mxu1 %v12603_v59 }
 0xb6e   :  { %10293 = vmatprep.subr.bf16.mxu0 %v12574_v57 }
 0xb70   :  { %11358 = vmatpush3.bf16.msra.mxu1 %v12604_v15 }
 0xb71   :  { %10294 = vmatpush1.bf16.msra.mxu0 %v12572_v62  ;;  %11359 = vmatprep.subr.bf16.mxu1 %v12605_v46 }
 0xb72   :  { %10295 = vmatprep.subr.bf16.mxu0 %v12577_v58 }
 0xb74   :  { %11360 = vmatpush3.bf16.msra.mxu1 %v12606_v17 }
 0xb75   :  { %10296 = vmatpush1.bf16.msra.mxu0 %v12575_v60  ;;  %11361 = vmatprep.subr.bf16.mxu1 %v12607_v22 }
 0xb76   :  { %10297 = vmatprep.subr.bf16.mxu0 %v12580_v25 }
 0xb78   :  { %11362 = vmatpush3.bf16.msra.mxu1 %v12608_v53 }
 0xb79   :  { %10298 = vmatpush1.bf16.msra.mxu0 %v12578_v30  ;;  %11363 = vmatprep.subr.bf16.mxu1 %v12609_v3 }
 0xb7a   :  { %10299 = vmatprep.subr.bf16.mxu0 %v12583_v61 }
 0xb7c   :  { %11364 = vmatpush3.bf16.msra.mxu1 %v12610_v35 }
 0xb7d   :  { %10300 = vmatpush1.bf16.msra.mxu0 %v12581_v10  ;;  %11365 = vmatprep.subr.bf16.mxu1 %v12611_v44 }
 0xb7e   :  { %10301 = vmatprep.subr.bf16.mxu0 %v12586_v23 }
 0xb80   :  { %11366 = vmatpush3.bf16.msra.mxu1 %v12612_v29 }
 0xb81   :  { %10302 = vmatpush1.bf16.msra.mxu0 %v12584_v63  ;;  %11367 = vmatprep.subr.bf16.mxu1 %v12613_v40 }
 0xb82   :  { %10303 = vmatprep.subr.bf16.mxu0 %v12589_v1 }
 0xb84   :  { %11368 = vmatpush3.bf16.msra.mxu1 %v12614_v27 }
 0xb85   :  { %10304 = vmatpush1.bf16.msra.mxu0 %v12587_v20  ;;  %11369 = vmatprep.subr.bf16.mxu1 %v12615_v32 }
 0xb86   :  { %10305 = vmatprep.subr.bf16.mxu0 %v12592_v13 }
 0xb88   :  { %11370 = vmatpush3.bf16.msra.mxu1 %v12616_v31 }
 0xb89   :  { %10306 = vmatpush1.bf16.msra.mxu0 %v12590_v8 }
 0xb8c   :  { %10308 = vmatmul.mubr.bf16.vlgmr.msra.gmra.mrb[20].mxu0 %v9835_v28 }
 0xc3e   :  { %v10557_v47 = vpop.f32.mrb[24].mxu1 }
 0xc3f   :  { %v11415_v51 = vpop.f32.mrb[25].mxu1 }
 0xc40   :  { %v10560_v50 = vpop.f32.mrb[26].mxu1 }
 0xc41   :  { %v11416_v18 = vpop.f32.mrb[27].mxu1 }
 0xc5f   :  { %v10309_v26 = vpop.f32.mrb[20].mxu0 }
 0xc60   :  { %v11421_v42 = vadd.f32 %v10309_v26, %v9907_v34  ;;  %v10311_v7 = vpop.f32.mrb[21].mxu0 }
 0xc61   :  { %v11422_v36 = vadd.f32 %v10311_v7, %v9911_v24  ;;  %v10313_v37 = vpop.f32.mrb[22].mxu0 }
 0xc62   :  { %v10316_v38 = vmax.f32 %v11421_v42, 0.0  ;;  %v10314_v21 = vpop.f32.mrb[23].mxu0 }
 0xc63   :  { %v10317_v48 = vmax.f32 %v11422_v36, 0.0 }
 0xc64   :  { %v10318_v49 = vpack.c.bf16 %v10316_v38, %v10316_v38 }
 0xc65   :  { %v10319_v41 = vpack.c.bf16 %v10317_v48, %v10317_v48 }
 0xc67   :  { %10691 = vmatprep.mubr.bf16.mxu1 %v10319_v41 }
 0xc68   :  { %10692 = vmatmul.mubr.bf16.vlgmr.msra.gmra.mrb[28].mxu1 %v10318_v49 }
 0xd3b   :  { %v11371_v52 = vpop.f32.mrb[28].mxu1 }
 0xd3c   :  { %v11372_v0 = vpop.f32.mrb[29].mxu1 }
 0xd3d   :  { %v11373_v54 = vadd.f32 %v11372_v0, %v11371_v52  ;;  %v11374_v39 = vpop.f32.mrb[30].mxu1 }
 0xd3e   :  { %v11375_v56 = vpop.f32.mrb[31].mxu1 }
 0xd3f   :  { %v10694_v57 = vadd.f32 %v11373_v54, %v10557_v47 }
 0xd41   :  { %v10700_v62 = vadd.f32 %v10699_v55, %v10694_v57 }
 0xd43   :  { %v10701_v58 = vand.u32 2147483647, %v10700_v62  ;;  %vm10705_vm2 = vcmp.ge.f32.partialorder %v10700_v62, 0.0 }
 0xd45   :  { %v10702_v60 = vsub.f32 0.0, %v10701_v58 }
 0xd47   :  { %v10703_v25 = vmul.f32 1.442695, %v10702_v60 }
 0xd49   :  { %12617 = vpow2.f32 %v10703_v25 }
 0xd53   :  { %v12618_v30 = vpop.eup %12617 }
 0xd54   :  { %v10707_v61 = vadd.f32 1.0, %v12618_v30  ;;  %v10706_v23 = vsel %vm10705_vm2, 1.0, %v12618_v30 }
 0xd56   :  { %12619 = vrcp.f32 %v10707_v61 }
 0xd60   :  { %v12620_v10 = vpop.eup %12619 }
 0xd61   :  { %v10709_v63 = vmul.f32 %v12620_v10, %v10706_v23 }
 0xd63   :  { %10710 = vst [vmem:[#allocation14] sm:$0xff] %v10709_v63 }
 0xd64   :  { %12764 = shalt.err (!%p12761_p10)
}
 0xd65   :  { %s12765_s21 = scalar_lea.hbm %s13278_s6, 128 }
 0xd66   :  { %p12766_p11 = scmp.ne.s32.totalorder %s13278_s6, %s12765_s21  ;;  %p12769_p12 = scmp.lt.u32.totalorder %s12765_s21, %s13278_s6 }
 0xd68   :  { %p12771_p13 = pnand %p12769_p12, %p12766_p11 }
 0xd6a   :  { %12774 = shalt.err (!%p12771_p13)
}
 0xd6b   :  { %10720 = dma.vmem_to_hbm [thread:$0]  %s10718_s0, 128, %s13278_s6, [#allocation5]  }
 0xd6c   :  { %12783 = dma.done.wait [#allocation5], 128  }
 0xd6d   :  { %12784 = vsyncadd [#allocation5], 4294967168 }
 0xd6e   :  { %10724 = vsyncpa [#allocation4], 1 }
 0xd6f   :  { %10725 = vsyncpa [#allocation7], 1 }
 0xd70   :  { %10726 = vsyncpa [#allocation10], 1 }
 0xd71   :  { %10727 = vsyncpa [#allocation13], 1 }
 0xd72   :  { %10728 = vsyncpa [#allocation5], 1 }

</bundles_post_ra>
